<compile_context>
chip_gen: v6e
topology: v6e:2x2x1
jax: 0.10.0
libtpu: 0.0.40
codegen_flags: <defaults>
</compile_context>

<pallas_src>
import functools

import jax
import jax.numpy as jnp
from jax.experimental import pallas as pl
from jax.experimental.pallas import tpu as pltpu


D_IN = 1024            # conv1 input channels
D_H1 = 1024            # conv1 output
D_H2 = 512             # conv2 output
D_CAT = D_H2 + D_IN    # 1536 (concat of conv2 output and the raw input)
D_H3 = 1024            # conv3 output
D_OUT = 512            # conv4 output
D_FUSED = D_H1 + D_H3  # 2048: conv1 weight and the skip-path weight, fused

_SMALL_BATCH_MAX = 256   # at/below this the kernel is weight-DMA bound
_LARGE_TILE = 512        # row tile for the compute-bound path


def _round_up(x, m):
    return (x + m - 1) // m * m


# ---------------------------------------------------------------------------
# Latency path (B <= 256): one grid step; weights live in HBM (pl.ANY) and are
# streamed with manual DMA so layer k+1's weight copy overlaps layer k's matmul.
# ---------------------------------------------------------------------------

def _ft_streaming_kernel(f_ref, w13_hbm, w2_hbm, w3x_hbm, w4_hbm,
                         b1_ref, b2_ref, b3_ref, b4_ref,
                         o_ref,
                         w13_v, w2_v, w3x_v, w4_v, sem):
    # Kick off every weight DMA up front; wait right before each use.
    c13 = pltpu.make_async_copy(w13_hbm, w13_v, sem.at[0]); c13.start()
    c2 = pltpu.make_async_copy(w2_hbm, w2_v, sem.at[1]); c2.start()
    c3 = pltpu.make_async_copy(w3x_hbm, w3x_v, sem.at[2]); c3.start()
    c4 = pltpu.make_async_copy(w4_hbm, w4_v, sem.at[3]); c4.start()

    f = f_ref[...]                                               # (tm, 1024) bf16

    c13.wait()
    # Fused conv1 + skip-path matmul: columns [:1024] are f@W1, [1024:] f@W3f.
    t = jnp.dot(f, w13_v[...], preferred_element_type=jnp.float32)  # (tm, 2048)
    h = jnp.maximum(t[:, :D_H1] + b1_ref[...], 0.0)              # relu(conv1)
    skip = t[:, D_H1:]                                           # f @ W3[512:]

    c2.wait()
    h = jnp.maximum(                                             # relu(conv2)
        jnp.dot(h.astype(jnp.bfloat16), w2_v[...],
                preferred_element_type=jnp.float32) + b2_ref[...], 0.0)

    c3.wait()
    h = jnp.maximum(                                             # relu(conv3)
        jnp.dot(h.astype(jnp.bfloat16), w3x_v[...],
                preferred_element_type=jnp.float32) + skip + b3_ref[...], 0.0)

    c4.wait()
    o_ref[...] = (jnp.dot(h.astype(jnp.bfloat16), w4_v[...],     # conv4 (linear)
                          preferred_element_type=jnp.float32) + b4_ref[...])


def _forward_streaming(x, prep, b):
    bp = _round_up(b, 8)
    if bp != b:
        x = jnp.pad(x, ((0, bp - b), (0, 0)))

    biases = (prep["b1"], prep["b2"], prep["b3"], prep["b4"])

    return pl.pallas_call(
        _ft_streaming_kernel,
        out_shape=jax.ShapeDtypeStruct((bp, D_OUT), jnp.float32),
        grid=(1,),
        in_specs=(
            [pl.BlockSpec((bp, D_IN), lambda i: (0, 0))]
            + [pl.BlockSpec(memory_space=pl.ANY)] * 4          # weights stay in HBM
            + [pl.BlockSpec(bb.shape, lambda i: (0, 0)) for bb in biases]
        ),
        out_specs=pl.BlockSpec((bp, D_OUT), lambda i: (0, 0)),
        scratch_shapes=[
            pltpu.VMEM((D_IN, D_FUSED), jnp.bfloat16),   # w13  (1024, 2048)
            pltpu.VMEM((D_H1, D_H2), jnp.bfloat16),      # w2   (1024, 512)
            pltpu.VMEM((D_H2, D_H3), jnp.bfloat16),      # w3x  (512, 1024)
            pltpu.VMEM((D_H3, D_OUT), jnp.bfloat16),     # w4   (1024, 512)
            pltpu.SemaphoreType.DMA((4,)),
        ],
        compiler_params=pltpu.CompilerParams(
            dimension_semantics=("arbitrary",),
            vmem_limit_bytes=24 * 1024 * 1024,
        ),
    )(x, prep["w13"], prep["w2"], prep["w3x"], prep["w4"], *biases)


# ---------------------------------------------------------------------------
# Throughput path (B > 256): BlockSpec-pipelined row tiles, weights resident.
# ---------------------------------------------------------------------------

def _ft_tiled_kernel(f_ref, w13_ref, b1_ref, w2_ref, b2_ref,
                     w3x_ref, b3_ref, w4_ref, b4_ref, o_ref):
    f = f_ref[...]                                               # (tm, 1024) bf16

    t = jnp.dot(f, w13_ref[...], preferred_element_type=jnp.float32)  # (tm, 2048)
    h = jnp.maximum(t[:, :D_H1] + b1_ref[...], 0.0)              # relu(conv1)
    skip = t[:, D_H1:]                                           # f @ W3[512:]

    h = jnp.maximum(                                             # relu(conv2)
        jnp.dot(h.astype(jnp.bfloat16), w2_ref[...],
                preferred_element_type=jnp.float32) + b2_ref[...], 0.0)

    h = jnp.maximum(                                             # relu(conv3)
        jnp.dot(h.astype(jnp.bfloat16), w3x_ref[...],
                preferred_element_type=jnp.float32) + skip + b3_ref[...], 0.0)

    o_ref[...] = (jnp.dot(h.astype(jnp.bfloat16), w4_ref[...],   # conv4 (linear)
                          preferred_element_type=jnp.float32) + b4_ref[...])


def _forward_tiled(x, prep, b):
    if b >= 2 * _LARGE_TILE:
        tm = _LARGE_TILE
    else:
        # Exactly 2 grid steps so both v7x TensorCores get a row block.
        tm = _round_up(-(-b // 2), 8)
    bp = _round_up(b, tm)
    if bp != b:
        x = jnp.pad(x, ((0, bp - b), (0, 0)))

    consts = (prep["w13"], prep["b1"], prep["w2"], prep["b2"],
              prep["w3x"], prep["b3"], prep["w4"], prep["b4"])
    # Static operands: constant index_map + single buffering (fetched once).
    const_specs = [
        pl.BlockSpec(c.shape, lambda i: (0, 0), pipeline_mode=pl.Buffered(1))
        for c in consts
    ]

    return pl.pallas_call(
        _ft_tiled_kernel,
        out_shape=jax.ShapeDtypeStruct((bp, D_OUT), jnp.float32),
        grid=(bp // tm,),
        in_specs=[pl.BlockSpec((tm, D_IN), lambda i: (i, 0))] + const_specs,
        out_specs=pl.BlockSpec((tm, D_OUT), lambda i: (i, 0)),
        compiler_params=pltpu.CompilerParams(
            dimension_semantics=("parallel",),
            vmem_limit_bytes=34 * 1024 * 1024,
        ),
    )(x, *consts)


# ---------------------------------------------------------------------------
# Public wrapper + offline weight prep
# ---------------------------------------------------------------------------

def prepare_params(params):
    """Fold the concat / fuse W1 with W3's skip half, cast weights to bf16."""
    w3 = params["w3"]                                            # (1536, 1024)
    w13 = jnp.concatenate([params["w1"], w3[D_H2:]], axis=1)     # (1024, 2048)
    return dict(
        w13=w13.astype(jnp.bfloat16),
        w2=params["w2"].astype(jnp.bfloat16),                    # (1024, 512)
        w3x=w3[:D_H2].astype(jnp.bfloat16),                      # (512, 1024)
        w4=params["w4"].astype(jnp.bfloat16),                    # (1024, 512)
        b1=params["b1"].reshape(1, D_H1).astype(jnp.float32),
        b2=params["b2"].reshape(1, D_H2).astype(jnp.float32),
        b3=params["b3"].reshape(1, D_H3).astype(jnp.float32),
        b4=params["b4"].reshape(1, D_OUT).astype(jnp.float32),
    )


def feature_transform(feature, prep):
    """feature: (B, 1024, 1) -> (B, 512, 1), matches Feature_transfrom.forward."""
    b = feature.shape[0]
    x = feature[:, :, 0].astype(jnp.bfloat16)                    # (B, 1024) bf16
    if b <= _SMALL_BATCH_MAX:
        out = _forward_streaming(x, prep, b)
    else:
        out = _forward_tiled(x, prep, b)
    return out[:b, :, None]                                      # (B, 512, 1) f32


# ---------------------------------------------------------------------------
# Plain-JAX f32 reference (same math as the PyTorch module) + deterministic init
# ---------------------------------------------------------------------------

def feature_transform_ref(feature, params):
    f = feature[:, :, 0].astype(jnp.float32)
    h1 = jax.nn.relu(f @ params["w1"] + params["b1"])
    h2 = jax.nn.relu(h1 @ params["w2"] + params["b2"])
    cat = jnp.concatenate([h2, f], axis=1)
    h3 = jax.nn.relu(cat @ params["w3"] + params["b3"])
    out = h3 @ params["w4"] + params["b4"]
    return out[:, :, None]


def init_params(key):
    """PyTorch Conv1d default init: U(-1/sqrt(fan_in), 1/sqrt(fan_in))."""
    def conv_init(k, cin, cout):
        kw, kb = jax.random.split(k)
        bound = 1.0 / (cin ** 0.5)
        w = jax.random.uniform(kw, (cin, cout), jnp.float32, -bound, bound)
        bb = jax.random.uniform(kb, (cout,), jnp.float32, -bound, bound)
        return w, bb

    k1, k2, k3, k4 = jax.random.split(key, 4)
    w1, b1 = conv_init(k1, D_IN, D_H1)
    w2, b2 = conv_init(k2, D_H1, D_H2)
    w3, b3 = conv_init(k3, D_CAT, D_H3)
    w4, b4 = conv_init(k4, D_H3, D_OUT)
    return dict(w1=w1, b1=b1, w2=w2, b2=b2, w3=w3, b3=b3, w4=w4, b4=b4)


if __name__ == "__main__":
    key = jax.random.PRNGKey(0)
    kf, kp = jax.random.split(key)
    params = init_params(kp)
    prep = prepare_params(params)

    fwd = jax.jit(functools.partial(feature_transform, prep=prep))

    # --- Latency (weight-streaming) path: B = 2 ---
    b_small = 2
    feat_small = jax.random.normal(kf, (b_small, D_IN, 1), jnp.float32)
    out_small = jax.block_until_ready(fwd(feat_small))
    assert out_small.shape == (b_small, D_OUT, 1), out_small.shape
    assert bool(jnp.all(jnp.isfinite(out_small)))
    ref_small = feature_transform_ref(feat_small, params)
    err_small = float(jnp.max(jnp.abs(out_small - ref_small)))
    assert err_small < 2.5e-2, f"streaming path max abs err vs reference: {err_small}"

    # --- Tiled (BlockSpec-pipelined, 2 parallel grid steps) path: B = 300 ---
    b_big = 300
    feat_big = jax.random.normal(jax.random.PRNGKey(2), (b_big, D_IN, 1),
                                 jnp.float32)
    out_big = jax.block_until_ready(fwd(feat_big))
    assert out_big.shape == (b_big, D_OUT, 1), out_big.shape
    assert bool(jnp.all(jnp.isfinite(out_big)))
    ref_big = feature_transform_ref(feat_big, params)
    err_big = float(jnp.max(jnp.abs(out_big - ref_big)))
    assert err_big < 2.5e-2, f"tiled path max abs err vs reference: {err_big}"

    print("KERNEL_OK")
</pallas_src>

<mosaic_0001>
module attributes {stable_mosaic.version = 11 : i64} {
  func.func @_ft_streaming_kernel(%arg0: i32, %arg1: memref<8x1024xbf16, #tpu.memory_space<vmem>>, %arg2: memref<1024x2048xbf16, #tpu.memory_space<any>>, %arg3: memref<1024x512xbf16, #tpu.memory_space<any>>, %arg4: memref<512x1024xbf16, #tpu.memory_space<any>>, %arg5: memref<1024x512xbf16, #tpu.memory_space<any>>, %arg6: memref<1x1024xf32, #tpu.memory_space<vmem>>, %arg7: memref<1x512xf32, #tpu.memory_space<vmem>>, %arg8: memref<1x1024xf32, #tpu.memory_space<vmem>>, %arg9: memref<1x512xf32, #tpu.memory_space<vmem>>, %arg10: memref<8x512xf32, #tpu.memory_space<vmem>>, %arg11: memref<1024x2048xbf16, #tpu.memory_space<vmem>>, %arg12: memref<1024x512xbf16, #tpu.memory_space<vmem>>, %arg13: memref<512x1024xbf16, #tpu.memory_space<vmem>>, %arg14: memref<1024x512xbf16, #tpu.memory_space<vmem>>, %arg15: memref<4x!tpu.dma_semaphore, #tpu.memory_space<semaphore_mem>>) attributes {dimension_semantics = [#tpu.dimension_semantics<arbitrary>], iteration_bounds = array<i64: 1>, scalar_prefetch = 0 : i64, scratch_operands = 5 : i64, tpu.core_type = #tpu.core_type<tc>, window_params = [{pipeline_mode = #tpu.pipeline_mode<synchronous>, transform_indices = @transform_0, window_bounds = array<i64: 8, 1024>}, {}, {}, {}, {}, {pipeline_mode = #tpu.pipeline_mode<synchronous>, transform_indices = @transform_5, window_bounds = array<i64: 1, 1024>}, {pipeline_mode = #tpu.pipeline_mode<synchronous>, transform_indices = @transform_6, window_bounds = array<i64: 1, 512>}, {pipeline_mode = #tpu.pipeline_mode<synchronous>, transform_indices = @transform_7, window_bounds = array<i64: 1, 1024>}, {pipeline_mode = #tpu.pipeline_mode<synchronous>, transform_indices = @transform_8, window_bounds = array<i64: 1, 512>}, {pipeline_mode = #tpu.pipeline_mode<synchronous>, transform_indices = @transform_9, window_bounds = array<i64: 8, 512>}]} {
    %c0_i32 = arith.constant 0 : i32
    %0 = tpu.memref_slice %arg15[%c0_i32] : memref<4x!tpu.dma_semaphore, #tpu.memory_space<semaphore_mem>> -> memref<1x!tpu.dma_semaphore, #tpu.memory_space<semaphore_mem>>
    %1 = tpu.memref_squeeze %0 : memref<1x!tpu.dma_semaphore, #tpu.memory_space<semaphore_mem>> -> memref<!tpu.dma_semaphore, #tpu.memory_space<semaphore_mem>>
    tpu.enqueue_dma source(%arg2 : memref<1024x2048xbf16, #tpu.memory_space<any>>) target(%arg11 : memref<1024x2048xbf16, #tpu.memory_space<vmem>>) target_semaphore(%1 : memref<!tpu.dma_semaphore, #tpu.memory_space<semaphore_mem>>)
    %c1_i32 = arith.constant 1 : i32
    %2 = tpu.memref_slice %arg15[%c1_i32] : memref<4x!tpu.dma_semaphore, #tpu.memory_space<semaphore_mem>> -> memref<1x!tpu.dma_semaphore, #tpu.memory_space<semaphore_mem>>
    %3 = tpu.memref_squeeze %2 : memref<1x!tpu.dma_semaphore, #tpu.memory_space<semaphore_mem>> -> memref<!tpu.dma_semaphore, #tpu.memory_space<semaphore_mem>>
    tpu.enqueue_dma source(%arg3 : memref<1024x512xbf16, #tpu.memory_space<any>>) target(%arg12 : memref<1024x512xbf16, #tpu.memory_space<vmem>>) target_semaphore(%3 : memref<!tpu.dma_semaphore, #tpu.memory_space<semaphore_mem>>)
    %c2_i32 = arith.constant 2 : i32
    %4 = tpu.memref_slice %arg15[%c2_i32] : memref<4x!tpu.dma_semaphore, #tpu.memory_space<semaphore_mem>> -> memref<1x!tpu.dma_semaphore, #tpu.memory_space<semaphore_mem>>
    %5 = tpu.memref_squeeze %4 : memref<1x!tpu.dma_semaphore, #tpu.memory_space<semaphore_mem>> -> memref<!tpu.dma_semaphore, #tpu.memory_space<semaphore_mem>>
    tpu.enqueue_dma source(%arg4 : memref<512x1024xbf16, #tpu.memory_space<any>>) target(%arg13 : memref<512x1024xbf16, #tpu.memory_space<vmem>>) target_semaphore(%5 : memref<!tpu.dma_semaphore, #tpu.memory_space<semaphore_mem>>)
    %c3_i32 = arith.constant 3 : i32
    %6 = tpu.memref_slice %arg15[%c3_i32] : memref<4x!tpu.dma_semaphore, #tpu.memory_space<semaphore_mem>> -> memref<1x!tpu.dma_semaphore, #tpu.memory_space<semaphore_mem>>
    %7 = tpu.memref_squeeze %6 : memref<1x!tpu.dma_semaphore, #tpu.memory_space<semaphore_mem>> -> memref<!tpu.dma_semaphore, #tpu.memory_space<semaphore_mem>>
    tpu.enqueue_dma source(%arg5 : memref<1024x512xbf16, #tpu.memory_space<any>>) target(%arg14 : memref<1024x512xbf16, #tpu.memory_space<vmem>>) target_semaphore(%7 : memref<!tpu.dma_semaphore, #tpu.memory_space<semaphore_mem>>)
    %c0 = arith.constant 0 : index
    %c0_0 = arith.constant 0 : index
    %8 = vector.load %arg1[%c0, %c0_0] : memref<8x1024xbf16, #tpu.memory_space<vmem>>, vector<8x1024xbf16>
    %c0_i32_1 = arith.constant 0 : i32
    %9 = tpu.memref_slice %arg15[%c0_i32_1] : memref<4x!tpu.dma_semaphore, #tpu.memory_space<semaphore_mem>> -> memref<1x!tpu.dma_semaphore, #tpu.memory_space<semaphore_mem>>
    %10 = tpu.memref_squeeze %9 : memref<1x!tpu.dma_semaphore, #tpu.memory_space<semaphore_mem>> -> memref<!tpu.dma_semaphore, #tpu.memory_space<semaphore_mem>>
    tpu.wait_dma2 semaphore(%10 : memref<!tpu.dma_semaphore, #tpu.memory_space<semaphore_mem>>) src(%arg2 : memref<1024x2048xbf16, #tpu.memory_space<any>>) dst(%arg11 : memref<1024x2048xbf16, #tpu.memory_space<vmem>>)
    %c0_2 = arith.constant 0 : index
    %c0_3 = arith.constant 0 : index
    %11 = vector.load %arg11[%c0_2, %c0_3] : memref<1024x2048xbf16, #tpu.memory_space<vmem>>, vector<1024x2048xbf16>
    %cst = arith.constant dense<0.000000e+00> : vector<8x2048xf32>
    %12 = tpu.matmul %8, %11, %cst {dimension_numbers = #tpu.dot_dimension_numbers<[1], [0], [0], [1], [0, 0, 1, 1], [], []>} : vector<8x1024xbf16>, vector<1024x2048xbf16>, vector<8x2048xf32> -> vector<8x2048xf32>
    %13 = vector.extract_strided_slice %12 {offsets = [0, 0], sizes = [8, 1024], strides = [1, 1]} : vector<8x2048xf32> to vector<8x1024xf32>
    %c0_4 = arith.constant 0 : index
    %c0_5 = arith.constant 0 : index
    %14 = vector.load %arg6[%c0_4, %c0_5] : memref<1x1024xf32, #tpu.memory_space<vmem>>, vector<1x1024xf32>
    %15 = vector.broadcast %14 : vector<1x1024xf32> to vector<8x1024xf32>
    %16 = arith.addf %13, %15 : vector<8x1024xf32>
    %cst_6 = arith.constant 0.000000e+00 : f32
    %17 = vector.broadcast %cst_6 : f32 to vector<8x1024xf32>
    %18 = arith.maximumf %16, %17 : vector<8x1024xf32>
    %19 = vector.extract_strided_slice %12 {offsets = [0, 1024], sizes = [8, 1024], strides = [1, 1]} : vector<8x2048xf32> to vector<8x1024xf32>
    %c1_i32_7 = arith.constant 1 : i32
    %20 = tpu.memref_slice %arg15[%c1_i32_7] : memref<4x!tpu.dma_semaphore, #tpu.memory_space<semaphore_mem>> -> memref<1x!tpu.dma_semaphore, #tpu.memory_space<semaphore_mem>>
    %21 = tpu.memref_squeeze %20 : memref<1x!tpu.dma_semaphore, #tpu.memory_space<semaphore_mem>> -> memref<!tpu.dma_semaphore, #tpu.memory_space<semaphore_mem>>
    tpu.wait_dma2 semaphore(%21 : memref<!tpu.dma_semaphore, #tpu.memory_space<semaphore_mem>>) src(%arg3 : memref<1024x512xbf16, #tpu.memory_space<any>>) dst(%arg12 : memref<1024x512xbf16, #tpu.memory_space<vmem>>)
    %22 = arith.truncf %18 : vector<8x1024xf32> to vector<8x1024xbf16>
    %c0_8 = arith.constant 0 : index
    %c0_9 = arith.constant 0 : index
    %23 = vector.load %arg12[%c0_8, %c0_9] : memref<1024x512xbf16, #tpu.memory_space<vmem>>, vector<1024x512xbf16>
    %cst_10 = arith.constant dense<0.000000e+00> : vector<8x512xf32>
    %24 = tpu.matmul %22, %23, %cst_10 {dimension_numbers = #tpu.dot_dimension_numbers<[1], [0], [0], [1], [0, 0, 1, 1], [], []>} : vector<8x1024xbf16>, vector<1024x512xbf16>, vector<8x512xf32> -> vector<8x512xf32>
    %c0_11 = arith.constant 0 : index
    %c0_12 = arith.constant 0 : index
    %25 = vector.load %arg7[%c0_11, %c0_12] : memref<1x512xf32, #tpu.memory_space<vmem>>, vector<1x512xf32>
    %26 = vector.broadcast %25 : vector<1x512xf32> to vector<8x512xf32>
    %27 = arith.addf %24, %26 : vector<8x512xf32>
    %cst_13 = arith.constant 0.000000e+00 : f32
    %28 = vector.broadcast %cst_13 : f32 to vector<8x512xf32>
    %29 = arith.maximumf %27, %28 : vector<8x512xf32>
    %c2_i32_14 = arith.constant 2 : i32
    %30 = tpu.memref_slice %arg15[%c2_i32_14] : memref<4x!tpu.dma_semaphore, #tpu.memory_space<semaphore_mem>> -> memref<1x!tpu.dma_semaphore, #tpu.memory_space<semaphore_mem>>
    %31 = tpu.memref_squeeze %30 : memref<1x!tpu.dma_semaphore, #tpu.memory_space<semaphore_mem>> -> memref<!tpu.dma_semaphore, #tpu.memory_space<semaphore_mem>>
    tpu.wait_dma2 semaphore(%31 : memref<!tpu.dma_semaphore, #tpu.memory_space<semaphore_mem>>) src(%arg4 : memref<512x1024xbf16, #tpu.memory_space<any>>) dst(%arg13 : memref<512x1024xbf16, #tpu.memory_space<vmem>>)
    %32 = arith.truncf %29 : vector<8x512xf32> to vector<8x512xbf16>
    %c0_15 = arith.constant 0 : index
    %c0_16 = arith.constant 0 : index
    %33 = vector.load %arg13[%c0_15, %c0_16] : memref<512x1024xbf16, #tpu.memory_space<vmem>>, vector<512x1024xbf16>
    %cst_17 = arith.constant dense<0.000000e+00> : vector<8x1024xf32>
    %34 = tpu.matmul %32, %33, %cst_17 {dimension_numbers = #tpu.dot_dimension_numbers<[1], [0], [0], [1], [0, 0, 1, 1], [], []>} : vector<8x512xbf16>, vector<512x1024xbf16>, vector<8x1024xf32> -> vector<8x1024xf32>
    %35 = arith.addf %34, %19 : vector<8x1024xf32>
    %c0_18 = arith.constant 0 : index
    %c0_19 = arith.constant 0 : index
    %36 = vector.load %arg8[%c0_18, %c0_19] : memref<1x1024xf32, #tpu.memory_space<vmem>>, vector<1x1024xf32>
    %37 = vector.broadcast %36 : vector<1x1024xf32> to vector<8x1024xf32>
    %38 = arith.addf %35, %37 : vector<8x1024xf32>
    %cst_20 = arith.constant 0.000000e+00 : f32
    %39 = vector.broadcast %cst_20 : f32 to vector<8x1024xf32>
    %40 = arith.maximumf %38, %39 : vector<8x1024xf32>
    %c3_i32_21 = arith.constant 3 : i32
    %41 = tpu.memref_slice %arg15[%c3_i32_21] : memref<4x!tpu.dma_semaphore, #tpu.memory_space<semaphore_mem>> -> memref<1x!tpu.dma_semaphore, #tpu.memory_space<semaphore_mem>>
    %42 = tpu.memref_squeeze %41 : memref<1x!tpu.dma_semaphore, #tpu.memory_space<semaphore_mem>> -> memref<!tpu.dma_semaphore, #tpu.memory_space<semaphore_mem>>
    tpu.wait_dma2 semaphore(%42 : memref<!tpu.dma_semaphore, #tpu.memory_space<semaphore_mem>>) src(%arg5 : memref<1024x512xbf16, #tpu.memory_space<any>>) dst(%arg14 : memref<1024x512xbf16, #tpu.memory_space<vmem>>)
    %43 = arith.truncf %40 : vector<8x1024xf32> to vector<8x1024xbf16>
    %c0_22 = arith.constant 0 : index
    %c0_23 = arith.constant 0 : index
    %44 = vector.load %arg14[%c0_22, %c0_23] : memref<1024x512xbf16, #tpu.memory_space<vmem>>, vector<1024x512xbf16>
    %cst_24 = arith.constant dense<0.000000e+00> : vector<8x512xf32>
    %45 = tpu.matmul %43, %44, %cst_24 {dimension_numbers = #tpu.dot_dimension_numbers<[1], [0], [0], [1], [0, 0, 1, 1], [], []>} : vector<8x1024xbf16>, vector<1024x512xbf16>, vector<8x512xf32> -> vector<8x512xf32>
    %c0_25 = arith.constant 0 : index
    %c0_26 = arith.constant 0 : index
    %46 = vector.load %arg9[%c0_25, %c0_26] : memref<1x512xf32, #tpu.memory_space<vmem>>, vector<1x512xf32>
    %47 = vector.broadcast %46 : vector<1x512xf32> to vector<8x512xf32>
    %48 = arith.addf %45, %47 : vector<8x512xf32>
    %c0_27 = arith.constant 0 : index
    %c0_28 = arith.constant 0 : index
    %49 = vector.load %arg10[%c0_27, %c0_28] : memref<8x512xf32, #tpu.memory_space<vmem>>, vector<8x512xf32>
    tpu.vector_store %arg10[%c0_27, %c0_28], %48 {strides = array<i32>} : memref<8x512xf32, #tpu.memory_space<vmem>>, vector<8x512xf32>,
    return
  }
  func.func @transform_0(%arg0: i32) -> (i32, i32) {
    %c0_i32 = arith.constant 0 : i32
    %c0_i32_0 = arith.constant 0 : i32
    %c0_i32_1 = arith.constant 0 : i32
    return %c0_i32, %c0_i32_0 : i32, i32
  }
  func.func @transform_5(%arg0: i32) -> (i32, i32) {
    %c0_i32 = arith.constant 0 : i32
    %c0_i32_0 = arith.constant 0 : i32
    %c0_i32_1 = arith.constant 0 : i32
    return %c0_i32, %c0_i32_0 : i32, i32
  }
  func.func @transform_6(%arg0: i32) -> (i32, i32) {
    %c0_i32 = arith.constant 0 : i32
    %c0_i32_0 = arith.constant 0 : i32
    %c0_i32_1 = arith.constant 0 : i32
    return %c0_i32, %c0_i32_0 : i32, i32
  }
  func.func @transform_7(%arg0: i32) -> (i32, i32) {
    %c0_i32 = arith.constant 0 : i32
    %c0_i32_0 = arith.constant 0 : i32
    %c0_i32_1 = arith.constant 0 : i32
    return %c0_i32, %c0_i32_0 : i32, i32
  }
  func.func @transform_8(%arg0: i32) -> (i32, i32) {
    %c0_i32 = arith.constant 0 : i32
    %c0_i32_0 = arith.constant 0 : i32
    %c0_i32_1 = arith.constant 0 : i32
    return %c0_i32, %c0_i32_0 : i32, i32
  }
  func.func @transform_9(%arg0: i32) -> (i32, i32) {
    %c0_i32 = arith.constant 0 : i32
    %c0_i32_0 = arith.constant 0 : i32
    %c0_i32_1 = arith.constant 0 : i32
    return %c0_i32, %c0_i32_0 : i32, i32
  }
}

</mosaic_0001>

<bundles_post_ra>
// kernel: feature_transform.1
= control target key start
LH: loop header
LB: loop body
LE: loop exit
PB: predicated region body
PF: predicated region fallthrough
CT: control target
= control target key end

     0   :  { %14 = vsyncpa [#allocation8], 0  ;;  %s16714_s0 = inlined_call_operand.vmem [shape: bf16[8,1024], index: 0, kind: input, shape index: {}]   ;;  %s16715_s1 = inlined_call_operand.hbm [shape: bf16[1024,2048], index: 1, kind: input, shape index: {}]   ;;  %s16716_s2 = inlined_call_operand.hbm [shape: bf16[1024,512], index: 2, kind: input, shape index: {}]   ;;  %s16717_s3 = inlined_call_operand.hbm [shape: bf16[512,1024], index: 3, kind: input, shape index: {}]   ;;  %s16718_s4 = inlined_call_operand.hbm [shape: bf16[1024,512], index: 4, kind: input, shape index: {}]   ;;  %s16719_s5 = inlined_call_operand.hbm [shape: f32[1,1024], index: 5, kind: input, shape index: {}]   ;;  %s16720_s6 = inlined_call_operand.hbm [shape: f32[1,512], index: 6, kind: input, shape index: {}]   ;;  %s16721_s7 = inlined_call_operand.hbm [shape: f32[1,1024], index: 7, kind: input, shape index: {}]   ;;  %s16722_s8 = inlined_call_operand.hbm [shape: f32[1,512], index: 8, kind: input, shape index: {}]   ;;  %s16723_s9 = inlined_call_operand.vmem [shape: f32[8,512], index: 9, kind: output, shape index: {}]  }
   0x1   :  { %15 = vsyncpa [#allocation10], 0 }
   0x2   :  { %16 = vsyncpa [#allocation13], 0  ;;  %s16188_s30 = smov [#allocation9]   ;;  %s16189_s11 = smov [#allocation7]  }
   0x3   :  { %s35_s10 = sshll.u32 %s16188_s30, 4  ;;  %s25_s12 = sshll.u32 %s16189_s11, 4  ;;  %s36_s10 = int_to_ptr.vmem [resolvable:$true] %s35_s10  ;;  %s26_s12 = int_to_ptr.vmem [resolvable:$true] %s25_s12 }
   0x4   :  { %s16022_s13 = scalar_lea.vmem %s36_s10, 64  ;;  %p16027_p1 = scmp.lt.s32.totalorder %s36_s10, %s36_s10 }
   0x5   :  { %p16023_p0 = scmp.ne.s32.totalorder %s36_s10, %s16022_s13  ;;  %p16028_p2 = scmp.lt.s32.totalorder %s16022_s13, %s16022_s13 }
   0x7   :  { %p16029_p3 = por %p16028_p2, %p16027_p1 }
   0x9   :  { %p16030_p4 = pnand %p16029_p3, %p16023_p0 }
   0xb   :  { %16033 = shalt.err (!%p16030_p4)
}
   0xc   :  { %38 = dma.hbm_to_vmem [thread:$0]  %s16720_s6, 64, %s36_s10, [#allocation10]  }
   0xd   :  { %s16042_s16 = scalar_lea.vmem %s26_s12, 128  ;;  %p16047_p6 = scmp.lt.s32.totalorder %s26_s12, %s26_s12 }
   0xe   :  { %p16043_p5 = scmp.ne.s32.totalorder %s26_s12, %s16042_s16  ;;  %p16048_p7 = scmp.lt.s32.totalorder %s16042_s16, %s16042_s16 }
  0x10   :  { %p16049_p8 = por %p16048_p7, %p16047_p6 }
  0x12   :  { %p16050_p9 = pnand %p16049_p8, %p16043_p5 }
  0x14   :  { %16053 = shalt.err (!%p16050_p9)
}
  0x15   :  { %28 = dma.hbm_to_vmem [thread:$0]  %s16719_s5, 128, %s26_s12, [#allocation8]  }
  0x16   :  { %s16190_s19 = smov [#allocation11]   ;;  %s16191_s21 = smov [#allocation12]  }
  0x17   :  { %s45_s20 = sshll.u32 %s16190_s19, 4  ;;  %s55_s22 = sshll.u32 %s16191_s21, 4  ;;  %s46_s20 = int_to_ptr.vmem [resolvable:$true] %s45_s20  ;;  %s56_s22 = int_to_ptr.vmem [resolvable:$true] %s55_s22 }
  0x18   :  { %s16062_s23 = scalar_lea.vmem %s46_s20, 128  ;;  %p16067_p11 = scmp.lt.s32.totalorder %s46_s20, %s46_s20 }
  0x19   :  { %p16063_p10 = scmp.ne.s32.totalorder %s46_s20, %s16062_s23  ;;  %p16068_p12 = scmp.lt.s32.totalorder %s16062_s23, %s16062_s23 }
  0x1b   :  { %p16069_p13 = por %p16068_p12, %p16067_p11 }
  0x1d   :  { %p16070_p0 = pnand %p16069_p13, %p16063_p10 }
  0x1f   :  { %16073 = shalt.err (!%p16070_p0)
}
  0x20   :  { %48 = dma.hbm_to_vmem [thread:$0]  %s16721_s7, 128, %s46_s20, [#allocation10]  }
  0x21   :  { %s16082_s25 = scalar_lea.vmem %s56_s22, 64  ;;  %p16087_p2 = scmp.lt.s32.totalorder %s56_s22, %s56_s22 }
  0x22   :  { %p16083_p1 = scmp.ne.s32.totalorder %s56_s22, %s16082_s25  ;;  %p16088_p3 = scmp.lt.s32.totalorder %s16082_s25, %s16082_s25 }
  0x24   :  { %p16089_p4 = por %p16088_p3, %p16087_p2 }
  0x26   :  { %p16090_p5 = pnand %p16089_p4, %p16083_p1 }
  0x28   :  { %16093 = shalt.err (!%p16090_p5)
}
  0x29   :  { %58 = dma.hbm_to_vmem [thread:$0]  %s16722_s8, 64, %s56_s22, [#allocation13]  }
  0x2a   :  { %16174 = dma.done.wait [#allocation8], 128  }
  0x2b   :  { %16175 = vsyncadd [#allocation8], 4294967168 }
  0x2c   :  { %16176 = dma.done.wait [#allocation10], 192  }
  0x2d   :  { %16177 = vsyncadd [#allocation10], 4294967104 }
  0x2e   :  { %16178 = dma.done.wait [#allocation13], 64  }
  0x2f   :  { %16179 = vsyncadd [#allocation13], 4294967232  ;;  %s16192_s27 = smov [#allocation2]   ;;  %s16193_s7 = smov [#allocation3]  }
  0x30   :  { %s78_s28 = sshll.u32 %s16192_s27, 4  ;;  %s90_s29 = sshll.u32 %s16193_s7, 4  ;;  %s79_s28 = int_to_ptr.vmem [resolvable:$true] %s78_s28  ;;  %s91_s29 = int_to_ptr.vmem [resolvable:$true] %s90_s29 }
  0x31   :  { %s16102_s30 = scalar_lea.vmem %s79_s28, 131072  ;;  %p16107_p7 = scmp.lt.s32.totalorder %s79_s28, %s79_s28 }
  0x32   :  { %p16103_p6 = scmp.ne.s32.totalorder %s79_s28, %s16102_s30  ;;  %p16108_p8 = scmp.lt.s32.totalorder %s16102_s30, %s16102_s30 }
  0x34   :  { %p16109_p9 = por %p16108_p8, %p16107_p7 }
  0x36   :  { %p16110_p10 = pnand %p16109_p9, %p16103_p6 }
  0x38   :  { %16113 = shalt.err (!%p16110_p10)  }
  0x39   :  { %81 = dma.hbm_to_vmem [thread:$0]  %s16715_s1, 131072, %s79_s28, [#allocation6] }
  0x3a   :  { %s16122_s11 = scalar_lea.vmem %s91_s29, 32768  ;;  %p16127_p12 = scmp.lt.s32.totalorder %s91_s29, %s91_s29 }
  0x3b   :  { %p16123_p11 = scmp.ne.s32.totalorder %s91_s29, %s16122_s11  ;;  %p16128_p13 = scmp.lt.s32.totalorder %s16122_s11, %s16122_s11 }
  0x3d   :  { %p16129_p0 = por %p16128_p13, %p16127_p12 }
  0x3f   :  { %p16130_p1 = pnand %p16129_p0, %p16123_p11 }
  0x41   :  { %16133 = shalt.err (!%p16130_p1)  }
  0x42   :  { %93 = dma.hbm_to_vmem [thread:$0]  %s16716_s2, 32768, %s91_s29, [#allocation6 + $0x1]  ;;  %v16267_v0 = vld [vmem:[%s16714_s0] sm:$0xff]  ;;  %v16272_v1 = vld [vmem:[%s16714_s0 + $0x8] sm:$0xff]  ;;  %v16277_v2 = vld [vmem:[%s16714_s0 + $0x10] sm:$0xff] }
  0x43   :  { %s16194_s14 = smov [#allocation4]   ;;  %s16195_s16 = smov [#allocation5]   ;;  %v16282_v3 = vld [vmem:[%s16714_s0 + $0x18] sm:$0xff] }
  0x44   :  { %s102_s15 = sshll.u32 %s16194_s14, 4  ;;  %s114_s17 = sshll.u32 %s16195_s16, 4  ;;  %s103_s15 = int_to_ptr.vmem [resolvable:$true] %s102_s15  ;;  %s115_s17 = int_to_ptr.vmem [resolvable:$true] %s114_s17 }
  0x45   :  { %s16142_s6 = scalar_lea.vmem %s103_s15, 32768  ;;  %p16147_p3 = scmp.lt.s32.totalorder %s103_s15, %s103_s15 }
  0x46   :  { %p16143_p2 = scmp.ne.s32.totalorder %s103_s15, %s16142_s6  ;;  %p16148_p4 = scmp.lt.s32.totalorder %s16142_s6, %s16142_s6 }
  0x48   :  { %p16149_p5 = por %p16148_p4, %p16147_p3 }
  0x4a   :  { %p16150_p6 = pnand %p16149_p5, %p16143_p2 }
  0x4c   :  { %16153 = shalt.err (!%p16150_p6)  }
  0x4d   :  { %105 = dma.hbm_to_vmem [thread:$0]  %s16717_s3, 32768, %s103_s15, [#allocation6 + $0x2] }
  0x4e   :  { %s16162_s5 = scalar_lea.vmem %s115_s17, 32768  ;;  %p16167_p8 = scmp.lt.s32.totalorder %s115_s17, %s115_s17 }
  0x4f   :  { %p16163_p7 = scmp.ne.s32.totalorder %s115_s17, %s16162_s5  ;;  %p16168_p9 = scmp.lt.s32.totalorder %s16162_s5, %s16162_s5 }
  0x51   :  { %p16169_p10 = por %p16168_p9, %p16167_p8 }
  0x53   :  { %p16170_p11 = pnand %p16169_p10, %p16163_p7 }
  0x55   :  { %16173 = shalt.err (!%p16170_p11)  }
  0x56   :  { %117 = dma.hbm_to_vmem [thread:$0]  %s16718_s4, 32768, %s115_s17, [#allocation6 + $0x3] }
  0x57   :  { %16180 = dma.done.wait [#allocation6], 131072 }
  0x58   :  { %16181 = vsyncadd [#allocation6], 4294836224  ;;  %v16292_v4 = vcombine.high %v16267_v0, %v16267_v0  ;;  %v16296_v5 = vcombine.high %v16272_v1, %v16272_v1  ;;  %v238_v6 = vld [vmem:[#allocation2 + $0x380] sm:$0xff] }
  0x59   :  { %v246_v7 = vld [vmem:[#allocation2 + $0x3c0] sm:$0xff] }
  0x5a   :  { %6330 = vmatprep.mubr.bf16.mxu0 %v16292_v4  ;;  %6371 = vmatprep.mubr.bf16.mxu1 %v16296_v5  ;;  %v494_v8 = vld [vmem:[#allocation2 + $0xb80] sm:$0xff]  ;;  %v13554_v9 = vcombine.high %v238_v6, %v246_v7  ;;  %v13553_v11 = vcombine.low %v238_v6, %v246_v7 }
  0x5b   :  { %v502_v10 = vld [vmem:[#allocation2 + $0xbc0] sm:$0xff] }
  0x5c   :  { %v222_v12 = vld [vmem:[#allocation2 + $0x300] sm:$0xff]  ;;  %v13810_v14 = vcombine.high %v494_v8, %v502_v10  ;;  %v13809_v15 = vcombine.low %v494_v8, %v502_v10  ;;  %6298 = vmatprep.subr.bf16.mxu0 %v13554_v9 }
  0x5d   :  { %v230_v13 = vld [vmem:[#allocation2 + $0x340] sm:$0xff]  ;;  %6299 = vmatpush1.bf16.msra.mxu0 %v13553_v11 }
  0x5e   :  { %v13538_v16 = vcombine.high %v222_v12, %v230_v13  ;;  %v478_v17 = vld [vmem:[#allocation2 + $0xb00] sm:$0xff]  ;;  %6339 = vmatprep.subr.bf16.mxu1 %v13810_v14  ;;  %v13537_v24 = vcombine.low %v222_v12, %v230_v13 }
  0x5f   :  { %v486_v18 = vld [vmem:[#allocation2 + $0xb40] sm:$0xff]  ;;  %6340 = vmatpush1.bf16.msra.mxu1 %v13809_v15 }
  0x60   :  { %v206_v19 = vld [vmem:[#allocation2 + $0x280] sm:$0xff]  ;;  %v13794_v20 = vcombine.high %v478_v17, %v486_v18  ;;  %6300 = vmatprep.subr.bf16.mxu0 %v13538_v16  ;;  %v13793_v25 = vcombine.low %v478_v17, %v486_v18 }
  0x61   :  { %v214_v21 = vld [vmem:[#allocation2 + $0x2c0] sm:$0xff]  ;;  %6301 = vmatpush1.bf16.msra.mxu0 %v13537_v24 }
  0x62   :  { %v462_v22 = vld [vmem:[#allocation2 + $0xa80] sm:$0xff]  ;;  %v13522_v26 = vcombine.high %v206_v19, %v214_v21  ;;  %6341 = vmatprep.subr.bf16.mxu1 %v13794_v20  ;;  %v13521_v32 = vcombine.low %v206_v19, %v214_v21 }
  0x63   :  { %v470_v23 = vld [vmem:[#allocation2 + $0xac0] sm:$0xff]  ;;  %6342 = vmatpush1.bf16.msra.mxu1 %v13793_v25 }
  0x64   :  { %v13778_v27 = vcombine.high %v462_v22, %v470_v23  ;;  %v190_v28 = vld [vmem:[#allocation2 + $0x200] sm:$0xff]  ;;  %6302 = vmatprep.subr.bf16.mxu0 %v13522_v26  ;;  %v13777_v33 = vcombine.low %v462_v22, %v470_v23 }
  0x65   :  { %v198_v29 = vld [vmem:[#allocation2 + $0x240] sm:$0xff]  ;;  %6303 = vmatpush1.bf16.msra.mxu0 %v13521_v32 }
  0x66   :  { %v446_v30 = vld [vmem:[#allocation2 + $0xa00] sm:$0xff]  ;;  %v13506_v34 = vcombine.high %v190_v28, %v198_v29  ;;  %6343 = vmatprep.subr.bf16.mxu1 %v13778_v27  ;;  %v13505_v40 = vcombine.low %v190_v28, %v198_v29 }
  0x67   :  { %v454_v31 = vld [vmem:[#allocation2 + $0xa40] sm:$0xff]  ;;  %6344 = vmatpush1.bf16.msra.mxu1 %v13777_v33 }
  0x68   :  { %v13762_v35 = vcombine.high %v446_v30, %v454_v31  ;;  %v174_v36 = vld [vmem:[#allocation2 + $0x180] sm:$0xff]  ;;  %6304 = vmatprep.subr.bf16.mxu0 %v13506_v34  ;;  %v13761_v41 = vcombine.low %v446_v30, %v454_v31 }
  0x69   :  { %v182_v37 = vld [vmem:[#allocation2 + $0x1c0] sm:$0xff]  ;;  %6305 = vmatpush1.bf16.msra.mxu0 %v13505_v40 }
  0x6a   :  { %v430_v38 = vld [vmem:[#allocation2 + $0x980] sm:$0xff]  ;;  %v13490_v42 = vcombine.high %v174_v36, %v182_v37  ;;  %6345 = vmatprep.subr.bf16.mxu1 %v13762_v35  ;;  %v13489_v48 = vcombine.low %v174_v36, %v182_v37 }
  0x6b   :  { %v438_v39 = vld [vmem:[#allocation2 + $0x9c0] sm:$0xff]  ;;  %6346 = vmatpush1.bf16.msra.mxu1 %v13761_v41 }
  0x6c   :  { %v13746_v43 = vcombine.high %v430_v38, %v438_v39  ;;  %v158_v44 = vld [vmem:[#allocation2 + $0x100] sm:$0xff]  ;;  %6306 = vmatprep.subr.bf16.mxu0 %v13490_v42  ;;  %v13745_v49 = vcombine.low %v430_v38, %v438_v39 }
  0x6d   :  { %v166_v45 = vld [vmem:[#allocation2 + $0x140] sm:$0xff]  ;;  %6307 = vmatpush1.bf16.msra.mxu0 %v13489_v48 }
  0x6e   :  { %v414_v46 = vld [vmem:[#allocation2 + $0x900] sm:$0xff]  ;;  %v13474_v50 = vcombine.high %v158_v44, %v166_v45  ;;  %6347 = vmatprep.subr.bf16.mxu1 %v13746_v43  ;;  %v13473_v56 = vcombine.low %v158_v44, %v166_v45 }
  0x6f   :  { %v422_v47 = vld [vmem:[#allocation2 + $0x940] sm:$0xff]  ;;  %6348 = vmatpush1.bf16.msra.mxu1 %v13745_v49 }
  0x70   :  { %v13730_v51 = vcombine.high %v414_v46, %v422_v47  ;;  %v142_v52 = vld [vmem:[#allocation2 + $0x80] sm:$0xff]  ;;  %6308 = vmatprep.subr.bf16.mxu0 %v13474_v50  ;;  %v13729_v57 = vcombine.low %v414_v46, %v422_v47 }
  0x71   :  { %v150_v53 = vld [vmem:[#allocation2 + $0xc0] sm:$0xff]  ;;  %6309 = vmatpush1.bf16.msra.mxu0 %v13473_v56 }
  0x72   :  { %v398_v54 = vld [vmem:[#allocation2 + $0x880] sm:$0xff]  ;;  %v13458_v58 = vcombine.high %v142_v52, %v150_v53  ;;  %6349 = vmatprep.subr.bf16.mxu1 %v13730_v51  ;;  %v13457_v6 = vcombine.low %v142_v52, %v150_v53 }
  0x73   :  { %v406_v55 = vld [vmem:[#allocation2 + $0x8c0] sm:$0xff]  ;;  %6350 = vmatpush1.bf16.msra.mxu1 %v13729_v57 }
  0x74   :  { %v13714_v59 = vcombine.high %v398_v54, %v406_v55  ;;  %v126_v60 = vld [vmem:[#allocation2] sm:$0xff]  ;;  %6310 = vmatprep.subr.bf16.mxu0 %v13458_v58  ;;  %v13713_v7 = vcombine.low %v398_v54, %v406_v55 }
  0x75   :  { %v134_v61 = vld [vmem:[#allocation2 + $0x40] sm:$0xff]  ;;  %6311 = vmatpush1.bf16.msra.mxu0 %v13457_v6 }
  0x76   :  { %v382_v62 = vld [vmem:[#allocation2 + $0x800] sm:$0xff]  ;;  %v13442_v8 = vcombine.high %v126_v60, %v134_v61  ;;  %6351 = vmatprep.subr.bf16.mxu1 %v13714_v59  ;;  %v13441_v14 = vcombine.low %v126_v60, %v134_v61 }
  0x77   :  { %v390_v63 = vld [vmem:[#allocation2 + $0x840] sm:$0xff]  ;;  %6352 = vmatpush1.bf16.msra.mxu1 %v13713_v7 }
  0x78   :  { %v13698_v9 = vcombine.high %v382_v62, %v390_v63  ;;  %v366_v10 = vld [vmem:[#allocation2 + $0x780] sm:$0xff]  ;;  %6312 = vmatprep.subr.bf16.mxu0 %v13442_v8  ;;  %v13697_v15 = vcombine.low %v382_v62, %v390_v63 }
  0x79   :  { %v374_v11 = vld [vmem:[#allocation2 + $0x7c0] sm:$0xff]  ;;  %6313 = vmatpush1.bf16.msra.mxu0 %v13441_v14 }
  0x7a   :  { %v622_v12 = vld [vmem:[#allocation2 + $0xf80] sm:$0xff]  ;;  %v13682_v16 = vcombine.high %v366_v10, %v374_v11  ;;  %6353 = vmatprep.subr.bf16.mxu1 %v13698_v9  ;;  %v13681_v22 = vcombine.low %v366_v10, %v374_v11 }
  0x7b   :  { %v630_v13 = vld [vmem:[#allocation2 + $0xfc0] sm:$0xff]  ;;  %6354 = vmatpush1.bf16.msra.mxu1 %v13697_v15 }
  0x7c   :  { %v13938_v17 = vcombine.high %v622_v12, %v630_v13  ;;  %v350_v18 = vld [vmem:[#allocation2 + $0x700] sm:$0xff]  ;;  %6314 = vmatprep.subr.bf16.mxu0 %v13682_v16  ;;  %v13937_v23 = vcombine.low %v622_v12, %v630_v13 }
  0x7d   :  { %v358_v19 = vld [vmem:[#allocation2 + $0x740] sm:$0xff]  ;;  %6315 = vmatpush2.bf16.msra.mxu0 %v13681_v22 }
  0x7e   :  { %v606_v20 = vld [vmem:[#allocation2 + $0xf00] sm:$0xff]  ;;  %v13666_v24 = vcombine.high %v350_v18, %v358_v19  ;;  %6355 = vmatprep.subr.bf16.mxu1 %v13938_v17  ;;  %v13665_v30 = vcombine.low %v350_v18, %v358_v19 }
  0x7f   :  { %v614_v21 = vld [vmem:[#allocation2 + $0xf40] sm:$0xff]  ;;  %6356 = vmatpush2.bf16.msra.mxu1 %v13937_v23 }
  0x80   :  { %v13922_v25 = vcombine.high %v606_v20, %v614_v21  ;;  %v334_v26 = vld [vmem:[#allocation2 + $0x680] sm:$0xff]  ;;  %6316 = vmatprep.subr.bf16.mxu0 %v13666_v24  ;;  %v13921_v31 = vcombine.low %v606_v20, %v614_v21 }
  0x81   :  { %v342_v27 = vld [vmem:[#allocation2 + $0x6c0] sm:$0xff]  ;;  %6317 = vmatpush2.bf16.msra.mxu0 %v13665_v30 }
  0x82   :  { %v590_v28 = vld [vmem:[#allocation2 + $0xe80] sm:$0xff]  ;;  %v13650_v32 = vcombine.high %v334_v26, %v342_v27  ;;  %6357 = vmatprep.subr.bf16.mxu1 %v13922_v25  ;;  %v13649_v38 = vcombine.low %v334_v26, %v342_v27  ;;  %v16302_v26 = vcombine.low %v16267_v0, %v16267_v0  ;;  %v16310_v0 = vcombine.high %v16277_v2, %v16277_v2 }
  0x83   :  { %v598_v29 = vld [vmem:[#allocation2 + $0xec0] sm:$0xff]  ;;  %6358 = vmatpush2.bf16.msra.mxu1 %v13921_v31 }
  0x84   :  { %v13906_v33 = vcombine.high %v590_v28, %v598_v29  ;;  %v318_v34 = vld [vmem:[#allocation2 + $0x600] sm:$0xff]  ;;  %6318 = vmatprep.subr.bf16.mxu0 %v13650_v32  ;;  %v13905_v39 = vcombine.low %v590_v28, %v598_v29  ;;  %v16306_v29 = vcombine.low %v16272_v1, %v16272_v1  ;;  %v16315_v1 = vcombine.high %v16282_v3, %v16282_v3 }
  0x85   :  { %v326_v35 = vld [vmem:[#allocation2 + $0x640] sm:$0xff]  ;;  %6319 = vmatpush2.bf16.msra.mxu0 %v13649_v38 }
  0x86   :  { %v574_v36 = vld [vmem:[#allocation2 + $0xe00] sm:$0xff]  ;;  %v13634_v40 = vcombine.high %v318_v34, %v326_v35  ;;  %6359 = vmatprep.subr.bf16.mxu1 %v13906_v33  ;;  %v13633_v46 = vcombine.low %v318_v34, %v326_v35 }
  0x87   :  { %v582_v37 = vld [vmem:[#allocation2 + $0xe40] sm:$0xff]  ;;  %6360 = vmatpush2.bf16.msra.mxu1 %v13905_v39 }
  0x88   :  { %v13890_v41 = vcombine.high %v574_v36, %v582_v37  ;;  %v302_v42 = vld [vmem:[#allocation2 + $0x580] sm:$0xff]  ;;  %6320 = vmatprep.subr.bf16.mxu0 %v13634_v40  ;;  %v13889_v47 = vcombine.low %v574_v36, %v582_v37 }
  0x89   :  { %v310_v43 = vld [vmem:[#allocation2 + $0x5c0] sm:$0xff]  ;;  %6321 = vmatpush2.bf16.msra.mxu0 %v13633_v46 }
  0x8a   :  { %v558_v44 = vld [vmem:[#allocation2 + $0xd80] sm:$0xff]  ;;  %v13618_v48 = vcombine.high %v302_v42, %v310_v43  ;;  %6361 = vmatprep.subr.bf16.mxu1 %v13890_v41  ;;  %v13617_v54 = vcombine.low %v302_v42, %v310_v43 }
  0x8b   :  { %v566_v45 = vld [vmem:[#allocation2 + $0xdc0] sm:$0xff]  ;;  %6362 = vmatpush2.bf16.msra.mxu1 %v13889_v47 }
  0x8c   :  { %v13874_v49 = vcombine.high %v558_v44, %v566_v45  ;;  %v286_v50 = vld [vmem:[#allocation2 + $0x500] sm:$0xff]  ;;  %6322 = vmatprep.subr.bf16.mxu0 %v13618_v48  ;;  %v13873_v55 = vcombine.low %v558_v44, %v566_v45 }
  0x8d   :  { %v294_v51 = vld [vmem:[#allocation2 + $0x540] sm:$0xff]  ;;  %6323 = vmatpush2.bf16.msra.mxu0 %v13617_v54 }
  0x8e   :  { %v542_v52 = vld [vmem:[#allocation2 + $0xd00] sm:$0xff]  ;;  %v13602_v56 = vcombine.high %v286_v50, %v294_v51  ;;  %6363 = vmatprep.subr.bf16.mxu1 %v13874_v49  ;;  %v13601_v62 = vcombine.low %v286_v50, %v294_v51 }
  0x8f   :  { %v550_v53 = vld [vmem:[#allocation2 + $0xd40] sm:$0xff]  ;;  %6364 = vmatpush2.bf16.msra.mxu1 %v13873_v55 }
  0x90   :  { %v13858_v57 = vcombine.high %v542_v52, %v550_v53  ;;  %v270_v58 = vld [vmem:[#allocation2 + $0x480] sm:$0xff]  ;;  %6324 = vmatprep.subr.bf16.mxu0 %v13602_v56  ;;  %v13857_v63 = vcombine.low %v542_v52, %v550_v53 }
  0x91   :  { %v278_v59 = vld [vmem:[#allocation2 + $0x4c0] sm:$0xff]  ;;  %6325 = vmatpush2.bf16.msra.mxu0 %v13601_v62 }
  0x92   :  { %v526_v60 = vld [vmem:[#allocation2 + $0xc80] sm:$0xff]  ;;  %v13586_v6 = vcombine.high %v270_v58, %v278_v59  ;;  %6365 = vmatprep.subr.bf16.mxu1 %v13858_v57  ;;  %v13585_v12 = vcombine.low %v270_v58, %v278_v59 }
  0x93   :  { %v534_v61 = vld [vmem:[#allocation2 + $0xcc0] sm:$0xff]  ;;  %6366 = vmatpush2.bf16.msra.mxu1 %v13857_v63 }
  0x94   :  { %v13842_v7 = vcombine.high %v526_v60, %v534_v61  ;;  %v254_v8 = vld [vmem:[#allocation2 + $0x400] sm:$0xff]  ;;  %6326 = vmatprep.subr.bf16.mxu0 %v13586_v6  ;;  %v13841_v13 = vcombine.low %v526_v60, %v534_v61 }
  0x95   :  { %v262_v9 = vld [vmem:[#allocation2 + $0x440] sm:$0xff]  ;;  %6327 = vmatpush2.bf16.msra.mxu0 %v13585_v12 }
  0x96   :  { %v510_v10 = vld [vmem:[#allocation2 + $0xc00] sm:$0xff]  ;;  %v13570_v14 = vcombine.high %v254_v8, %v262_v9  ;;  %6367 = vmatprep.subr.bf16.mxu1 %v13842_v7  ;;  %v13569_v20 = vcombine.low %v254_v8, %v262_v9 }
  0x97   :  { %v518_v11 = vld [vmem:[#allocation2 + $0xc40] sm:$0xff]  ;;  %6368 = vmatpush2.bf16.msra.mxu1 %v13841_v13 }
  0x98   :  { %v13826_v15 = vcombine.high %v510_v10, %v518_v11  ;;  %v750_v16 = vld [vmem:[#allocation2 + $0x1380] sm:$0xff]  ;;  %6328 = vmatprep.subr.bf16.mxu0 %v13570_v14  ;;  %v13825_v21 = vcombine.low %v510_v10, %v518_v11 }
  0x99   :  { %v758_v17 = vld [vmem:[#allocation2 + $0x13c0] sm:$0xff]  ;;  %6329 = vmatpush2.bf16.msra.mxu0 %v13569_v20 }
  0x9a   :  { %v1006_v18 = vld [vmem:[#allocation2 + $0x1b80] sm:$0xff]  ;;  %v14066_v22 = vcombine.high %v750_v16, %v758_v17  ;;  %6369 = vmatprep.subr.bf16.mxu1 %v13826_v15  ;;  %v14065_v30 = vcombine.low %v750_v16, %v758_v17 }
  0x9b   :  { %v1014_v19 = vld [vmem:[#allocation2 + $0x1bc0] sm:$0xff]  ;;  %6370 = vmatpush2.bf16.msra.mxu1 %v13825_v21 }
  0x9c   :  { %v14322_v23 = vcombine.high %v1006_v18, %v1014_v19  ;;  %v734_v24 = vld [vmem:[#allocation2 + $0x1300] sm:$0xff]  ;;  %6380 = vmatprep.subr.bf16.mxu0 %v14066_v22  ;;  %v14321_v31 = vcombine.low %v1006_v18, %v1014_v19  ;;  %6331 = vmatmul.mubr.bf16.vlgmr.msra.gmra.mxu0 %v16302_v26 }
  0x9d   :  { %v742_v25 = vld [vmem:[#allocation2 + $0x1340] sm:$0xff]  ;;  %6381 = vmatpush1.bf16.msra.mxu0 %v14065_v30  ;;  %6412 = vmatprep.mubr.bf16.mxu0 %v16310_v0 }
  0x9e   :  { %v990_v27 = vld [vmem:[#allocation2 + $0x1b00] sm:$0xff]  ;;  %v14050_v32 = vcombine.high %v734_v24, %v742_v25  ;;  %6421 = vmatprep.subr.bf16.mxu1 %v14322_v23  ;;  %6372 = vmatmul.mubr.bf16.vlgmr.msra.gmra.mxu1 %v16306_v29  ;;  %v14049_v38 = vcombine.low %v734_v24, %v742_v25 }
  0x9f   :  { %v998_v28 = vld [vmem:[#allocation2 + $0x1b40] sm:$0xff]  ;;  %6422 = vmatpush1.bf16.msra.mxu1 %v14321_v31  ;;  %6453 = vmatprep.mubr.bf16.mxu1 %v16315_v1 }
  0xa0   :  { %v14306_v33 = vcombine.high %v990_v27, %v998_v28  ;;  %v718_v34 = vld [vmem:[#allocation2 + $0x1280] sm:$0xff]  ;;  %6382 = vmatprep.subr.bf16.mxu0 %v14050_v32  ;;  %v14305_v39 = vcombine.low %v990_v27, %v998_v28 }
  0xa1   :  { %v726_v35 = vld [vmem:[#allocation2 + $0x12c0] sm:$0xff]  ;;  %6383 = vmatpush1.bf16.msra.mxu0 %v14049_v38 }
  0xa2   :  { %v974_v36 = vld [vmem:[#allocation2 + $0x1a80] sm:$0xff]  ;;  %v14034_v40 = vcombine.high %v718_v34, %v726_v35  ;;  %6423 = vmatprep.subr.bf16.mxu1 %v14306_v33  ;;  %v14033_v46 = vcombine.low %v718_v34, %v726_v35 }
  0xa3   :  { %v982_v37 = vld [vmem:[#allocation2 + $0x1ac0] sm:$0xff]  ;;  %6424 = vmatpush1.bf16.msra.mxu1 %v14305_v39 }
  0xa4   :  { %v14290_v41 = vcombine.high %v974_v36, %v982_v37  ;;  %v702_v42 = vld [vmem:[#allocation2 + $0x1200] sm:$0xff]  ;;  %6384 = vmatprep.subr.bf16.mxu0 %v14034_v40  ;;  %v14289_v47 = vcombine.low %v974_v36, %v982_v37 }
  0xa5   :  { %v710_v43 = vld [vmem:[#allocation2 + $0x1240] sm:$0xff]  ;;  %6385 = vmatpush1.bf16.msra.mxu0 %v14033_v46 }
  0xa6   :  { %v958_v44 = vld [vmem:[#allocation2 + $0x1a00] sm:$0xff]  ;;  %v14018_v48 = vcombine.high %v702_v42, %v710_v43  ;;  %6425 = vmatprep.subr.bf16.mxu1 %v14290_v41  ;;  %v14017_v54 = vcombine.low %v702_v42, %v710_v43 }
  0xa7   :  { %v966_v45 = vld [vmem:[#allocation2 + $0x1a40] sm:$0xff]  ;;  %6426 = vmatpush1.bf16.msra.mxu1 %v14289_v47 }
  0xa8   :  { %v14274_v49 = vcombine.high %v958_v44, %v966_v45  ;;  %v686_v50 = vld [vmem:[#allocation2 + $0x1180] sm:$0xff]  ;;  %6386 = vmatprep.subr.bf16.mxu0 %v14018_v48  ;;  %v14273_v55 = vcombine.low %v958_v44, %v966_v45 }
  0xa9   :  { %v694_v51 = vld [vmem:[#allocation2 + $0x11c0] sm:$0xff]  ;;  %6387 = vmatpush1.bf16.msra.mxu0 %v14017_v54 }
  0xaa   :  { %v942_v52 = vld [vmem:[#allocation2 + $0x1980] sm:$0xff]  ;;  %v14002_v56 = vcombine.high %v686_v50, %v694_v51  ;;  %6427 = vmatprep.subr.bf16.mxu1 %v14274_v49  ;;  %v14001_v62 = vcombine.low %v686_v50, %v694_v51 }
  0xab   :  { %v950_v53 = vld [vmem:[#allocation2 + $0x19c0] sm:$0xff]  ;;  %6428 = vmatpush1.bf16.msra.mxu1 %v14273_v55 }
  0xac   :  { %v14258_v57 = vcombine.high %v942_v52, %v950_v53  ;;  %v670_v58 = vld [vmem:[#allocation2 + $0x1100] sm:$0xff]  ;;  %6388 = vmatprep.subr.bf16.mxu0 %v14002_v56  ;;  %v14257_v63 = vcombine.low %v942_v52, %v950_v53 }
  0xad   :  { %v678_v59 = vld [vmem:[#allocation2 + $0x1140] sm:$0xff]  ;;  %6389 = vmatpush1.bf16.msra.mxu0 %v14001_v62 }
  0xae   :  { %v926_v60 = vld [vmem:[#allocation2 + $0x1900] sm:$0xff]  ;;  %v13986_v6 = vcombine.high %v670_v58, %v678_v59  ;;  %6429 = vmatprep.subr.bf16.mxu1 %v14258_v57  ;;  %v13985_v12 = vcombine.low %v670_v58, %v678_v59 }
  0xaf   :  { %v934_v61 = vld [vmem:[#allocation2 + $0x1940] sm:$0xff]  ;;  %6430 = vmatpush1.bf16.msra.mxu1 %v14257_v63 }
  0xb0   :  { %v14242_v7 = vcombine.high %v926_v60, %v934_v61  ;;  %v654_v8 = vld [vmem:[#allocation2 + $0x1080] sm:$0xff]  ;;  %6390 = vmatprep.subr.bf16.mxu0 %v13986_v6  ;;  %v14241_v13 = vcombine.low %v926_v60, %v934_v61 }
  0xb1   :  { %v662_v9 = vld [vmem:[#allocation2 + $0x10c0] sm:$0xff]  ;;  %6391 = vmatpush1.bf16.msra.mxu0 %v13985_v12 }
  0xb2   :  { %v910_v10 = vld [vmem:[#allocation2 + $0x1880] sm:$0xff]  ;;  %v13970_v14 = vcombine.high %v654_v8, %v662_v9  ;;  %6431 = vmatprep.subr.bf16.mxu1 %v14242_v7  ;;  %v13969_v20 = vcombine.low %v654_v8, %v662_v9 }
  0xb3   :  { %v918_v11 = vld [vmem:[#allocation2 + $0x18c0] sm:$0xff]  ;;  %6432 = vmatpush1.bf16.msra.mxu1 %v14241_v13 }
  0xb4   :  { %v14226_v15 = vcombine.high %v910_v10, %v918_v11  ;;  %v638_v16 = vld [vmem:[#allocation2 + $0x1000] sm:$0xff]  ;;  %6392 = vmatprep.subr.bf16.mxu0 %v13970_v14  ;;  %v14225_v21 = vcombine.low %v910_v10, %v918_v11 }
  0xb5   :  { %v646_v17 = vld [vmem:[#allocation2 + $0x1040] sm:$0xff]  ;;  %6393 = vmatpush1.bf16.msra.mxu0 %v13969_v20 }
  0xb6   :  { %v894_v18 = vld [vmem:[#allocation2 + $0x1800] sm:$0xff]  ;;  %v13954_v22 = vcombine.high %v638_v16, %v646_v17  ;;  %6433 = vmatprep.subr.bf16.mxu1 %v14226_v15  ;;  %v13953_v30 = vcombine.low %v638_v16, %v646_v17 }
  0xb7   :  { %v902_v19 = vld [vmem:[#allocation2 + $0x1840] sm:$0xff]  ;;  %6434 = vmatpush1.bf16.msra.mxu1 %v14225_v21 }
  0xb8   :  { %v14210_v23 = vcombine.high %v894_v18, %v902_v19  ;;  %v878_v24 = vld [vmem:[#allocation2 + $0x1780] sm:$0xff]  ;;  %6394 = vmatprep.subr.bf16.mxu0 %v13954_v22  ;;  %v14209_v31 = vcombine.low %v894_v18, %v902_v19 }
  0xb9   :  { %v886_v25 = vld [vmem:[#allocation2 + $0x17c0] sm:$0xff]  ;;  %6395 = vmatpush1.bf16.msra.mxu0 %v13953_v30 }
  0xba   :  { %v1134_v27 = vld [vmem:[#allocation2 + $0x1f80] sm:$0xff]  ;;  %v14194_v32 = vcombine.high %v878_v24, %v886_v25  ;;  %6435 = vmatprep.subr.bf16.mxu1 %v14210_v23  ;;  %v14193_v38 = vcombine.low %v878_v24, %v886_v25 }
  0xbb   :  { %v1142_v28 = vld [vmem:[#allocation2 + $0x1fc0] sm:$0xff]  ;;  %6436 = vmatpush1.bf16.msra.mxu1 %v14209_v31 }
  0xbc   :  { %v14450_v33 = vcombine.high %v1134_v27, %v1142_v28  ;;  %v862_v34 = vld [vmem:[#allocation2 + $0x1700] sm:$0xff]  ;;  %6396 = vmatprep.subr.bf16.mxu0 %v14194_v32  ;;  %v14449_v39 = vcombine.low %v1134_v27, %v1142_v28 }
  0xbd   :  { %v870_v35 = vld [vmem:[#allocation2 + $0x1740] sm:$0xff]  ;;  %6397 = vmatpush2.bf16.msra.mxu0 %v14193_v38 }
  0xbe   :  { %v1118_v36 = vld [vmem:[#allocation2 + $0x1f00] sm:$0xff]  ;;  %v14178_v40 = vcombine.high %v862_v34, %v870_v35  ;;  %6437 = vmatprep.subr.bf16.mxu1 %v14450_v33  ;;  %v14177_v46 = vcombine.low %v862_v34, %v870_v35  ;;  %v239_v34 = vld [vmem:[#allocation2 + $0x388] sm:$0xff] }
  0xbf   :  { %v1126_v37 = vld [vmem:[#allocation2 + $0x1f40] sm:$0xff]  ;;  %6438 = vmatpush2.bf16.msra.mxu1 %v14449_v39  ;;  %v247_v35 = vld [vmem:[#allocation2 + $0x3c8] sm:$0xff] }
  0xc0   :  { %v14434_v41 = vcombine.high %v1118_v36, %v1126_v37  ;;  %v846_v42 = vld [vmem:[#allocation2 + $0x1680] sm:$0xff]  ;;  %6398 = vmatprep.subr.bf16.mxu0 %v14178_v40  ;;  %v14433_v47 = vcombine.low %v1118_v36, %v1126_v37  ;;  %v495_v36 = vld [vmem:[#allocation2 + $0xb88] sm:$0xff]  ;;  %v13556_v40 = vcombine.high %v239_v34, %v247_v35 }
  0xc1   :  { %v854_v43 = vld [vmem:[#allocation2 + $0x16c0] sm:$0xff]  ;;  %6399 = vmatpush2.bf16.msra.mxu0 %v14177_v46  ;;  %v503_v37 = vld [vmem:[#allocation2 + $0xbc8] sm:$0xff] }
  0xc2   :  { %v1102_v44 = vld [vmem:[#allocation2 + $0x1e80] sm:$0xff]  ;;  %v14162_v48 = vcombine.high %v846_v42, %v854_v43  ;;  %6439 = vmatprep.subr.bf16.mxu1 %v14434_v41  ;;  %v14161_v54 = vcombine.low %v846_v42, %v854_v43  ;;  %v13812_v41 = vcombine.high %v495_v36, %v503_v37  ;;  %v223_v42 = vld [vmem:[#allocation2 + $0x308] sm:$0xff] }
  0xc3   :  { %v1110_v45 = vld [vmem:[#allocation2 + $0x1ec0] sm:$0xff]  ;;  %6440 = vmatpush2.bf16.msra.mxu1 %v14433_v47  ;;  %v231_v43 = vld [vmem:[#allocation2 + $0x348] sm:$0xff]  ;;  %v16326_v47 = vcombine.low %v16282_v3, %v16282_v3 }
  0xc4   :  { %v14418_v49 = vcombine.high %v1102_v44, %v1110_v45  ;;  %v830_v50 = vld [vmem:[#allocation2 + $0x1600] sm:$0xff]  ;;  %6400 = vmatprep.subr.bf16.mxu0 %v14162_v48  ;;  %v14417_v55 = vcombine.low %v1102_v44, %v1110_v45  ;;  %v16322_v44 = vcombine.low %v16277_v2, %v16277_v2  ;;  %v479_v45 = vld [vmem:[#allocation2 + $0xb08] sm:$0xff]  ;;  %v13555_v48 = vcombine.low %v239_v34, %v247_v35 }
  0xc5   :  { %v838_v51 = vld [vmem:[#allocation2 + $0x1640] sm:$0xff]  ;;  %6401 = vmatpush2.bf16.msra.mxu0 %v14161_v54  ;;  %v487_v46 = vld [vmem:[#allocation2 + $0xb48] sm:$0xff] }
  0xc6   :  { %v1086_v52 = vld [vmem:[#allocation2 + $0x1e00] sm:$0xff]  ;;  %v14146_v56 = vcombine.high %v830_v50, %v838_v51  ;;  %6441 = vmatprep.subr.bf16.mxu1 %v14418_v49  ;;  %v14145_v62 = vcombine.low %v830_v50, %v838_v51  ;;  %v13811_v49 = vcombine.low %v495_v36, %v503_v37  ;;  %v13540_v50 = vcombine.high %v223_v42, %v231_v43  ;;  %v463_v2 = vld [vmem:[#allocation2 + $0xa88] sm:$0xff] }
  0xc7   :  { %v1094_v53 = vld [vmem:[#allocation2 + $0x1e40] sm:$0xff]  ;;  %6442 = vmatpush2.bf16.msra.mxu1 %v14417_v55  ;;  %v13796_v51 = vcombine.high %v479_v45, %v487_v46  ;;  %v471_v54 = vld [vmem:[#allocation2 + $0xac8] sm:$0xff]  ;;  %v13539_v55 = vcombine.low %v223_v42, %v231_v43  ;;  %v13795_v3 = vcombine.low %v479_v45, %v487_v46 }
  0xc8   :  { %v14402_v57 = vcombine.high %v1086_v52, %v1094_v53  ;;  %v814_v58 = vld [vmem:[#allocation2 + $0x1580] sm:$0xff]  ;;  %6402 = vmatprep.subr.bf16.mxu0 %v14146_v56  ;;  %v14401_v63 = vcombine.low %v1086_v52, %v1094_v53  ;;  %v207_v52 = vld [vmem:[#allocation2 + $0x288] sm:$0xff] }
  0xc9   :  { %v822_v59 = vld [vmem:[#allocation2 + $0x15c0] sm:$0xff]  ;;  %6403 = vmatpush2.bf16.msra.mxu0 %v14145_v62  ;;  %v215_v53 = vld [vmem:[#allocation2 + $0x2c8] sm:$0xff] }
  0xca   :  { %v1070_v60 = vld [vmem:[#allocation2 + $0x1d80] sm:$0xff]  ;;  %v14130_v6 = vcombine.high %v814_v58, %v822_v59  ;;  %6443 = vmatprep.subr.bf16.mxu1 %v14402_v57  ;;  %v14129_v12 = vcombine.low %v814_v58, %v822_v59  ;;  %v13524_v56 = vcombine.high %v207_v52, %v215_v53  ;;  %v13780_v57 = vcombine.high %v463_v2, %v471_v54  ;;  %v191_v58 = vld [vmem:[#allocation2 + $0x208] sm:$0xff] }
  0xcb   :  { %v1078_v61 = vld [vmem:[#allocation2 + $0x1dc0] sm:$0xff]  ;;  %6444 = vmatpush2.bf16.msra.mxu1 %v14401_v63  ;;  %v199_v59 = vld [vmem:[#allocation2 + $0x248] sm:$0xff]  ;;  %v13523_v62 = vcombine.low %v207_v52, %v215_v53  ;;  %v13779_v63 = vcombine.low %v463_v2, %v471_v54 }
  0xcc   :  { %v14386_v7 = vcombine.high %v1070_v60, %v1078_v61  ;;  %v798_v8 = vld [vmem:[#allocation2 + $0x1500] sm:$0xff]  ;;  %6404 = vmatprep.subr.bf16.mxu0 %v14130_v6  ;;  %v14385_v13 = vcombine.low %v1070_v60, %v1078_v61  ;;  %v447_v60 = vld [vmem:[#allocation2 + $0xa08] sm:$0xff]  ;;  %v13508_v6 = vcombine.high %v191_v58, %v199_v59 }
  0xcd   :  { %v806_v9 = vld [vmem:[#allocation2 + $0x1540] sm:$0xff]  ;;  %6405 = vmatpush2.bf16.msra.mxu0 %v14129_v12  ;;  %v455_v61 = vld [vmem:[#allocation2 + $0xa48] sm:$0xff]  ;;  %v13507_v12 = vcombine.low %v191_v58, %v199_v59 }
  0xce   :  { %v1054_v10 = vld [vmem:[#allocation2 + $0x1d00] sm:$0xff]  ;;  %v14114_v14 = vcombine.high %v798_v8, %v806_v9  ;;  %6445 = vmatprep.subr.bf16.mxu1 %v14386_v7  ;;  %v14113_v20 = vcombine.low %v798_v8, %v806_v9  ;;  %v13764_v7 = vcombine.high %v447_v60, %v455_v61  ;;  %v175_v8 = vld [vmem:[#allocation2 + $0x188] sm:$0xff] }
  0xcf   :  { %v1062_v11 = vld [vmem:[#allocation2 + $0x1d40] sm:$0xff]  ;;  %6446 = vmatpush2.bf16.msra.mxu1 %v14385_v13  ;;  %v183_v9 = vld [vmem:[#allocation2 + $0x1c8] sm:$0xff]  ;;  %v13763_v13 = vcombine.low %v447_v60, %v455_v61 }
  0xd0   :  { %v14370_v15 = vcombine.high %v1054_v10, %v1062_v11  ;;  %v782_v16 = vld [vmem:[#allocation2 + $0x1480] sm:$0xff]  ;;  %6406 = vmatprep.subr.bf16.mxu0 %v14114_v14  ;;  %v14369_v21 = vcombine.low %v1054_v10, %v1062_v11  ;;  %v431_v10 = vld [vmem:[#allocation2 + $0x988] sm:$0xff]  ;;  %v13492_v14 = vcombine.high %v175_v8, %v183_v9 }
  0xd1   :  { %v790_v17 = vld [vmem:[#allocation2 + $0x14c0] sm:$0xff]  ;;  %6407 = vmatpush2.bf16.msra.mxu0 %v14113_v20  ;;  %v439_v11 = vld [vmem:[#allocation2 + $0x9c8] sm:$0xff]  ;;  %v13491_v20 = vcombine.low %v175_v8, %v183_v9 }
  0xd2   :  { %v1038_v18 = vld [vmem:[#allocation2 + $0x1c80] sm:$0xff]  ;;  %v14098_v22 = vcombine.high %v782_v16, %v790_v17  ;;  %6447 = vmatprep.subr.bf16.mxu1 %v14370_v15  ;;  %v14097_v30 = vcombine.low %v782_v16, %v790_v17  ;;  %v13748_v15 = vcombine.high %v431_v10, %v439_v11  ;;  %v159_v16 = vld [vmem:[#allocation2 + $0x108] sm:$0xff] }
  0xd3   :  { %v1046_v19 = vld [vmem:[#allocation2 + $0x1cc0] sm:$0xff]  ;;  %6448 = vmatpush2.bf16.msra.mxu1 %v14369_v21  ;;  %v167_v17 = vld [vmem:[#allocation2 + $0x148] sm:$0xff]  ;;  %v13747_v21 = vcombine.low %v431_v10, %v439_v11 }
  0xd4   :  { %v14354_v23 = vcombine.high %v1038_v18, %v1046_v19  ;;  %v766_v24 = vld [vmem:[#allocation2 + $0x1400] sm:$0xff]  ;;  %6408 = vmatprep.subr.bf16.mxu0 %v14098_v22  ;;  %v14353_v31 = vcombine.low %v1038_v18, %v1046_v19  ;;  %v415_v18 = vld [vmem:[#allocation2 + $0x908] sm:$0xff]  ;;  %v13476_v22 = vcombine.high %v159_v16, %v167_v17 }
  0xd5   :  { %v774_v25 = vld [vmem:[#allocation2 + $0x1440] sm:$0xff]  ;;  %6409 = vmatpush2.bf16.msra.mxu0 %v14097_v30  ;;  %v423_v19 = vld [vmem:[#allocation2 + $0x948] sm:$0xff]  ;;  %v13475_v30 = vcombine.low %v159_v16, %v167_v17 }
  0xd6   :  { %v1022_v27 = vld [vmem:[#allocation2 + $0x1c00] sm:$0xff]  ;;  %v14082_v32 = vcombine.high %v766_v24, %v774_v25  ;;  %6449 = vmatprep.subr.bf16.mxu1 %v14354_v23  ;;  %v14081_v38 = vcombine.low %v766_v24, %v774_v25  ;;  %v13732_v23 = vcombine.high %v415_v18, %v423_v19  ;;  %v143_v24 = vld [vmem:[#allocation2 + $0x88] sm:$0xff] }
  0xd7   :  { %v1030_v28 = vld [vmem:[#allocation2 + $0x1c40] sm:$0xff]  ;;  %6450 = vmatpush2.bf16.msra.mxu1 %v14353_v31  ;;  %v151_v25 = vld [vmem:[#allocation2 + $0xc8] sm:$0xff]  ;;  %v13731_v31 = vcombine.low %v415_v18, %v423_v19 }
  0xd8   :  { %v14338_v33 = vcombine.high %v1022_v27, %v1030_v28  ;;  %6410 = vmatprep.subr.bf16.mxu0 %v14082_v32  ;;  %v14337_v39 = vcombine.low %v1022_v27, %v1030_v28  ;;  %v399_v27 = vld [vmem:[#allocation2 + $0x888] sm:$0xff]  ;;  %v13460_v32 = vcombine.high %v143_v24, %v151_v25 }
  0xd9   :  { %6411 = vmatpush2.bf16.msra.mxu0 %v14081_v38  ;;  %v407_v28 = vld [vmem:[#allocation2 + $0x8c8] sm:$0xff]  ;;  %v13459_v38 = vcombine.low %v143_v24, %v151_v25 }
  0xda   :  { %6451 = vmatprep.subr.bf16.mxu1 %v14338_v33  ;;  %6462 = vmatprep.subr.bf16.mxu0 %v13556_v40  ;;  %v13716_v33 = vcombine.high %v399_v27, %v407_v28  ;;  %v127_v34 = vld [vmem:[#allocation2 + $0x8] sm:$0xff] }
  0xdb   :  { %6452 = vmatpush2.bf16.msra.mxu1 %v14337_v39  ;;  %v135_v35 = vld [vmem:[#allocation2 + $0x48] sm:$0xff]  ;;  %v13715_v39 = vcombine.low %v399_v27, %v407_v28 }
  0xdc   :  { %6503 = vmatprep.subr.bf16.mxu1 %v13812_v41  ;;  %6413 = vmatmul.mubr.bf16.vlgmr.msra.gmra.mxu0 %v16322_v44  ;;  %v383_v36 = vld [vmem:[#allocation2 + $0x808] sm:$0xff]  ;;  %v13444_v40 = vcombine.high %v127_v34, %v135_v35 }
  0xdd   :  { %6463 = vmatpush1.bf16.msra.mxu0 %v13555_v48  ;;  %6494 = vmatprep.mubr.bf16.mxu0 %v16292_v4  ;;  %v391_v37 = vld [vmem:[#allocation2 + $0x848] sm:$0xff]  ;;  %v13443_v48 = vcombine.low %v127_v34, %v135_v35 }
  0xde   :  { %6454 = vmatmul.mubr.bf16.vlgmr.msra.gmra.mxu1 %v16326_v47  ;;  %6464 = vmatprep.subr.bf16.mxu0 %v13540_v50  ;;  %v13700_v41 = vcombine.high %v383_v36, %v391_v37  ;;  %v367_v42 = vld [vmem:[#allocation2 + $0x788] sm:$0xff] }
  0xdf   :  { %6504 = vmatpush1.bf16.msra.mxu1 %v13811_v49  ;;  %6535 = vmatprep.mubr.bf16.mxu1 %v16296_v5  ;;  %v375_v43 = vld [vmem:[#allocation2 + $0x7c8] sm:$0xff]  ;;  %v13699_v49 = vcombine.low %v383_v36, %v391_v37 }
  0xe0   :  { %6505 = vmatprep.subr.bf16.mxu1 %v13796_v51  ;;  %v623_v45 = vld [vmem:[#allocation2 + $0xf88] sm:$0xff]  ;;  %v13684_v50 = vcombine.high %v367_v42, %v375_v43 }
  0xe1   :  { %6465 = vmatpush1.bf16.msra.mxu0 %v13539_v55  ;;  %v631_v46 = vld [vmem:[#allocation2 + $0xfc8] sm:$0xff]  ;;  %v13683_v55 = vcombine.low %v367_v42, %v375_v43 }
  0xe2   :  { %6466 = vmatprep.subr.bf16.mxu0 %v13524_v56  ;;  %v13940_v51 = vcombine.high %v623_v45, %v631_v46  ;;  %v351_v52 = vld [vmem:[#allocation2 + $0x708] sm:$0xff] }
  0xe3   :  { %6506 = vmatpush1.bf16.msra.mxu1 %v13795_v3  ;;  %v359_v53 = vld [vmem:[#allocation2 + $0x748] sm:$0xff]  ;;  %v13939_v3 = vcombine.low %v623_v45, %v631_v46 }
  0xe4   :  { %6507 = vmatprep.subr.bf16.mxu1 %v13780_v57  ;;  %v607_v2 = vld [vmem:[#allocation2 + $0xf08] sm:$0xff]  ;;  %v13668_v56 = vcombine.high %v351_v52, %v359_v53 }
  0xe5   :  { %6467 = vmatpush1.bf16.msra.mxu0 %v13523_v62  ;;  %v615_v54 = vld [vmem:[#allocation2 + $0xf48] sm:$0xff]  ;;  %v13667_v62 = vcombine.low %v351_v52, %v359_v53 }
  0xe6   :  { %6468 = vmatprep.subr.bf16.mxu0 %v13508_v6  ;;  %v13924_v57 = vcombine.high %v607_v2, %v615_v54  ;;  %v335_v58 = vld [vmem:[#allocation2 + $0x688] sm:$0xff] }
  0xe7   :  { %6508 = vmatpush1.bf16.msra.mxu1 %v13779_v63  ;;  %v343_v59 = vld [vmem:[#allocation2 + $0x6c8] sm:$0xff]  ;;  %v13923_v63 = vcombine.low %v607_v2, %v615_v54 }
  0xe8   :  { %6509 = vmatprep.subr.bf16.mxu1 %v13764_v7  ;;  %v591_v60 = vld [vmem:[#allocation2 + $0xe88] sm:$0xff]  ;;  %v13652_v6 = vcombine.high %v335_v58, %v343_v59 }
  0xe9   :  { %6469 = vmatpush1.bf16.msra.mxu0 %v13507_v12  ;;  %v599_v61 = vld [vmem:[#allocation2 + $0xec8] sm:$0xff]  ;;  %v13651_v12 = vcombine.low %v335_v58, %v343_v59 }
  0xea   :  { %6470 = vmatprep.subr.bf16.mxu0 %v13492_v14  ;;  %v13908_v7 = vcombine.high %v591_v60, %v599_v61  ;;  %v319_v8 = vld [vmem:[#allocation2 + $0x608] sm:$0xff] }
  0xeb   :  { %6510 = vmatpush1.bf16.msra.mxu1 %v13763_v13  ;;  %v327_v9 = vld [vmem:[#allocation2 + $0x648] sm:$0xff]  ;;  %v13907_v13 = vcombine.low %v591_v60, %v599_v61 }
  0xec   :  { %6511 = vmatprep.subr.bf16.mxu1 %v13748_v15  ;;  %v575_v10 = vld [vmem:[#allocation2 + $0xe08] sm:$0xff]  ;;  %v13636_v14 = vcombine.high %v319_v8, %v327_v9 }
  0xed   :  { %6471 = vmatpush1.bf16.msra.mxu0 %v13491_v20  ;;  %v583_v11 = vld [vmem:[#allocation2 + $0xe48] sm:$0xff]  ;;  %v13635_v20 = vcombine.low %v319_v8, %v327_v9 }
  0xee   :  { %6472 = vmatprep.subr.bf16.mxu0 %v13476_v22  ;;  %v13892_v15 = vcombine.high %v575_v10, %v583_v11  ;;  %v303_v16 = vld [vmem:[#allocation2 + $0x588] sm:$0xff] }
  0xef   :  { %6512 = vmatpush1.bf16.msra.mxu1 %v13747_v21  ;;  %v311_v17 = vld [vmem:[#allocation2 + $0x5c8] sm:$0xff]  ;;  %v13891_v21 = vcombine.low %v575_v10, %v583_v11 }
  0xf0   :  { %6513 = vmatprep.subr.bf16.mxu1 %v13732_v23  ;;  %v559_v18 = vld [vmem:[#allocation2 + $0xd88] sm:$0xff]  ;;  %v13620_v22 = vcombine.high %v303_v16, %v311_v17 }
  0xf1   :  { %6473 = vmatpush1.bf16.msra.mxu0 %v13475_v30  ;;  %v567_v19 = vld [vmem:[#allocation2 + $0xdc8] sm:$0xff]  ;;  %v13619_v30 = vcombine.low %v303_v16, %v311_v17 }
  0xf2   :  { %6474 = vmatprep.subr.bf16.mxu0 %v13460_v32  ;;  %v13876_v23 = vcombine.high %v559_v18, %v567_v19  ;;  %v287_v24 = vld [vmem:[#allocation2 + $0x508] sm:$0xff] }
  0xf3   :  { %6514 = vmatpush1.bf16.msra.mxu1 %v13731_v31  ;;  %v295_v25 = vld [vmem:[#allocation2 + $0x548] sm:$0xff]  ;;  %v13875_v31 = vcombine.low %v559_v18, %v567_v19 }
  0xf4   :  { %6515 = vmatprep.subr.bf16.mxu1 %v13716_v33  ;;  %v543_v27 = vld [vmem:[#allocation2 + $0xd08] sm:$0xff]  ;;  %v13604_v32 = vcombine.high %v287_v24, %v295_v25 }
  0xf5   :  { %6475 = vmatpush1.bf16.msra.mxu0 %v13459_v38  ;;  %v551_v28 = vld [vmem:[#allocation2 + $0xd48] sm:$0xff]  ;;  %v13603_v38 = vcombine.low %v287_v24, %v295_v25 }
  0xf6   :  { %6476 = vmatprep.subr.bf16.mxu0 %v13444_v40  ;;  %v13860_v33 = vcombine.high %v543_v27, %v551_v28  ;;  %v271_v34 = vld [vmem:[#allocation2 + $0x488] sm:$0xff] }
  0xf7   :  { %6516 = vmatpush1.bf16.msra.mxu1 %v13715_v39  ;;  %v279_v35 = vld [vmem:[#allocation2 + $0x4c8] sm:$0xff]  ;;  %v13859_v39 = vcombine.low %v543_v27, %v551_v28 }
  0xf8   :  { %6517 = vmatprep.subr.bf16.mxu1 %v13700_v41  ;;  %v527_v36 = vld [vmem:[#allocation2 + $0xc88] sm:$0xff]  ;;  %v13588_v40 = vcombine.high %v271_v34, %v279_v35 }
  0xf9   :  { %6477 = vmatpush1.bf16.msra.mxu0 %v13443_v48  ;;  %v535_v37 = vld [vmem:[#allocation2 + $0xcc8] sm:$0xff]  ;;  %v13587_v48 = vcombine.low %v271_v34, %v279_v35 }
  0xfa   :  { %6478 = vmatprep.subr.bf16.mxu0 %v13684_v50  ;;  %v13844_v41 = vcombine.high %v527_v36, %v535_v37  ;;  %v255_v42 = vld [vmem:[#allocation2 + $0x408] sm:$0xff] }
  0xfb   :  { %6518 = vmatpush1.bf16.msra.mxu1 %v13699_v49  ;;  %v263_v43 = vld [vmem:[#allocation2 + $0x448] sm:$0xff]  ;;  %v13843_v49 = vcombine.low %v527_v36, %v535_v37 }
  0xfc   :  { %6519 = vmatprep.subr.bf16.mxu1 %v13940_v51  ;;  %v511_v45 = vld [vmem:[#allocation2 + $0xc08] sm:$0xff]  ;;  %v13572_v50 = vcombine.high %v255_v42, %v263_v43 }
  0xfd   :  { %6479 = vmatpush2.bf16.msra.mxu0 %v13683_v55  ;;  %v519_v46 = vld [vmem:[#allocation2 + $0xc48] sm:$0xff]  ;;  %v13571_v55 = vcombine.low %v255_v42, %v263_v43 }
  0xfe   :  { %6480 = vmatprep.subr.bf16.mxu0 %v13668_v56  ;;  %v13828_v51 = vcombine.high %v511_v45, %v519_v46  ;;  %v751_v52 = vld [vmem:[#allocation2 + $0x1388] sm:$0xff] }
  0xff   :  { %6520 = vmatpush2.bf16.msra.mxu1 %v13939_v3  ;;  %v759_v53 = vld [vmem:[#allocation2 + $0x13c8] sm:$0xff]  ;;  %v13827_v3 = vcombine.low %v511_v45, %v519_v46 }
 0x100   :  { %6521 = vmatprep.subr.bf16.mxu1 %v13924_v57  ;;  %v1007_v2 = vld [vmem:[#allocation2 + $0x1b88] sm:$0xff]  ;;  %v14068_v56 = vcombine.high %v751_v52, %v759_v53 }
 0x101   :  { %6481 = vmatpush2.bf16.msra.mxu0 %v13667_v62  ;;  %v1015_v54 = vld [vmem:[#allocation2 + $0x1bc8] sm:$0xff]  ;;  %v14067_v62 = vcombine.low %v751_v52, %v759_v53 }
 0x102   :  { %6482 = vmatprep.subr.bf16.mxu0 %v13652_v6  ;;  %v14324_v57 = vcombine.high %v1007_v2, %v1015_v54  ;;  %v735_v58 = vld [vmem:[#allocation2 + $0x1308] sm:$0xff] }
 0x103   :  { %6522 = vmatpush2.bf16.msra.mxu1 %v13923_v63  ;;  %v743_v59 = vld [vmem:[#allocation2 + $0x1348] sm:$0xff]  ;;  %v14323_v63 = vcombine.low %v1007_v2, %v1015_v54 }
 0x104   :  { %6523 = vmatprep.subr.bf16.mxu1 %v13908_v7  ;;  %v991_v60 = vld [vmem:[#allocation2 + $0x1b08] sm:$0xff]  ;;  %v14052_v6 = vcombine.high %v735_v58, %v743_v59 }
 0x105   :  { %6483 = vmatpush2.bf16.msra.mxu0 %v13651_v12  ;;  %v999_v61 = vld [vmem:[#allocation2 + $0x1b48] sm:$0xff]  ;;  %v14051_v12 = vcombine.low %v735_v58, %v743_v59 }
 0x106   :  { %6484 = vmatprep.subr.bf16.mxu0 %v13636_v14  ;;  %v14308_v7 = vcombine.high %v991_v60, %v999_v61  ;;  %v719_v8 = vld [vmem:[#allocation2 + $0x1288] sm:$0xff] }
 0x107   :  { %6524 = vmatpush2.bf16.msra.mxu1 %v13907_v13  ;;  %v727_v9 = vld [vmem:[#allocation2 + $0x12c8] sm:$0xff]  ;;  %v14307_v13 = vcombine.low %v991_v60, %v999_v61 }
 0x108   :  { %6525 = vmatprep.subr.bf16.mxu1 %v13892_v15  ;;  %v975_v10 = vld [vmem:[#allocation2 + $0x1a88] sm:$0xff]  ;;  %v14036_v14 = vcombine.high %v719_v8, %v727_v9 }
 0x109   :  { %6485 = vmatpush2.bf16.msra.mxu0 %v13635_v20  ;;  %v983_v11 = vld [vmem:[#allocation2 + $0x1ac8] sm:$0xff]  ;;  %v14035_v20 = vcombine.low %v719_v8, %v727_v9 }
 0x10a   :  { %6486 = vmatprep.subr.bf16.mxu0 %v13620_v22  ;;  %v14292_v15 = vcombine.high %v975_v10, %v983_v11  ;;  %v703_v16 = vld [vmem:[#allocation2 + $0x1208] sm:$0xff] }
 0x10b   :  { %6526 = vmatpush2.bf16.msra.mxu1 %v13891_v21  ;;  %v711_v17 = vld [vmem:[#allocation2 + $0x1248] sm:$0xff]  ;;  %v14291_v21 = vcombine.low %v975_v10, %v983_v11 }
 0x10c   :  { %6527 = vmatprep.subr.bf16.mxu1 %v13876_v23  ;;  %v959_v18 = vld [vmem:[#allocation2 + $0x1a08] sm:$0xff]  ;;  %v14020_v22 = vcombine.high %v703_v16, %v711_v17 }
 0x10d   :  { %6487 = vmatpush2.bf16.msra.mxu0 %v13619_v30  ;;  %v967_v19 = vld [vmem:[#allocation2 + $0x1a48] sm:$0xff]  ;;  %v14019_v30 = vcombine.low %v703_v16, %v711_v17 }
 0x10e   :  { %6488 = vmatprep.subr.bf16.mxu0 %v13604_v32  ;;  %v14276_v23 = vcombine.high %v959_v18, %v967_v19  ;;  %v687_v24 = vld [vmem:[#allocation2 + $0x1188] sm:$0xff] }
 0x10f   :  { %6528 = vmatpush2.bf16.msra.mxu1 %v13875_v31  ;;  %v695_v25 = vld [vmem:[#allocation2 + $0x11c8] sm:$0xff]  ;;  %v14275_v31 = vcombine.low %v959_v18, %v967_v19 }
 0x110   :  { %6529 = vmatprep.subr.bf16.mxu1 %v13860_v33  ;;  %v943_v27 = vld [vmem:[#allocation2 + $0x1988] sm:$0xff]  ;;  %v14004_v32 = vcombine.high %v687_v24, %v695_v25 }
 0x111   :  { %6489 = vmatpush2.bf16.msra.mxu0 %v13603_v38  ;;  %v951_v28 = vld [vmem:[#allocation2 + $0x19c8] sm:$0xff]  ;;  %v14003_v38 = vcombine.low %v687_v24, %v695_v25 }
 0x112   :  { %6490 = vmatprep.subr.bf16.mxu0 %v13588_v40  ;;  %v14260_v33 = vcombine.high %v943_v27, %v951_v28  ;;  %v671_v34 = vld [vmem:[#allocation2 + $0x1108] sm:$0xff] }
 0x113   :  { %6530 = vmatpush2.bf16.msra.mxu1 %v13859_v39  ;;  %v679_v35 = vld [vmem:[#allocation2 + $0x1148] sm:$0xff]  ;;  %v14259_v39 = vcombine.low %v943_v27, %v951_v28 }
 0x114   :  { %6531 = vmatprep.subr.bf16.mxu1 %v13844_v41  ;;  %v927_v36 = vld [vmem:[#allocation2 + $0x1908] sm:$0xff]  ;;  %v13988_v40 = vcombine.high %v671_v34, %v679_v35 }
 0x115   :  { %6491 = vmatpush2.bf16.msra.mxu0 %v13587_v48  ;;  %v935_v37 = vld [vmem:[#allocation2 + $0x1948] sm:$0xff]  ;;  %v13987_v48 = vcombine.low %v671_v34, %v679_v35 }
 0x116   :  { %6492 = vmatprep.subr.bf16.mxu0 %v13572_v50  ;;  %v14244_v41 = vcombine.high %v927_v36, %v935_v37  ;;  %v655_v42 = vld [vmem:[#allocation2 + $0x1088] sm:$0xff] }
 0x117   :  { %6532 = vmatpush2.bf16.msra.mxu1 %v13843_v49  ;;  %v663_v43 = vld [vmem:[#allocation2 + $0x10c8] sm:$0xff]  ;;  %v14243_v49 = vcombine.low %v927_v36, %v935_v37 }
 0x118   :  { %6533 = vmatprep.subr.bf16.mxu1 %v13828_v51  ;;  %v911_v45 = vld [vmem:[#allocation2 + $0x1888] sm:$0xff]  ;;  %v13972_v50 = vcombine.high %v655_v42, %v663_v43 }
 0x119   :  { %6493 = vmatpush2.bf16.msra.mxu0 %v13571_v55  ;;  %v919_v46 = vld [vmem:[#allocation2 + $0x18c8] sm:$0xff]  ;;  %v13971_v55 = vcombine.low %v655_v42, %v663_v43 }
 0x11a   :  { %6544 = vmatprep.subr.bf16.mxu0 %v14068_v56  ;;  %v14228_v51 = vcombine.high %v911_v45, %v919_v46  ;;  %v639_v52 = vld [vmem:[#allocation2 + $0x1008] sm:$0xff] }
 0x11b   :  { %6534 = vmatpush2.bf16.msra.mxu1 %v13827_v3  ;;  %v647_v53 = vld [vmem:[#allocation2 + $0x1048] sm:$0xff]  ;;  %v14227_v3 = vcombine.low %v911_v45, %v919_v46 }
 0x11c   :  { %6585 = vmatprep.subr.bf16.mxu1 %v14324_v57  ;;  %6495 = vmatmul.mubr.bf16.vlgmr.msra.gmra.mxu0 %v16302_v26  ;;  %v895_v2 = vld [vmem:[#allocation2 + $0x1808] sm:$0xff]  ;;  %v13956_v56 = vcombine.high %v639_v52, %v647_v53 }
 0x11d   :  { %6545 = vmatpush1.bf16.msra.mxu0 %v14067_v62  ;;  %6576 = vmatprep.mubr.bf16.mxu0 %v16310_v0  ;;  %v903_v54 = vld [vmem:[#allocation2 + $0x1848] sm:$0xff]  ;;  %v13955_v62 = vcombine.low %v639_v52, %v647_v53 }
 0x11e   :  { %6536 = vmatmul.mubr.bf16.vlgmr.msra.gmra.mxu1 %v16306_v29  ;;  %6546 = vmatprep.subr.bf16.mxu0 %v14052_v6  ;;  %v14212_v57 = vcombine.high %v895_v2, %v903_v54  ;;  %v879_v58 = vld [vmem:[#allocation2 + $0x1788] sm:$0xff] }
 0x11f   :  { %6586 = vmatpush1.bf16.msra.mxu1 %v14323_v63  ;;  %6617 = vmatprep.mubr.bf16.mxu1 %v16315_v1  ;;  %v887_v59 = vld [vmem:[#allocation2 + $0x17c8] sm:$0xff]  ;;  %v14211_v63 = vcombine.low %v895_v2, %v903_v54 }
 0x120   :  { %6587 = vmatprep.subr.bf16.mxu1 %v14308_v7  ;;  %v1135_v60 = vld [vmem:[#allocation2 + $0x1f88] sm:$0xff]  ;;  %v14196_v6 = vcombine.high %v879_v58, %v887_v59 }
 0x121   :  { %6547 = vmatpush1.bf16.msra.mxu0 %v14051_v12  ;;  %v1143_v61 = vld [vmem:[#allocation2 + $0x1fc8] sm:$0xff]  ;;  %v14195_v12 = vcombine.low %v879_v58, %v887_v59 }
 0x122   :  { %6548 = vmatprep.subr.bf16.mxu0 %v14036_v14  ;;  %v14452_v7 = vcombine.high %v1135_v60, %v1143_v61  ;;  %v863_v8 = vld [vmem:[#allocation2 + $0x1708] sm:$0xff] }
 0x123   :  { %6588 = vmatpush1.bf16.msra.mxu1 %v14307_v13  ;;  %v871_v9 = vld [vmem:[#allocation2 + $0x1748] sm:$0xff]  ;;  %v14451_v13 = vcombine.low %v1135_v60, %v1143_v61 }
 0x124   :  { %6589 = vmatprep.subr.bf16.mxu1 %v14292_v15  ;;  %v1119_v10 = vld [vmem:[#allocation2 + $0x1f08] sm:$0xff]  ;;  %v14180_v14 = vcombine.high %v863_v8, %v871_v9 }
 0x125   :  { %6549 = vmatpush1.bf16.msra.mxu0 %v14035_v20  ;;  %v1127_v11 = vld [vmem:[#allocation2 + $0x1f48] sm:$0xff]  ;;  %v14179_v20 = vcombine.low %v863_v8, %v871_v9  ;;  %v240_v8 = vld [vmem:[#allocation2 + $0x390] sm:$0xff] }
 0x126   :  { %6550 = vmatprep.subr.bf16.mxu0 %v14020_v22  ;;  %v14436_v15 = vcombine.high %v1119_v10, %v1127_v11  ;;  %v847_v16 = vld [vmem:[#allocation2 + $0x1688] sm:$0xff]  ;;  %v248_v9 = vld [vmem:[#allocation2 + $0x3d0] sm:$0xff] }
 0x127   :  { %6590 = vmatpush1.bf16.msra.mxu1 %v14291_v21  ;;  %v855_v17 = vld [vmem:[#allocation2 + $0x16c8] sm:$0xff]  ;;  %v14435_v21 = vcombine.low %v1119_v10, %v1127_v11  ;;  %v496_v10 = vld [vmem:[#allocation2 + $0xb90] sm:$0xff] }
 0x128   :  { %6591 = vmatprep.subr.bf16.mxu1 %v14276_v23  ;;  %v1103_v18 = vld [vmem:[#allocation2 + $0x1e88] sm:$0xff]  ;;  %v14164_v22 = vcombine.high %v847_v16, %v855_v17  ;;  %v504_v11 = vld [vmem:[#allocation2 + $0xbd0] sm:$0xff] }
 0x129   :  { %6551 = vmatpush1.bf16.msra.mxu0 %v14019_v30  ;;  %v1111_v19 = vld [vmem:[#allocation2 + $0x1ec8] sm:$0xff]  ;;  %v14163_v30 = vcombine.low %v847_v16, %v855_v17  ;;  %v224_v16 = vld [vmem:[#allocation2 + $0x310] sm:$0xff] }
 0x12a   :  { %6552 = vmatprep.subr.bf16.mxu0 %v14004_v32  ;;  %v14420_v23 = vcombine.high %v1103_v18, %v1111_v19  ;;  %v831_v24 = vld [vmem:[#allocation2 + $0x1608] sm:$0xff]  ;;  %v232_v17 = vld [vmem:[#allocation2 + $0x350] sm:$0xff] }
 0x12b   :  { %6592 = vmatpush1.bf16.msra.mxu1 %v14275_v31  ;;  %v839_v25 = vld [vmem:[#allocation2 + $0x1648] sm:$0xff]  ;;  %v14419_v31 = vcombine.low %v1103_v18, %v1111_v19  ;;  %v480_v18 = vld [vmem:[#allocation2 + $0xb10] sm:$0xff] }
 0x12c   :  { %6593 = vmatprep.subr.bf16.mxu1 %v14260_v33  ;;  %v1087_v27 = vld [vmem:[#allocation2 + $0x1e08] sm:$0xff]  ;;  %v14148_v32 = vcombine.high %v831_v24, %v839_v25  ;;  %v488_v19 = vld [vmem:[#allocation2 + $0xb50] sm:$0xff] }
 0x12d   :  { %6553 = vmatpush1.bf16.msra.mxu0 %v14003_v38  ;;  %v1095_v28 = vld [vmem:[#allocation2 + $0x1e48] sm:$0xff]  ;;  %v14147_v38 = vcombine.low %v831_v24, %v839_v25  ;;  %v208_v24 = vld [vmem:[#allocation2 + $0x290] sm:$0xff] }
 0x12e   :  { %6554 = vmatprep.subr.bf16.mxu0 %v13988_v40  ;;  %v14404_v33 = vcombine.high %v1087_v27, %v1095_v28  ;;  %v815_v34 = vld [vmem:[#allocation2 + $0x1588] sm:$0xff]  ;;  %v216_v25 = vld [vmem:[#allocation2 + $0x2d0] sm:$0xff] }
 0x12f   :  { %6594 = vmatpush1.bf16.msra.mxu1 %v14259_v39  ;;  %v823_v35 = vld [vmem:[#allocation2 + $0x15c8] sm:$0xff]  ;;  %v14403_v39 = vcombine.low %v1087_v27, %v1095_v28  ;;  %v464_v28 = vld [vmem:[#allocation2 + $0xa90] sm:$0xff] }
 0x130   :  { %6595 = vmatprep.subr.bf16.mxu1 %v14244_v41  ;;  %v1071_v36 = vld [vmem:[#allocation2 + $0x1d88] sm:$0xff]  ;;  %v14132_v40 = vcombine.high %v815_v34, %v823_v35 }
 0x131   :  { %6555 = vmatpush1.bf16.msra.mxu0 %v13987_v48  ;;  %v1079_v37 = vld [vmem:[#allocation2 + $0x1dc8] sm:$0xff]  ;;  %v14131_v48 = vcombine.low %v815_v34, %v823_v35  ;;  %v13797_v35 = vcombine.low %v480_v18, %v488_v19 }
 0x132   :  { %6556 = vmatprep.subr.bf16.mxu0 %v13972_v50  ;;  %v14388_v41 = vcombine.high %v1071_v36, %v1079_v37  ;;  %v799_v42 = vld [vmem:[#allocation2 + $0x1508] sm:$0xff] }
 0x133   :  { %6596 = vmatpush1.bf16.msra.mxu1 %v14243_v49  ;;  %v807_v43 = vld [vmem:[#allocation2 + $0x1548] sm:$0xff]  ;;  %v14387_v49 = vcombine.low %v1071_v36, %v1079_v37  ;;  %v13526_v36 = vcombine.high %v208_v24, %v216_v25 }
 0x134   :  { %6597 = vmatprep.subr.bf16.mxu1 %v14228_v51  ;;  %v1055_v45 = vld [vmem:[#allocation2 + $0x1d08] sm:$0xff]  ;;  %v14116_v50 = vcombine.high %v799_v42, %v807_v43 }
 0x135   :  { %6557 = vmatpush1.bf16.msra.mxu0 %v13971_v55  ;;  %v1063_v46 = vld [vmem:[#allocation2 + $0x1d48] sm:$0xff]  ;;  %v14115_v55 = vcombine.low %v799_v42, %v807_v43  ;;  %v448_v43 = vld [vmem:[#allocation2 + $0xa10] sm:$0xff] }
 0x136   :  { %6558 = vmatprep.subr.bf16.mxu0 %v13956_v56  ;;  %v14372_v51 = vcombine.high %v1055_v45, %v1063_v46  ;;  %v783_v52 = vld [vmem:[#allocation2 + $0x1488] sm:$0xff] }
 0x137   :  { %6598 = vmatpush1.bf16.msra.mxu1 %v14227_v3  ;;  %v791_v53 = vld [vmem:[#allocation2 + $0x14c8] sm:$0xff]  ;;  %v14371_v3 = vcombine.low %v1055_v45, %v1063_v46  ;;  %v456_v45 = vld [vmem:[#allocation2 + $0xa50] sm:$0xff] }
 0x138   :  { %6599 = vmatprep.subr.bf16.mxu1 %v14212_v57  ;;  %v1039_v2 = vld [vmem:[#allocation2 + $0x1c88] sm:$0xff]  ;;  %v14100_v56 = vcombine.high %v783_v52, %v791_v53 }
 0x139   :  { %6559 = vmatpush1.bf16.msra.mxu0 %v13955_v62  ;;  %v1047_v54 = vld [vmem:[#allocation2 + $0x1cc8] sm:$0xff]  ;;  %v14099_v62 = vcombine.low %v783_v52, %v791_v53  ;;  %v13766_v53 = vcombine.high %v448_v43, %v456_v45 }
 0x13a   :  { %6560 = vmatprep.subr.bf16.mxu0 %v14196_v6  ;;  %v14356_v57 = vcombine.high %v1039_v2, %v1047_v54  ;;  %v767_v58 = vld [vmem:[#allocation2 + $0x1408] sm:$0xff] }
 0x13b   :  { %6600 = vmatpush1.bf16.msra.mxu1 %v14211_v63  ;;  %v775_v59 = vld [vmem:[#allocation2 + $0x1448] sm:$0xff]  ;;  %v14355_v63 = vcombine.low %v1039_v2, %v1047_v54  ;;  %v176_v2 = vld [vmem:[#allocation2 + $0x190] sm:$0xff] }
 0x13c   :  { %6601 = vmatprep.subr.bf16.mxu1 %v14452_v7  ;;  %v1023_v60 = vld [vmem:[#allocation2 + $0x1c08] sm:$0xff]  ;;  %v14084_v6 = vcombine.high %v767_v58, %v775_v59  ;;  %v184_v54 = vld [vmem:[#allocation2 + $0x1d0] sm:$0xff] }
 0x13d   :  { %6561 = vmatpush2.bf16.msra.mxu0 %v14195_v12  ;;  %v1031_v61 = vld [vmem:[#allocation2 + $0x1c48] sm:$0xff]  ;;  %v14083_v12 = vcombine.low %v767_v58, %v775_v59  ;;  %v13494_v58 = vcombine.high %v176_v2, %v184_v54 }
 0x13e   :  { %6562 = vmatprep.subr.bf16.mxu0 %v14180_v14  ;;  %v14340_v7 = vcombine.high %v1023_v60, %v1031_v61  ;;  %v13558_v14 = vcombine.high %v240_v8, %v248_v9 }
 0x13f   :  { %6602 = vmatpush2.bf16.msra.mxu1 %v14451_v13  ;;  %v14339_v13 = vcombine.low %v1023_v60, %v1031_v61  ;;  %v160_v60 = vld [vmem:[#allocation2 + $0x110] sm:$0xff] }
 0x140   :  { %6603 = vmatprep.subr.bf16.mxu1 %v14436_v15  ;;  %v13814_v15 = vcombine.high %v496_v10, %v504_v11  ;;  %v168_v61 = vld [vmem:[#allocation2 + $0x150] sm:$0xff] }
 0x141   :  { %6563 = vmatpush2.bf16.msra.mxu0 %v14179_v20  ;;  %v13557_v20 = vcombine.low %v240_v8, %v248_v9  ;;  %v13478_v8 = vcombine.high %v160_v60, %v168_v61 }
 0x142   :  { %6564 = vmatprep.subr.bf16.mxu0 %v14164_v22  ;;  %v13542_v22 = vcombine.high %v224_v16, %v232_v17 }
 0x143   :  { %6604 = vmatpush2.bf16.msra.mxu1 %v14435_v21  ;;  %v13813_v21 = vcombine.low %v496_v10, %v504_v11  ;;  %v144_v10 = vld [vmem:[#allocation2 + $0x90] sm:$0xff] }
 0x144   :  { %6605 = vmatprep.subr.bf16.mxu1 %v14420_v23  ;;  %v13798_v23 = vcombine.high %v480_v18, %v488_v19  ;;  %v152_v11 = vld [vmem:[#allocation2 + $0xd0] sm:$0xff] }
 0x145   :  { %6565 = vmatpush2.bf16.msra.mxu0 %v14163_v30  ;;  %v472_v30 = vld [vmem:[#allocation2 + $0xad0] sm:$0xff] }
 0x146   :  { %6566 = vmatprep.subr.bf16.mxu0 %v14148_v32  ;;  %v13541_v32 = vcombine.low %v224_v16, %v232_v17  ;;  %v13462_v16 = vcombine.high %v144_v10, %v152_v11  ;;  %v128_v18 = vld [vmem:[#allocation2 + $0x10] sm:$0xff] }
 0x147   :  { %6606 = vmatpush2.bf16.msra.mxu1 %v14419_v31  ;;  %v136_v19 = vld [vmem:[#allocation2 + $0x50] sm:$0xff] }
 0x148   :  { %6607 = vmatprep.subr.bf16.mxu1 %v14404_v33 }
 0x149   :  { %6567 = vmatpush2.bf16.msra.mxu0 %v14147_v38  ;;  %v13782_v38 = vcombine.high %v464_v28, %v472_v30 }
 0x14a   :  { %6568 = vmatprep.subr.bf16.mxu0 %v14132_v40  ;;  %v200_v40 = vld [vmem:[#allocation2 + $0x250] sm:$0xff] }
 0x14b   :  { %6608 = vmatpush2.bf16.msra.mxu1 %v14403_v39  ;;  %v192_v39 = vld [vmem:[#allocation2 + $0x210] sm:$0xff] }
 0x14c   :  { %6609 = vmatprep.subr.bf16.mxu1 %v14388_v41 }
 0x14d   :  { %6569 = vmatpush2.bf16.msra.mxu0 %v14131_v48  ;;  %v13525_v48 = vcombine.low %v208_v24, %v216_v25  ;;  %v13446_v24 = vcombine.high %v128_v18, %v136_v19 }
 0x14e   :  { %6570 = vmatprep.subr.bf16.mxu0 %v14116_v50  ;;  %v13781_v50 = vcombine.low %v464_v28, %v472_v30  ;;  %v376_v28 = vld [vmem:[#allocation2 + $0x7d0] sm:$0xff] }
 0x14f   :  { %6610 = vmatpush2.bf16.msra.mxu1 %v14387_v49  ;;  %v624_v30 = vld [vmem:[#allocation2 + $0xf90] sm:$0xff] }
 0x150   :  { %6611 = vmatprep.subr.bf16.mxu1 %v14372_v51  ;;  %v13510_v51 = vcombine.high %v192_v39, %v200_v40 }
 0x151   :  { %6571 = vmatpush2.bf16.msra.mxu0 %v14115_v55  ;;  %v432_v55 = vld [vmem:[#allocation2 + $0x990] sm:$0xff] }
 0x152   :  { %6572 = vmatprep.subr.bf16.mxu0 %v14100_v56  ;;  %v13509_v56 = vcombine.low %v192_v39, %v200_v40  ;;  %v608_v39 = vld [vmem:[#allocation2 + $0xf10] sm:$0xff] }
 0x153   :  { %6612 = vmatpush2.bf16.msra.mxu1 %v14371_v3  ;;  %v440_v3 = vld [vmem:[#allocation2 + $0x9d0] sm:$0xff] }
 0x154   :  { %6613 = vmatprep.subr.bf16.mxu1 %v14356_v57  ;;  %v13765_v57 = vcombine.low %v448_v43, %v456_v45  ;;  %v13750_v59 = vcombine.high %v432_v55, %v440_v3  ;;  %v616_v40 = vld [vmem:[#allocation2 + $0xf50] sm:$0xff] }
 0x155   :  { %6573 = vmatpush2.bf16.msra.mxu0 %v14099_v62  ;;  %v416_v62 = vld [vmem:[#allocation2 + $0x910] sm:$0xff] }
 0x156   :  { %6574 = vmatprep.subr.bf16.mxu0 %v14084_v6  ;;  %v13493_v6 = vcombine.low %v176_v2, %v184_v54 }
 0x157   :  { %6614 = vmatpush2.bf16.msra.mxu1 %v14355_v63  ;;  %v424_v63 = vld [vmem:[#allocation2 + $0x950] sm:$0xff] }
 0x158   :  { %6615 = vmatprep.subr.bf16.mxu1 %v14340_v7  ;;  %v13749_v7 = vcombine.low %v432_v55, %v440_v3  ;;  %v13734_v9 = vcombine.high %v416_v62, %v424_v63  ;;  %v320_v55 = vld [vmem:[#allocation2 + $0x610] sm:$0xff] }
 0x159   :  { %6575 = vmatpush2.bf16.msra.mxu0 %v14083_v12  ;;  %v400_v12 = vld [vmem:[#allocation2 + $0x890] sm:$0xff] }
 0x15a   :  { %6626 = vmatprep.subr.bf16.mxu0 %v13558_v14  ;;  %v13477_v14 = vcombine.low %v160_v60, %v168_v61  ;;  %v328_v3 = vld [vmem:[#allocation2 + $0x650] sm:$0xff] }
 0x15b   :  { %6616 = vmatpush2.bf16.msra.mxu1 %v14339_v13  ;;  %v408_v13 = vld [vmem:[#allocation2 + $0x8d0] sm:$0xff]  ;;  %v13638_v60 = vcombine.high %v320_v55, %v328_v3 }
 0x15c   :  { %6667 = vmatprep.subr.bf16.mxu1 %v13814_v15  ;;  %v6332_v27 = vpop.f32.mrf.mxu0  ;;  %6577 = vmatmul.mubr.bf16.vlgmr.msra.gmra.mxu0 %v16322_v44  ;;  %v13733_v15 = vcombine.low %v416_v62, %v424_v63  ;;  %v13718_v17 = vcombine.high %v400_v12, %v408_v13  ;;  %v304_v62 = vld [vmem:[#allocation2 + $0x590] sm:$0xff] }
 0x15d   :  { %6627 = vmatpush1.bf16.msra.mxu0 %v13557_v20  ;;  %6658 = vmatprep.mubr.bf16.mxu0 %v16292_v4  ;;  %v384_v20 = vld [vmem:[#allocation2 + $0x810] sm:$0xff] }
 0x15e   :  { %v6373_v31 = vpop.f32.mrf.mxu1  ;;  %6618 = vmatmul.mubr.bf16.vlgmr.msra.gmra.mxu1 %v16326_v47  ;;  %v6334_v34 = vpop.f32.mrf.mxu0  ;;  %6628 = vmatprep.subr.bf16.mxu0 %v13542_v22  ;;  %v13461_v22 = vcombine.low %v144_v10, %v152_v11  ;;  %v312_v63 = vld [vmem:[#allocation2 + $0x5d0] sm:$0xff] }
 0x15f   :  { %v16338_v33 = vadd.f32 %v6373_v31, %v6332_v27  ;;  %6668 = vmatpush1.bf16.msra.mxu1 %v13813_v21  ;;  %6699 = vmatprep.mubr.bf16.mxu1 %v16296_v5  ;;  %v392_v21 = vld [vmem:[#allocation2 + $0x850] sm:$0xff]  ;;  %v13622_v10 = vcombine.high %v304_v62, %v312_v63 }
 0x160   :  { %v6375_v37 = vpop.f32.mrf.mxu1  ;;  %6669 = vmatprep.subr.bf16.mxu1 %v13798_v23  ;;  %v6336_v42 = vpop.f32.mrf.mxu0  ;;  %v13717_v23 = vcombine.low %v400_v12, %v408_v13  ;;  %v13702_v25 = vcombine.high %v384_v20, %v392_v21  ;;  %v368_v27 = vld [vmem:[#allocation2 + $0x790] sm:$0xff] }
 0x161   :  { %v16341_v41 = vadd.f32 %v6375_v37, %v6334_v34  ;;  %6629 = vmatpush1.bf16.msra.mxu0 %v13541_v32  ;;  %v632_v31 = vld [vmem:[#allocation2 + $0xfd0] sm:$0xff]  ;;  %v13445_v32 = vcombine.low %v128_v18, %v136_v19  ;;  %v13701_v34 = vcombine.low %v384_v20, %v392_v21  ;;  %v13685_v42 = vcombine.low %v368_v27, %v376_v28 }
 0x162   :  { %v6377_v46 = vpop.f32.mrf.mxu1  ;;  %v6337_v49 = vpop.f32.mrf.mxu0  ;;  %6630 = vmatprep.subr.bf16.mxu0 %v13526_v36  ;;  %v13942_v36 = vcombine.high %v624_v30, %v632_v31  ;;  %v352_v37 = vld [vmem:[#allocation2 + $0x710] sm:$0xff]  ;;  %v13941_v43 = vcombine.low %v624_v30, %v632_v31 }
 0x163   :  { %6670 = vmatpush1.bf16.msra.mxu1 %v13797_v35  ;;  %v13686_v35 = vcombine.high %v368_v27, %v376_v28  ;;  %v13926_v46 = vcombine.high %v608_v39, %v616_v40  ;;  %v344_v49 = vld [vmem:[#allocation2 + $0x6d0] sm:$0xff] }
 0x164   :  { %v6378_v52 = vpop.f32.mrf.mxu1  ;;  %6671 = vmatprep.subr.bf16.mxu1 %v13782_v38  ;;  %v360_v38 = vld [vmem:[#allocation2 + $0x750] sm:$0xff] }
 0x165   :  { %6631 = vmatpush1.bf16.msra.mxu0 %v13525_v48  ;;  %v13670_v45 = vcombine.high %v352_v37, %v360_v38  ;;  %v336_v48 = vld [vmem:[#allocation2 + $0x690] sm:$0xff]  ;;  %v13669_v52 = vcombine.low %v352_v37, %v360_v38 }
 0x166   :  { %6632 = vmatprep.subr.bf16.mxu0 %v13510_v51  ;;  %v600_v51 = vld [vmem:[#allocation2 + $0xed0] sm:$0xff]  ;;  %v13654_v2 = vcombine.high %v336_v48, %v344_v49 }
 0x167   :  { %6672 = vmatpush1.bf16.msra.mxu1 %v13781_v50  ;;  %v592_v50 = vld [vmem:[#allocation2 + $0xe90] sm:$0xff] }
 0x168   :  { %6673 = vmatprep.subr.bf16.mxu1 %v13766_v53  ;;  %v13925_v53 = vcombine.low %v608_v39, %v616_v40  ;;  %v13910_v54 = vcombine.high %v592_v50, %v600_v51  ;;  %v288_v12 = vld [vmem:[#allocation2 + $0x510] sm:$0xff] }
 0x169   :  { %6633 = vmatpush1.bf16.msra.mxu0 %v13509_v56  ;;  %v576_v56 = vld [vmem:[#allocation2 + $0xe10] sm:$0xff] }
 0x16a   :  { %6634 = vmatprep.subr.bf16.mxu0 %v13494_v58  ;;  %v13653_v58 = vcombine.low %v336_v48, %v344_v49  ;;  %v296_v13 = vld [vmem:[#allocation2 + $0x550] sm:$0xff] }
 0x16b   :  { %6674 = vmatpush1.bf16.msra.mxu1 %v13765_v57  ;;  %v584_v57 = vld [vmem:[#allocation2 + $0xe50] sm:$0xff]  ;;  %v13606_v18 = vcombine.high %v288_v12, %v296_v13 }
 0x16c   :  { %6675 = vmatprep.subr.bf16.mxu1 %v13750_v59  ;;  %v13909_v59 = vcombine.low %v592_v50, %v600_v51  ;;  %v13894_v61 = vcombine.high %v576_v56, %v584_v57  ;;  %v272_v20 = vld [vmem:[#allocation2 + $0x490] sm:$0xff] }
 0x16d   :  { %6635 = vmatpush1.bf16.msra.mxu0 %v13493_v6  ;;  %v560_v6 = vld [vmem:[#allocation2 + $0xd90] sm:$0xff] }
 0x16e   :  { %6636 = vmatprep.subr.bf16.mxu0 %v13478_v8  ;;  %v13637_v8 = vcombine.low %v320_v55, %v328_v3  ;;  %v280_v21 = vld [vmem:[#allocation2 + $0x4d0] sm:$0xff] }
 0x16f   :  { %6676 = vmatpush1.bf16.msra.mxu1 %v13749_v7  ;;  %v568_v7 = vld [vmem:[#allocation2 + $0xdd0] sm:$0xff]  ;;  %v13590_v27 = vcombine.high %v272_v20, %v280_v21 }
 0x170   :  { %6677 = vmatprep.subr.bf16.mxu1 %v13734_v9  ;;  %v13893_v9 = vcombine.low %v576_v56, %v584_v57  ;;  %v13878_v11 = vcombine.high %v560_v6, %v568_v7  ;;  %v256_v30 = vld [vmem:[#allocation2 + $0x410] sm:$0xff]  ;;  %v16349_v56 = vld [vmem:[#allocation7] sm:$0xff] }
 0x171   :  { %6637 = vmatpush1.bf16.msra.mxu0 %v13477_v14  ;;  %v544_v14 = vld [vmem:[#allocation2 + $0xd10] sm:$0xff] }
 0x172   :  { %6638 = vmatprep.subr.bf16.mxu0 %v13462_v16  ;;  %v13621_v16 = vcombine.low %v304_v62, %v312_v63  ;;  %v264_v31 = vld [vmem:[#allocation2 + $0x450] sm:$0xff] }
 0x173   :  { %6678 = vmatpush1.bf16.msra.mxu1 %v13733_v15  ;;  %v552_v15 = vld [vmem:[#allocation2 + $0xd50] sm:$0xff]  ;;  %v13574_v38 = vcombine.high %v256_v30, %v264_v31 }
 0x174   :  { %6679 = vmatprep.subr.bf16.mxu1 %v13718_v17  ;;  %v13877_v17 = vcombine.low %v560_v6, %v568_v7  ;;  %v13862_v19 = vcombine.high %v544_v14, %v552_v15  ;;  %v752_v40 = vld [vmem:[#allocation2 + $0x1390] sm:$0xff] }
 0x175   :  { %6639 = vmatpush1.bf16.msra.mxu0 %v13461_v22  ;;  %v528_v22 = vld [vmem:[#allocation2 + $0xc90] sm:$0xff] }
 0x176   :  { %6640 = vmatprep.subr.bf16.mxu0 %v13446_v24  ;;  %v13605_v24 = vcombine.low %v288_v12, %v296_v13  ;;  %v728_v62 = vld [vmem:[#allocation2 + $0x12d0] sm:$0xff] }
 0x177   :  { %6680 = vmatpush1.bf16.msra.mxu1 %v13717_v23  ;;  %v536_v23 = vld [vmem:[#allocation2 + $0xcd0] sm:$0xff] }
 0x178   :  { %6681 = vmatprep.subr.bf16.mxu1 %v13702_v25  ;;  %v13861_v25 = vcombine.low %v544_v14, %v552_v15  ;;  %v13846_v28 = vcombine.high %v528_v22, %v536_v23  ;;  %v13845_v37 = vcombine.low %v528_v22, %v536_v23  ;;  %v976_v6 = vld [vmem:[#allocation2 + $0x1a90] sm:$0xff] }
 0x179   :  { %6641 = vmatpush1.bf16.msra.mxu0 %v13445_v32  ;;  %v512_v32 = vld [vmem:[#allocation2 + $0xc10] sm:$0xff] }
 0x17a   :  { %6642 = vmatprep.subr.bf16.mxu0 %v13686_v35  ;;  %v13589_v35 = vcombine.low %v272_v20, %v280_v21  ;;  %v984_v7 = vld [vmem:[#allocation2 + $0x1ad0] sm:$0xff] }
 0x17b   :  { %6682 = vmatpush1.bf16.msra.mxu1 %v13701_v34  ;;  %v520_v34 = vld [vmem:[#allocation2 + $0xc50] sm:$0xff] }
 0x17c   :  { %6683 = vmatprep.subr.bf16.mxu1 %v13942_v36  ;;  %v7612_v36 = vlaneseq  ;;  %v13830_v39 = vcombine.high %v512_v32, %v520_v34  ;;  %v13829_v49 = vcombine.low %v512_v32, %v520_v34  ;;  %v712_v20 = vld [vmem:[#allocation2 + $0x1250] sm:$0xff] }
 0x17d   :  { %6643 = vmatpush2.bf16.msra.mxu0 %v13685_v42  ;;  %v760_v42 = vld [vmem:[#allocation2 + $0x13d0] sm:$0xff] }
 0x17e   :  { %6644 = vmatprep.subr.bf16.mxu0 %v13670_v45  ;;  %v1016_v45 = vld [vmem:[#allocation2 + $0x1bd0] sm:$0xff]  ;;  %v16344_v48 = vshrl.u32 %v7612_v36, 7  ;;  %v14070_v50 = vcombine.high %v752_v40, %v760_v42  ;;  %v14069_v3 = vcombine.low %v752_v40, %v760_v42 }
 0x17f   :  { %6684 = vmatpush2.bf16.msra.mxu1 %v13941_v43  ;;  %v1008_v43 = vld [vmem:[#allocation2 + $0x1b90] sm:$0xff] }
 0x180   :  { %6685 = vmatprep.subr.bf16.mxu1 %v13926_v46  ;;  %v13573_v46 = vcombine.low %v256_v30, %v264_v31  ;;  %v14326_v51 = vcombine.high %v1008_v43, %v1016_v45  ;;  %v16347_v55 = vsub.s32 0, %v16344_v48  ;;  %v14325_v57 = vcombine.low %v1008_v43, %v1016_v45  ;;  %v960_v22 = vld [vmem:[#allocation2 + $0x1a10] sm:$0xff] }
 0x181   :  { %6645 = vmatpush2.bf16.msra.mxu0 %v13669_v52  ;;  %v736_v52 = vld [vmem:[#allocation2 + $0x1310] sm:$0xff]  ;;  %v14293_v30 = vcombine.low %v976_v6, %v984_v7 }
 0x182   :  { %6646 = vmatprep.subr.bf16.mxu0 %v13654_v2  ;;  %v992_v2 = vld [vmem:[#allocation2 + $0x1b10] sm:$0xff] }
 0x183   :  { %6686 = vmatpush2.bf16.msra.mxu1 %v13925_v53  ;;  %v744_v53 = vld [vmem:[#allocation2 + $0x1350] sm:$0xff] }
 0x184   :  { %6687 = vmatprep.subr.bf16.mxu1 %v13910_v54  ;;  %v1000_v54 = vld [vmem:[#allocation2 + $0x1b50] sm:$0xff] }
 0x185   :  { %6647 = vmatpush2.bf16.msra.mxu0 %v13653_v58  ;;  %v16352_v58 = vsub.s32 1, %v16344_v48  ;;  %v14309_v14 = vcombine.low %v992_v2, %v1000_v54  ;;  %v968_v23 = vld [vmem:[#allocation2 + $0x1a50] sm:$0xff] }
 0x186   :  { %6648 = vmatprep.subr.bf16.mxu0 %v13638_v60  ;;  %v14310_v60 = vcombine.high %v992_v2, %v1000_v54  ;;  %v14278_v36 = vcombine.high %v960_v22, %v968_v23  ;;  %v952_v40 = vld [vmem:[#allocation2 + $0x19d0] sm:$0xff]  ;;  %v14277_v45 = vcombine.low %v960_v22, %v968_v23 }
 0x187   :  { %6688 = vmatpush2.bf16.msra.mxu1 %v13909_v59  ;;  %v14054_v59 = vcombine.high %v736_v52, %v744_v53  ;;  %v7619_v13 = vrot.slane %v16349_v56, %v16352_v58 }
 0x188   :  { %6689 = vmatprep.subr.bf16.mxu1 %v13894_v61  ;;  %v720_v61 = vld [vmem:[#allocation2 + $0x1290] sm:$0xff] }
 0x189   :  { %6649 = vmatpush2.bf16.msra.mxu0 %v13637_v8  ;;  %v14038_v15 = vcombine.high %v720_v61, %v728_v62 }
 0x18a   :  { %6650 = vmatprep.subr.bf16.mxu0 %v13622_v10  ;;  %v7615_v10 = vrot.slane %v16349_v56, %v16347_v55 }
 0x18b   :  { %6690 = vmatpush2.bf16.msra.mxu1 %v13893_v9 }
 0x18c   :  { %6691 = vmatprep.subr.bf16.mxu1 %v13878_v11  ;;  %v14053_v11 = vcombine.low %v736_v52, %v744_v53  ;;  %v928_v52 = vld [vmem:[#allocation2 + $0x1910] sm:$0xff] }
 0x18d   :  { %6651 = vmatpush2.bf16.msra.mxu0 %v13621_v16  ;;  %v936_v53 = vld [vmem:[#allocation2 + $0x1950] sm:$0xff] }
 0x18e   :  { %6652 = vmatprep.subr.bf16.mxu0 %v13606_v18  ;;  %v14294_v18 = vcombine.high %v976_v6, %v984_v7  ;;  %v14245_v6 = vcombine.low %v928_v52, %v936_v53 }
 0x18f   :  { %6692 = vmatpush2.bf16.msra.mxu1 %v13877_v17 }
 0x190   :  { %6693 = vmatprep.subr.bf16.mxu1 %v13862_v19  ;;  %v704_v19 = vld [vmem:[#allocation2 + $0x1210] sm:$0xff] }
 0x191   :  { %6653 = vmatpush2.bf16.msra.mxu0 %v13605_v24  ;;  %v14022_v31 = vcombine.high %v704_v19, %v712_v20  ;;  %v14021_v43 = vcombine.low %v704_v19, %v712_v20  ;;  %v1144_v19 = vld [vmem:[#allocation2 + $0x1fd0] sm:$0xff] }
 0x192   :  { %6654 = vmatprep.subr.bf16.mxu0 %v13590_v27 }
 0x193   :  { %6694 = vmatpush2.bf16.msra.mxu1 %v13861_v25 }
 0x194   :  { %6695 = vmatprep.subr.bf16.mxu1 %v13846_v28  ;;  %v14037_v28 = vcombine.low %v720_v61, %v728_v62  ;;  %v912_v61 = vld [vmem:[#allocation2 + $0x1890] sm:$0xff] }
 0x195   :  { %6655 = vmatpush2.bf16.msra.mxu0 %v13589_v35  ;;  %v920_v62 = vld [vmem:[#allocation2 + $0x18d0] sm:$0xff] }
 0x196   :  { %6656 = vmatprep.subr.bf16.mxu0 %v13574_v38  ;;  %v696_v38 = vld [vmem:[#allocation2 + $0x11d0] sm:$0xff] }
 0x197   :  { %6696 = vmatpush2.bf16.msra.mxu1 %v13845_v37  ;;  %v688_v37 = vld [vmem:[#allocation2 + $0x1190] sm:$0xff] }
 0x198   :  { %6697 = vmatprep.subr.bf16.mxu1 %v13830_v39  ;;  %v944_v39 = vld [vmem:[#allocation2 + $0x1990] sm:$0xff]  ;;  %v14005_v2 = vcombine.low %v688_v37, %v696_v38 }
 0x199   :  { %6657 = vmatpush2.bf16.msra.mxu0 %v13573_v46  ;;  %v14006_v46 = vcombine.high %v688_v37, %v696_v38  ;;  %v14261_v54 = vcombine.low %v944_v39, %v952_v40  ;;  %v848_v37 = vld [vmem:[#allocation2 + $0x1690] sm:$0xff] }
 0x19a   :  { %6708 = vmatprep.subr.bf16.mxu0 %v14070_v50  ;;  %v672_v50 = vld [vmem:[#allocation2 + $0x1110] sm:$0xff] }
 0x19b   :  { %6698 = vmatpush2.bf16.msra.mxu1 %v13829_v49  ;;  %v14262_v49 = vcombine.high %v944_v39, %v952_v40  ;;  %v856_v38 = vld [vmem:[#allocation2 + $0x16d0] sm:$0xff] }
 0x19c   :  { %6749 = vmatprep.subr.bf16.mxu1 %v14326_v51  ;;  %v6414_v63 = vpop.f32.mrf.mxu0  ;;  %6659 = vmatmul.mubr.bf16.vlgmr.msra.gmra.mxu0 %v16302_v26  ;;  %v680_v51 = vld [vmem:[#allocation2 + $0x1150] sm:$0xff] }
 0x19d   :  { %v6415_v8 = vadd.f32 %v6414_v63, %v16338_v33  ;;  %6709 = vmatpush1.bf16.msra.mxu0 %v14069_v3  ;;  %6740 = vmatprep.mubr.bf16.mxu0 %v16310_v0  ;;  %v13990_v3 = vcombine.high %v672_v50, %v680_v51  ;;  %v13989_v63 = vcombine.low %v672_v50, %v680_v51  ;;  %v1104_v39 = vld [vmem:[#allocation2 + $0x1e90] sm:$0xff] }
 0x19e   :  { %v6455_v9 = vpop.f32.mrf.mxu1  ;;  %6700 = vmatmul.mubr.bf16.vlgmr.msra.gmra.mxu1 %v16306_v29  ;;  %v6416_v12 = vpop.f32.mrf.mxu0  ;;  %6710 = vmatprep.subr.bf16.mxu0 %v14054_v59  ;;  %v656_v59 = vld [vmem:[#allocation2 + $0x1090] sm:$0xff] }
 0x19f   :  { %6750 = vmatpush1.bf16.msra.mxu1 %v14325_v57  ;;  %v6456_v16 = vadd.f32 %v6455_v9, %v6415_v8  ;;  %v6417_v17 = vadd.f32 %v6416_v12, %v16341_v41  ;;  %6781 = vmatprep.mubr.bf16.mxu1 %v16315_v1  ;;  %v14246_v57 = vcombine.high %v928_v52, %v936_v53  ;;  %v640_v9 = vld [vmem:[#allocation2 + $0x1010] sm:$0xff] }
 0x1a0   :  { %v6457_v33 = vpop.f32.mrf.mxu1  ;;  %6751 = vmatprep.subr.bf16.mxu1 %v14310_v60  ;;  %v6418_v21 = vpop.f32.mrf.mxu0  ;;  %v664_v60 = vld [vmem:[#allocation2 + $0x10d0] sm:$0xff]  ;;  %v14230_v8 = vcombine.high %v912_v61, %v920_v62 }
 0x1a1   :  { %v16364_v24 = vadd.f32 %v7615_v10, %v6456_v16  ;;  %v6458_v25 = vadd.f32 %v6457_v33, %v6417_v17  ;;  %6711 = vmatpush1.bf16.msra.mxu0 %v14053_v11  ;;  %v13974_v7 = vcombine.high %v656_v59, %v664_v60  ;;  %v648_v10 = vld [vmem:[#allocation2 + $0x1050] sm:$0xff] }
 0x1a2   :  { %v6459_v27 = vpop.f32.mrf.mxu1  ;;  %v6419_v41 = vpop.f32.mrf.mxu0  ;;  %6712 = vmatprep.subr.bf16.mxu0 %v14038_v15  ;;  %v896_v11 = vld [vmem:[#allocation2 + $0x1810] sm:$0xff]  ;;  %v13958_v15 = vcombine.high %v640_v9, %v648_v10  ;;  %v13957_v20 = vcombine.low %v640_v9, %v648_v10 }
 0x1a3   :  { %6752 = vmatpush1.bf16.msra.mxu1 %v14309_v14  ;;  %v7660_v32 = vmax.f32 %v16364_v24, 0.0  ;;  %v16367_v34 = vadd.f32 %v7619_v13, %v6458_v25  ;;  %v904_v12 = vld [vmem:[#allocation2 + $0x1850] sm:$0xff]  ;;  %v13973_v13 = vcombine.low %v656_v59, %v664_v60  ;;  %v14229_v14 = vcombine.low %v912_v61, %v920_v62 }
 0x1a4   :  { %v6460_v35 = vpop.f32.mrf.mxu1  ;;  %6753 = vmatprep.subr.bf16.mxu1 %v14294_v18  ;;  %v14214_v16 = vcombine.high %v896_v11, %v904_v12  ;;  %v880_v17 = vld [vmem:[#allocation2 + $0x1790] sm:$0xff]  ;;  %v14213_v21 = vcombine.low %v896_v11, %v904_v12 }
 0x1a5   :  { %v7661_v42 = vmax.f32 %v16367_v34, 0.0  ;;  %6713 = vmatpush1.bf16.msra.mxu0 %v14037_v28  ;;  %v888_v33 = vld [vmem:[#allocation2 + $0x17d0] sm:$0xff] }
 0x1a6   :  { %6714 = vmatprep.subr.bf16.mxu0 %v14022_v31  ;;  %v1136_v18 = vld [vmem:[#allocation2 + $0x1f90] sm:$0xff]  ;;  %v14198_v22 = vcombine.high %v880_v17, %v888_v33 }
 0x1a7   :  { %6754 = vmatpush1.bf16.msra.mxu1 %v14293_v30  ;;  %v14454_v23 = vcombine.high %v1136_v18, %v1144_v19  ;;  %v864_v25 = vld [vmem:[#allocation2 + $0x1710] sm:$0xff]  ;;  %v14197_v30 = vcombine.low %v880_v17, %v888_v33  ;;  %v14453_v31 = vcombine.low %v1136_v18, %v1144_v19 }
 0x1a8   :  { %6755 = vmatprep.subr.bf16.mxu1 %v14278_v36  ;;  %v872_v27 = vld [vmem:[#allocation2 + $0x1750] sm:$0xff] }
 0x1a9   :  { %6715 = vmatpush1.bf16.msra.mxu0 %v14021_v43  ;;  %v1120_v28 = vld [vmem:[#allocation2 + $0x1f10] sm:$0xff]  ;;  %v14182_v35 = vcombine.high %v864_v25, %v872_v27  ;;  %v14181_v43 = vcombine.low %v864_v25, %v872_v27 }
 0x1aa   :  { %6716 = vmatprep.subr.bf16.mxu0 %v14006_v46  ;;  %v1128_v41 = vld [vmem:[#allocation2 + $0x1f50] sm:$0xff]  ;;  %v14166_v46 = vcombine.high %v848_v37, %v856_v38 }
 0x1ab   :  { %6756 = vmatpush1.bf16.msra.mxu1 %v14277_v45  ;;  %v14438_v36 = vcombine.high %v1120_v28, %v1128_v41  ;;  %v1112_v40 = vld [vmem:[#allocation2 + $0x1ed0] sm:$0xff]  ;;  %v14437_v45 = vcombine.low %v1120_v28, %v1128_v41 }
 0x1ac   :  { %6757 = vmatprep.subr.bf16.mxu1 %v14262_v49  ;;  %v14422_v49 = vcombine.high %v1104_v39, %v1112_v40  ;;  %v832_v50 = vld [vmem:[#allocation2 + $0x1610] sm:$0xff] }
 0x1ad   :  { %6717 = vmatpush1.bf16.msra.mxu0 %v14005_v2  ;;  %v840_v51 = vld [vmem:[#allocation2 + $0x1650] sm:$0xff]  ;;  %v14165_v2 = vcombine.low %v848_v37, %v856_v38  ;;  %v241_v37 = vld [vmem:[#allocation2 + $0x398] sm:$0xff] }
 0x1ae   :  { %6718 = vmatprep.subr.bf16.mxu0 %v13990_v3  ;;  %v1088_v52 = vld [vmem:[#allocation2 + $0x1e10] sm:$0xff]  ;;  %v14150_v3 = vcombine.high %v832_v50, %v840_v51  ;;  %v249_v38 = vld [vmem:[#allocation2 + $0x3d8] sm:$0xff] }
 0x1af   :  { %6758 = vmatpush1.bf16.msra.mxu1 %v14261_v54  ;;  %v1096_v53 = vld [vmem:[#allocation2 + $0x1e50] sm:$0xff]  ;;  %v14421_v54 = vcombine.low %v1104_v39, %v1112_v40  ;;  %v497_v39 = vld [vmem:[#allocation2 + $0xb98] sm:$0xff] }
 0x1b0   :  { %6759 = vmatprep.subr.bf16.mxu1 %v14246_v57  ;;  %v14406_v57 = vcombine.high %v1088_v52, %v1096_v53  ;;  %v816_v59 = vld [vmem:[#allocation2 + $0x1590] sm:$0xff]  ;;  %v505_v40 = vld [vmem:[#allocation2 + $0xbd8] sm:$0xff] }
 0x1b1   :  { %6719 = vmatpush1.bf16.msra.mxu0 %v13989_v63  ;;  %v824_v60 = vld [vmem:[#allocation2 + $0x15d0] sm:$0xff]  ;;  %v14149_v63 = vcombine.low %v832_v50, %v840_v51  ;;  %v225_v50 = vld [vmem:[#allocation2 + $0x318] sm:$0xff] }
 0x1b2   :  { %6720 = vmatprep.subr.bf16.mxu0 %v13974_v7  ;;  %v1072_v61 = vld [vmem:[#allocation2 + $0x1d90] sm:$0xff]  ;;  %v14134_v7 = vcombine.high %v816_v59, %v824_v60  ;;  %v233_v51 = vld [vmem:[#allocation2 + $0x358] sm:$0xff] }
 0x1b3   :  { %6760 = vmatpush1.bf16.msra.mxu1 %v14245_v6  ;;  %v1080_v62 = vld [vmem:[#allocation2 + $0x1dd0] sm:$0xff]  ;;  %v14405_v6 = vcombine.low %v1088_v52, %v1096_v53  ;;  %v481_v52 = vld [vmem:[#allocation2 + $0xb18] sm:$0xff] }
 0x1b4   :  { %6761 = vmatprep.subr.bf16.mxu1 %v14230_v8  ;;  %v14390_v8 = vcombine.high %v1072_v61, %v1080_v62  ;;  %v800_v9 = vld [vmem:[#allocation2 + $0x1510] sm:$0xff]  ;;  %v489_v53 = vld [vmem:[#allocation2 + $0xb58] sm:$0xff] }
 0x1b5   :  { %6721 = vmatpush1.bf16.msra.mxu0 %v13973_v13  ;;  %v808_v10 = vld [vmem:[#allocation2 + $0x1550] sm:$0xff]  ;;  %v14133_v13 = vcombine.low %v816_v59, %v824_v60  ;;  %v209_v59 = vld [vmem:[#allocation2 + $0x298] sm:$0xff] }
 0x1b6   :  { %6722 = vmatprep.subr.bf16.mxu0 %v13958_v15  ;;  %v1056_v11 = vld [vmem:[#allocation2 + $0x1d10] sm:$0xff]  ;;  %v14118_v15 = vcombine.high %v800_v9, %v808_v10  ;;  %v217_v60 = vld [vmem:[#allocation2 + $0x2d8] sm:$0xff] }
 0x1b7   :  { %6762 = vmatpush1.bf16.msra.mxu1 %v14229_v14  ;;  %v1064_v12 = vld [vmem:[#allocation2 + $0x1d50] sm:$0xff]  ;;  %v14389_v14 = vcombine.low %v1072_v61, %v1080_v62  ;;  %v465_v62 = vld [vmem:[#allocation2 + $0xa98] sm:$0xff] }
 0x1b8   :  { %6763 = vmatprep.subr.bf16.mxu1 %v14214_v16  ;;  %v14374_v16 = vcombine.high %v1056_v11, %v1064_v12  ;;  %v784_v17 = vld [vmem:[#allocation2 + $0x1490] sm:$0xff] }
 0x1b9   :  { %6723 = vmatpush1.bf16.msra.mxu0 %v13957_v20  ;;  %v792_v33 = vld [vmem:[#allocation2 + $0x14d0] sm:$0xff]  ;;  %v14117_v20 = vcombine.low %v800_v9, %v808_v10  ;;  %v13799_v10 = vcombine.low %v481_v52, %v489_v53 }
 0x1ba   :  { %6724 = vmatprep.subr.bf16.mxu0 %v14198_v22  ;;  %v1040_v18 = vld [vmem:[#allocation2 + $0x1c90] sm:$0xff]  ;;  %v14102_v22 = vcombine.high %v784_v17, %v792_v33 }
 0x1bb   :  { %6764 = vmatpush1.bf16.msra.mxu1 %v14213_v21  ;;  %v1048_v19 = vld [vmem:[#allocation2 + $0x1cd0] sm:$0xff]  ;;  %v14373_v21 = vcombine.low %v1056_v11, %v1064_v12  ;;  %v13528_v11 = vcombine.high %v209_v59, %v217_v60 }
 0x1bc   :  { %6765 = vmatprep.subr.bf16.mxu1 %v14454_v23  ;;  %v14358_v23 = vcombine.high %v1040_v18, %v1048_v19  ;;  %v768_v25 = vld [vmem:[#allocation2 + $0x1410] sm:$0xff] }
 0x1bd   :  { %6725 = vmatpush2.bf16.msra.mxu0 %v14197_v30  ;;  %v776_v27 = vld [vmem:[#allocation2 + $0x1450] sm:$0xff]  ;;  %v14101_v30 = vcombine.low %v784_v17, %v792_v33  ;;  %v449_v33 = vld [vmem:[#allocation2 + $0xa18] sm:$0xff] }
 0x1be   :  { %6726 = vmatprep.subr.bf16.mxu0 %v14182_v35  ;;  %v1024_v28 = vld [vmem:[#allocation2 + $0x1c10] sm:$0xff]  ;;  %v14086_v35 = vcombine.high %v768_v25, %v776_v27 }
 0x1bf   :  { %6766 = vmatpush2.bf16.msra.mxu1 %v14453_v31  ;;  %v1032_v41 = vld [vmem:[#allocation2 + $0x1c50] sm:$0xff]  ;;  %v14357_v31 = vcombine.low %v1040_v18, %v1048_v19  ;;  %v457_v18 = vld [vmem:[#allocation2 + $0xa58] sm:$0xff] }
 0x1c0   :  { %6767 = vmatprep.subr.bf16.mxu1 %v14438_v36  ;;  %v14342_v36 = vcombine.high %v1024_v28, %v1032_v41 }
 0x1c1   :  { %6727 = vmatpush2.bf16.msra.mxu0 %v14181_v43  ;;  %v14085_v43 = vcombine.low %v768_v25, %v776_v27  ;;  %v13768_v27 = vcombine.high %v449_v33, %v457_v18 }
 0x1c2   :  { %6728 = vmatprep.subr.bf16.mxu0 %v14166_v46  ;;  %v13560_v46 = vcombine.high %v241_v37, %v249_v38 }
 0x1c3   :  { %6768 = vmatpush2.bf16.msra.mxu1 %v14437_v45  ;;  %v14341_v45 = vcombine.low %v1024_v28, %v1032_v41  ;;  %v177_v28 = vld [vmem:[#allocation2 + $0x198] sm:$0xff] }
 0x1c4   :  { %6769 = vmatprep.subr.bf16.mxu1 %v14422_v49  ;;  %v13816_v49 = vcombine.high %v497_v39, %v505_v40  ;;  %v185_v41 = vld [vmem:[#allocation2 + $0x1d8] sm:$0xff] }
 0x1c5   :  { %6729 = vmatpush2.bf16.msra.mxu0 %v14165_v2  ;;  %v13559_v2 = vcombine.low %v241_v37, %v249_v38  ;;  %v13496_v37 = vcombine.high %v177_v28, %v185_v41 }
 0x1c6   :  { %6730 = vmatprep.subr.bf16.mxu0 %v14150_v3  ;;  %v13544_v3 = vcombine.high %v225_v50, %v233_v51 }
 0x1c7   :  { %6770 = vmatpush2.bf16.msra.mxu1 %v14421_v54  ;;  %v13815_v54 = vcombine.low %v497_v39, %v505_v40  ;;  %v161_v39 = vld [vmem:[#allocation2 + $0x118] sm:$0xff] }
 0x1c8   :  { %6771 = vmatprep.subr.bf16.mxu1 %v14406_v57  ;;  %v13800_v57 = vcombine.high %v481_v52, %v489_v53  ;;  %v169_v40 = vld [vmem:[#allocation2 + $0x158] sm:$0xff] }
 0x1c9   :  { %6731 = vmatpush2.bf16.msra.mxu0 %v14149_v63  ;;  %v473_v63 = vld [vmem:[#allocation2 + $0xad8] sm:$0xff] }
 0x1ca   :  { %6732 = vmatprep.subr.bf16.mxu0 %v14134_v7  ;;  %v13543_v7 = vcombine.low %v225_v50, %v233_v51  ;;  %v13480_v50 = vcombine.high %v161_v39, %v169_v40  ;;  %v145_v52 = vld [vmem:[#allocation2 + $0x98] sm:$0xff] }
 0x1cb   :  { %6772 = vmatpush2.bf16.msra.mxu1 %v14405_v6  ;;  %v153_v53 = vld [vmem:[#allocation2 + $0xd8] sm:$0xff] }
 0x1cc   :  { %6773 = vmatprep.subr.bf16.mxu1 %v14390_v8 }
 0x1cd   :  { %6733 = vmatpush2.bf16.msra.mxu0 %v14133_v13  ;;  %v13784_v13 = vcombine.high %v465_v62, %v473_v63 }
 0x1ce   :  { %6734 = vmatprep.subr.bf16.mxu0 %v14118_v15  ;;  %v201_v15 = vld [vmem:[#allocation2 + $0x258] sm:$0xff] }
 0x1cf   :  { %6774 = vmatpush2.bf16.msra.mxu1 %v14389_v14  ;;  %v193_v14 = vld [vmem:[#allocation2 + $0x218] sm:$0xff] }
 0x1d0   :  { %6775 = vmatprep.subr.bf16.mxu1 %v14374_v16 }
 0x1d1   :  { %6735 = vmatpush2.bf16.msra.mxu0 %v14117_v20  ;;  %v13527_v20 = vcombine.low %v209_v59, %v217_v60  ;;  %v13464_v59 = vcombine.high %v145_v52, %v153_v53 }
 0x1d2   :  { %6736 = vmatprep.subr.bf16.mxu0 %v14102_v22  ;;  %v13783_v22 = vcombine.low %v465_v62, %v473_v63  ;;  %v137_v62 = vld [vmem:[#allocation2 + $0x58] sm:$0xff] }
 0x1d3   :  { %6776 = vmatpush2.bf16.msra.mxu1 %v14373_v21  ;;  %v385_v63 = vld [vmem:[#allocation2 + $0x818] sm:$0xff] }
 0x1d4   :  { %6777 = vmatprep.subr.bf16.mxu1 %v14358_v23  ;;  %v13512_v23 = vcombine.high %v193_v14, %v201_v15 }
 0x1d5   :  { %6737 = vmatpush2.bf16.msra.mxu0 %v14101_v30  ;;  %v433_v30 = vld [vmem:[#allocation2 + $0x998] sm:$0xff] }
 0x1d6   :  { %6738 = vmatprep.subr.bf16.mxu0 %v14086_v35  ;;  %v13511_v35 = vcombine.low %v193_v14, %v201_v15  ;;  %v625_v14 = vld [vmem:[#allocation2 + $0xf98] sm:$0xff] }
 0x1d7   :  { %6778 = vmatpush2.bf16.msra.mxu1 %v14357_v31  ;;  %v441_v31 = vld [vmem:[#allocation2 + $0x9d8] sm:$0xff] }
 0x1d8   :  { %6779 = vmatprep.subr.bf16.mxu1 %v14342_v36  ;;  %v13767_v36 = vcombine.low %v449_v33, %v457_v18  ;;  %v13752_v38 = vcombine.high %v433_v30, %v441_v31  ;;  %v633_v15 = vld [vmem:[#allocation2 + $0xfd8] sm:$0xff] }
 0x1d9   :  { %6739 = vmatpush2.bf16.msra.mxu0 %v14085_v43  ;;  %v417_v43 = vld [vmem:[#allocation2 + $0x918] sm:$0xff] }
 0x1da   :  { %6790 = vmatprep.subr.bf16.mxu0 %v13560_v46  ;;  %v13495_v46 = vcombine.low %v177_v28, %v185_v41 }
 0x1db   :  { %6780 = vmatpush2.bf16.msra.mxu1 %v14341_v45  ;;  %v425_v45 = vld [vmem:[#allocation2 + $0x958] sm:$0xff] }
 0x1dc   :  { %6831 = vmatprep.subr.bf16.mxu1 %v13816_v49  ;;  %v6496_v61 = vpop.f32.mrf.mxu0  ;;  %6741 = vmatmul.mubr.bf16.vlgmr.msra.gmra.mxu0 %v16322_v44  ;;  %v13751_v49 = vcombine.low %v433_v30, %v441_v31  ;;  %v13736_v51 = vcombine.high %v417_v43, %v425_v45  ;;  %v337_v30 = vld [vmem:[#allocation2 + $0x698] sm:$0xff] }
 0x1dd   :  { %6791 = vmatpush1.bf16.msra.mxu0 %v13559_v2  ;;  %6822 = vmatprep.mubr.bf16.mxu0 %v16292_v4  ;;  %v401_v2 = vld [vmem:[#allocation2 + $0x898] sm:$0xff] }
 0x1de   :  { %v6537_v6 = vpop.f32.mrf.mxu1  ;;  %6782 = vmatmul.mubr.bf16.vlgmr.msra.gmra.mxu1 %v16326_v47  ;;  %v6498_v9 = vpop.f32.mrf.mxu0  ;;  %6792 = vmatprep.subr.bf16.mxu0 %v13544_v3  ;;  %v13479_v3 = vcombine.low %v161_v39, %v169_v40  ;;  %v345_v31 = vld [vmem:[#allocation2 + $0x6d8] sm:$0xff] }
 0x1df   :  { %v16372_v8 = vadd.f32 %v6537_v6, %v6496_v61  ;;  %6832 = vmatpush1.bf16.msra.mxu1 %v13815_v54  ;;  %6863 = vmatprep.mubr.bf16.mxu1 %v16296_v5  ;;  %v409_v54 = vld [vmem:[#allocation2 + $0x8d8] sm:$0xff]  ;;  %v13656_v39 = vcombine.high %v337_v30, %v345_v31 }
 0x1e0   :  { %v6539_v12 = vpop.f32.mrf.mxu1  ;;  %6833 = vmatprep.subr.bf16.mxu1 %v13800_v57  ;;  %v6500_v17 = vpop.f32.mrf.mxu0  ;;  %v13735_v57 = vcombine.low %v417_v43, %v425_v45  ;;  %v13720_v60 = vcombine.high %v401_v2, %v409_v54  ;;  %v129_v61 = vld [vmem:[#allocation2 + $0x18] sm:$0xff] }
 0x1e1   :  { %v16375_v16 = vadd.f32 %v6539_v12, %v6498_v9  ;;  %6793 = vmatpush1.bf16.msra.mxu0 %v13543_v7  ;;  %v393_v6 = vld [vmem:[#allocation2 + $0x858] sm:$0xff]  ;;  %v13463_v7 = vcombine.low %v145_v52, %v153_v53  ;;  %v13719_v9 = vcombine.low %v401_v2, %v409_v54  ;;  %v13447_v17 = vcombine.low %v129_v61, %v137_v62 }
 0x1e2   :  { %v6541_v19 = vpop.f32.mrf.mxu1  ;;  %v6501_v21 = vpop.f32.mrf.mxu0  ;;  %6794 = vmatprep.subr.bf16.mxu0 %v13528_v11  ;;  %v13704_v11 = vcombine.high %v385_v63, %v393_v6  ;;  %v369_v12 = vld [vmem:[#allocation2 + $0x798] sm:$0xff]  ;;  %v13703_v33 = vcombine.low %v385_v63, %v393_v6 }
 0x1e3   :  { %6834 = vmatpush1.bf16.msra.mxu1 %v13799_v10  ;;  %v13448_v10 = vcombine.high %v129_v61, %v137_v62  ;;  %v13944_v19 = vcombine.high %v625_v14, %v633_v15  ;;  %v361_v21 = vld [vmem:[#allocation2 + $0x758] sm:$0xff] }
 0x1e4   :  { %v6542_v25 = vpop.f32.mrf.mxu1  ;;  %6835 = vmatprep.subr.bf16.mxu1 %v13784_v13  ;;  %v377_v13 = vld [vmem:[#allocation2 + $0x7d8] sm:$0xff] }
 0x1e5   :  { %6795 = vmatpush1.bf16.msra.mxu0 %v13527_v20  ;;  %v13688_v18 = vcombine.high %v369_v12, %v377_v13  ;;  %v353_v20 = vld [vmem:[#allocation2 + $0x718] sm:$0xff]  ;;  %v13687_v25 = vcombine.low %v369_v12, %v377_v13 }
 0x1e6   :  { %6796 = vmatprep.subr.bf16.mxu0 %v13512_v23  ;;  %v617_v23 = vld [vmem:[#allocation2 + $0xf58] sm:$0xff]  ;;  %v13672_v28 = vcombine.high %v353_v20, %v361_v21 }
 0x1e7   :  { %6836 = vmatpush1.bf16.msra.mxu1 %v13783_v22  ;;  %v609_v22 = vld [vmem:[#allocation2 + $0xf18] sm:$0xff] }
 0x1e8   :  { %6837 = vmatprep.subr.bf16.mxu1 %v13768_v27  ;;  %v13943_v27 = vcombine.low %v625_v14, %v633_v15  ;;  %v13928_v41 = vcombine.high %v609_v22, %v617_v23  ;;  %v321_v43 = vld [vmem:[#allocation2 + $0x618] sm:$0xff] }
 0x1e9   :  { %6797 = vmatpush1.bf16.msra.mxu0 %v13511_v35  ;;  %v593_v35 = vld [vmem:[#allocation2 + $0xe98] sm:$0xff] }
 0x1ea   :  { %6798 = vmatprep.subr.bf16.mxu0 %v13496_v37  ;;  %v13671_v37 = vcombine.low %v353_v20, %v361_v21  ;;  %v329_v45 = vld [vmem:[#allocation2 + $0x658] sm:$0xff] }
 0x1eb   :  { %6838 = vmatpush1.bf16.msra.mxu1 %v13767_v36  ;;  %v601_v36 = vld [vmem:[#allocation2 + $0xed8] sm:$0xff]  ;;  %v13640_v52 = vcombine.high %v321_v43, %v329_v45 }
 0x1ec   :  { %6839 = vmatprep.subr.bf16.mxu1 %v13752_v38  ;;  %v13927_v38 = vcombine.low %v609_v22, %v617_v23  ;;  %v13912_v40 = vcombine.high %v593_v35, %v601_v36  ;;  %v305_v2 = vld [vmem:[#allocation2 + $0x598] sm:$0xff] }
 0x1ed   :  { %6799 = vmatpush1.bf16.msra.mxu0 %v13495_v46  ;;  %v577_v46 = vld [vmem:[#allocation2 + $0xe18] sm:$0xff] }
 0x1ee   :  { %6800 = vmatprep.subr.bf16.mxu0 %v13480_v50  ;;  %v13655_v50 = vcombine.low %v337_v30, %v345_v31  ;;  %v313_v54 = vld [vmem:[#allocation2 + $0x5d8] sm:$0xff] }
 0x1ef   :  { %6840 = vmatpush1.bf16.msra.mxu1 %v13751_v49  ;;  %v585_v49 = vld [vmem:[#allocation2 + $0xe58] sm:$0xff]  ;;  %v13624_v61 = vcombine.high %v305_v2, %v313_v54 }
 0x1f0   :  { %6841 = vmatprep.subr.bf16.mxu1 %v13736_v51  ;;  %v13911_v51 = vcombine.low %v593_v35, %v601_v36  ;;  %v13896_v53 = vcombine.high %v577_v46, %v585_v49  ;;  %v289_v63 = vld [vmem:[#allocation2 + $0x518] sm:$0xff] }
 0x1f1   :  { %6801 = vmatpush1.bf16.msra.mxu0 %v13479_v3  ;;  %v561_v3 = vld [vmem:[#allocation2 + $0xd98] sm:$0xff] }
 0x1f2   :  { %6802 = vmatprep.subr.bf16.mxu0 %v13464_v59  ;;  %v13639_v59 = vcombine.low %v321_v43, %v329_v45  ;;  %v297_v6 = vld [vmem:[#allocation2 + $0x558] sm:$0xff] }
 0x1f3   :  { %6842 = vmatpush1.bf16.msra.mxu1 %v13735_v57  ;;  %v569_v57 = vld [vmem:[#allocation2 + $0xdd8] sm:$0xff]  ;;  %v13608_v12 = vcombine.high %v289_v63, %v297_v6 }
 0x1f4   :  { %6843 = vmatprep.subr.bf16.mxu1 %v13720_v60  ;;  %v13895_v60 = vcombine.low %v577_v46, %v585_v49  ;;  %v13880_v62 = vcombine.high %v561_v3, %v569_v57  ;;  %v273_v14 = vld [vmem:[#allocation2 + $0x498] sm:$0xff] }
 0x1f5   :  { %6803 = vmatpush1.bf16.msra.mxu0 %v13463_v7  ;;  %v545_v7 = vld [vmem:[#allocation2 + $0xd18] sm:$0xff] }
 0x1f6   :  { %6804 = vmatprep.subr.bf16.mxu0 %v13448_v10  ;;  %v13623_v10 = vcombine.low %v305_v2, %v313_v54  ;;  %v281_v15 = vld [vmem:[#allocation2 + $0x4d8] sm:$0xff]  ;;  %v16382_v54 = vsub.s32 3, %v16344_v48 }
 0x1f7   :  { %6844 = vmatpush1.bf16.msra.mxu1 %v13719_v9  ;;  %v553_v9 = vld [vmem:[#allocation2 + $0xd58] sm:$0xff]  ;;  %v13592_v20 = vcombine.high %v273_v14, %v281_v15 }
 0x1f8   :  { %6845 = vmatprep.subr.bf16.mxu1 %v13704_v11  ;;  %v13879_v11 = vcombine.low %v561_v3, %v569_v57  ;;  %v13864_v13 = vcombine.high %v545_v7, %v553_v9  ;;  %v257_v22 = vld [vmem:[#allocation2 + $0x418] sm:$0xff] }
 0x1f9   :  { %6805 = vmatpush1.bf16.msra.mxu0 %v13447_v17  ;;  %v529_v17 = vld [vmem:[#allocation2 + $0xc98] sm:$0xff] }
 0x1fa   :  { %6806 = vmatprep.subr.bf16.mxu0 %v13688_v18  ;;  %v13607_v18 = vcombine.low %v289_v63, %v297_v6  ;;  %v265_v23 = vld [vmem:[#allocation2 + $0x458] sm:$0xff] }
 0x1fb   :  { %6846 = vmatpush1.bf16.msra.mxu1 %v13703_v33  ;;  %v537_v33 = vld [vmem:[#allocation2 + $0xcd8] sm:$0xff]  ;;  %v13576_v30 = vcombine.high %v257_v22, %v265_v23 }
 0x1fc   :  { %6847 = vmatprep.subr.bf16.mxu1 %v13944_v19  ;;  %v13863_v19 = vcombine.low %v545_v7, %v553_v9  ;;  %v13848_v21 = vcombine.high %v529_v17, %v537_v33  ;;  %v753_v35 = vld [vmem:[#allocation2 + $0x1398] sm:$0xff] }
 0x1fd   :  { %6807 = vmatpush2.bf16.msra.mxu0 %v13687_v25  ;;  %v513_v25 = vld [vmem:[#allocation2 + $0xc18] sm:$0xff] }
 0x1fe   :  { %6808 = vmatprep.subr.bf16.mxu0 %v13672_v28  ;;  %v13591_v28 = vcombine.low %v273_v14, %v281_v15  ;;  %v761_v36 = vld [vmem:[#allocation2 + $0x13d8] sm:$0xff] }
 0x1ff   :  { %6848 = vmatpush2.bf16.msra.mxu1 %v13943_v27  ;;  %v521_v27 = vld [vmem:[#allocation2 + $0xc58] sm:$0xff]  ;;  %v14072_v43 = vcombine.high %v753_v35, %v761_v36 }
 0x200   :  { %6849 = vmatprep.subr.bf16.mxu1 %v13928_v41  ;;  %v13847_v41 = vcombine.low %v529_v17, %v537_v33  ;;  %v13832_v31 = vcombine.high %v513_v25, %v521_v27  ;;  %v737_v46 = vld [vmem:[#allocation2 + $0x1318] sm:$0xff] }
 0x201   :  { %6809 = vmatpush2.bf16.msra.mxu0 %v13671_v37  ;;  %v1009_v37 = vld [vmem:[#allocation2 + $0x1b98] sm:$0xff] }
 0x202   :  { %6810 = vmatprep.subr.bf16.mxu0 %v13656_v39  ;;  %v13575_v39 = vcombine.low %v257_v22, %v265_v23  ;;  %v745_v49 = vld [vmem:[#allocation2 + $0x1358] sm:$0xff] }
 0x203   :  { %6850 = vmatpush2.bf16.msra.mxu1 %v13927_v38  ;;  %v1017_v38 = vld [vmem:[#allocation2 + $0x1bd8] sm:$0xff]  ;;  %v14056_v3 = vcombine.high %v737_v46, %v745_v49 }
 0x204   :  { %6851 = vmatprep.subr.bf16.mxu1 %v13912_v40  ;;  %v13831_v40 = vcombine.low %v513_v25, %v521_v27  ;;  %v14328_v45 = vcombine.high %v1009_v37, %v1017_v38  ;;  %v14327_v2 = vcombine.low %v1009_v37, %v1017_v38  ;;  %v985_v63 = vld [vmem:[#allocation2 + $0x1ad8] sm:$0xff] }
 0x205   :  { %6811 = vmatpush2.bf16.msra.mxu0 %v13655_v50  ;;  %v993_v50 = vld [vmem:[#allocation2 + $0x1b18] sm:$0xff] }
 0x206   :  { %6812 = vmatprep.subr.bf16.mxu0 %v13640_v52  ;;  %v16379_v52 = vsub.s32 2, %v16344_v48  ;;  %v969_v22 = vld [vmem:[#allocation2 + $0x1a58] sm:$0xff] }
 0x207   :  { %6852 = vmatpush2.bf16.msra.mxu1 %v13911_v51  ;;  %v1001_v51 = vld [vmem:[#allocation2 + $0x1b58] sm:$0xff] }
 0x208   :  { %6853 = vmatprep.subr.bf16.mxu1 %v13896_v53  ;;  %v14071_v53 = vcombine.low %v753_v35, %v761_v36  ;;  %v14312_v57 = vcombine.high %v993_v50, %v1001_v51  ;;  %v7623_v9 = vrot.slane %v16349_v56, %v16379_v52  ;;  %v689_v37 = vld [vmem:[#allocation2 + $0x1198] sm:$0xff] }
 0x209   :  { %6813 = vmatpush2.bf16.msra.mxu0 %v13639_v59  ;;  %v721_v59 = vld [vmem:[#allocation2 + $0x1298] sm:$0xff] }
 0x20a   :  { %6814 = vmatprep.subr.bf16.mxu0 %v13624_v61  ;;  %v697_v38 = vld [vmem:[#allocation2 + $0x11d8] sm:$0xff] }
 0x20b   :  { %6854 = vmatpush2.bf16.msra.mxu1 %v13895_v60  ;;  %v729_v60 = vld [vmem:[#allocation2 + $0x12d8] sm:$0xff] }
 0x20c   :  { %6855 = vmatprep.subr.bf16.mxu1 %v13880_v62  ;;  %v977_v62 = vld [vmem:[#allocation2 + $0x1a98] sm:$0xff]  ;;  %v14040_v14 = vcombine.high %v721_v59, %v729_v60  ;;  %v14039_v27 = vcombine.low %v721_v59, %v729_v60 }
 0x20d   :  { %6815 = vmatpush2.bf16.msra.mxu0 %v13623_v10  ;;  %v14055_v10 = vcombine.low %v737_v46, %v745_v49  ;;  %v14296_v33 = vcombine.high %v977_v62, %v985_v63  ;;  %v14008_v49 = vcombine.high %v689_v37, %v697_v38 }
 0x20e   :  { %6816 = vmatprep.subr.bf16.mxu0 %v13608_v12  ;;  %v7627_v12 = vrot.slane %v16349_v56, %v16382_v54 }
 0x20f   :  { %6856 = vmatpush2.bf16.msra.mxu1 %v13879_v11 }
 0x210   :  { %6857 = vmatprep.subr.bf16.mxu1 %v13864_v13  ;;  %v14311_v13 = vcombine.low %v993_v50, %v1001_v51  ;;  %v673_v51 = vld [vmem:[#allocation2 + $0x1118] sm:$0xff] }
 0x211   :  { %6817 = vmatpush2.bf16.msra.mxu0 %v13607_v18  ;;  %v705_v18 = vld [vmem:[#allocation2 + $0x1218] sm:$0xff] }
 0x212   :  { %6818 = vmatprep.subr.bf16.mxu0 %v13592_v20 }
 0x213   :  { %6858 = vmatpush2.bf16.msra.mxu1 %v13863_v19  ;;  %v713_v19 = vld [vmem:[#allocation2 + $0x1258] sm:$0xff] }
 0x214   :  { %6859 = vmatprep.subr.bf16.mxu1 %v13848_v21  ;;  %v961_v21 = vld [vmem:[#allocation2 + $0x1a18] sm:$0xff] }
 0x215   :  { %6819 = vmatpush2.bf16.msra.mxu0 %v13591_v28  ;;  %v14295_v28 = vcombine.low %v977_v62, %v985_v63  ;;  %v14280_v36 = vcombine.high %v961_v21, %v969_v22  ;;  %v14279_v46 = vcombine.low %v961_v21, %v969_v22  ;;  %v657_v62 = vld [vmem:[#allocation2 + $0x1098] sm:$0xff] }
 0x216   :  { %6820 = vmatprep.subr.bf16.mxu0 %v13576_v30  ;;  %v665_v63 = vld [vmem:[#allocation2 + $0x10d8] sm:$0xff] }
 0x217   :  { %6860 = vmatpush2.bf16.msra.mxu1 %v13847_v41  ;;  %v14024_v41 = vcombine.high %v705_v18, %v713_v19  ;;  %v889_v21 = vld [vmem:[#allocation2 + $0x17d8] sm:$0xff] }
 0x218   :  { %6861 = vmatprep.subr.bf16.mxu1 %v13832_v31  ;;  %v1137_v22 = vld [vmem:[#allocation2 + $0x1f98] sm:$0xff] }
 0x219   :  { %6821 = vmatpush2.bf16.msra.mxu0 %v13575_v39  ;;  %v945_v39 = vld [vmem:[#allocation2 + $0x1998] sm:$0xff] }
 0x21a   :  { %6872 = vmatprep.subr.bf16.mxu0 %v14072_v43 }
 0x21b   :  { %6862 = vmatpush2.bf16.msra.mxu1 %v13831_v40  ;;  %v953_v40 = vld [vmem:[#allocation2 + $0x19d8] sm:$0xff] }
 0x21c   :  { %6913 = vmatprep.subr.bf16.mxu1 %v14328_v45  ;;  %v6578_v61 = vpop.f32.mrf.mxu0  ;;  %6823 = vmatmul.mubr.bf16.vlgmr.msra.gmra.mxu0 %v16302_v26  ;;  %v14023_v45 = vcombine.low %v705_v18, %v713_v19  ;;  %v14264_v50 = vcombine.high %v945_v39, %v953_v40  ;;  %v14263_v59 = vcombine.low %v945_v39, %v953_v40 }
 0x21d   :  { %v6579_v6 = vadd.f32 %v6578_v61, %v16372_v8  ;;  %6873 = vmatpush1.bf16.msra.mxu0 %v14071_v53  ;;  %6904 = vmatprep.mubr.bf16.mxu0 %v16310_v0  ;;  %v681_v53 = vld [vmem:[#allocation2 + $0x1158] sm:$0xff] }
 0x21e   :  { %v6619_v7 = vpop.f32.mrf.mxu1  ;;  %6864 = vmatmul.mubr.bf16.vlgmr.msra.gmra.mxu1 %v16306_v29  ;;  %v6580_v11 = vpop.f32.mrf.mxu0  ;;  %6874 = vmatprep.subr.bf16.mxu0 %v14056_v3  ;;  %v937_v3 = vld [vmem:[#allocation2 + $0x1958] sm:$0xff]  ;;  %v13992_v60 = vcombine.high %v673_v51, %v681_v53 }
 0x21f   :  { %6914 = vmatpush1.bf16.msra.mxu1 %v14327_v2  ;;  %v6620_v15 = vadd.f32 %v6619_v7, %v6579_v6  ;;  %v6581_v17 = vadd.f32 %v6580_v11, %v16375_v16  ;;  %6945 = vmatprep.mubr.bf16.mxu1 %v16315_v1  ;;  %v929_v2 = vld [vmem:[#allocation2 + $0x1918] sm:$0xff]  ;;  %v13976_v11 = vcombine.high %v657_v62, %v665_v63 }
 0x220   :  { %v6621_v8 = vpop.f32.mrf.mxu1  ;;  %6915 = vmatprep.subr.bf16.mxu1 %v14312_v57  ;;  %v6582_v20 = vpop.f32.mrf.mxu0  ;;  %v14007_v57 = vcombine.low %v689_v37, %v697_v38  ;;  %v14248_v61 = vcombine.high %v929_v2, %v937_v3  ;;  %v913_v6 = vld [vmem:[#allocation2 + $0x1898] sm:$0xff] }
 0x221   :  { %v16394_v23 = vadd.f32 %v7623_v9, %v6620_v15  ;;  %v6622_v56 = vadd.f32 %v6621_v8, %v6581_v17  ;;  %6875 = vmatpush1.bf16.msra.mxu0 %v14055_v10  ;;  %v921_v7 = vld [vmem:[#allocation2 + $0x18d8] sm:$0xff]  ;;  %v13991_v9 = vcombine.low %v673_v51, %v681_v53  ;;  %v14247_v10 = vcombine.low %v929_v2, %v937_v3 }
 0x222   :  { %v6623_v25 = vpop.f32.mrf.mxu1  ;;  %v6583_v16 = vpop.f32.mrf.mxu0  ;;  %6876 = vmatprep.subr.bf16.mxu0 %v14040_v14  ;;  %v649_v14 = vld [vmem:[#allocation2 + $0x1058] sm:$0xff]  ;;  %v13975_v8 = vcombine.low %v657_v62, %v665_v63 }
 0x223   :  { %6916 = vmatpush1.bf16.msra.mxu1 %v14311_v13  ;;  %v7662_v30 = vmax.f32 %v16394_v23, 0.0  ;;  %v16397_v31 = vadd.f32 %v7627_v12, %v6622_v56  ;;  %v14232_v12 = vcombine.high %v913_v6, %v921_v7  ;;  %v641_v13 = vld [vmem:[#allocation2 + $0x1018] sm:$0xff] }
 0x224   :  { %v6624_v35 = vpop.f32.mrf.mxu1  ;;  %6917 = vmatprep.subr.bf16.mxu1 %v14296_v33  ;;  %v897_v15 = vld [vmem:[#allocation2 + $0x1818] sm:$0xff]  ;;  %v14231_v33 = vcombine.low %v913_v6, %v921_v7  ;;  %v13960_v18 = vcombine.high %v641_v13, %v649_v14  ;;  %v13959_v25 = vcombine.low %v641_v13, %v649_v14 }
 0x225   :  { %v7663_v43 = vmax.f32 %v16397_v31, 0.0  ;;  %6877 = vmatpush1.bf16.msra.mxu0 %v14039_v27  ;;  %v905_v17 = vld [vmem:[#allocation2 + $0x1858] sm:$0xff] }
 0x226   :  { %6878 = vmatprep.subr.bf16.mxu0 %v14024_v41  ;;  %v14216_v19 = vcombine.high %v897_v15, %v905_v17  ;;  %v881_v20 = vld [vmem:[#allocation2 + $0x1798] sm:$0xff]  ;;  %v14215_v27 = vcombine.low %v897_v15, %v905_v17 }
 0x227   :  { %6918 = vmatpush1.bf16.msra.mxu1 %v14295_v28  ;;  %v1145_v56 = vld [vmem:[#allocation2 + $0x1fd8] sm:$0xff]  ;;  %v14200_v16 = vcombine.high %v881_v20, %v889_v21  ;;  %v14199_v38 = vcombine.low %v881_v20, %v889_v21 }
 0x228   :  { %6919 = vmatprep.subr.bf16.mxu1 %v14280_v36  ;;  %v14456_v28 = vcombine.high %v1137_v22, %v1145_v56  ;;  %v865_v41 = vld [vmem:[#allocation2 + $0x1718] sm:$0xff]  ;;  %v14455_v39 = vcombine.low %v1137_v22, %v1145_v56 }
 0x229   :  { %6879 = vmatpush1.bf16.msra.mxu0 %v14023_v45  ;;  %v873_v35 = vld [vmem:[#allocation2 + $0x1758] sm:$0xff] }
 0x22a   :  { %6880 = vmatprep.subr.bf16.mxu0 %v14008_v49  ;;  %v1121_v36 = vld [vmem:[#allocation2 + $0x1f18] sm:$0xff]  ;;  %v14184_v40 = vcombine.high %v865_v41, %v873_v35  ;;  %v14183_v53 = vcombine.low %v865_v41, %v873_v35 }
 0x22b   :  { %6920 = vmatpush1.bf16.msra.mxu1 %v14279_v46  ;;  %v1129_v37 = vld [vmem:[#allocation2 + $0x1f58] sm:$0xff] }
 0x22c   :  { %6921 = vmatprep.subr.bf16.mxu1 %v14264_v50  ;;  %v14440_v45 = vcombine.high %v1121_v36, %v1129_v37  ;;  %v849_v46 = vld [vmem:[#allocation2 + $0x1698] sm:$0xff]  ;;  %v14439_v2 = vcombine.low %v1121_v36, %v1129_v37 }
 0x22d   :  { %6881 = vmatpush1.bf16.msra.mxu0 %v14007_v57  ;;  %v857_v49 = vld [vmem:[#allocation2 + $0x16d8] sm:$0xff] }
 0x22e   :  { %6882 = vmatprep.subr.bf16.mxu0 %v13992_v60  ;;  %v1105_v50 = vld [vmem:[#allocation2 + $0x1e98] sm:$0xff]  ;;  %v14168_v3 = vcombine.high %v849_v46, %v857_v49  ;;  %v14167_v63 = vcombine.low %v849_v46, %v857_v49 }
 0x22f   :  { %6922 = vmatpush1.bf16.msra.mxu1 %v14263_v59  ;;  %v1113_v51 = vld [vmem:[#allocation2 + $0x1ed8] sm:$0xff] }
 0x230   :  { %6923 = vmatprep.subr.bf16.mxu1 %v14248_v61  ;;  %v14424_v57 = vcombine.high %v1105_v50, %v1113_v51  ;;  %v833_v59 = vld [vmem:[#allocation2 + $0x1618] sm:$0xff]  ;;  %v14423_v6 = vcombine.low %v1105_v50, %v1113_v51 }
 0x231   :  { %6883 = vmatpush1.bf16.msra.mxu0 %v13991_v9  ;;  %v841_v60 = vld [vmem:[#allocation2 + $0x1658] sm:$0xff] }
 0x232   :  { %6884 = vmatprep.subr.bf16.mxu0 %v13976_v11  ;;  %v1089_v61 = vld [vmem:[#allocation2 + $0x1e18] sm:$0xff]  ;;  %v14152_v7 = vcombine.high %v833_v59, %v841_v60  ;;  %v14151_v14 = vcombine.low %v833_v59, %v841_v60  ;;  %v506_v59 = vld [vmem:[#allocation2 + $0xbe0] sm:$0xff] }
 0x233   :  { %6924 = vmatpush1.bf16.msra.mxu1 %v14247_v10  ;;  %v1097_v62 = vld [vmem:[#allocation2 + $0x1e58] sm:$0xff] }
 0x234   :  { %6925 = vmatprep.subr.bf16.mxu1 %v14232_v12  ;;  %v14408_v9 = vcombine.high %v1089_v61, %v1097_v62  ;;  %v817_v10 = vld [vmem:[#allocation2 + $0x1598] sm:$0xff]  ;;  %v14407_v15 = vcombine.low %v1089_v61, %v1097_v62 }
 0x235   :  { %6885 = vmatpush1.bf16.msra.mxu0 %v13975_v8  ;;  %v825_v11 = vld [vmem:[#allocation2 + $0x15d8] sm:$0xff] }
 0x236   :  { %6886 = vmatprep.subr.bf16.mxu0 %v13960_v18  ;;  %v1073_v12 = vld [vmem:[#allocation2 + $0x1d98] sm:$0xff]  ;;  %v14136_v17 = vcombine.high %v817_v10, %v825_v11  ;;  %v14135_v21 = vcombine.low %v817_v10, %v825_v11  ;;  %v490_v10 = vld [vmem:[#allocation2 + $0xb60] sm:$0xff] }
 0x237   :  { %6926 = vmatpush1.bf16.msra.mxu1 %v14231_v33  ;;  %v1081_v13 = vld [vmem:[#allocation2 + $0x1dd8] sm:$0xff] }
 0x238   :  { %6927 = vmatprep.subr.bf16.mxu1 %v14216_v19  ;;  %v14392_v8 = vcombine.high %v1073_v12, %v1081_v13  ;;  %v801_v33 = vld [vmem:[#allocation2 + $0x1518] sm:$0xff]  ;;  %v14391_v22 = vcombine.low %v1073_v12, %v1081_v13 }
 0x239   :  { %6887 = vmatpush1.bf16.msra.mxu0 %v13959_v25  ;;  %v809_v18 = vld [vmem:[#allocation2 + $0x1558] sm:$0xff] }
 0x23a   :  { %6888 = vmatprep.subr.bf16.mxu0 %v14200_v16  ;;  %v1057_v19 = vld [vmem:[#allocation2 + $0x1d18] sm:$0xff]  ;;  %v14120_v56 = vcombine.high %v801_v33, %v809_v18  ;;  %v14119_v35 = vcombine.low %v801_v33, %v809_v18  ;;  %v466_v33 = vld [vmem:[#allocation2 + $0xaa0] sm:$0xff] }
 0x23b   :  { %6928 = vmatpush1.bf16.msra.mxu1 %v14215_v27  ;;  %v1065_v20 = vld [vmem:[#allocation2 + $0x1d58] sm:$0xff]  ;;  %v474_v18 = vld [vmem:[#allocation2 + $0xae0] sm:$0xff] }
 0x23c   :  { %6929 = vmatprep.subr.bf16.mxu1 %v14456_v28  ;;  %v14376_v25 = vcombine.high %v1057_v19, %v1065_v20  ;;  %v785_v27 = vld [vmem:[#allocation2 + $0x1498] sm:$0xff]  ;;  %v14375_v36 = vcombine.low %v1057_v19, %v1065_v20 }
 0x23d   :  { %6889 = vmatpush2.bf16.msra.mxu0 %v14199_v38  ;;  %v793_v16 = vld [vmem:[#allocation2 + $0x14d8] sm:$0xff] }
 0x23e   :  { %6890 = vmatprep.subr.bf16.mxu0 %v14184_v40  ;;  %v1041_v28 = vld [vmem:[#allocation2 + $0x1c98] sm:$0xff]  ;;  %v14104_v37 = vcombine.high %v785_v27, %v793_v16  ;;  %v14103_v49 = vcombine.low %v785_v27, %v793_v16  ;;  %v13786_v16 = vcombine.high %v466_v33, %v474_v18 }
 0x23f   :  { %6930 = vmatpush2.bf16.msra.mxu1 %v14455_v39  ;;  %v1049_v41 = vld [vmem:[#allocation2 + $0x1cd8] sm:$0xff] }
 0x240   :  { %6931 = vmatprep.subr.bf16.mxu1 %v14440_v45  ;;  %v14360_v38 = vcombine.high %v1041_v28, %v1049_v41  ;;  %v769_v39 = vld [vmem:[#allocation2 + $0x1418] sm:$0xff]  ;;  %v14359_v50 = vcombine.low %v1041_v28, %v1049_v41  ;;  %v194_v28 = vld [vmem:[#allocation2 + $0x220] sm:$0xff] }
 0x241   :  { %6891 = vmatpush2.bf16.msra.mxu0 %v14183_v53  ;;  %v777_v40 = vld [vmem:[#allocation2 + $0x1458] sm:$0xff]  ;;  %v202_v41 = vld [vmem:[#allocation2 + $0x260] sm:$0xff] }
 0x242   :  { %6892 = vmatprep.subr.bf16.mxu0 %v14168_v3  ;;  %v1025_v45 = vld [vmem:[#allocation2 + $0x1c18] sm:$0xff]  ;;  %v14088_v51 = vcombine.high %v769_v39, %v777_v40  ;;  %v250_v3 = vld [vmem:[#allocation2 + $0x3e0] sm:$0xff]  ;;  %v14087_v60 = vcombine.low %v769_v39, %v777_v40 }
 0x243   :  { %6932 = vmatpush2.bf16.msra.mxu1 %v14439_v2  ;;  %v1033_v46 = vld [vmem:[#allocation2 + $0x1c58] sm:$0xff]  ;;  %v242_v2 = vld [vmem:[#allocation2 + $0x3a0] sm:$0xff] }
 0x244   :  { %6933 = vmatprep.subr.bf16.mxu1 %v14424_v57  ;;  %v14344_v53 = vcombine.high %v1025_v45, %v1033_v46  ;;  %v498_v57 = vld [vmem:[#allocation2 + $0xba0] sm:$0xff]  ;;  %v14343_v61 = vcombine.low %v1025_v45, %v1033_v46  ;;  %v13562_v62 = vcombine.high %v242_v2, %v250_v3  ;;  %v13561_v11 = vcombine.low %v242_v2, %v250_v3 }
 0x245   :  { %6893 = vmatpush2.bf16.msra.mxu0 %v14167_v63  ;;  %v13818_v63 = vcombine.high %v498_v57, %v506_v59  ;;  %v13817_v12 = vcombine.low %v498_v57, %v506_v59  ;;  %v13785_v46 = vcombine.low %v466_v33, %v474_v18  ;;  %v186_v2 = vld [vmem:[#allocation2 + $0x1e0] sm:$0xff]  ;;  %v13513_v59 = vcombine.low %v194_v28, %v202_v41 }
 0x246   :  { %6894 = vmatprep.subr.bf16.mxu0 %v14152_v7  ;;  %v234_v7 = vld [vmem:[#allocation2 + $0x360] sm:$0xff] }
 0x247   :  { %6934 = vmatpush2.bf16.msra.mxu1 %v14423_v6  ;;  %v226_v6 = vld [vmem:[#allocation2 + $0x320] sm:$0xff] }
 0x248   :  { %6935 = vmatprep.subr.bf16.mxu1 %v14408_v9  ;;  %v482_v9 = vld [vmem:[#allocation2 + $0xb20] sm:$0xff]  ;;  %v13546_v13 = vcombine.high %v226_v6, %v234_v7  ;;  %v13545_v20 = vcombine.low %v226_v6, %v234_v7 }
 0x249   :  { %6895 = vmatpush2.bf16.msra.mxu0 %v14151_v14  ;;  %v13802_v14 = vcombine.high %v482_v9, %v490_v10  ;;  %v434_v3 = vld [vmem:[#allocation2 + $0x9a0] sm:$0xff] }
 0x24a   :  { %6896 = vmatprep.subr.bf16.mxu0 %v14136_v17  ;;  %v218_v17 = vld [vmem:[#allocation2 + $0x2e0] sm:$0xff] }
 0x24b   :  { %6936 = vmatpush2.bf16.msra.mxu1 %v14407_v15  ;;  %v210_v15 = vld [vmem:[#allocation2 + $0x2a0] sm:$0xff] }
 0x24c   :  { %6937 = vmatprep.subr.bf16.mxu1 %v14392_v8  ;;  %v13529_v40 = vcombine.low %v210_v15, %v218_v17  ;;  %v442_v57 = vld [vmem:[#allocation2 + $0x9e0] sm:$0xff] }
 0x24d   :  { %6897 = vmatpush2.bf16.msra.mxu0 %v14135_v21  ;;  %v170_v6 = vld [vmem:[#allocation2 + $0x160] sm:$0xff] }
 0x24e   :  { %6898 = vmatprep.subr.bf16.mxu0 %v14120_v56  ;;  %v13801_v56 = vcombine.low %v482_v9, %v490_v10  ;;  %v418_v7 = vld [vmem:[#allocation2 + $0x920] sm:$0xff] }
 0x24f   :  { %6938 = vmatpush2.bf16.msra.mxu1 %v14391_v22  ;;  %v426_v9 = vld [vmem:[#allocation2 + $0x960] sm:$0xff] }
 0x250   :  { %6939 = vmatprep.subr.bf16.mxu1 %v14376_v25  ;;  %v13530_v25 = vcombine.high %v210_v15, %v218_v17  ;;  %v154_v15 = vld [vmem:[#allocation2 + $0xe0] sm:$0xff]  ;;  %v13737_v18 = vcombine.low %v418_v7, %v426_v9 }
 0x251   :  { %6899 = vmatpush2.bf16.msra.mxu0 %v14119_v35  ;;  %v402_v17 = vld [vmem:[#allocation2 + $0x8a0] sm:$0xff] }
 0x252   :  { %6900 = vmatprep.subr.bf16.mxu0 %v14104_v37  ;;  %v450_v37 = vld [vmem:[#allocation2 + $0xa20] sm:$0xff] }
 0x253   :  { %6940 = vmatpush2.bf16.msra.mxu1 %v14375_v36 }
 0x254   :  { %6941 = vmatprep.subr.bf16.mxu1 %v14360_v38  ;;  %v458_v38 = vld [vmem:[#allocation2 + $0xa60] sm:$0xff] }
 0x255   :  { %6901 = vmatpush2.bf16.msra.mxu0 %v14103_v49  ;;  %v13514_v49 = vcombine.high %v194_v28, %v202_v41 }
 0x256   :  { %6902 = vmatprep.subr.bf16.mxu0 %v14088_v51  ;;  %v13770_v51 = vcombine.high %v450_v37, %v458_v38 }
 0x257   :  { %6942 = vmatpush2.bf16.msra.mxu1 %v14359_v50 }
 0x258   :  { %6943 = vmatprep.subr.bf16.mxu1 %v14344_v53  ;;  %v178_v53 = vld [vmem:[#allocation2 + $0x1a0] sm:$0xff] }
 0x259   :  { %6903 = vmatpush2.bf16.msra.mxu0 %v14087_v60  ;;  %v13769_v60 = vcombine.low %v450_v37, %v458_v38  ;;  %v13497_v10 = vcombine.low %v178_v53, %v186_v2  ;;  %v370_v37 = vld [vmem:[#allocation2 + $0x7a0] sm:$0xff] }
 0x25a   :  { %6954 = vmatprep.subr.bf16.mxu0 %v13562_v62  ;;  %v13754_v62 = vcombine.high %v434_v3, %v442_v57  ;;  %v378_v38 = vld [vmem:[#allocation2 + $0x7e0] sm:$0xff] }
 0x25b   :  { %6944 = vmatpush2.bf16.msra.mxu1 %v14343_v61  ;;  %v13498_v61 = vcombine.high %v178_v53, %v186_v2  ;;  %v362_v53 = vld [vmem:[#allocation2 + $0x760] sm:$0xff] }
 0x25c   :  { %6995 = vmatprep.subr.bf16.mxu1 %v13818_v63  ;;  %v6660_v8 = vpop.f32.mrf.mxu0  ;;  %6905 = vmatmul.mubr.bf16.vlgmr.msra.gmra.mxu0 %v16322_v44  ;;  %v162_v63 = vld [vmem:[#allocation2 + $0x120] sm:$0xff] }
 0x25d   :  { %6955 = vmatpush1.bf16.msra.mxu0 %v13561_v11  ;;  %6986 = vmatprep.mubr.bf16.mxu0 %v16292_v4  ;;  %v13753_v11 = vcombine.low %v434_v3, %v442_v57  ;;  %v13481_v33 = vcombine.low %v162_v63, %v170_v6  ;;  %v610_v2 = vld [vmem:[#allocation2 + $0xf20] sm:$0xff]  ;;  %v13689_v57 = vcombine.low %v370_v37, %v378_v38 }
 0x25e   :  { %v6701_v19 = vpop.f32.mrf.mxu1  ;;  %6946 = vmatmul.mubr.bf16.vlgmr.msra.gmra.mxu1 %v16326_v47  ;;  %v6662_v22 = vpop.f32.mrf.mxu0  ;;  %6956 = vmatprep.subr.bf16.mxu0 %v13546_v13  ;;  %v13738_v13 = vcombine.high %v418_v7, %v426_v9  ;;  %v618_v3 = vld [vmem:[#allocation2 + $0xf60] sm:$0xff] }
 0x25f   :  { %v16402_v21 = vadd.f32 %v6701_v19, %v6660_v8  ;;  %6996 = vmatpush1.bf16.msra.mxu1 %v13817_v12  ;;  %7027 = vmatprep.mubr.bf16.mxu1 %v16296_v5  ;;  %v13482_v12 = vcombine.high %v162_v63, %v170_v6  ;;  %v410_v8 = vld [vmem:[#allocation2 + $0x8e0] sm:$0xff] }
 0x260   :  { %v6703_v27 = vpop.f32.mrf.mxu1  ;;  %6997 = vmatprep.subr.bf16.mxu1 %v13802_v14  ;;  %v6664_v36 = vpop.f32.mrf.mxu0  ;;  %v146_v14 = vld [vmem:[#allocation2 + $0xa0] sm:$0xff]  ;;  %v13721_v28 = vcombine.low %v402_v17, %v410_v8 }
 0x261   :  { %v16405_v35 = vadd.f32 %v6703_v27, %v6662_v22  ;;  %6957 = vmatpush1.bf16.msra.mxu0 %v13545_v20  ;;  %v13466_v19 = vcombine.high %v146_v14, %v154_v15  ;;  %v13722_v20 = vcombine.high %v402_v17, %v410_v8  ;;  %v130_v22 = vld [vmem:[#allocation2 + $0x20] sm:$0xff] }
 0x262   :  { %v6705_v39 = vpop.f32.mrf.mxu1  ;;  %v6665_v45 = vpop.f32.mrf.mxu0  ;;  %6958 = vmatprep.subr.bf16.mxu0 %v13530_v25  ;;  %v386_v25 = vld [vmem:[#allocation2 + $0x820] sm:$0xff] }
 0x263   :  { %6998 = vmatpush1.bf16.msra.mxu1 %v13801_v56  ;;  %v138_v56 = vld [vmem:[#allocation2 + $0x60] sm:$0xff] }
 0x264   :  { %v6706_v50 = vpop.f32.mrf.mxu1  ;;  %6999 = vmatprep.subr.bf16.mxu1 %v13786_v16  ;;  %v394_v27 = vld [vmem:[#allocation2 + $0x860] sm:$0xff]  ;;  %v13465_v16 = vcombine.low %v146_v14, %v154_v15  ;;  %v13450_v41 = vcombine.high %v130_v22, %v138_v56  ;;  %v13449_v45 = vcombine.low %v130_v22, %v138_v56 }
 0x265   :  { %6959 = vmatpush1.bf16.msra.mxu0 %v13529_v40  ;;  %v13706_v36 = vcombine.high %v386_v25, %v394_v27  ;;  %v626_v39 = vld [vmem:[#allocation2 + $0xfa0] sm:$0xff] }
 0x266   :  { %6960 = vmatprep.subr.bf16.mxu0 %v13514_v49  ;;  %v634_v40 = vld [vmem:[#allocation2 + $0xfe0] sm:$0xff]  ;;  %v13690_v49 = vcombine.high %v370_v37, %v378_v38 }
 0x267   :  { %7000 = vmatpush1.bf16.msra.mxu1 %v13785_v46  ;;  %v13705_v46 = vcombine.low %v386_v25, %v394_v27  ;;  %v13946_v50 = vcombine.high %v626_v39, %v634_v40  ;;  %v346_v63 = vld [vmem:[#allocation2 + $0x6e0] sm:$0xff] }
 0x268   :  { %7001 = vmatprep.subr.bf16.mxu1 %v13770_v51  ;;  %v354_v51 = vld [vmem:[#allocation2 + $0x720] sm:$0xff] }
 0x269   :  { %6961 = vmatpush1.bf16.msra.mxu0 %v13513_v59  ;;  %v13945_v59 = vcombine.low %v626_v39, %v634_v40  ;;  %v594_v6 = vld [vmem:[#allocation2 + $0xea0] sm:$0xff]  ;;  %v13673_v9 = vcombine.low %v354_v51, %v362_v53 }
 0x26a   :  { %6962 = vmatprep.subr.bf16.mxu0 %v13498_v61  ;;  %v13930_v61 = vcombine.high %v610_v2, %v618_v3  ;;  %v602_v7 = vld [vmem:[#allocation2 + $0xee0] sm:$0xff] }
 0x26b   :  { %7002 = vmatpush1.bf16.msra.mxu1 %v13769_v60  ;;  %v13674_v60 = vcombine.high %v354_v51, %v362_v53  ;;  %v330_v14 = vld [vmem:[#allocation2 + $0x660] sm:$0xff] }
 0x26c   :  { %7003 = vmatprep.subr.bf16.mxu1 %v13754_v62  ;;  %v338_v62 = vld [vmem:[#allocation2 + $0x6a0] sm:$0xff] }
 0x26d   :  { %6963 = vmatpush1.bf16.msra.mxu0 %v13497_v10  ;;  %v13929_v10 = vcombine.low %v610_v2, %v618_v3  ;;  %v578_v15 = vld [vmem:[#allocation2 + $0xe20] sm:$0xff]  ;;  %v13657_v8 = vcombine.low %v338_v62, %v346_v63 }
 0x26e   :  { %6964 = vmatprep.subr.bf16.mxu0 %v13482_v12  ;;  %v13914_v12 = vcombine.high %v594_v6, %v602_v7  ;;  %v586_v17 = vld [vmem:[#allocation2 + $0xe60] sm:$0xff] }
 0x26f   :  { %7004 = vmatpush1.bf16.msra.mxu1 %v13753_v11  ;;  %v13658_v11 = vcombine.high %v338_v62, %v346_v63  ;;  %v314_v22 = vld [vmem:[#allocation2 + $0x5e0] sm:$0xff] }
 0x270   :  { %7005 = vmatprep.subr.bf16.mxu1 %v13738_v13  ;;  %v322_v13 = vld [vmem:[#allocation2 + $0x620] sm:$0xff] }
 0x271   :  { %6965 = vmatpush1.bf16.msra.mxu0 %v13481_v33  ;;  %v13913_v33 = vcombine.low %v594_v6, %v602_v7  ;;  %v562_v56 = vld [vmem:[#allocation2 + $0xda0] sm:$0xff]  ;;  %v13641_v27 = vcombine.low %v322_v13, %v330_v14 }
 0x272   :  { %6966 = vmatprep.subr.bf16.mxu0 %v13466_v19  ;;  %v13898_v19 = vcombine.high %v578_v15, %v586_v17  ;;  %v570_v25 = vld [vmem:[#allocation2 + $0xde0] sm:$0xff] }
 0x273   :  { %7006 = vmatpush1.bf16.msra.mxu1 %v13737_v18  ;;  %v13642_v18 = vcombine.high %v322_v13, %v330_v14  ;;  %v298_v37 = vld [vmem:[#allocation2 + $0x560] sm:$0xff] }
 0x274   :  { %7007 = vmatprep.subr.bf16.mxu1 %v13722_v20  ;;  %v306_v20 = vld [vmem:[#allocation2 + $0x5a0] sm:$0xff] }
 0x275   :  { %6967 = vmatpush1.bf16.msra.mxu0 %v13465_v16  ;;  %v13897_v16 = vcombine.low %v578_v15, %v586_v17  ;;  %v546_v38 = vld [vmem:[#allocation2 + $0xd20] sm:$0xff]  ;;  %v13625_v40 = vcombine.low %v306_v20, %v314_v22 }
 0x276   :  { %6968 = vmatprep.subr.bf16.mxu0 %v13450_v41  ;;  %v13882_v41 = vcombine.high %v562_v56, %v570_v25  ;;  %v554_v39 = vld [vmem:[#allocation2 + $0xd60] sm:$0xff] }
 0x277   :  { %7008 = vmatpush1.bf16.msra.mxu1 %v13721_v28  ;;  %v13626_v28 = vcombine.high %v306_v20, %v314_v22  ;;  %v282_v51 = vld [vmem:[#allocation2 + $0x4e0] sm:$0xff] }
 0x278   :  { %7009 = vmatprep.subr.bf16.mxu1 %v13706_v36  ;;  %v290_v36 = vld [vmem:[#allocation2 + $0x520] sm:$0xff] }
 0x279   :  { %6969 = vmatpush1.bf16.msra.mxu0 %v13449_v45  ;;  %v13881_v45 = vcombine.low %v562_v56, %v570_v25  ;;  %v530_v53 = vld [vmem:[#allocation2 + $0xca0] sm:$0xff]  ;;  %v13609_v3 = vcombine.low %v290_v36, %v298_v37  ;;  %v7630_v25 = vsub.s32 4, %v16344_v48 }
 0x27a   :  { %6970 = vmatprep.subr.bf16.mxu0 %v13690_v49  ;;  %v13866_v49 = vcombine.high %v546_v38, %v554_v39  ;;  %v538_v2 = vld [vmem:[#allocation2 + $0xce0] sm:$0xff] }
 0x27b   :  { %7010 = vmatpush1.bf16.msra.mxu1 %v13705_v46  ;;  %v13610_v46 = vcombine.high %v290_v36, %v298_v37  ;;  %v266_v62 = vld [vmem:[#allocation2 + $0x460] sm:$0xff] }
 0x27c   :  { %7011 = vmatprep.subr.bf16.mxu1 %v13946_v50  ;;  %v274_v50 = vld [vmem:[#allocation2 + $0x4a0] sm:$0xff] }
 0x27d   :  { %6971 = vmatpush2.bf16.msra.mxu0 %v13689_v57  ;;  %v13865_v57 = vcombine.low %v546_v38, %v554_v39  ;;  %v514_v63 = vld [vmem:[#allocation2 + $0xc20] sm:$0xff]  ;;  %v13593_v7 = vcombine.low %v274_v50, %v282_v51 }
 0x27e   :  { %6972 = vmatprep.subr.bf16.mxu0 %v13674_v60  ;;  %v13850_v60 = vcombine.high %v530_v53, %v538_v2  ;;  %v522_v6 = vld [vmem:[#allocation2 + $0xc60] sm:$0xff] }
 0x27f   :  { %7012 = vmatpush2.bf16.msra.mxu1 %v13945_v59  ;;  %v13594_v59 = vcombine.high %v274_v50, %v282_v51  ;;  %v762_v13 = vld [vmem:[#allocation2 + $0x13e0] sm:$0xff] }
 0x280   :  { %7013 = vmatprep.subr.bf16.mxu1 %v13930_v61  ;;  %v258_v61 = vld [vmem:[#allocation2 + $0x420] sm:$0xff] }
 0x281   :  { %6973 = vmatpush2.bf16.msra.mxu0 %v13673_v9  ;;  %v13849_v9 = vcombine.low %v530_v53, %v538_v2  ;;  %v1010_v14 = vld [vmem:[#allocation2 + $0x1ba0] sm:$0xff]  ;;  %v13577_v17 = vcombine.low %v258_v61, %v266_v62 }
 0x282   :  { %6974 = vmatprep.subr.bf16.mxu0 %v13658_v11  ;;  %v13834_v11 = vcombine.high %v514_v63, %v522_v6  ;;  %v1018_v15 = vld [vmem:[#allocation2 + $0x1be0] sm:$0xff] }
 0x283   :  { %7014 = vmatpush2.bf16.msra.mxu1 %v13929_v10  ;;  %v13578_v10 = vcombine.high %v258_v61, %v266_v62  ;;  %v746_v20 = vld [vmem:[#allocation2 + $0x1360] sm:$0xff] }
 0x284   :  { %7015 = vmatprep.subr.bf16.mxu1 %v13914_v12  ;;  %v754_v12 = vld [vmem:[#allocation2 + $0x13a0] sm:$0xff] }
 0x285   :  { %6975 = vmatpush2.bf16.msra.mxu0 %v13657_v8  ;;  %v13833_v8 = vcombine.low %v514_v63, %v522_v6  ;;  %v994_v22 = vld [vmem:[#allocation2 + $0x1b20] sm:$0xff] }
 0x286   :  { %6976 = vmatprep.subr.bf16.mxu0 %v13642_v18  ;;  %v14330_v18 = vcombine.high %v1010_v14, %v1018_v15  ;;  %v1002_v56 = vld [vmem:[#allocation2 + $0x1b60] sm:$0xff] }
 0x287   :  { %7016 = vmatpush2.bf16.msra.mxu1 %v13913_v33  ;;  %v14074_v33 = vcombine.high %v754_v12, %v762_v13  ;;  %v14314_v36 = vcombine.high %v994_v22, %v1002_v56  ;;  %v722_v37 = vld [vmem:[#allocation2 + $0x12a0] sm:$0xff] }
 0x288   :  { %7017 = vmatprep.subr.bf16.mxu1 %v13898_v19  ;;  %v738_v19 = vld [vmem:[#allocation2 + $0x1320] sm:$0xff] }
 0x289   :  { %6977 = vmatpush2.bf16.msra.mxu0 %v13641_v27  ;;  %v14073_v27 = vcombine.low %v754_v12, %v762_v13  ;;  %v730_v38 = vld [vmem:[#allocation2 + $0x12e0] sm:$0xff]  ;;  %v14057_v53 = vcombine.low %v738_v19, %v746_v20 }
 0x28a   :  { %6978 = vmatprep.subr.bf16.mxu0 %v13626_v28  ;;  %v7634_v28 = vsub.s32 5, %v16344_v48  ;;  %v16412_v50 = vld [vmem:[#allocation7] sm:$0xff] }
 0x28b   :  { %7018 = vmatpush2.bf16.msra.mxu1 %v13897_v16  ;;  %v14329_v16 = vcombine.low %v1010_v14, %v1018_v15  ;;  %v7631_v51 = vrot.slane %v16412_v50, %v7630_v25  ;;  %v706_v63 = vld [vmem:[#allocation2 + $0x1220] sm:$0xff]  ;;  %v14041_v14 = vcombine.low %v722_v37, %v730_v38 }
 0x28c   :  { %7019 = vmatprep.subr.bf16.mxu1 %v13882_v41  ;;  %v14058_v41 = vcombine.high %v738_v19, %v746_v20  ;;  %v714_v6 = vld [vmem:[#allocation2 + $0x1260] sm:$0xff] }
 0x28d   :  { %6979 = vmatpush2.bf16.msra.mxu0 %v13625_v40  ;;  %v978_v40 = vld [vmem:[#allocation2 + $0x1aa0] sm:$0xff] }
 0x28e   :  { %6980 = vmatprep.subr.bf16.mxu0 %v13610_v46  ;;  %v690_v20 = vld [vmem:[#allocation2 + $0x11a0] sm:$0xff] }
 0x28f   :  { %7020 = vmatpush2.bf16.msra.mxu1 %v13881_v45  ;;  %v986_v45 = vld [vmem:[#allocation2 + $0x1ae0] sm:$0xff] }
 0x290   :  { %7021 = vmatprep.subr.bf16.mxu1 %v13866_v49  ;;  %v14298_v62 = vcombine.high %v978_v40, %v986_v45  ;;  %v14297_v15 = vcombine.low %v978_v40, %v986_v45  ;;  %v682_v40 = vld [vmem:[#allocation2 + $0x1160] sm:$0xff] }
 0x291   :  { %6981 = vmatpush2.bf16.msra.mxu0 %v13609_v3  ;;  %v7635_v3 = vrot.slane %v16412_v50, %v7634_v28  ;;  %v930_v45 = vld [vmem:[#allocation2 + $0x1920] sm:$0xff] }
 0x292   :  { %6982 = vmatprep.subr.bf16.mxu0 %v13594_v59 }
 0x293   :  { %7022 = vmatpush2.bf16.msra.mxu1 %v13865_v57  ;;  %v14313_v57 = vcombine.low %v994_v22, %v1002_v56  ;;  %v698_v22 = vld [vmem:[#allocation2 + $0x11e0] sm:$0xff] }
 0x294   :  { %7023 = vmatprep.subr.bf16.mxu1 %v13850_v60  ;;  %v946_v56 = vld [vmem:[#allocation2 + $0x19a0] sm:$0xff] }
 0x295   :  { %6983 = vmatpush2.bf16.msra.mxu0 %v13593_v7 }
 0x296   :  { %6984 = vmatprep.subr.bf16.mxu0 %v13578_v10  ;;  %v970_v10 = vld [vmem:[#allocation2 + $0x1a60] sm:$0xff] }
 0x297   :  { %7024 = vmatpush2.bf16.msra.mxu1 %v13849_v9  ;;  %v962_v9 = vld [vmem:[#allocation2 + $0x1a20] sm:$0xff] }
 0x298   :  { %7025 = vmatprep.subr.bf16.mxu1 %v13834_v11  ;;  %v14282_v19 = vcombine.high %v962_v9, %v970_v10 }
 0x299   :  { %6985 = vmatpush2.bf16.msra.mxu0 %v13577_v17  ;;  %v14026_v17 = vcombine.high %v706_v63, %v714_v6 }
 0x29a   :  { %7036 = vmatprep.subr.bf16.mxu0 %v14074_v33 }
 0x29b   :  { %7026 = vmatpush2.bf16.msra.mxu1 %v13833_v8 }
 0x29c   :  { %7077 = vmatprep.subr.bf16.mxu1 %v14330_v18  ;;  %v6742_v39 = vpop.f32.mrf.mxu0  ;;  %6987 = vmatmul.mubr.bf16.vlgmr.msra.gmra.mxu0 %v16302_v26 }
 0x29d   :  { %v6743_v46 = vadd.f32 %v6742_v39, %v16402_v21  ;;  %7037 = vmatpush1.bf16.msra.mxu0 %v14073_v27  ;;  %v14042_v21 = vcombine.high %v722_v37, %v730_v38  ;;  %7068 = vmatprep.mubr.bf16.mxu0 %v16310_v0  ;;  %v954_v27 = vld [vmem:[#allocation2 + $0x19e0] sm:$0xff]  ;;  %v14010_v37 = vcombine.high %v690_v20, %v698_v22 }
 0x29e   :  { %v6783_v49 = vpop.f32.mrf.mxu1  ;;  %7028 = vmatmul.mubr.bf16.vlgmr.msra.gmra.mxu1 %v16306_v29  ;;  %v6744_v2 = vpop.f32.mrf.mxu0  ;;  %7038 = vmatprep.subr.bf16.mxu0 %v14058_v41  ;;  %v14025_v41 = vcombine.low %v706_v63, %v714_v6  ;;  %v14266_v38 = vcombine.high %v946_v56, %v954_v27  ;;  %v674_v39 = vld [vmem:[#allocation2 + $0x1120] sm:$0xff] }
 0x29f   :  { %7078 = vmatpush1.bf16.msra.mxu1 %v14329_v16  ;;  %v6784_v59 = vadd.f32 %v6783_v49, %v6743_v46  ;;  %v6745_v60 = vadd.f32 %v6744_v2, %v16405_v35  ;;  %7109 = vmatprep.mubr.bf16.mxu1 %v16315_v1  ;;  %v938_v46 = vld [vmem:[#allocation2 + $0x1960] sm:$0xff]  ;;  %v14009_v49 = vcombine.low %v690_v20, %v698_v22 }
 0x2a0   :  { %v6785_v61 = vpop.f32.mrf.mxu1  ;;  %7079 = vmatprep.subr.bf16.mxu1 %v14314_v36  ;;  %v6746_v7 = vpop.f32.mrf.mxu0  ;;  %v14281_v36 = vcombine.low %v962_v9, %v970_v10  ;;  %v14250_v2 = vcombine.high %v930_v45, %v938_v46  ;;  %v642_v6 = vld [vmem:[#allocation2 + $0x1020] sm:$0xff] }
 0x2a1   :  { %v16424_v11 = vadd.f32 %v7631_v51, %v6784_v59  ;;  %v6786_v12 = vadd.f32 %v6785_v61, %v6745_v60  ;;  %7039 = vmatpush1.bf16.msra.mxu0 %v14057_v53  ;;  %v14265_v51 = vcombine.low %v946_v56, %v954_v27  ;;  %v13994_v53 = vcombine.high %v674_v39, %v682_v40  ;;  %v922_v59 = vld [vmem:[#allocation2 + $0x18e0] sm:$0xff] }
 0x2a2   :  { %v6787_v13 = vpop.f32.mrf.mxu1  ;;  %v6747_v35 = vpop.f32.mrf.mxu0  ;;  %7040 = vmatprep.subr.bf16.mxu0 %v14042_v21  ;;  %v914_v21 = vld [vmem:[#allocation2 + $0x18a0] sm:$0xff]  ;;  %v13993_v60 = vcombine.low %v674_v39, %v682_v40  ;;  %v14249_v61 = vcombine.low %v930_v45, %v938_v46 }
 0x2a3   :  { %7080 = vmatpush1.bf16.msra.mxu1 %v14313_v57  ;;  %v7664_v8 = vmax.f32 %v16424_v11, 0.0  ;;  %v16427_v33 = vadd.f32 %v7635_v3, %v6786_v12  ;;  %v658_v3 = vld [vmem:[#allocation2 + $0x10a0] sm:$0xff]  ;;  %v14234_v63 = vcombine.high %v914_v21, %v922_v59  ;;  %v14233_v13 = vcombine.low %v914_v21, %v922_v59 }
 0x2a4   :  { %v6788_v18 = vpop.f32.mrf.mxu1  ;;  %7081 = vmatprep.subr.bf16.mxu1 %v14298_v62  ;;  %v666_v57 = vld [vmem:[#allocation2 + $0x10e0] sm:$0xff] }
 0x2a5   :  { %v7665_v16 = vmax.f32 %v16427_v33, 0.0  ;;  %7041 = vmatpush1.bf16.msra.mxu0 %v14041_v14  ;;  %v13978_v62 = vcombine.high %v658_v3, %v666_v57  ;;  %v650_v7 = vld [vmem:[#allocation2 + $0x1060] sm:$0xff]  ;;  %v13977_v12 = vcombine.low %v658_v3, %v666_v57 }
 0x2a6   :  { %7042 = vmatprep.subr.bf16.mxu0 %v14026_v17  ;;  %v898_v9 = vld [vmem:[#allocation2 + $0x1820] sm:$0xff]  ;;  %v13962_v14 = vcombine.high %v642_v6, %v650_v7  ;;  %v13961_v20 = vcombine.low %v642_v6, %v650_v7 }
 0x2a7   :  { %7082 = vmatpush1.bf16.msra.mxu1 %v14297_v15  ;;  %v906_v10 = vld [vmem:[#allocation2 + $0x1860] sm:$0xff] }
 0x2a8   :  { %7083 = vmatprep.subr.bf16.mxu1 %v14282_v19  ;;  %v14218_v35 = vcombine.high %v898_v9, %v906_v10  ;;  %v882_v15 = vld [vmem:[#allocation2 + $0x17a0] sm:$0xff]  ;;  %v14217_v22 = vcombine.low %v898_v9, %v906_v10 }
 0x2a9   :  { %7043 = vmatpush1.bf16.msra.mxu0 %v14025_v41  ;;  %v890_v17 = vld [vmem:[#allocation2 + $0x17e0] sm:$0xff] }
 0x2aa   :  { %7044 = vmatprep.subr.bf16.mxu0 %v14010_v37  ;;  %v1138_v18 = vld [vmem:[#allocation2 + $0x1fa0] sm:$0xff]  ;;  %v14202_v56 = vcombine.high %v882_v15, %v890_v17  ;;  %v14201_v39 = vcombine.low %v882_v15, %v890_v17 }
 0x2ab   :  { %7084 = vmatpush1.bf16.msra.mxu1 %v14281_v36  ;;  %v1146_v19 = vld [vmem:[#allocation2 + $0x1fe0] sm:$0xff] }
 0x2ac   :  { %7085 = vmatprep.subr.bf16.mxu1 %v14266_v38  ;;  %v14458_v27 = vcombine.high %v1138_v18, %v1146_v19  ;;  %v866_v41 = vld [vmem:[#allocation2 + $0x1720] sm:$0xff]  ;;  %v14457_v40 = vcombine.low %v1138_v18, %v1146_v19 }
 0x2ad   :  { %7045 = vmatpush1.bf16.msra.mxu0 %v14009_v49  ;;  %v874_v36 = vld [vmem:[#allocation2 + $0x1760] sm:$0xff] }
 0x2ae   :  { %7046 = vmatprep.subr.bf16.mxu0 %v13994_v53  ;;  %v1122_v37 = vld [vmem:[#allocation2 + $0x1f20] sm:$0xff]  ;;  %v14186_v45 = vcombine.high %v866_v41, %v874_v36  ;;  %v14185_v3 = vcombine.low %v866_v41, %v874_v36 }
 0x2af   :  { %7086 = vmatpush1.bf16.msra.mxu1 %v14265_v51  ;;  %v1130_v38 = vld [vmem:[#allocation2 + $0x1f60] sm:$0xff] }
 0x2b0   :  { %7087 = vmatprep.subr.bf16.mxu1 %v14250_v2  ;;  %v14442_v46 = vcombine.high %v1122_v37, %v1130_v38  ;;  %v850_v49 = vld [vmem:[#allocation2 + $0x16a0] sm:$0xff]  ;;  %v14441_v57 = vcombine.low %v1122_v37, %v1130_v38 }
 0x2b1   :  { %7047 = vmatpush1.bf16.msra.mxu0 %v13993_v60  ;;  %v858_v51 = vld [vmem:[#allocation2 + $0x16e0] sm:$0xff] }
 0x2b2   :  { %7048 = vmatprep.subr.bf16.mxu0 %v13978_v62  ;;  %v1106_v53 = vld [vmem:[#allocation2 + $0x1ea0] sm:$0xff]  ;;  %v14170_v21 = vcombine.high %v850_v49, %v858_v51  ;;  %v14169_v6 = vcombine.low %v850_v49, %v858_v51 }
 0x2b3   :  { %7088 = vmatpush1.bf16.msra.mxu1 %v14249_v61  ;;  %v1114_v2 = vld [vmem:[#allocation2 + $0x1ee0] sm:$0xff] }
 0x2b4   :  { %7089 = vmatprep.subr.bf16.mxu1 %v14234_v63  ;;  %v14426_v59 = vcombine.high %v1106_v53, %v1114_v2  ;;  %v834_v60 = vld [vmem:[#allocation2 + $0x1620] sm:$0xff]  ;;  %v14425_v7 = vcombine.low %v1106_v53, %v1114_v2 }
 0x2b5   :  { %7049 = vmatpush1.bf16.msra.mxu0 %v13977_v12  ;;  %v842_v61 = vld [vmem:[#allocation2 + $0x1660] sm:$0xff] }
 0x2b6   :  { %7050 = vmatprep.subr.bf16.mxu0 %v13962_v14  ;;  %v1090_v62 = vld [vmem:[#allocation2 + $0x1e20] sm:$0xff]  ;;  %v14154_v9 = vcombine.high %v834_v60, %v842_v61  ;;  %v14153_v15 = vcombine.low %v834_v60, %v842_v61 }
 0x2b7   :  { %7090 = vmatpush1.bf16.msra.mxu1 %v14233_v13  ;;  %v1098_v63 = vld [vmem:[#allocation2 + $0x1e60] sm:$0xff] }
 0x2b8   :  { %7091 = vmatprep.subr.bf16.mxu1 %v14218_v35  ;;  %v14410_v10 = vcombine.high %v1090_v62, %v1098_v63  ;;  %v818_v12 = vld [vmem:[#allocation2 + $0x15a0] sm:$0xff]  ;;  %v14409_v17 = vcombine.low %v1090_v62, %v1098_v63 }
 0x2b9   :  { %7051 = vmatpush1.bf16.msra.mxu0 %v13961_v20  ;;  %v826_v13 = vld [vmem:[#allocation2 + $0x15e0] sm:$0xff] }
 0x2ba   :  { %7052 = vmatprep.subr.bf16.mxu0 %v14202_v56  ;;  %v1074_v14 = vld [vmem:[#allocation2 + $0x1da0] sm:$0xff]  ;;  %v14138_v18 = vcombine.high %v818_v12, %v826_v13  ;;  %v14137_v41 = vcombine.low %v818_v12, %v826_v13 }
 0x2bb   :  { %7092 = vmatpush1.bf16.msra.mxu1 %v14217_v22  ;;  %v1082_v35 = vld [vmem:[#allocation2 + $0x1de0] sm:$0xff] }
 0x2bc   :  { %7093 = vmatprep.subr.bf16.mxu1 %v14458_v27  ;;  %v14394_v19 = vcombine.high %v1074_v14, %v1082_v35  ;;  %v802_v20 = vld [vmem:[#allocation2 + $0x1520] sm:$0xff]  ;;  %v14393_v36 = vcombine.low %v1074_v14, %v1082_v35 }
 0x2bd   :  { %7053 = vmatpush2.bf16.msra.mxu0 %v14201_v39  ;;  %v810_v22 = vld [vmem:[#allocation2 + $0x1560] sm:$0xff] }
 0x2be   :  { %7054 = vmatprep.subr.bf16.mxu0 %v14186_v45  ;;  %v1058_v56 = vld [vmem:[#allocation2 + $0x1d20] sm:$0xff]  ;;  %v14122_v37 = vcombine.high %v802_v20, %v810_v22  ;;  %v14121_v49 = vcombine.low %v802_v20, %v810_v22 }
 0x2bf   :  { %7094 = vmatpush2.bf16.msra.mxu1 %v14457_v40  ;;  %v1066_v27 = vld [vmem:[#allocation2 + $0x1d60] sm:$0xff] }
 0x2c0   :  { %7095 = vmatprep.subr.bf16.mxu1 %v14442_v46  ;;  %v14378_v38 = vcombine.high %v1058_v56, %v1066_v27  ;;  %v786_v39 = vld [vmem:[#allocation2 + $0x14a0] sm:$0xff]  ;;  %v14377_v51 = vcombine.low %v1058_v56, %v1066_v27 }
 0x2c1   :  { %7055 = vmatpush2.bf16.msra.mxu0 %v14185_v3  ;;  %v794_v40 = vld [vmem:[#allocation2 + $0x14e0] sm:$0xff] }
 0x2c2   :  { %7056 = vmatprep.subr.bf16.mxu0 %v14170_v21  ;;  %v1042_v45 = vld [vmem:[#allocation2 + $0x1ca0] sm:$0xff]  ;;  %v14106_v53 = vcombine.high %v786_v39, %v794_v40  ;;  %v14105_v60 = vcombine.low %v786_v39, %v794_v40  ;;  %v475_v39 = vld [vmem:[#allocation2 + $0xae8] sm:$0xff] }
 0x2c3   :  { %7096 = vmatpush2.bf16.msra.mxu1 %v14441_v57  ;;  %v1050_v46 = vld [vmem:[#allocation2 + $0x1ce0] sm:$0xff] }
 0x2c4   :  { %7097 = vmatprep.subr.bf16.mxu1 %v14426_v59  ;;  %v14362_v2 = vcombine.high %v1042_v45, %v1050_v46  ;;  %v770_v3 = vld [vmem:[#allocation2 + $0x1420] sm:$0xff]  ;;  %v14361_v61 = vcombine.low %v1042_v45, %v1050_v46 }
 0x2c5   :  { %7057 = vmatpush2.bf16.msra.mxu0 %v14169_v6  ;;  %v778_v57 = vld [vmem:[#allocation2 + $0x1460] sm:$0xff]  ;;  %v243_v6 = vld [vmem:[#allocation2 + $0x3a8] sm:$0xff] }
 0x2c6   :  { %7058 = vmatprep.subr.bf16.mxu0 %v14154_v9  ;;  %v1026_v21 = vld [vmem:[#allocation2 + $0x1c20] sm:$0xff]  ;;  %v14090_v62 = vcombine.high %v770_v3, %v778_v57  ;;  %v499_v9 = vld [vmem:[#allocation2 + $0xba8] sm:$0xff]  ;;  %v14089_v12 = vcombine.low %v770_v3, %v778_v57 }
 0x2c7   :  { %7098 = vmatpush2.bf16.msra.mxu1 %v14425_v7  ;;  %v1034_v59 = vld [vmem:[#allocation2 + $0x1c60] sm:$0xff]  ;;  %v251_v7 = vld [vmem:[#allocation2 + $0x3e8] sm:$0xff] }
 0x2c8   :  { %7099 = vmatprep.subr.bf16.mxu1 %v14410_v10  ;;  %v14346_v63 = vcombine.high %v1026_v21, %v1034_v59  ;;  %v507_v10 = vld [vmem:[#allocation2 + $0xbe8] sm:$0xff]  ;;  %v14345_v13 = vcombine.low %v1026_v21, %v1034_v59  ;;  %v13564_v14 = vcombine.high %v243_v6, %v251_v7  ;;  %v13563_v20 = vcombine.low %v243_v6, %v251_v7 }
 0x2c9   :  { %7059 = vmatpush2.bf16.msra.mxu0 %v14153_v15  ;;  %v13820_v35 = vcombine.high %v499_v9, %v507_v10  ;;  %v227_v15 = vld [vmem:[#allocation2 + $0x328] sm:$0xff]  ;;  %v13819_v22 = vcombine.low %v499_v9, %v507_v10 }
 0x2ca   :  { %7060 = vmatprep.subr.bf16.mxu0 %v14138_v18  ;;  %v483_v18 = vld [vmem:[#allocation2 + $0xb28] sm:$0xff] }
 0x2cb   :  { %7100 = vmatpush2.bf16.msra.mxu1 %v14409_v17  ;;  %v235_v17 = vld [vmem:[#allocation2 + $0x368] sm:$0xff] }
 0x2cc   :  { %7101 = vmatprep.subr.bf16.mxu1 %v14394_v19  ;;  %v491_v19 = vld [vmem:[#allocation2 + $0xb68] sm:$0xff]  ;;  %v13548_v56 = vcombine.high %v227_v15, %v235_v17  ;;  %v13547_v45 = vcombine.low %v227_v15, %v235_v17 }
 0x2cd   :  { %7061 = vmatpush2.bf16.msra.mxu0 %v14137_v41  ;;  %v13804_v27 = vcombine.high %v483_v18, %v491_v19  ;;  %v211_v41 = vld [vmem:[#allocation2 + $0x2a8] sm:$0xff] }
 0x2ce   :  { %7062 = vmatprep.subr.bf16.mxu0 %v14122_v37  ;;  %v195_v57 = vld [vmem:[#allocation2 + $0x228] sm:$0xff] }
 0x2cf   :  { %7102 = vmatpush2.bf16.msra.mxu1 %v14393_v36  ;;  %v219_v36 = vld [vmem:[#allocation2 + $0x2e8] sm:$0xff] }
 0x2d0   :  { %7103 = vmatprep.subr.bf16.mxu1 %v14378_v38  ;;  %v467_v38 = vld [vmem:[#allocation2 + $0xaa8] sm:$0xff]  ;;  %v13531_v6 = vcombine.low %v211_v41, %v219_v36 }
 0x2d1   :  { %7063 = vmatpush2.bf16.msra.mxu0 %v14121_v49  ;;  %v13788_v3 = vcombine.high %v467_v38, %v475_v39  ;;  %v203_v21 = vld [vmem:[#allocation2 + $0x268] sm:$0xff]  ;;  %v13787_v9 = vcombine.low %v467_v38, %v475_v39 }
 0x2d2   :  { %7064 = vmatprep.subr.bf16.mxu0 %v14106_v53  ;;  %v13532_v53 = vcombine.high %v211_v41, %v219_v36  ;;  %v13516_v10 = vcombine.high %v195_v57, %v203_v21  ;;  %v435_v15 = vld [vmem:[#allocation2 + $0x9a8] sm:$0xff] }
 0x2d3   :  { %7104 = vmatpush2.bf16.msra.mxu1 %v14377_v51  ;;  %v13803_v51 = vcombine.low %v483_v18, %v491_v19  ;;  %v443_v17 = vld [vmem:[#allocation2 + $0x9e8] sm:$0xff]  ;;  %v13515_v18 = vcombine.low %v195_v57, %v203_v21 }
 0x2d4   :  { %7105 = vmatprep.subr.bf16.mxu1 %v14362_v2  ;;  %v419_v41 = vld [vmem:[#allocation2 + $0x928] sm:$0xff]  ;;  %v13755_v38 = vcombine.low %v435_v15, %v443_v17 }
 0x2d5   :  { %7065 = vmatpush2.bf16.msra.mxu0 %v14105_v60  ;;  %v427_v36 = vld [vmem:[#allocation2 + $0x968] sm:$0xff] }
 0x2d6   :  { %7066 = vmatprep.subr.bf16.mxu0 %v14090_v62  ;;  %v459_v62 = vld [vmem:[#allocation2 + $0xa68] sm:$0xff] }
 0x2d7   :  { %7106 = vmatpush2.bf16.msra.mxu1 %v14361_v61  ;;  %v451_v61 = vld [vmem:[#allocation2 + $0xa28] sm:$0xff] }
 0x2d8   :  { %7107 = vmatprep.subr.bf16.mxu1 %v14346_v63  ;;  %v13771_v19 = vcombine.low %v451_v61, %v459_v62 }
 0x2d9   :  { %7067 = vmatpush2.bf16.msra.mxu0 %v14089_v12 }
 0x2da   :  { %7118 = vmatprep.subr.bf16.mxu0 %v13564_v14  ;;  %v179_v14 = vld [vmem:[#allocation2 + $0x1a8] sm:$0xff] }
 0x2db   :  { %7108 = vmatpush2.bf16.msra.mxu1 %v14345_v13  ;;  %v13772_v13 = vcombine.high %v451_v61, %v459_v62  ;;  %v139_v61 = vld [vmem:[#allocation2 + $0x68] sm:$0xff] }
 0x2dc   :  { %7159 = vmatprep.subr.bf16.mxu1 %v13820_v35  ;;  %v6824_v37 = vpop.f32.mrf.mxu0  ;;  %7069 = vmatmul.mubr.bf16.vlgmr.msra.gmra.mxu0 %v16322_v44  ;;  %v187_v35 = vld [vmem:[#allocation2 + $0x1e8] sm:$0xff] }
 0x2dd   :  { %7119 = vmatpush1.bf16.msra.mxu0 %v13563_v20  ;;  %7150 = vmatprep.mubr.bf16.mxu0 %v16292_v4  ;;  %v13500_v20 = vcombine.high %v179_v14, %v187_v35  ;;  %v387_v62 = vld [vmem:[#allocation2 + $0x828] sm:$0xff] }
 0x2de   :  { %v6865_v40 = vpop.f32.mrf.mxu1  ;;  %7110 = vmatmul.mubr.bf16.vlgmr.msra.gmra.mxu1 %v16326_v47  ;;  %v6826_v49 = vpop.f32.mrf.mxu0  ;;  %7120 = vmatprep.subr.bf16.mxu0 %v13548_v56  ;;  %v163_v56 = vld [vmem:[#allocation2 + $0x128] sm:$0xff] }
 0x2df   :  { %v16432_v46 = vadd.f32 %v6865_v40, %v6824_v37  ;;  %7160 = vmatpush1.bf16.msra.mxu1 %v13819_v22  ;;  %7191 = vmatprep.mubr.bf16.mxu1 %v16296_v5  ;;  %v13756_v22 = vcombine.high %v435_v15, %v443_v17  ;;  %v13499_v37 = vcombine.low %v179_v14, %v187_v35  ;;  %v627_v14 = vld [vmem:[#allocation2 + $0xfa8] sm:$0xff] }
 0x2e0   :  { %v6867_v2 = vpop.f32.mrf.mxu1  ;;  %7161 = vmatprep.subr.bf16.mxu1 %v13804_v27  ;;  %v6828_v60 = vpop.f32.mrf.mxu0  ;;  %v171_v27 = vld [vmem:[#allocation2 + $0x168] sm:$0xff]  ;;  %v13740_v40 = vcombine.high %v419_v41, %v427_v36 }
 0x2e1   :  { %v16435_v59 = vadd.f32 %v6867_v2, %v6826_v49  ;;  %7121 = vmatpush1.bf16.msra.mxu0 %v13547_v45  ;;  %v13484_v39 = vcombine.high %v163_v56, %v171_v27  ;;  %v147_v45 = vld [vmem:[#allocation2 + $0xa8] sm:$0xff]  ;;  %v13483_v2 = vcombine.low %v163_v56, %v171_v27 }
 0x2e2   :  { %v6869_v63 = vpop.f32.mrf.mxu1  ;;  %v6829_v7 = vpop.f32.mrf.mxu0  ;;  %7122 = vmatprep.subr.bf16.mxu0 %v13532_v53  ;;  %v155_v49 = vld [vmem:[#allocation2 + $0xe8] sm:$0xff] }
 0x2e3   :  { %7162 = vmatpush1.bf16.msra.mxu1 %v13803_v51  ;;  %v403_v51 = vld [vmem:[#allocation2 + $0x8a8] sm:$0xff]  ;;  %v13468_v57 = vcombine.high %v147_v45, %v155_v49 }
 0x2e4   :  { %v6870_v12 = vpop.f32.mrf.mxu1  ;;  %7163 = vmatprep.subr.bf16.mxu1 %v13788_v3  ;;  %v411_v53 = vld [vmem:[#allocation2 + $0x8e8] sm:$0xff]  ;;  %v13739_v3 = vcombine.low %v419_v41, %v427_v36 }
 0x2e5   :  { %7123 = vmatpush1.bf16.msra.mxu0 %v13531_v6  ;;  %v13724_v21 = vcombine.high %v403_v51, %v411_v53  ;;  %v131_v60 = vld [vmem:[#allocation2 + $0x28] sm:$0xff]  ;;  %v13467_v6 = vcombine.low %v147_v45, %v155_v49  ;;  %v13723_v7 = vcombine.low %v403_v51, %v411_v53 }
 0x2e6   :  { %7124 = vmatprep.subr.bf16.mxu0 %v13516_v10  ;;  %v395_v63 = vld [vmem:[#allocation2 + $0x868] sm:$0xff]  ;;  %v13451_v15 = vcombine.low %v131_v60, %v139_v61 }
 0x2e7   :  { %7164 = vmatpush1.bf16.msra.mxu1 %v13787_v9  ;;  %v13452_v9 = vcombine.high %v131_v60, %v139_v61  ;;  %v13708_v10 = vcombine.high %v387_v62, %v395_v63  ;;  %v371_v12 = vld [vmem:[#allocation2 + $0x7a8] sm:$0xff]  ;;  %v13707_v17 = vcombine.low %v387_v62, %v395_v63 }
 0x2e8   :  { %7165 = vmatprep.subr.bf16.mxu1 %v13772_v13  ;;  %v379_v13 = vld [vmem:[#allocation2 + $0x7e8] sm:$0xff] }
 0x2e9   :  { %7125 = vmatpush1.bf16.msra.mxu0 %v13515_v18  ;;  %v635_v35 = vld [vmem:[#allocation2 + $0xfe8] sm:$0xff]  ;;  %v13692_v18 = vcombine.high %v371_v12, %v379_v13  ;;  %v13691_v41 = vcombine.low %v371_v12, %v379_v13 }
 0x2ea   :  { %7126 = vmatprep.subr.bf16.mxu0 %v13500_v20  ;;  %v355_v20 = vld [vmem:[#allocation2 + $0x728] sm:$0xff]  ;;  %v13947_v36 = vcombine.low %v627_v14, %v635_v35 }
 0x2eb   :  { %7166 = vmatpush1.bf16.msra.mxu1 %v13771_v19  ;;  %v13948_v19 = vcombine.high %v627_v14, %v635_v35  ;;  %v611_v56 = vld [vmem:[#allocation2 + $0xf28] sm:$0xff] }
 0x2ec   :  { %7167 = vmatprep.subr.bf16.mxu1 %v13756_v22  ;;  %v363_v22 = vld [vmem:[#allocation2 + $0x768] sm:$0xff] }
 0x2ed   :  { %7127 = vmatpush1.bf16.msra.mxu0 %v13499_v37  ;;  %v619_v27 = vld [vmem:[#allocation2 + $0xf68] sm:$0xff]  ;;  %v13676_v37 = vcombine.high %v355_v20, %v363_v22  ;;  %v13675_v51 = vcombine.low %v355_v20, %v363_v22 }
 0x2ee   :  { %7128 = vmatprep.subr.bf16.mxu0 %v13484_v39  ;;  %v339_v39 = vld [vmem:[#allocation2 + $0x6a8] sm:$0xff]  ;;  %v13931_v53 = vcombine.low %v611_v56, %v619_v27 }
 0x2ef   :  { %7168 = vmatpush1.bf16.msra.mxu1 %v13755_v38  ;;  %v13932_v38 = vcombine.high %v611_v56, %v619_v27  ;;  %v595_v45 = vld [vmem:[#allocation2 + $0xea8] sm:$0xff] }
 0x2f0   :  { %7169 = vmatprep.subr.bf16.mxu1 %v13740_v40  ;;  %v347_v40 = vld [vmem:[#allocation2 + $0x6e8] sm:$0xff] }
 0x2f1   :  { %7129 = vmatpush1.bf16.msra.mxu0 %v13483_v2  ;;  %v603_v49 = vld [vmem:[#allocation2 + $0xee8] sm:$0xff]  ;;  %v13660_v2 = vcombine.high %v339_v39, %v347_v40  ;;  %v13659_v62 = vcombine.low %v339_v39, %v347_v40 }
 0x2f2   :  { %7130 = vmatprep.subr.bf16.mxu0 %v13468_v57  ;;  %v323_v57 = vld [vmem:[#allocation2 + $0x628] sm:$0xff]  ;;  %v13915_v63 = vcombine.low %v595_v45, %v603_v49 }
 0x2f3   :  { %7170 = vmatpush1.bf16.msra.mxu1 %v13739_v3  ;;  %v13916_v3 = vcombine.high %v595_v45, %v603_v49  ;;  %v579_v60 = vld [vmem:[#allocation2 + $0xe28] sm:$0xff] }
 0x2f4   :  { %7171 = vmatprep.subr.bf16.mxu1 %v13724_v21  ;;  %v331_v21 = vld [vmem:[#allocation2 + $0x668] sm:$0xff] }
 0x2f5   :  { %7131 = vmatpush1.bf16.msra.mxu0 %v13467_v6  ;;  %v587_v61 = vld [vmem:[#allocation2 + $0xe68] sm:$0xff]  ;;  %v13644_v6 = vcombine.high %v323_v57, %v331_v21  ;;  %v13643_v14 = vcombine.low %v323_v57, %v331_v21 }
 0x2f6   :  { %7132 = vmatprep.subr.bf16.mxu0 %v13452_v9  ;;  %v307_v9 = vld [vmem:[#allocation2 + $0x5a8] sm:$0xff]  ;;  %v13899_v35 = vcombine.low %v579_v60, %v587_v61 }
 0x2f7   :  { %7172 = vmatpush1.bf16.msra.mxu1 %v13723_v7  ;;  %v13900_v7 = vcombine.high %v579_v60, %v587_v61  ;;  %v563_v12 = vld [vmem:[#allocation2 + $0xda8] sm:$0xff] }
 0x2f8   :  { %7173 = vmatprep.subr.bf16.mxu1 %v13708_v10  ;;  %v315_v10 = vld [vmem:[#allocation2 + $0x5e8] sm:$0xff] }
 0x2f9   :  { %7133 = vmatpush1.bf16.msra.mxu0 %v13451_v15  ;;  %v571_v13 = vld [vmem:[#allocation2 + $0xde8] sm:$0xff]  ;;  %v13628_v15 = vcombine.high %v307_v9, %v315_v10  ;;  %v13627_v56 = vcombine.low %v307_v9, %v315_v10 }
 0x2fa   :  { %7134 = vmatprep.subr.bf16.mxu0 %v13692_v18  ;;  %v291_v18 = vld [vmem:[#allocation2 + $0x528] sm:$0xff]  ;;  %v13883_v27 = vcombine.low %v563_v12, %v571_v13 }
 0x2fb   :  { %7174 = vmatpush1.bf16.msra.mxu1 %v13707_v17  ;;  %v13884_v17 = vcombine.high %v563_v12, %v571_v13  ;;  %v547_v20 = vld [vmem:[#allocation2 + $0xd28] sm:$0xff] }
 0x2fc   :  { %7175 = vmatprep.subr.bf16.mxu1 %v13948_v19  ;;  %v299_v19 = vld [vmem:[#allocation2 + $0x568] sm:$0xff] }
 0x2fd   :  { %7135 = vmatpush2.bf16.msra.mxu0 %v13691_v41  ;;  %v555_v22 = vld [vmem:[#allocation2 + $0xd68] sm:$0xff]  ;;  %v13612_v41 = vcombine.high %v291_v18, %v299_v19  ;;  %v13611_v45 = vcombine.low %v291_v18, %v299_v19 }
 0x2fe   :  { %7136 = vmatprep.subr.bf16.mxu0 %v13676_v37  ;;  %v275_v37 = vld [vmem:[#allocation2 + $0x4a8] sm:$0xff]  ;;  %v13867_v49 = vcombine.low %v547_v20, %v555_v22 }
 0x2ff   :  { %7176 = vmatpush2.bf16.msra.mxu1 %v13947_v36  ;;  %v13868_v36 = vcombine.high %v547_v20, %v555_v22  ;;  %v531_v39 = vld [vmem:[#allocation2 + $0xca8] sm:$0xff]  ;;  %v7638_v20 = vsub.s32 6, %v16344_v48 }
 0x300   :  { %7177 = vmatprep.subr.bf16.mxu1 %v13932_v38  ;;  %v283_v38 = vld [vmem:[#allocation2 + $0x4e8] sm:$0xff] }
 0x301   :  { %7137 = vmatpush2.bf16.msra.mxu0 %v13675_v51  ;;  %v539_v40 = vld [vmem:[#allocation2 + $0xce8] sm:$0xff]  ;;  %v13596_v51 = vcombine.high %v275_v37, %v283_v38  ;;  %v13595_v60 = vcombine.low %v275_v37, %v283_v38 }
 0x302   :  { %7138 = vmatprep.subr.bf16.mxu0 %v13660_v2  ;;  %v259_v2 = vld [vmem:[#allocation2 + $0x428] sm:$0xff]  ;;  %v13851_v61 = vcombine.low %v531_v39, %v539_v40 }
 0x303   :  { %7178 = vmatpush2.bf16.msra.mxu1 %v13931_v53  ;;  %v13852_v53 = vcombine.high %v531_v39, %v539_v40  ;;  %v515_v57 = vld [vmem:[#allocation2 + $0xc28] sm:$0xff] }
 0x304   :  { %7179 = vmatprep.subr.bf16.mxu1 %v13916_v3  ;;  %v267_v3 = vld [vmem:[#allocation2 + $0x468] sm:$0xff] }
 0x305   :  { %7139 = vmatpush2.bf16.msra.mxu0 %v13659_v62  ;;  %v523_v21 = vld [vmem:[#allocation2 + $0xc68] sm:$0xff]  ;;  %v13580_v62 = vcombine.high %v259_v2, %v267_v3  ;;  %v13579_v12 = vcombine.low %v259_v2, %v267_v3 }
 0x306   :  { %7140 = vmatprep.subr.bf16.mxu0 %v13644_v6  ;;  %v755_v6 = vld [vmem:[#allocation2 + $0x13a8] sm:$0xff]  ;;  %v13835_v13 = vcombine.low %v515_v57, %v523_v21 }
 0x307   :  { %7180 = vmatpush2.bf16.msra.mxu1 %v13915_v63  ;;  %v13836_v63 = vcombine.high %v515_v57, %v523_v21  ;;  %v1011_v9 = vld [vmem:[#allocation2 + $0x1ba8] sm:$0xff] }
 0x308   :  { %7181 = vmatprep.subr.bf16.mxu1 %v13900_v7  ;;  %v763_v7 = vld [vmem:[#allocation2 + $0x13e8] sm:$0xff] }
 0x309   :  { %7141 = vmatpush2.bf16.msra.mxu0 %v13643_v14  ;;  %v1019_v10 = vld [vmem:[#allocation2 + $0x1be8] sm:$0xff]  ;;  %v14076_v14 = vcombine.high %v755_v6, %v763_v7  ;;  %v14075_v22 = vcombine.low %v755_v6, %v763_v7 }
 0x30a   :  { %7142 = vmatprep.subr.bf16.mxu0 %v13628_v15  ;;  %v739_v15 = vld [vmem:[#allocation2 + $0x1328] sm:$0xff] }
 0x30b   :  { %7182 = vmatpush2.bf16.msra.mxu1 %v13899_v35  ;;  %v14332_v35 = vcombine.high %v1011_v9, %v1019_v10  ;;  %v995_v18 = vld [vmem:[#allocation2 + $0x1b28] sm:$0xff] }
 0x30c   :  { %7183 = vmatprep.subr.bf16.mxu1 %v13884_v17  ;;  %v747_v17 = vld [vmem:[#allocation2 + $0x1368] sm:$0xff] }
 0x30d   :  { %7143 = vmatpush2.bf16.msra.mxu0 %v13627_v56  ;;  %v1003_v19 = vld [vmem:[#allocation2 + $0x1b68] sm:$0xff]  ;;  %v14331_v56 = vcombine.low %v1011_v9, %v1019_v10  ;;  %v14059_v2 = vcombine.low %v739_v15, %v747_v17 }
 0x30e   :  { %7144 = vmatprep.subr.bf16.mxu0 %v13612_v41  ;;  %v14060_v41 = vcombine.high %v739_v15, %v747_v17  ;;  %v723_v37 = vld [vmem:[#allocation2 + $0x12a8] sm:$0xff]  ;;  %v14315_v21 = vcombine.low %v995_v18, %v1003_v19 }
 0x30f   :  { %7184 = vmatpush2.bf16.msra.mxu1 %v13883_v27  ;;  %v7642_v27 = vsub.s32 7, %v16344_v48  ;;  %v731_v38 = vld [vmem:[#allocation2 + $0x12e8] sm:$0xff] }
 0x310   :  { %7185 = vmatprep.subr.bf16.mxu1 %v13868_v36  ;;  %v14316_v36 = vcombine.high %v995_v18, %v1003_v19  ;;  %v979_v40 = vld [vmem:[#allocation2 + $0x1aa8] sm:$0xff] }
 0x311   :  { %7145 = vmatpush2.bf16.msra.mxu0 %v13611_v45  ;;  %v987_v45 = vld [vmem:[#allocation2 + $0x1ae8] sm:$0xff]  ;;  %v7643_v57 = vrot.slane %v16412_v50, %v7642_v27 }
 0x312   :  { %7146 = vmatprep.subr.bf16.mxu0 %v13596_v51  ;;  %v707_v6 = vld [vmem:[#allocation2 + $0x1228] sm:$0xff]  ;;  %v14299_v15 = vcombine.low %v979_v40, %v987_v45 }
 0x313   :  { %7186 = vmatpush2.bf16.msra.mxu1 %v13867_v49  ;;  %v715_v7 = vld [vmem:[#allocation2 + $0x1268] sm:$0xff] }
 0x314   :  { %7187 = vmatprep.subr.bf16.mxu1 %v13852_v53  ;;  %v7639_v53 = vrot.slane %v16412_v50, %v7638_v20  ;;  %v963_v10 = vld [vmem:[#allocation2 + $0x1a28] sm:$0xff]  ;;  %v14028_v17 = vcombine.high %v707_v6, %v715_v7 }
 0x315   :  { %7147 = vmatpush2.bf16.msra.mxu0 %v13595_v60  ;;  %v14044_v60 = vcombine.high %v723_v37, %v731_v38 }
 0x316   :  { %7148 = vmatprep.subr.bf16.mxu0 %v13580_v62 }
 0x317   :  { %7188 = vmatpush2.bf16.msra.mxu1 %v13851_v61 }
 0x318   :  { %7189 = vmatprep.subr.bf16.mxu1 %v13836_v63  ;;  %v14300_v63 = vcombine.high %v979_v40, %v987_v45 }
 0x319   :  { %7149 = vmatpush2.bf16.msra.mxu0 %v13579_v12  ;;  %v971_v12 = vld [vmem:[#allocation2 + $0x1a68] sm:$0xff] }
 0x31a   :  { %7200 = vmatprep.subr.bf16.mxu0 %v14076_v14 }
 0x31b   :  { %7190 = vmatpush2.bf16.msra.mxu1 %v13835_v13 }
 0x31c   :  { %7241 = vmatprep.subr.bf16.mxu1 %v14332_v35  ;;  %v6906_v39 = vpop.f32.mrf.mxu0  ;;  %7151 = vmatmul.mubr.bf16.vlgmr.msra.gmra.mxu0 %v16302_v26  ;;  %v14043_v35 = vcombine.low %v723_v37, %v731_v38  ;;  %v14027_v37 = vcombine.low %v707_v6, %v715_v7  ;;  %v14283_v38 = vcombine.low %v963_v10, %v971_v12  ;;  %v915_v6 = vld [vmem:[#allocation2 + $0x18a8] sm:$0xff] }
 0x31d   :  { %v6907_v49 = vadd.f32 %v6906_v39, %v16432_v46  ;;  %7201 = vmatpush1.bf16.msra.mxu0 %v14075_v22  ;;  %7232 = vmatprep.mubr.bf16.mxu0 %v16310_v0  ;;  %v947_v39 = vld [vmem:[#allocation2 + $0x19a8] sm:$0xff] }
 0x31e   :  { %v6947_v51 = vpop.f32.mrf.mxu1  ;;  %7192 = vmatmul.mubr.bf16.vlgmr.msra.gmra.mxu1 %v16306_v29  ;;  %v6908_v3 = vpop.f32.mrf.mxu0  ;;  %7202 = vmatprep.subr.bf16.mxu0 %v14060_v41  ;;  %v691_v41 = vld [vmem:[#allocation2 + $0x11a8] sm:$0xff] }
 0x31f   :  { %7242 = vmatpush1.bf16.msra.mxu1 %v14331_v56  ;;  %v6948_v61 = vadd.f32 %v6947_v51, %v6907_v49  ;;  %v6909_v46 = vadd.f32 %v6908_v3, %v16435_v59  ;;  %7273 = vmatprep.mubr.bf16.mxu1 %v16315_v1  ;;  %v14284_v56 = vcombine.high %v963_v10, %v971_v12  ;;  %v955_v49 = vld [vmem:[#allocation2 + $0x19e8] sm:$0xff] }
 0x320   :  { %v6949_v62 = vpop.f32.mrf.mxu1  ;;  %7243 = vmatprep.subr.bf16.mxu1 %v14316_v36  ;;  %v6910_v9 = vpop.f32.mrf.mxu0  ;;  %v699_v36 = vld [vmem:[#allocation2 + $0x11e8] sm:$0xff]  ;;  %v14268_v45 = vcombine.high %v947_v39, %v955_v49 }
 0x321   :  { %v16452_v13 = vadd.f32 %v7639_v53, %v6948_v61  ;;  %v6950_v50 = vadd.f32 %v6949_v62, %v6909_v46  ;;  %7203 = vmatpush1.bf16.msra.mxu0 %v14059_v2  ;;  %v14012_v40 = vcombine.high %v691_v41, %v699_v36  ;;  %v675_v53 = vld [vmem:[#allocation2 + $0x1128] sm:$0xff] }
 0x322   :  { %v6951_v14 = vpop.f32.mrf.mxu1  ;;  %v6911_v59 = vpop.f32.mrf.mxu0  ;;  %7204 = vmatprep.subr.bf16.mxu0 %v14044_v60  ;;  %v683_v2 = vld [vmem:[#allocation2 + $0x1168] sm:$0xff]  ;;  %v14267_v60 = vcombine.low %v947_v39, %v955_v49 }
 0x323   :  { %7244 = vmatpush1.bf16.msra.mxu1 %v14315_v21  ;;  %v7666_v18 = vmax.f32 %v16452_v13, 0.0  ;;  %v16455_v19 = vadd.f32 %v7643_v57, %v6950_v50  ;;  %v931_v3 = vld [vmem:[#allocation2 + $0x1928] sm:$0xff]  ;;  %v14011_v21 = vcombine.low %v691_v41, %v699_v36  ;;  %v13996_v61 = vcombine.high %v675_v53, %v683_v2 }
 0x324   :  { %v6952_v22 = vpop.f32.mrf.mxu1  ;;  %7245 = vmatprep.subr.bf16.mxu1 %v14300_v63  ;;  %v939_v57 = vld [vmem:[#allocation2 + $0x1968] sm:$0xff]  ;;  %v13995_v9 = vcombine.low %v675_v53, %v683_v2 }
 0x325   :  { %v7667_v51 = vmax.f32 %v16455_v19, 0.0  ;;  %7205 = vmatpush1.bf16.msra.mxu0 %v14043_v35  ;;  %v14252_v46 = vcombine.high %v931_v3, %v939_v57  ;;  %v659_v62 = vld [vmem:[#allocation2 + $0x10a8] sm:$0xff]  ;;  %v14251_v10 = vcombine.low %v931_v3, %v939_v57 }
 0x326   :  { %7206 = vmatprep.subr.bf16.mxu0 %v14028_v17  ;;  %v667_v63 = vld [vmem:[#allocation2 + $0x10e8] sm:$0xff] }
 0x327   :  { %7246 = vmatpush1.bf16.msra.mxu1 %v14299_v15  ;;  %v923_v7 = vld [vmem:[#allocation2 + $0x18e8] sm:$0xff]  ;;  %v13980_v12 = vcombine.high %v659_v62, %v667_v63  ;;  %v13979_v17 = vcombine.low %v659_v62, %v667_v63 }
 0x328   :  { %7247 = vmatprep.subr.bf16.mxu1 %v14284_v56  ;;  %v14236_v50 = vcombine.high %v915_v6, %v923_v7  ;;  %v643_v14 = vld [vmem:[#allocation2 + $0x1028] sm:$0xff]  ;;  %v14235_v22 = vcombine.low %v915_v6, %v923_v7 }
 0x329   :  { %7207 = vmatpush1.bf16.msra.mxu0 %v14027_v37  ;;  %v651_v35 = vld [vmem:[#allocation2 + $0x1068] sm:$0xff] }
 0x32a   :  { %7208 = vmatprep.subr.bf16.mxu0 %v14012_v40  ;;  %v899_v59 = vld [vmem:[#allocation2 + $0x1828] sm:$0xff]  ;;  %v13964_v56 = vcombine.high %v643_v14, %v651_v35 }
 0x32b   :  { %7248 = vmatpush1.bf16.msra.mxu1 %v14283_v38  ;;  %v907_v15 = vld [vmem:[#allocation2 + $0x1868] sm:$0xff]  ;;  %v13963_v38 = vcombine.low %v643_v14, %v651_v35 }
 0x32c   :  { %7249 = vmatprep.subr.bf16.mxu1 %v14268_v45  ;;  %v14220_v41 = vcombine.high %v899_v59, %v907_v15  ;;  %v883_v36 = vld [vmem:[#allocation2 + $0x17a8] sm:$0xff]  ;;  %v14219_v40 = vcombine.low %v899_v59, %v907_v15 }
 0x32d   :  { %7209 = vmatpush1.bf16.msra.mxu0 %v14011_v21  ;;  %v891_v39 = vld [vmem:[#allocation2 + $0x17e8] sm:$0xff] }
 0x32e   :  { %7210 = vmatprep.subr.bf16.mxu0 %v13996_v61  ;;  %v1139_v49 = vld [vmem:[#allocation2 + $0x1fa8] sm:$0xff]  ;;  %v14204_v45 = vcombine.high %v883_v36, %v891_v39 }
 0x32f   :  { %7250 = vmatpush1.bf16.msra.mxu1 %v14267_v60  ;;  %v1147_v37 = vld [vmem:[#allocation2 + $0x1fe8] sm:$0xff]  ;;  %v14203_v60 = vcombine.low %v883_v36, %v891_v39 }
 0x330   :  { %7251 = vmatprep.subr.bf16.mxu1 %v14252_v46  ;;  %v14460_v53 = vcombine.high %v1139_v49, %v1147_v37  ;;  %v867_v2 = vld [vmem:[#allocation2 + $0x1728] sm:$0xff]  ;;  %v14459_v61 = vcombine.low %v1139_v49, %v1147_v37 }
 0x331   :  { %7211 = vmatpush1.bf16.msra.mxu0 %v13995_v9  ;;  %v875_v3 = vld [vmem:[#allocation2 + $0x1768] sm:$0xff] }
 0x332   :  { %7212 = vmatprep.subr.bf16.mxu0 %v13980_v12  ;;  %v1123_v57 = vld [vmem:[#allocation2 + $0x1f28] sm:$0xff]  ;;  %v14188_v46 = vcombine.high %v867_v2, %v875_v3 }
 0x333   :  { %7252 = vmatpush1.bf16.msra.mxu1 %v14251_v10  ;;  %v1131_v21 = vld [vmem:[#allocation2 + $0x1f68] sm:$0xff]  ;;  %v14187_v10 = vcombine.low %v867_v2, %v875_v3 }
 0x334   :  { %7253 = vmatprep.subr.bf16.mxu1 %v14236_v50  ;;  %v14444_v62 = vcombine.high %v1123_v57, %v1131_v21  ;;  %v851_v63 = vld [vmem:[#allocation2 + $0x16a8] sm:$0xff]  ;;  %v14443_v12 = vcombine.low %v1123_v57, %v1131_v21 }
 0x335   :  { %7213 = vmatpush1.bf16.msra.mxu0 %v13979_v17  ;;  %v859_v6 = vld [vmem:[#allocation2 + $0x16e8] sm:$0xff] }
 0x336   :  { %7214 = vmatprep.subr.bf16.mxu0 %v13964_v56  ;;  %v1107_v7 = vld [vmem:[#allocation2 + $0x1ea8] sm:$0xff]  ;;  %v14172_v50 = vcombine.high %v851_v63, %v859_v6 }
 0x337   :  { %7254 = vmatpush1.bf16.msra.mxu1 %v14235_v22  ;;  %v1115_v9 = vld [vmem:[#allocation2 + $0x1ee8] sm:$0xff]  ;;  %v14171_v22 = vcombine.low %v851_v63, %v859_v6 }
 0x338   :  { %7255 = vmatprep.subr.bf16.mxu1 %v14220_v41  ;;  %v14428_v14 = vcombine.high %v1107_v7, %v1115_v9  ;;  %v835_v35 = vld [vmem:[#allocation2 + $0x1628] sm:$0xff]  ;;  %v14427_v56 = vcombine.low %v1107_v7, %v1115_v9 }
 0x339   :  { %7215 = vmatpush1.bf16.msra.mxu0 %v13963_v38  ;;  %v843_v59 = vld [vmem:[#allocation2 + $0x1668] sm:$0xff] }
 0x33a   :  { %7216 = vmatprep.subr.bf16.mxu0 %v14204_v45  ;;  %v1091_v15 = vld [vmem:[#allocation2 + $0x1e28] sm:$0xff]  ;;  %v14156_v41 = vcombine.high %v835_v35, %v843_v59 }
 0x33b   :  { %7256 = vmatpush1.bf16.msra.mxu1 %v14219_v40  ;;  %v1099_v17 = vld [vmem:[#allocation2 + $0x1e68] sm:$0xff]  ;;  %v14155_v40 = vcombine.low %v835_v35, %v843_v59 }
 0x33c   :  { %7257 = vmatprep.subr.bf16.mxu1 %v14460_v53  ;;  %v14412_v36 = vcombine.high %v1091_v15, %v1099_v17  ;;  %v819_v39 = vld [vmem:[#allocation2 + $0x15a8] sm:$0xff]  ;;  %v14411_v45 = vcombine.low %v1091_v15, %v1099_v17 }
 0x33d   :  { %7217 = vmatpush2.bf16.msra.mxu0 %v14203_v60  ;;  %v827_v49 = vld [vmem:[#allocation2 + $0x15e8] sm:$0xff] }
 0x33e   :  { %7218 = vmatprep.subr.bf16.mxu0 %v14188_v46  ;;  %v1075_v37 = vld [vmem:[#allocation2 + $0x1da8] sm:$0xff]  ;;  %v14140_v53 = vcombine.high %v819_v39, %v827_v49 }
 0x33f   :  { %7258 = vmatpush2.bf16.msra.mxu1 %v14459_v61  ;;  %v1083_v38 = vld [vmem:[#allocation2 + $0x1de8] sm:$0xff]  ;;  %v14139_v61 = vcombine.low %v819_v39, %v827_v49  ;;  %v244_v49 = vld [vmem:[#allocation2 + $0x3b0] sm:$0xff] }
 0x340   :  { %7259 = vmatprep.subr.bf16.mxu1 %v14444_v62  ;;  %v14396_v2 = vcombine.high %v1075_v37, %v1083_v38  ;;  %v803_v3 = vld [vmem:[#allocation2 + $0x1528] sm:$0xff]  ;;  %v14395_v46 = vcombine.low %v1075_v37, %v1083_v38  ;;  %v252_v37 = vld [vmem:[#allocation2 + $0x3f0] sm:$0xff] }
 0x341   :  { %7219 = vmatpush2.bf16.msra.mxu0 %v14187_v10  ;;  %v811_v57 = vld [vmem:[#allocation2 + $0x1568] sm:$0xff]  ;;  %v500_v38 = vld [vmem:[#allocation2 + $0xbb0] sm:$0xff] }
 0x342   :  { %7220 = vmatprep.subr.bf16.mxu0 %v14172_v50  ;;  %v1059_v21 = vld [vmem:[#allocation2 + $0x1d28] sm:$0xff]  ;;  %v14124_v62 = vcombine.high %v803_v3, %v811_v57 }
 0x343   :  { %7260 = vmatpush2.bf16.msra.mxu1 %v14443_v12  ;;  %v1067_v60 = vld [vmem:[#allocation2 + $0x1d68] sm:$0xff]  ;;  %v14123_v12 = vcombine.low %v803_v3, %v811_v57  ;;  %v228_v57 = vld [vmem:[#allocation2 + $0x330] sm:$0xff] }
 0x344   :  { %7261 = vmatprep.subr.bf16.mxu1 %v14428_v14  ;;  %v14380_v63 = vcombine.high %v1059_v21, %v1067_v60  ;;  %v787_v6 = vld [vmem:[#allocation2 + $0x14a8] sm:$0xff]  ;;  %v14379_v50 = vcombine.low %v1059_v21, %v1067_v60  ;;  %v236_v21 = vld [vmem:[#allocation2 + $0x370] sm:$0xff] }
 0x345   :  { %7221 = vmatpush2.bf16.msra.mxu0 %v14171_v22  ;;  %v795_v7 = vld [vmem:[#allocation2 + $0x14e8] sm:$0xff]  ;;  %v484_v60 = vld [vmem:[#allocation2 + $0xb30] sm:$0xff] }
 0x346   :  { %7222 = vmatprep.subr.bf16.mxu0 %v14156_v41  ;;  %v1043_v9 = vld [vmem:[#allocation2 + $0x1ca8] sm:$0xff]  ;;  %v14108_v14 = vcombine.high %v787_v6, %v795_v7 }
 0x347   :  { %7262 = vmatpush2.bf16.msra.mxu1 %v14427_v56  ;;  %v1051_v10 = vld [vmem:[#allocation2 + $0x1ce8] sm:$0xff]  ;;  %v14107_v56 = vcombine.low %v787_v6, %v795_v7  ;;  %v212_v7 = vld [vmem:[#allocation2 + $0x2b0] sm:$0xff] }
 0x348   :  { %7263 = vmatprep.subr.bf16.mxu1 %v14412_v36  ;;  %v14364_v35 = vcombine.high %v1043_v9, %v1051_v10  ;;  %v771_v59 = vld [vmem:[#allocation2 + $0x1428] sm:$0xff]  ;;  %v14363_v41 = vcombine.low %v1043_v9, %v1051_v10  ;;  %v220_v9 = vld [vmem:[#allocation2 + $0x2f0] sm:$0xff] }
 0x349   :  { %7223 = vmatpush2.bf16.msra.mxu0 %v14155_v40  ;;  %v779_v15 = vld [vmem:[#allocation2 + $0x1468] sm:$0xff]  ;;  %v508_v40 = vld [vmem:[#allocation2 + $0xbf0] sm:$0xff] }
 0x34a   :  { %7224 = vmatprep.subr.bf16.mxu0 %v14140_v53  ;;  %v1027_v17 = vld [vmem:[#allocation2 + $0x1c28] sm:$0xff]  ;;  %v14092_v36 = vcombine.high %v771_v59, %v779_v15  ;;  %v13822_v3 = vcombine.high %v500_v38, %v508_v40 }
 0x34b   :  { %7264 = vmatpush2.bf16.msra.mxu1 %v14411_v45  ;;  %v1035_v22 = vld [vmem:[#allocation2 + $0x1c68] sm:$0xff]  ;;  %v14091_v45 = vcombine.low %v771_v59, %v779_v15 }
 0x34c   :  { %7265 = vmatprep.subr.bf16.mxu1 %v14396_v2  ;;  %v14348_v39 = vcombine.high %v1027_v17, %v1035_v22  ;;  %v14347_v53 = vcombine.low %v1027_v17, %v1035_v22  ;;  %v13566_v2 = vcombine.high %v244_v49, %v252_v37  ;;  %v13534_v22 = vcombine.high %v212_v7, %v220_v9 }
 0x34d   :  { %7225 = vmatpush2.bf16.msra.mxu0 %v14139_v61  ;;  %v492_v61 = vld [vmem:[#allocation2 + $0xb70] sm:$0xff] }
 0x34e   :  { %7226 = vmatprep.subr.bf16.mxu0 %v14124_v62  ;;  %v13821_v62 = vcombine.low %v500_v38, %v508_v40  ;;  %v13806_v6 = vcombine.high %v484_v60, %v492_v61  ;;  %v13805_v17 = vcombine.low %v484_v60, %v492_v61  ;;  %v452_v38 = vld [vmem:[#allocation2 + $0xa30] sm:$0xff] }
 0x34f   :  { %7266 = vmatpush2.bf16.msra.mxu1 %v14395_v46  ;;  %v13565_v46 = vcombine.low %v244_v49, %v252_v37  ;;  %v460_v40 = vld [vmem:[#allocation2 + $0xa70] sm:$0xff] }
 0x350   :  { %7267 = vmatprep.subr.bf16.mxu1 %v14380_v63  ;;  %v13550_v63 = vcombine.high %v228_v57, %v236_v21  ;;  %v13774_v60 = vcombine.high %v452_v38, %v460_v40  ;;  %v180_v61 = vld [vmem:[#allocation2 + $0x1b0] sm:$0xff] }
 0x351   :  { %7227 = vmatpush2.bf16.msra.mxu0 %v14123_v12  ;;  %v468_v12 = vld [vmem:[#allocation2 + $0xab0] sm:$0xff] }
 0x352   :  { %7228 = vmatprep.subr.bf16.mxu0 %v14108_v14 }
 0x353   :  { %7268 = vmatpush2.bf16.msra.mxu1 %v14379_v50  ;;  %v476_v50 = vld [vmem:[#allocation2 + $0xaf0] sm:$0xff] }
 0x354   :  { %7269 = vmatprep.subr.bf16.mxu1 %v14364_v35  ;;  %v13549_v35 = vcombine.low %v228_v57, %v236_v21 }
 0x355   :  { %7229 = vmatpush2.bf16.msra.mxu0 %v14107_v56 }
 0x356   :  { %7230 = vmatprep.subr.bf16.mxu0 %v14092_v36  ;;  %v196_v36 = vld [vmem:[#allocation2 + $0x230] sm:$0xff] }
 0x357   :  { %7270 = vmatpush2.bf16.msra.mxu1 %v14363_v41  ;;  %v13790_v41 = vcombine.high %v468_v12, %v476_v50 }
 0x358   :  { %7271 = vmatprep.subr.bf16.mxu1 %v14348_v39  ;;  %v204_v39 = vld [vmem:[#allocation2 + $0x270] sm:$0xff] }
 0x359   :  { %7231 = vmatpush2.bf16.msra.mxu0 %v14091_v45  ;;  %v13518_v57 = vcombine.high %v196_v36, %v204_v39 }
 0x35a   :  { %7282 = vmatprep.subr.bf16.mxu0 %v13566_v2 }
 0x35b   :  { %7272 = vmatpush2.bf16.msra.mxu1 %v14347_v53  ;;  %v13533_v53 = vcombine.low %v212_v7, %v220_v9  ;;  %v164_v9 = vld [vmem:[#allocation2 + $0x130] sm:$0xff] }
 0x35c   :  { %7323 = vmatprep.subr.bf16.mxu1 %v13822_v3  ;;  %v6988_v10 = vpop.f32.mrf.mxu0  ;;  %7233 = vmatmul.mubr.bf16.vlgmr.msra.gmra.mxu0 %v16322_v44  ;;  %v13789_v3 = vcombine.low %v468_v12, %v476_v50  ;;  %v428_v12 = vld [vmem:[#allocation2 + $0x970] sm:$0xff] }
 0x35d   :  { %7283 = vmatpush1.bf16.msra.mxu0 %v13565_v46  ;;  %7314 = vmatprep.mubr.bf16.mxu0 %v16292_v4  ;;  %v188_v46 = vld [vmem:[#allocation2 + $0x1f0] sm:$0xff] }
 0x35e   :  { %v7029_v14 = vpop.f32.mrf.mxu1  ;;  %7274 = vmatmul.mubr.bf16.vlgmr.msra.gmra.mxu1 %v16326_v47  ;;  %v6990_v15 = vpop.f32.mrf.mxu0  ;;  %7284 = vmatprep.subr.bf16.mxu0 %v13550_v63  ;;  %v444_v63 = vld [vmem:[#allocation2 + $0x9f0] sm:$0xff]  ;;  %v13501_v50 = vcombine.low %v180_v61, %v188_v46 }
 0x35f   :  { %v16460_v59 = vadd.f32 %v7029_v14, %v6988_v10  ;;  %7324 = vmatpush1.bf16.msra.mxu1 %v13821_v62  ;;  %7355 = vmatprep.mubr.bf16.mxu1 %v16296_v5  ;;  %v436_v62 = vld [vmem:[#allocation2 + $0x9b0] sm:$0xff]  ;;  %v13773_v10 = vcombine.low %v452_v38, %v460_v40  ;;  %v13502_v14 = vcombine.high %v180_v61, %v188_v46 }
 0x360   :  { %v7031_v56 = vpop.f32.mrf.mxu1  ;;  %7325 = vmatprep.subr.bf16.mxu1 %v13806_v6  ;;  %v6992_v37 = vpop.f32.mrf.mxu0  ;;  %v13517_v6 = vcombine.low %v196_v36, %v204_v39  ;;  %v13758_v7 = vcombine.high %v436_v62, %v444_v63  ;;  %v156_v36 = vld [vmem:[#allocation2 + $0xf0] sm:$0xff] }
 0x361   :  { %v16463_v49 = vadd.f32 %v7031_v56, %v6990_v15  ;;  %7285 = vmatpush1.bf16.msra.mxu0 %v13549_v35  ;;  %v172_v35 = vld [vmem:[#allocation2 + $0x170] sm:$0xff] }
 0x362   :  { %v7033_v45 = vpop.f32.mrf.mxu1  ;;  %v6993_v2 = vpop.f32.mrf.mxu0  ;;  %7286 = vmatprep.subr.bf16.mxu0 %v13534_v22  ;;  %v420_v15 = vld [vmem:[#allocation2 + $0x930] sm:$0xff]  ;;  %v13486_v22 = vcombine.high %v164_v9, %v172_v35  ;;  %v13485_v38 = vcombine.low %v164_v9, %v172_v35 }
 0x363   :  { %7326 = vmatpush1.bf16.msra.mxu1 %v13805_v17  ;;  %v13757_v17 = vcombine.low %v436_v62, %v444_v63  ;;  %v13742_v56 = vcombine.high %v420_v15, %v428_v12  ;;  %v404_v39 = vld [vmem:[#allocation2 + $0x8b0] sm:$0xff]  ;;  %v13741_v40 = vcombine.low %v420_v15, %v428_v12 }
 0x364   :  { %v7034_v21 = vpop.f32.mrf.mxu1  ;;  %7327 = vmatprep.subr.bf16.mxu1 %v13790_v41  ;;  %v148_v41 = vld [vmem:[#allocation2 + $0xb0] sm:$0xff] }
 0x365   :  { %7287 = vmatpush1.bf16.msra.mxu0 %v13533_v53  ;;  %v412_v37 = vld [vmem:[#allocation2 + $0x8f0] sm:$0xff]  ;;  %v13470_v45 = vcombine.high %v148_v41, %v156_v36 }
 0x366   :  { %7288 = vmatprep.subr.bf16.mxu0 %v13518_v57  ;;  %v13726_v53 = vcombine.high %v404_v39, %v412_v37  ;;  %v132_v2 = vld [vmem:[#allocation2 + $0x30] sm:$0xff]  ;;  %v13725_v61 = vcombine.low %v404_v39, %v412_v37 }
 0x367   :  { %7328 = vmatpush1.bf16.msra.mxu1 %v13789_v3  ;;  %v140_v3 = vld [vmem:[#allocation2 + $0x70] sm:$0xff] }
 0x368   :  { %7329 = vmatprep.subr.bf16.mxu1 %v13774_v60  ;;  %v388_v57 = vld [vmem:[#allocation2 + $0x830] sm:$0xff]  ;;  %v13469_v60 = vcombine.low %v148_v41, %v156_v36  ;;  %v13454_v46 = vcombine.high %v132_v2, %v140_v3 }
 0x369   :  { %7289 = vmatpush1.bf16.msra.mxu0 %v13517_v6  ;;  %v396_v21 = vld [vmem:[#allocation2 + $0x870] sm:$0xff] }
 0x36a   :  { %7290 = vmatprep.subr.bf16.mxu0 %v13502_v14  ;;  %v13710_v62 = vcombine.high %v388_v57, %v396_v21  ;;  %v372_v63 = vld [vmem:[#allocation2 + $0x7b0] sm:$0xff]  ;;  %v13709_v9 = vcombine.low %v388_v57, %v396_v21 }
 0x36b   :  { %7330 = vmatpush1.bf16.msra.mxu1 %v13773_v10  ;;  %v380_v6 = vld [vmem:[#allocation2 + $0x7f0] sm:$0xff] }
 0x36c   :  { %7331 = vmatprep.subr.bf16.mxu1 %v13758_v7  ;;  %v628_v10 = vld [vmem:[#allocation2 + $0xfb0] sm:$0xff]  ;;  %v13453_v7 = vcombine.low %v132_v2, %v140_v3  ;;  %v13694_v35 = vcombine.high %v372_v63, %v380_v6 }
 0x36d   :  { %7291 = vmatpush1.bf16.msra.mxu0 %v13501_v50  ;;  %v636_v14 = vld [vmem:[#allocation2 + $0xff0] sm:$0xff] }
 0x36e   :  { %7292 = vmatprep.subr.bf16.mxu0 %v13486_v22  ;;  %v13950_v15 = vcombine.high %v628_v10, %v636_v14  ;;  %v356_v12 = vld [vmem:[#allocation2 + $0x730] sm:$0xff]  ;;  %v13949_v41 = vcombine.low %v628_v10, %v636_v14 }
 0x36f   :  { %7332 = vmatpush1.bf16.msra.mxu1 %v13757_v17  ;;  %v364_v50 = vld [vmem:[#allocation2 + $0x770] sm:$0xff] }
 0x370   :  { %7333 = vmatprep.subr.bf16.mxu1 %v13742_v56  ;;  %v612_v17 = vld [vmem:[#allocation2 + $0xf30] sm:$0xff]  ;;  %v13693_v56 = vcombine.low %v372_v63, %v380_v6  ;;  %v13678_v36 = vcombine.high %v356_v12, %v364_v50 }
 0x371   :  { %7293 = vmatpush1.bf16.msra.mxu0 %v13485_v38  ;;  %v620_v22 = vld [vmem:[#allocation2 + $0xf70] sm:$0xff] }
 0x372   :  { %7294 = vmatprep.subr.bf16.mxu0 %v13470_v45  ;;  %v13934_v39 = vcombine.high %v612_v17, %v620_v22  ;;  %v340_v37 = vld [vmem:[#allocation2 + $0x6b0] sm:$0xff]  ;;  %v13933_v2 = vcombine.low %v612_v17, %v620_v22 }
 0x373   :  { %7334 = vmatpush1.bf16.msra.mxu1 %v13741_v40  ;;  %v348_v38 = vld [vmem:[#allocation2 + $0x6f0] sm:$0xff] }
 0x374   :  { %7335 = vmatprep.subr.bf16.mxu1 %v13726_v53  ;;  %v596_v40 = vld [vmem:[#allocation2 + $0xeb0] sm:$0xff]  ;;  %v13677_v53 = vcombine.low %v356_v12, %v364_v50  ;;  %v13662_v3 = vcombine.high %v340_v37, %v348_v38 }
 0x375   :  { %7295 = vmatpush1.bf16.msra.mxu0 %v13469_v60  ;;  %v604_v45 = vld [vmem:[#allocation2 + $0xef0] sm:$0xff] }
 0x376   :  { %7296 = vmatprep.subr.bf16.mxu0 %v13454_v46  ;;  %v13918_v57 = vcombine.high %v596_v40, %v604_v45  ;;  %v324_v21 = vld [vmem:[#allocation2 + $0x630] sm:$0xff]  ;;  %v13917_v63 = vcombine.low %v596_v40, %v604_v45 }
 0x377   :  { %7336 = vmatpush1.bf16.msra.mxu1 %v13725_v61  ;;  %v332_v60 = vld [vmem:[#allocation2 + $0x670] sm:$0xff] }
 0x378   :  { %7337 = vmatprep.subr.bf16.mxu1 %v13710_v62  ;;  %v580_v61 = vld [vmem:[#allocation2 + $0xe30] sm:$0xff]  ;;  %v13661_v62 = vcombine.low %v340_v37, %v348_v38  ;;  %v13646_v6 = vcombine.high %v324_v21, %v332_v60 }
 0x379   :  { %7297 = vmatpush1.bf16.msra.mxu0 %v13453_v7  ;;  %v588_v46 = vld [vmem:[#allocation2 + $0xe70] sm:$0xff] }
 0x37a   :  { %7298 = vmatprep.subr.bf16.mxu0 %v13694_v35  ;;  %v13902_v10 = vcombine.high %v580_v61, %v588_v46  ;;  %v308_v14 = vld [vmem:[#allocation2 + $0x5b0] sm:$0xff]  ;;  %v13901_v12 = vcombine.low %v580_v61, %v588_v46 }
 0x37b   :  { %7338 = vmatpush1.bf16.msra.mxu1 %v13709_v9  ;;  %v316_v7 = vld [vmem:[#allocation2 + $0x5f0] sm:$0xff] }
 0x37c   :  { %7339 = vmatprep.subr.bf16.mxu1 %v13950_v15  ;;  %v564_v9 = vld [vmem:[#allocation2 + $0xdb0] sm:$0xff]  ;;  %v13645_v15 = vcombine.low %v324_v21, %v332_v60  ;;  %v13630_v50 = vcombine.high %v308_v14, %v316_v7 }
 0x37d   :  { %7299 = vmatpush2.bf16.msra.mxu0 %v13693_v56  ;;  %v572_v35 = vld [vmem:[#allocation2 + $0xdf0] sm:$0xff] }
 0x37e   :  { %7300 = vmatprep.subr.bf16.mxu0 %v13678_v36  ;;  %v13886_v17 = vcombine.high %v564_v9, %v572_v35  ;;  %v292_v22 = vld [vmem:[#allocation2 + $0x530] sm:$0xff]  ;;  %v13885_v37 = vcombine.low %v564_v9, %v572_v35 }
 0x37f   :  { %7340 = vmatpush2.bf16.msra.mxu1 %v13949_v41  ;;  %v300_v56 = vld [vmem:[#allocation2 + $0x570] sm:$0xff] }
 0x380   :  { %7341 = vmatprep.subr.bf16.mxu1 %v13934_v39  ;;  %v548_v41 = vld [vmem:[#allocation2 + $0xd30] sm:$0xff]  ;;  %v13629_v39 = vcombine.low %v308_v14, %v316_v7  ;;  %v13614_v38 = vcombine.high %v292_v22, %v300_v56 }
 0x381   :  { %7301 = vmatpush2.bf16.msra.mxu0 %v13677_v53  ;;  %v556_v36 = vld [vmem:[#allocation2 + $0xd70] sm:$0xff] }
 0x382   :  { %7302 = vmatprep.subr.bf16.mxu0 %v13662_v3  ;;  %v13870_v40 = vcombine.high %v548_v41, %v556_v36  ;;  %v276_v45 = vld [vmem:[#allocation2 + $0x4b0] sm:$0xff]  ;;  %v13869_v21 = vcombine.low %v548_v41, %v556_v36 }
 0x383   :  { %7342 = vmatpush2.bf16.msra.mxu1 %v13933_v2  ;;  %v284_v53 = vld [vmem:[#allocation2 + $0x4f0] sm:$0xff] }
 0x384   :  { %7343 = vmatprep.subr.bf16.mxu1 %v13918_v57  ;;  %v532_v2 = vld [vmem:[#allocation2 + $0xcb0] sm:$0xff]  ;;  %v13613_v57 = vcombine.low %v292_v22, %v300_v56  ;;  %v13598_v60 = vcombine.high %v276_v45, %v284_v53 }
 0x385   :  { %7303 = vmatpush2.bf16.msra.mxu0 %v13661_v62  ;;  %v540_v3 = vld [vmem:[#allocation2 + $0xcf0] sm:$0xff] }
 0x386   :  { %7304 = vmatprep.subr.bf16.mxu0 %v13646_v6  ;;  %v13854_v61 = vcombine.high %v532_v2, %v540_v3  ;;  %v260_v46 = vld [vmem:[#allocation2 + $0x430] sm:$0xff]  ;;  %v13853_v14 = vcombine.low %v532_v2, %v540_v3 }
 0x387   :  { %7344 = vmatpush2.bf16.msra.mxu1 %v13917_v63  ;;  %v268_v62 = vld [vmem:[#allocation2 + $0x470] sm:$0xff] }
 0x388   :  { %7345 = vmatprep.subr.bf16.mxu1 %v13902_v10  ;;  %v516_v63 = vld [vmem:[#allocation2 + $0xc30] sm:$0xff]  ;;  %v13597_v10 = vcombine.low %v276_v45, %v284_v53  ;;  %v13582_v7 = vcombine.high %v260_v46, %v268_v62 }
 0x389   :  { %7305 = vmatpush2.bf16.msra.mxu0 %v13645_v15  ;;  %v524_v6 = vld [vmem:[#allocation2 + $0xc70] sm:$0xff] }
 0x38a   :  { %7306 = vmatprep.subr.bf16.mxu0 %v13630_v50  ;;  %v13838_v9 = vcombine.high %v516_v63, %v524_v6  ;;  %v756_v35 = vld [vmem:[#allocation2 + $0x13b0] sm:$0xff]  ;;  %v13837_v22 = vcombine.low %v516_v63, %v524_v6 }
 0x38b   :  { %7346 = vmatpush2.bf16.msra.mxu1 %v13901_v12  ;;  %v764_v15 = vld [vmem:[#allocation2 + $0x13f0] sm:$0xff] }
 0x38c   :  { %7347 = vmatprep.subr.bf16.mxu1 %v13886_v17  ;;  %v1012_v12 = vld [vmem:[#allocation2 + $0x1bb0] sm:$0xff]  ;;  %v13581_v17 = vcombine.low %v260_v46, %v268_v62  ;;  %v14078_v56 = vcombine.high %v756_v35, %v764_v15 }
 0x38d   :  { %7307 = vmatpush2.bf16.msra.mxu0 %v13629_v39  ;;  %v1020_v50 = vld [vmem:[#allocation2 + $0x1bf0] sm:$0xff] }
 0x38e   :  { %7308 = vmatprep.subr.bf16.mxu0 %v13614_v38  ;;  %v14334_v41 = vcombine.high %v1012_v12, %v1020_v50  ;;  %v740_v36 = vld [vmem:[#allocation2 + $0x1330] sm:$0xff]  ;;  %v14333_v45 = vcombine.low %v1012_v12, %v1020_v50 }
 0x38f   :  { %7348 = vmatpush2.bf16.msra.mxu1 %v13885_v37  ;;  %v748_v39 = vld [vmem:[#allocation2 + $0x1370] sm:$0xff] }
 0x390   :  { %7349 = vmatprep.subr.bf16.mxu1 %v13870_v40  ;;  %v996_v37 = vld [vmem:[#allocation2 + $0x1b30] sm:$0xff]  ;;  %v14077_v40 = vcombine.low %v756_v35, %v764_v15  ;;  %v14062_v53 = vcombine.high %v740_v36, %v748_v39  ;;  %v14061_v63 = vcombine.low %v740_v36, %v748_v39 }
 0x391   :  { %7309 = vmatpush2.bf16.msra.mxu0 %v13613_v57  ;;  %v1004_v38 = vld [vmem:[#allocation2 + $0x1b70] sm:$0xff] }
 0x392   :  { %7310 = vmatprep.subr.bf16.mxu0 %v13598_v60  ;;  %v14318_v2 = vcombine.high %v996_v37, %v1004_v38  ;;  %v724_v3 = vld [vmem:[#allocation2 + $0x12b0] sm:$0xff] }
 0x393   :  { %7350 = vmatpush2.bf16.msra.mxu1 %v13869_v21  ;;  %v732_v57 = vld [vmem:[#allocation2 + $0x12f0] sm:$0xff] }
 0x394   :  { %7351 = vmatprep.subr.bf16.mxu1 %v13854_v61  ;;  %v980_v60 = vld [vmem:[#allocation2 + $0x1ab0] sm:$0xff]  ;;  %v14045_v36 = vcombine.low %v724_v3, %v732_v57 }
 0x395   :  { %7311 = vmatpush2.bf16.msra.mxu0 %v13597_v10  ;;  %v988_v61 = vld [vmem:[#allocation2 + $0x1af0] sm:$0xff]  ;;  %v14317_v10 = vcombine.low %v996_v37, %v1004_v38 }
 0x396   :  { %7312 = vmatprep.subr.bf16.mxu0 %v13582_v7  ;;  %v14302_v15 = vcombine.high %v980_v60, %v988_v61  ;;  %v708_v12 = vld [vmem:[#allocation2 + $0x1230] sm:$0xff] }
 0x397   :  { %7352 = vmatpush2.bf16.msra.mxu1 %v13853_v14  ;;  %v14046_v14 = vcombine.high %v724_v3, %v732_v57  ;;  %v716_v50 = vld [vmem:[#allocation2 + $0x1270] sm:$0xff] }
 0x398   :  { %7353 = vmatprep.subr.bf16.mxu1 %v13838_v9  ;;  %v14030_v37 = vcombine.high %v708_v12, %v716_v50  ;;  %v676_v57 = vld [vmem:[#allocation2 + $0x1130] sm:$0xff] }
 0x399   :  { %7313 = vmatpush2.bf16.msra.mxu0 %v13581_v17  ;;  %v964_v17 = vld [vmem:[#allocation2 + $0x1a30] sm:$0xff] }
 0x39a   :  { %7364 = vmatprep.subr.bf16.mxu0 %v14078_v56 }
 0x39b   :  { %7354 = vmatpush2.bf16.msra.mxu1 %v13837_v22  ;;  %v972_v22 = vld [vmem:[#allocation2 + $0x1a70] sm:$0xff] }
 0x39c   :  { %7405 = vmatprep.subr.bf16.mxu1 %v14334_v41  ;;  %v7070_v21 = vpop.f32.mrf.mxu0  ;;  %7315 = vmatmul.mubr.bf16.vlgmr.msra.gmra.mxu0 %v16302_v26 }
 0x39d   :  { %v7071_v46 = vadd.f32 %v7070_v21, %v16460_v59  ;;  %7365 = vmatpush1.bf16.msra.mxu0 %v14077_v40  ;;  %7396 = vmatprep.mubr.bf16.mxu0 %v16310_v0  ;;  %v14286_v40 = vcombine.high %v964_v17, %v972_v22  ;;  %v956_v21 = vld [vmem:[#allocation2 + $0x19f0] sm:$0xff] }
 0x39e   :  { %v7111_v62 = vpop.f32.mrf.mxu1  ;;  %7356 = vmatmul.mubr.bf16.vlgmr.msra.gmra.mxu1 %v16306_v29  ;;  %v7072_v6 = vpop.f32.mrf.mxu0  ;;  %7366 = vmatprep.subr.bf16.mxu0 %v14062_v53  ;;  %v700_v53 = vld [vmem:[#allocation2 + $0x11f0] sm:$0xff] }
 0x39f   :  { %7406 = vmatpush1.bf16.msra.mxu1 %v14333_v45  ;;  %v16469_v7 = vadd.f32 %v7111_v62, %v7071_v46  ;;  %v7073_v9 = vadd.f32 %v7072_v6, %v16463_v49  ;;  %7437 = vmatprep.mubr.bf16.mxu1 %v16315_v1  ;;  %v14301_v49 = vcombine.low %v980_v60, %v988_v61  ;;  %v692_v45 = vld [vmem:[#allocation2 + $0x11b0] sm:$0xff] }
 0x3a0   :  { %v7113_v35 = vpop.f32.mrf.mxu1  ;;  %7407 = vmatprep.subr.bf16.mxu1 %v14318_v2  ;;  %v7074_v59 = vpop.f32.mrf.mxu0  ;;  %v948_v2 = vld [vmem:[#allocation2 + $0x19b0] sm:$0xff]  ;;  %v14029_v46 = vcombine.low %v708_v12, %v716_v50  ;;  %v14285_v62 = vcombine.low %v964_v17, %v972_v22  ;;  %v14014_v6 = vcombine.high %v692_v45, %v700_v53  ;;  %v14013_v61 = vcombine.low %v692_v45, %v700_v53 }
 0x3a1   :  { %v16474_v56 = vadd.f32 %v7113_v35, %v7073_v9  ;;  %7367 = vmatpush1.bf16.msra.mxu0 %v14061_v63  ;;  %v14270_v3 = vcombine.high %v948_v2, %v956_v21  ;;  %v684_v63 = vld [vmem:[#allocation2 + $0x1170] sm:$0xff] }
 0x3a2   :  { %v7115_v41 = vpop.f32.mrf.mxu1  ;;  %v7075_v39 = vpop.f32.mrf.mxu0  ;;  %7368 = vmatprep.subr.bf16.mxu0 %v14046_v14  ;;  %v940_v60 = vld [vmem:[#allocation2 + $0x1970] sm:$0xff]  ;;  %v14269_v14 = vcombine.low %v948_v2, %v956_v21  ;;  %v13998_v9 = vcombine.high %v676_v57, %v684_v63  ;;  %v13997_v17 = vcombine.low %v676_v57, %v684_v63 }
 0x3a3   :  { %7408 = vmatpush1.bf16.msra.mxu1 %v14317_v10  ;;  %v932_v10 = vld [vmem:[#allocation2 + $0x1930] sm:$0xff] }
 0x3a4   :  { %v7116_v38 = vpop.f32.mrf.mxu1  ;;  %7409 = vmatprep.subr.bf16.mxu1 %v14302_v15  ;;  %v14254_v35 = vcombine.high %v932_v10, %v940_v60  ;;  %v660_v15 = vld [vmem:[#allocation2 + $0x10b0] sm:$0xff]  ;;  %v14253_v22 = vcombine.low %v932_v10, %v940_v60 }
 0x3a5   :  { %7369 = vmatpush1.bf16.msra.mxu0 %v14045_v36  ;;  %v668_v12 = vld [vmem:[#allocation2 + $0x10f0] sm:$0xff] }
 0x3a6   :  { %7370 = vmatprep.subr.bf16.mxu0 %v14030_v37  ;;  %v916_v50 = vld [vmem:[#allocation2 + $0x18b0] sm:$0xff]  ;;  %v13982_v41 = vcombine.high %v660_v15, %v668_v12 }
 0x3a7   :  { %7410 = vmatpush1.bf16.msra.mxu1 %v14301_v49  ;;  %v924_v59 = vld [vmem:[#allocation2 + $0x18f0] sm:$0xff] }
 0x3a8   :  { %7411 = vmatprep.subr.bf16.mxu1 %v14286_v40  ;;  %v14238_v36 = vcombine.high %v916_v50, %v924_v59  ;;  %v644_v39 = vld [vmem:[#allocation2 + $0x1030] sm:$0xff]  ;;  %v13981_v40 = vcombine.low %v660_v15, %v668_v12  ;;  %v14237_v45 = vcombine.low %v916_v50, %v924_v59 }
 0x3a9   :  { %7371 = vmatpush1.bf16.msra.mxu0 %v14029_v46  ;;  %v652_v49 = vld [vmem:[#allocation2 + $0x1070] sm:$0xff] }
 0x3aa   :  { %7372 = vmatprep.subr.bf16.mxu0 %v14014_v6  ;;  %v900_v37 = vld [vmem:[#allocation2 + $0x1830] sm:$0xff]  ;;  %v13966_v53 = vcombine.high %v644_v39, %v652_v49 }
 0x3ab   :  { %7412 = vmatpush1.bf16.msra.mxu1 %v14285_v62  ;;  %v908_v38 = vld [vmem:[#allocation2 + $0x1870] sm:$0xff] }
 0x3ac   :  { %7413 = vmatprep.subr.bf16.mxu1 %v14270_v3  ;;  %v14222_v2 = vcombine.high %v900_v37, %v908_v38  ;;  %v884_v21 = vld [vmem:[#allocation2 + $0x17b0] sm:$0xff]  ;;  %v13965_v3 = vcombine.low %v644_v39, %v652_v49  ;;  %v14221_v57 = vcombine.low %v900_v37, %v908_v38 }
 0x3ad   :  { %7373 = vmatpush1.bf16.msra.mxu0 %v14013_v61  ;;  %v892_v46 = vld [vmem:[#allocation2 + $0x17f0] sm:$0xff] }
 0x3ae   :  { %7374 = vmatprep.subr.bf16.mxu0 %v13998_v9  ;;  %v1140_v62 = vld [vmem:[#allocation2 + $0x1fb0] sm:$0xff]  ;;  %v14206_v63 = vcombine.high %v884_v21, %v892_v46 }
 0x3af   :  { %7414 = vmatpush1.bf16.msra.mxu1 %v14269_v14  ;;  %v1148_v6 = vld [vmem:[#allocation2 + $0x1ff0] sm:$0xff] }
 0x3b0   :  { %7415 = vmatprep.subr.bf16.mxu1 %v14254_v35  ;;  %v14462_v10 = vcombine.high %v1140_v62, %v1148_v6  ;;  %v868_v60 = vld [vmem:[#allocation2 + $0x1730] sm:$0xff]  ;;  %v14205_v35 = vcombine.low %v884_v21, %v892_v46  ;;  %v14461_v15 = vcombine.low %v1140_v62, %v1148_v6 }
 0x3b1   :  { %7375 = vmatpush1.bf16.msra.mxu0 %v13997_v17  ;;  %v876_v61 = vld [vmem:[#allocation2 + $0x1770] sm:$0xff] }
 0x3b2   :  { %7376 = vmatprep.subr.bf16.mxu0 %v13982_v41  ;;  %v1124_v14 = vld [vmem:[#allocation2 + $0x1f30] sm:$0xff]  ;;  %v14190_v12 = vcombine.high %v868_v60, %v876_v61 }
 0x3b3   :  { %7416 = vmatpush1.bf16.msra.mxu1 %v14253_v22  ;;  %v1132_v9 = vld [vmem:[#allocation2 + $0x1f70] sm:$0xff] }
 0x3b4   :  { %7417 = vmatprep.subr.bf16.mxu1 %v14238_v36  ;;  %v14446_v50 = vcombine.high %v1124_v14, %v1132_v9  ;;  %v852_v59 = vld [vmem:[#allocation2 + $0x16b0] sm:$0xff]  ;;  %v14189_v36 = vcombine.low %v868_v60, %v876_v61  ;;  %v14445_v39 = vcombine.low %v1124_v14, %v1132_v9 }
 0x3b5   :  { %7377 = vmatpush1.bf16.msra.mxu0 %v13981_v40  ;;  %v860_v17 = vld [vmem:[#allocation2 + $0x16f0] sm:$0xff] }
 0x3b6   :  { %7378 = vmatprep.subr.bf16.mxu0 %v13966_v53  ;;  %v1108_v22 = vld [vmem:[#allocation2 + $0x1eb0] sm:$0xff]  ;;  %v14174_v49 = vcombine.high %v852_v59, %v860_v17 }
 0x3b7   :  { %7418 = vmatpush1.bf16.msra.mxu1 %v14237_v45  ;;  %v1116_v41 = vld [vmem:[#allocation2 + $0x1ef0] sm:$0xff] }
 0x3b8   :  { %7419 = vmatprep.subr.bf16.mxu1 %v14222_v2  ;;  %v14430_v37 = vcombine.high %v1108_v22, %v1116_v41  ;;  %v836_v38 = vld [vmem:[#allocation2 + $0x1630] sm:$0xff]  ;;  %v14173_v2 = vcombine.low %v852_v59, %v860_v17  ;;  %v14429_v21 = vcombine.low %v1108_v22, %v1116_v41 }
 0x3b9   :  { %7379 = vmatpush1.bf16.msra.mxu0 %v13965_v3  ;;  %v844_v40 = vld [vmem:[#allocation2 + $0x1670] sm:$0xff] }
 0x3ba   :  { %7380 = vmatprep.subr.bf16.mxu0 %v14206_v63  ;;  %v1092_v45 = vld [vmem:[#allocation2 + $0x1e30] sm:$0xff]  ;;  %v14158_v46 = vcombine.high %v836_v38, %v844_v40 }
 0x3bb   :  { %7420 = vmatpush1.bf16.msra.mxu1 %v14221_v57  ;;  %v1100_v53 = vld [vmem:[#allocation2 + $0x1e70] sm:$0xff] }
 0x3bc   :  { %7421 = vmatprep.subr.bf16.mxu1 %v14462_v10  ;;  %v14414_v62 = vcombine.high %v1092_v45, %v1100_v53  ;;  %v820_v6 = vld [vmem:[#allocation2 + $0x15b0] sm:$0xff]  ;;  %v14157_v10 = vcombine.low %v836_v38, %v844_v40  ;;  %v14413_v60 = vcombine.low %v1092_v45, %v1100_v53 }
 0x3bd   :  { %7381 = vmatpush2.bf16.msra.mxu0 %v14205_v35  ;;  %v828_v3 = vld [vmem:[#allocation2 + $0x15f0] sm:$0xff] }
 0x3be   :  { %7382 = vmatprep.subr.bf16.mxu0 %v14190_v12  ;;  %v1076_v57 = vld [vmem:[#allocation2 + $0x1db0] sm:$0xff]  ;;  %v14142_v61 = vcombine.high %v820_v6, %v828_v3 }
 0x3bf   :  { %7422 = vmatpush2.bf16.msra.mxu1 %v14461_v15  ;;  %v1084_v63 = vld [vmem:[#allocation2 + $0x1df0] sm:$0xff] }
 0x3c0   :  { %7423 = vmatprep.subr.bf16.mxu1 %v14446_v50  ;;  %v14398_v14 = vcombine.high %v1076_v57, %v1084_v63  ;;  %v804_v9 = vld [vmem:[#allocation2 + $0x1530] sm:$0xff]  ;;  %v14141_v50 = vcombine.low %v820_v6, %v828_v3  ;;  %v14397_v59 = vcombine.low %v1076_v57, %v1084_v63  ;;  %v245_v63 = vld [vmem:[#allocation2 + $0x3b8] sm:$0xff] }
 0x3c1   :  { %7383 = vmatpush2.bf16.msra.mxu0 %v14189_v36  ;;  %v812_v35 = vld [vmem:[#allocation2 + $0x1570] sm:$0xff] }
 0x3c2   :  { %7384 = vmatprep.subr.bf16.mxu0 %v14174_v49  ;;  %v1060_v15 = vld [vmem:[#allocation2 + $0x1d30] sm:$0xff]  ;;  %v14126_v17 = vcombine.high %v804_v9, %v812_v35 }
 0x3c3   :  { %7424 = vmatpush2.bf16.msra.mxu1 %v14445_v39  ;;  %v1068_v12 = vld [vmem:[#allocation2 + $0x1d70] sm:$0xff] }
 0x3c4   :  { %7425 = vmatprep.subr.bf16.mxu1 %v14430_v37  ;;  %v14382_v22 = vcombine.high %v1060_v15, %v1068_v12  ;;  %v788_v41 = vld [vmem:[#allocation2 + $0x14b0] sm:$0xff]  ;;  %v14125_v37 = vcombine.low %v804_v9, %v812_v35  ;;  %v14381_v38 = vcombine.low %v1060_v15, %v1068_v12  ;;  %v229_v12 = vld [vmem:[#allocation2 + $0x338] sm:$0xff] }
 0x3c5   :  { %7385 = vmatpush2.bf16.msra.mxu0 %v14173_v2  ;;  %v796_v36 = vld [vmem:[#allocation2 + $0x14f0] sm:$0xff] }
 0x3c6   :  { %7386 = vmatprep.subr.bf16.mxu0 %v14158_v46  ;;  %v1044_v39 = vld [vmem:[#allocation2 + $0x1cb0] sm:$0xff]  ;;  %v14110_v40 = vcombine.high %v788_v41, %v796_v36 }
 0x3c7   :  { %7426 = vmatpush2.bf16.msra.mxu1 %v14429_v21  ;;  %v1052_v49 = vld [vmem:[#allocation2 + $0x1cf0] sm:$0xff] }
 0x3c8   :  { %7427 = vmatprep.subr.bf16.mxu1 %v14414_v62  ;;  %v14366_v45 = vcombine.high %v1044_v39, %v1052_v49  ;;  %v772_v53 = vld [vmem:[#allocation2 + $0x1430] sm:$0xff]  ;;  %v14109_v62 = vcombine.low %v788_v41, %v796_v36  ;;  %v14365_v6 = vcombine.low %v1044_v39, %v1052_v49  ;;  %v213_v49 = vld [vmem:[#allocation2 + $0x2b8] sm:$0xff] }
 0x3c9   :  { %7387 = vmatpush2.bf16.msra.mxu0 %v14157_v10  ;;  %v780_v2 = vld [vmem:[#allocation2 + $0x1470] sm:$0xff]  ;;  %v253_v10 = vld [vmem:[#allocation2 + $0x3f8] sm:$0xff] }
 0x3ca   :  { %7388 = vmatprep.subr.bf16.mxu0 %v14142_v61  ;;  %v1028_v21 = vld [vmem:[#allocation2 + $0x1c30] sm:$0xff]  ;;  %v14094_v3 = vcombine.high %v772_v53, %v780_v2  ;;  %v509_v61 = vld [vmem:[#allocation2 + $0xbf8] sm:$0xff]  ;;  %v13568_v35 = vcombine.high %v245_v63, %v253_v10 }
 0x3cb   :  { %7428 = vmatpush2.bf16.msra.mxu1 %v14413_v60  ;;  %v1036_v46 = vld [vmem:[#allocation2 + $0x1c70] sm:$0xff]  ;;  %v501_v60 = vld [vmem:[#allocation2 + $0xbb8] sm:$0xff] }
 0x3cc   :  { %7429 = vmatprep.subr.bf16.mxu1 %v14398_v14  ;;  %v14350_v57 = vcombine.high %v1028_v21, %v1036_v46  ;;  %v14093_v14 = vcombine.low %v772_v53, %v780_v2  ;;  %v14349_v9 = vcombine.low %v1028_v21, %v1036_v46  ;;  %v13824_v15 = vcombine.high %v501_v60, %v509_v61 }
 0x3cd   :  { %7389 = vmatpush2.bf16.msra.mxu0 %v14141_v50  ;;  %v237_v50 = vld [vmem:[#allocation2 + $0x378] sm:$0xff]  ;;  %v13823_v41 = vcombine.low %v501_v60, %v509_v61 }
 0x3ce   :  { %7390 = vmatprep.subr.bf16.mxu0 %v14126_v17  ;;  %v493_v17 = vld [vmem:[#allocation2 + $0xb78] sm:$0xff]  ;;  %v13552_v36 = vcombine.high %v229_v12, %v237_v50  ;;  %v13551_v2 = vcombine.low %v229_v12, %v237_v50 }
 0x3cf   :  { %7430 = vmatpush2.bf16.msra.mxu1 %v14397_v59  ;;  %v485_v59 = vld [vmem:[#allocation2 + $0xb38] sm:$0xff] }
 0x3d0   :  { %7431 = vmatprep.subr.bf16.mxu1 %v14382_v22  ;;  %v13567_v22 = vcombine.low %v245_v63, %v253_v10  ;;  %v13808_v39 = vcombine.high %v485_v59, %v493_v17  ;;  %v197_v63 = vld [vmem:[#allocation2 + $0x238] sm:$0xff] }
 0x3d1   :  { %7391 = vmatpush2.bf16.msra.mxu0 %v14125_v37  ;;  %v221_v37 = vld [vmem:[#allocation2 + $0x2f8] sm:$0xff] }
 0x3d2   :  { %7392 = vmatprep.subr.bf16.mxu0 %v14110_v40  ;;  %v469_v40 = vld [vmem:[#allocation2 + $0xab8] sm:$0xff] }
 0x3d3   :  { %7432 = vmatpush2.bf16.msra.mxu1 %v14381_v38  ;;  %v205_v10 = vld [vmem:[#allocation2 + $0x278] sm:$0xff] }
 0x3d4   :  { %7433 = vmatprep.subr.bf16.mxu1 %v14366_v45  ;;  %v477_v45 = vld [vmem:[#allocation2 + $0xaf8] sm:$0xff] }
 0x3d5   :  { %7393 = vmatpush2.bf16.msra.mxu0 %v14109_v62  ;;  %v13807_v62 = vcombine.low %v485_v59, %v493_v17  ;;  %v13791_v50 = vcombine.low %v469_v40, %v477_v45  ;;  %v13520_v59 = vcombine.high %v197_v63, %v205_v10 }
 0x3d6   :  { %7394 = vmatprep.subr.bf16.mxu0 %v14094_v3 }
 0x3d7   :  { %7434 = vmatpush2.bf16.msra.mxu1 %v14365_v6  ;;  %v13536_v6 = vcombine.high %v213_v49, %v221_v37 }
 0x3d8   :  { %7435 = vmatprep.subr.bf16.mxu1 %v14350_v57  ;;  %v13792_v57 = vcombine.high %v469_v40, %v477_v45  ;;  %v429_v40 = vld [vmem:[#allocation2 + $0x978] sm:$0xff] }
 0x3d9   :  { %7395 = vmatpush2.bf16.msra.mxu0 %v14093_v14  ;;  %v453_v14 = vld [vmem:[#allocation2 + $0xa38] sm:$0xff] }
 0x3da   :  { %7446 = vmatprep.subr.bf16.mxu0 %v13568_v35 }
 0x3db   :  { %7436 = vmatpush2.bf16.msra.mxu1 %v14349_v9  ;;  %v461_v9 = vld [vmem:[#allocation2 + $0xa78] sm:$0xff] }
 0x3dc   :  { %7487 = vmatprep.subr.bf16.mxu1 %v13824_v15  ;;  %v7152_v38 = vpop.f32.mrf.mxu0  ;;  %7397 = vmatmul.mubr.bf16.vlgmr.msra.gmra.mxu0 %v16322_v44  ;;  %v13535_v15 = vcombine.low %v213_v49, %v221_v37  ;;  %v165_v37 = vld [vmem:[#allocation2 + $0x138] sm:$0xff] }
 0x3dd   :  { %7447 = vmatpush1.bf16.msra.mxu0 %v13567_v22  ;;  %7478 = vmatprep.mubr.bf16.mxu0 %v16292_v4  ;;  %v13776_v22 = vcombine.high %v453_v14, %v461_v9  ;;  %v189_v4 = vld [vmem:[#allocation2 + $0x1f8] sm:$0xff] }
 0x3de   :  { %v7193_v53 = vpop.f32.mrf.mxu1  ;;  %7438 = vmatmul.mubr.bf16.vlgmr.msra.gmra.mxu1 %v16326_v47  ;;  %v7154_v46 = vpop.f32.mrf.mxu0  ;;  %7448 = vmatprep.subr.bf16.mxu0 %v13552_v36  ;;  %v437_v36 = vld [vmem:[#allocation2 + $0x9b8] sm:$0xff] }
 0x3df   :  { %v16478_v21 = vadd.f32 %v7193_v53, %v7152_v38  ;;  %7488 = vmatpush1.bf16.msra.mxu1 %v13823_v41  ;;  %7519 = vmatprep.mubr.bf16.mxu1 %v16296_v5  ;;  %v181_v41 = vld [vmem:[#allocation2 + $0x1b8] sm:$0xff]  ;;  %v13519_v38 = vcombine.low %v197_v63, %v205_v10  ;;  %v13775_v5 = vcombine.low %v453_v14, %v461_v9 }
 0x3e0   :  { %v7195_v3 = vpop.f32.mrf.mxu1  ;;  %7489 = vmatprep.subr.bf16.mxu1 %v13808_v39  ;;  %v7156_v61 = vpop.f32.mrf.mxu0  ;;  %v445_v39 = vld [vmem:[#allocation2 + $0x9f8] sm:$0xff]  ;;  %v13504_v53 = vcombine.high %v181_v41, %v189_v4  ;;  %v13503_v45 = vcombine.low %v181_v41, %v189_v4 }
 0x3e1   :  { %v16481_v60 = vadd.f32 %v7195_v3, %v7154_v46  ;;  %7449 = vmatpush1.bf16.msra.mxu0 %v13551_v2  ;;  %v13760_v49 = vcombine.high %v437_v36, %v445_v39  ;;  %v173_v2 = vld [vmem:[#allocation2 + $0x178] sm:$0xff] }
 0x3e2   :  { %v7197_v35 = vpop.f32.mrf.mxu1  ;;  %v7157_v12 = vpop.f32.mrf.mxu0  ;;  %7450 = vmatprep.subr.bf16.mxu0 %v13536_v6  ;;  %v421_v46 = vld [vmem:[#allocation2 + $0x938] sm:$0xff]  ;;  %v13488_v6 = vcombine.high %v165_v37, %v173_v2  ;;  %v13487_v14 = vcombine.low %v165_v37, %v173_v2 }
 0x3e3   :  { %7490 = vmatpush1.bf16.msra.mxu1 %v13807_v62  ;;  %v13759_v62 = vcombine.low %v437_v36, %v445_v39  ;;  %v13744_v3 = vcombine.high %v421_v46, %v429_v40  ;;  %v157_v63 = vld [vmem:[#allocation2 + $0xf8] sm:$0xff]  ;;  %v13743_v9 = vcombine.low %v421_v46, %v429_v40 }
 0x3e4   :  { %v7198_v17 = vpop.f32.mrf.mxu1  ;;  %7491 = vmatprep.subr.bf16.mxu1 %v13792_v57  ;;  %v149_v57 = vld [vmem:[#allocation2 + $0xb8] sm:$0xff] }
 0x3e5   :  { %7451 = vmatpush1.bf16.msra.mxu0 %v13535_v15  ;;  %v405_v10 = vld [vmem:[#allocation2 + $0x8b8] sm:$0xff]  ;;  %v13472_v35 = vcombine.high %v149_v57, %v157_v63 }
 0x3e6   :  { %7452 = vmatprep.subr.bf16.mxu0 %v13520_v59  ;;  %v413_v61 = vld [vmem:[#allocation2 + $0x8f8] sm:$0xff] }
 0x3e7   :  { %7492 = vmatpush1.bf16.msra.mxu1 %v13791_v50  ;;  %v13728_v15 = vcombine.high %v405_v10, %v413_v61  ;;  %v133_v12 = vld [vmem:[#allocation2 + $0x38] sm:$0xff]  ;;  %v13727_v41 = vcombine.low %v405_v10, %v413_v61 }
 0x3e8   :  { %7493 = vmatprep.subr.bf16.mxu1 %v13776_v22  ;;  %v141_v50 = vld [vmem:[#allocation2 + $0x78] sm:$0xff]  ;;  %v13471_v22 = vcombine.low %v149_v57, %v157_v63 }
 0x3e9   :  { %7453 = vmatpush1.bf16.msra.mxu0 %v13519_v38  ;;  %v389_v59 = vld [vmem:[#allocation2 + $0x838] sm:$0xff]  ;;  %v13456_v4 = vcombine.high %v133_v12, %v141_v50 }
 0x3ea   :  { %7454 = vmatprep.subr.bf16.mxu0 %v13504_v53  ;;  %v397_v17 = vld [vmem:[#allocation2 + $0x878] sm:$0xff] }
 0x3eb   :  { %7494 = vmatpush1.bf16.msra.mxu1 %v13775_v5  ;;  %v13712_v36 = vcombine.high %v389_v59, %v397_v17  ;;  %v373_v39 = vld [vmem:[#allocation2 + $0x7b8] sm:$0xff]  ;;  %v13711_v37 = vcombine.low %v389_v59, %v397_v17 }
 0x3ec   :  { %7495 = vmatprep.subr.bf16.mxu1 %v13760_v49  ;;  %v381_v38 = vld [vmem:[#allocation2 + $0x7f8] sm:$0xff]  ;;  %v13455_v49 = vcombine.low %v133_v12, %v141_v50 }
 0x3ed   :  { %7455 = vmatpush1.bf16.msra.mxu0 %v13503_v45  ;;  %v629_v5 = vld [vmem:[#allocation2 + $0xfb8] sm:$0xff]  ;;  %v13696_v2 = vcombine.high %v373_v39, %v381_v38 }
 0x3ee   :  { %7456 = vmatprep.subr.bf16.mxu0 %v13488_v6  ;;  %v637_v53 = vld [vmem:[#allocation2 + $0xff8] sm:$0xff] }
 0x3ef   :  { %7496 = vmatpush1.bf16.msra.mxu1 %v13759_v62  ;;  %v13952_v46 = vcombine.high %v629_v5, %v637_v53  ;;  %v357_v40 = vld [vmem:[#allocation2 + $0x738] sm:$0xff]  ;;  %v13951_v57 = vcombine.low %v629_v5, %v637_v53 }
 0x3f0   :  { %7497 = vmatprep.subr.bf16.mxu1 %v13744_v3  ;;  %v365_v45 = vld [vmem:[#allocation2 + $0x778] sm:$0xff]  ;;  %v13695_v3 = vcombine.low %v373_v39, %v381_v38 }
 0x3f1   :  { %7457 = vmatpush1.bf16.msra.mxu0 %v13487_v14  ;;  %v613_v62 = vld [vmem:[#allocation2 + $0xf38] sm:$0xff]  ;;  %v13680_v63 = vcombine.high %v357_v40, %v365_v45 }
 0x3f2   :  { %7458 = vmatprep.subr.bf16.mxu0 %v13472_v35  ;;  %v621_v6 = vld [vmem:[#allocation2 + $0xf78] sm:$0xff] }
 0x3f3   :  { %7498 = vmatpush1.bf16.msra.mxu1 %v13743_v9  ;;  %v13936_v10 = vcombine.high %v613_v62, %v621_v6  ;;  %v341_v61 = vld [vmem:[#allocation2 + $0x6b8] sm:$0xff]  ;;  %v13935_v12 = vcombine.low %v613_v62, %v621_v6 }
 0x3f4   :  { %7499 = vmatprep.subr.bf16.mxu1 %v13728_v15  ;;  %v349_v14 = vld [vmem:[#allocation2 + $0x6f8] sm:$0xff]  ;;  %v13679_v15 = vcombine.low %v357_v40, %v365_v45 }
 0x3f5   :  { %7459 = vmatpush1.bf16.msra.mxu0 %v13471_v22  ;;  %v597_v9 = vld [vmem:[#allocation2 + $0xeb8] sm:$0xff]  ;;  %v13664_v50 = vcombine.high %v341_v61, %v349_v14 }
 0x3f6   :  { %7460 = vmatprep.subr.bf16.mxu0 %v13456_v4  ;;  %v605_v35 = vld [vmem:[#allocation2 + $0xef8] sm:$0xff] }
 0x3f7   :  { %7500 = vmatpush1.bf16.msra.mxu1 %v13727_v41  ;;  %v13920_v59 = vcombine.high %v597_v9, %v605_v35  ;;  %v325_v17 = vld [vmem:[#allocation2 + $0x638] sm:$0xff]  ;;  %v13919_v39 = vcombine.low %v597_v9, %v605_v35 }
 0x3f8   :  { %7501 = vmatprep.subr.bf16.mxu1 %v13712_v36  ;;  %v333_v22 = vld [vmem:[#allocation2 + $0x678] sm:$0xff]  ;;  %v13663_v36 = vcombine.low %v341_v61, %v349_v14 }
 0x3f9   :  { %7461 = vmatpush1.bf16.msra.mxu0 %v13455_v49  ;;  %v581_v41 = vld [vmem:[#allocation2 + $0xe38] sm:$0xff]  ;;  %v13648_v38 = vcombine.high %v325_v17, %v333_v22 }
 0x3fa   :  { %7462 = vmatprep.subr.bf16.mxu0 %v13696_v2  ;;  %v589_v4 = vld [vmem:[#allocation2 + $0xe78] sm:$0xff] }
 0x3fb   :  { %7502 = vmatpush1.bf16.msra.mxu1 %v13711_v37  ;;  %v13904_v5 = vcombine.high %v581_v41, %v589_v4  ;;  %v309_v53 = vld [vmem:[#allocation2 + $0x5b8] sm:$0xff]  ;;  %v13903_v40 = vcombine.low %v581_v41, %v589_v4 }
 0x3fc   :  { %7503 = vmatprep.subr.bf16.mxu1 %v13952_v46  ;;  %v317_v49 = vld [vmem:[#allocation2 + $0x5f8] sm:$0xff]  ;;  %v13647_v46 = vcombine.low %v325_v17, %v333_v22 }
 0x3fd   :  { %7463 = vmatpush2.bf16.msra.mxu0 %v13695_v3  ;;  %v565_v37 = vld [vmem:[#allocation2 + $0xdb8] sm:$0xff]  ;;  %v13632_v45 = vcombine.high %v309_v53, %v317_v49 }
 0x3fe   :  { %7464 = vmatprep.subr.bf16.mxu0 %v13680_v63  ;;  %v573_v2 = vld [vmem:[#allocation2 + $0xdf8] sm:$0xff] }
 0x3ff   :  { %7504 = vmatpush2.bf16.msra.mxu1 %v13951_v57  ;;  %v13888_v62 = vcombine.high %v565_v37, %v573_v2  ;;  %v293_v6 = vld [vmem:[#allocation2 + $0x538] sm:$0xff]  ;;  %v13887_v61 = vcombine.low %v565_v37, %v573_v2 }
 0x400   :  { %7505 = vmatprep.subr.bf16.mxu1 %v13936_v10  ;;  %v301_v3 = vld [vmem:[#allocation2 + $0x578] sm:$0xff]  ;;  %v13631_v10 = vcombine.low %v309_v53, %v317_v49 }
 0x401   :  { %7465 = vmatpush2.bf16.msra.mxu0 %v13679_v15  ;;  %v549_v57 = vld [vmem:[#allocation2 + $0xd38] sm:$0xff]  ;;  %v13616_v14 = vcombine.high %v293_v6, %v301_v3 }
 0x402   :  { %7466 = vmatprep.subr.bf16.mxu0 %v13664_v50  ;;  %v557_v63 = vld [vmem:[#allocation2 + $0xd78] sm:$0xff] }
 0x403   :  { %7506 = vmatpush2.bf16.msra.mxu1 %v13935_v12  ;;  %v13872_v9 = vcombine.high %v549_v57, %v557_v63  ;;  %v277_v35 = vld [vmem:[#allocation2 + $0x4b8] sm:$0xff]  ;;  %v13871_v17 = vcombine.low %v549_v57, %v557_v63 }
 0x404   :  { %7507 = vmatprep.subr.bf16.mxu1 %v13920_v59  ;;  %v285_v15 = vld [vmem:[#allocation2 + $0x4f8] sm:$0xff]  ;;  %v13615_v59 = vcombine.low %v293_v6, %v301_v3 }
 0x405   :  { %7467 = vmatpush2.bf16.msra.mxu0 %v13663_v36  ;;  %v533_v12 = vld [vmem:[#allocation2 + $0xcb8] sm:$0xff]  ;;  %v13600_v22 = vcombine.high %v277_v35, %v285_v15 }
 0x406   :  { %7468 = vmatprep.subr.bf16.mxu0 %v13648_v38  ;;  %v541_v50 = vld [vmem:[#allocation2 + $0xcf8] sm:$0xff] }
 0x407   :  { %7508 = vmatpush2.bf16.msra.mxu1 %v13919_v39  ;;  %v13856_v41 = vcombine.high %v533_v12, %v541_v50  ;;  %v261_v4 = vld [vmem:[#allocation2 + $0x438] sm:$0xff]  ;;  %v13855_v53 = vcombine.low %v533_v12, %v541_v50 }
 0x408   :  { %7509 = vmatprep.subr.bf16.mxu1 %v13904_v5  ;;  %v269_v36 = vld [vmem:[#allocation2 + $0x478] sm:$0xff]  ;;  %v13599_v5 = vcombine.low %v277_v35, %v285_v15 }
 0x409   :  { %7469 = vmatpush2.bf16.msra.mxu0 %v13647_v46  ;;  %v517_v39 = vld [vmem:[#allocation2 + $0xc38] sm:$0xff]  ;;  %v13584_v49 = vcombine.high %v261_v4, %v269_v36 }
 0x40a   :  { %7470 = vmatprep.subr.bf16.mxu0 %v13632_v45  ;;  %v525_v38 = vld [vmem:[#allocation2 + $0xc78] sm:$0xff] }
 0x40b   :  { %7510 = vmatpush2.bf16.msra.mxu1 %v13903_v40  ;;  %v13840_v37 = vcombine.high %v517_v39, %v525_v38  ;;  %v757_v2 = vld [vmem:[#allocation2 + $0x13b8] sm:$0xff]  ;;  %v13839_v6 = vcombine.low %v517_v39, %v525_v38 }
 0x40c   :  { %7511 = vmatprep.subr.bf16.mxu1 %v13888_v62  ;;  %v765_v46 = vld [vmem:[#allocation2 + $0x13f8] sm:$0xff]  ;;  %v13583_v62 = vcombine.low %v261_v4, %v269_v36 }
 0x40d   :  { %7471 = vmatpush2.bf16.msra.mxu0 %v13631_v10  ;;  %v1013_v40 = vld [vmem:[#allocation2 + $0x1bb8] sm:$0xff]  ;;  %v14080_v3 = vcombine.high %v757_v2, %v765_v46 }
 0x40e   :  { %7472 = vmatprep.subr.bf16.mxu0 %v13616_v14  ;;  %v1021_v45 = vld [vmem:[#allocation2 + $0x1bf8] sm:$0xff] }
 0x40f   :  { %7512 = vmatpush2.bf16.msra.mxu1 %v13887_v61  ;;  %v14336_v57 = vcombine.high %v1013_v40, %v1021_v45  ;;  %v741_v63 = vld [vmem:[#allocation2 + $0x1338] sm:$0xff]  ;;  %v14335_v35 = vcombine.low %v1013_v40, %v1021_v45 }
 0x410   :  { %7513 = vmatprep.subr.bf16.mxu1 %v13872_v9  ;;  %v749_v10 = vld [vmem:[#allocation2 + $0x1378] sm:$0xff]  ;;  %v14079_v9 = vcombine.low %v757_v2, %v765_v46 }
 0x411   :  { %7473 = vmatpush2.bf16.msra.mxu0 %v13615_v59  ;;  %v997_v61 = vld [vmem:[#allocation2 + $0x1b38] sm:$0xff]  ;;  %v14064_v15 = vcombine.high %v741_v63, %v749_v10  ;;  %v14063_v39 = vcombine.low %v741_v63, %v749_v10 }
 0x412   :  { %7474 = vmatprep.subr.bf16.mxu0 %v13600_v22  ;;  %v1005_v14 = vld [vmem:[#allocation2 + $0x1b78] sm:$0xff] }
 0x413   :  { %7514 = vmatpush2.bf16.msra.mxu1 %v13871_v17  ;;  %v14320_v12 = vcombine.high %v997_v61, %v1005_v14  ;;  %v725_v50 = vld [vmem:[#allocation2 + $0x12b8] sm:$0xff] }
 0x414   :  { %7515 = vmatprep.subr.bf16.mxu1 %v13856_v41  ;;  %v733_v59 = vld [vmem:[#allocation2 + $0x12f8] sm:$0xff] }
 0x415   :  { %7475 = vmatpush2.bf16.msra.mxu0 %v13599_v5  ;;  %v981_v22 = vld [vmem:[#allocation2 + $0x1ab8] sm:$0xff]  ;;  %v14319_v5 = vcombine.low %v997_v61, %v1005_v14 }
 0x416   :  { %7476 = vmatprep.subr.bf16.mxu0 %v13584_v49  ;;  %v989_v41 = vld [vmem:[#allocation2 + $0x1af8] sm:$0xff] }
 0x417   :  { %7516 = vmatpush2.bf16.msra.mxu1 %v13855_v53  ;;  %v14048_v53 = vcombine.high %v725_v50, %v733_v59  ;;  %v709_v46 = vld [vmem:[#allocation2 + $0x1238] sm:$0xff] }
 0x418   :  { %7517 = vmatprep.subr.bf16.mxu1 %v13840_v37  ;;  %v717_v40 = vld [vmem:[#allocation2 + $0x1278] sm:$0xff] }
 0x419   :  { %7477 = vmatpush2.bf16.msra.mxu0 %v13583_v62  ;;  %v973_v45 = vld [vmem:[#allocation2 + $0x1a78] sm:$0xff]  ;;  %v14032_v63 = vcombine.high %v709_v46, %v717_v40 }
 0x41a   :  { %7528 = vmatprep.subr.bf16.mxu0 %v14080_v3  ;;  %v14047_v3 = vcombine.low %v725_v50, %v733_v59  ;;  %v693_v14 = vld [vmem:[#allocation2 + $0x11b8] sm:$0xff] }
 0x41b   :  { %7518 = vmatpush2.bf16.msra.mxu1 %v13839_v6  ;;  %v677_v59 = vld [vmem:[#allocation2 + $0x1138] sm:$0xff] }
 0x41c   :  { %7569 = vmatprep.subr.bf16.mxu1 %v14336_v57  ;;  %v7234_v17 = vpop.f32.mrf.mxu0  ;;  %7479 = vmatmul.mubr.bf16.vlgmr.msra.gmra.mxu0 %v16302_v26  ;;  %v14304_v26 = vcombine.high %v981_v22, %v989_v41 }
 0x41d   :  { %v7235_v4 = vadd.f32 %v7234_v17, %v16478_v21  ;;  %7529 = vmatpush1.bf16.msra.mxu0 %v14079_v9  ;;  %7560 = vmatprep.mubr.bf16.mxu0 %v16310_v0  ;;  %v701_v0 = vld [vmem:[#allocation2 + $0x11f8] sm:$0xff] }
 0x41e   :  { %v7275_v36 = vpop.f32.mrf.mxu1  ;;  %7520 = vmatmul.mubr.bf16.vlgmr.msra.gmra.mxu1 %v16306_v29  ;;  %v7236_v38 = vpop.f32.mrf.mxu0  ;;  %7530 = vmatprep.subr.bf16.mxu0 %v14064_v15  ;;  %v965_v29 = vld [vmem:[#allocation2 + $0x1a38] sm:$0xff]  ;;  %v14031_v15 = vcombine.low %v709_v46, %v717_v40 }
 0x41f   :  { %7570 = vmatpush1.bf16.msra.mxu1 %v14335_v35  ;;  %v16487_v49 = vadd.f32 %v7275_v36, %v7235_v4  ;;  %v7237_v37 = vadd.f32 %v7236_v38, %v16481_v60  ;;  %7601 = vmatprep.mubr.bf16.mxu1 %v16315_v1  ;;  %v14303_v60 = vcombine.low %v981_v22, %v989_v41  ;;  %v949_v9 = vld [vmem:[#allocation2 + $0x19b8] sm:$0xff] }
 0x420   :  { %v7277_v2 = vpop.f32.mrf.mxu1  ;;  %7571 = vmatprep.subr.bf16.mxu1 %v14320_v12  ;;  %v7238_v21 = vpop.f32.mrf.mxu0  ;;  %v14288_v61 = vcombine.high %v965_v29, %v973_v45  ;;  %v957_v35 = vld [vmem:[#allocation2 + $0x19f8] sm:$0xff]  ;;  %v14287_v1 = vcombine.low %v965_v29, %v973_v45  ;;  %v14016_v12 = vcombine.high %v693_v14, %v701_v0  ;;  %v14015_v41 = vcombine.low %v693_v14, %v701_v0 }
 0x421   :  { %v16492_v62 = vadd.f32 %v7277_v2, %v7237_v37  ;;  %7531 = vmatpush1.bf16.msra.mxu0 %v14063_v39  ;;  %v14272_v50 = vcombine.high %v949_v9, %v957_v35  ;;  %v685_v17 = vld [vmem:[#allocation2 + $0x1178] sm:$0xff]  ;;  %v14271_v36 = vcombine.low %v949_v9, %v957_v35 }
 0x422   :  { %v7279_v6 = vpop.f32.mrf.mxu1  ;;  %v7239_v57 = vpop.f32.mrf.mxu0  ;;  %7532 = vmatprep.subr.bf16.mxu0 %v14048_v53  ;;  %v933_v4 = vld [vmem:[#allocation2 + $0x1938] sm:$0xff]  ;;  %v14000_v39 = vcombine.high %v677_v59, %v685_v17 }
 0x423   :  { %7572 = vmatpush1.bf16.msra.mxu1 %v14319_v5  ;;  %v941_v22 = vld [vmem:[#allocation2 + $0x1978] sm:$0xff] }
 0x424   :  { %v7280_v10 = vpop.f32.mrf.mxu1  ;;  %7573 = vmatprep.subr.bf16.mxu1 %v14304_v26  ;;  %v14256_v38 = vcombine.high %v933_v4, %v941_v22  ;;  %v661_v5 = vld [vmem:[#allocation2 + $0x10b8] sm:$0xff]  ;;  %v13999_v26 = vcombine.low %v677_v59, %v685_v17  ;;  %v14255_v46 = vcombine.low %v933_v4, %v941_v22 }
 0x425   :  { %7533 = vmatpush1.bf16.msra.mxu0 %v14047_v3  ;;  %v669_v53 = vld [vmem:[#allocation2 + $0x10f8] sm:$0xff] }
 0x426   :  { %7534 = vmatprep.subr.bf16.mxu0 %v14032_v63  ;;  %v917_v37 = vld [vmem:[#allocation2 + $0x18b8] sm:$0xff]  ;;  %v13984_v40 = vcombine.high %v661_v5, %v669_v53  ;;  %v13983_v57 = vcombine.low %v661_v5, %v669_v53 }
 0x427   :  { %7574 = vmatpush1.bf16.msra.mxu1 %v14303_v60  ;;  %v925_v2 = vld [vmem:[#allocation2 + $0x18f8] sm:$0xff] }
 0x428   :  { %7575 = vmatprep.subr.bf16.mxu1 %v14288_v61  ;;  %v14240_v21 = vcombine.high %v917_v37, %v925_v2  ;;  %v645_v29 = vld [vmem:[#allocation2 + $0x1038] sm:$0xff]  ;;  %v14239_v60 = vcombine.low %v917_v37, %v925_v2 }
 0x429   :  { %7535 = vmatpush1.bf16.msra.mxu0 %v14031_v15  ;;  %v653_v45 = vld [vmem:[#allocation2 + $0x1078] sm:$0xff] }
 0x42a   :  { %7536 = vmatprep.subr.bf16.mxu0 %v14016_v12  ;;  %v901_v6 = vld [vmem:[#allocation2 + $0x1838] sm:$0xff]  ;;  %v13968_v63 = vcombine.high %v645_v29, %v653_v45  ;;  %v13967_v35 = vcombine.low %v645_v29, %v653_v45 }
 0x42b   :  { %7576 = vmatpush1.bf16.msra.mxu1 %v14287_v1  ;;  %v909_v3 = vld [vmem:[#allocation2 + $0x1878] sm:$0xff] }
 0x42c   :  { %7577 = vmatprep.subr.bf16.mxu1 %v14272_v50  ;;  %v14224_v10 = vcombine.high %v901_v6, %v909_v3  ;;  %v885_v61 = vld [vmem:[#allocation2 + $0x17b8] sm:$0xff]  ;;  %v14223_v15 = vcombine.low %v901_v6, %v909_v3 }
 0x42d   :  { %7537 = vmatpush1.bf16.msra.mxu0 %v14015_v41  ;;  %v893_v14 = vld [vmem:[#allocation2 + $0x17f8] sm:$0xff] }
 0x42e   :  { %7538 = vmatprep.subr.bf16.mxu0 %v14000_v39  ;;  %v1141_v0 = vld [vmem:[#allocation2 + $0x1fb8] sm:$0xff]  ;;  %v14208_v1 = vcombine.high %v885_v61, %v893_v14  ;;  %v14207_v22 = vcombine.low %v885_v61, %v893_v14 }
 0x42f   :  { %7578 = vmatpush1.bf16.msra.mxu1 %v14271_v36  ;;  %v1149_v9 = vld [vmem:[#allocation2 + $0x1ff8] sm:$0xff] }
 0x430   :  { %7579 = vmatprep.subr.bf16.mxu1 %v14256_v38  ;;  %v14464_v12 = vcombine.high %v1141_v0, %v1149_v9  ;;  %v869_v50 = vld [vmem:[#allocation2 + $0x1738] sm:$0xff]  ;;  %v14463_v41 = vcombine.low %v1141_v0, %v1149_v9 }
 0x431   :  { %7539 = vmatpush1.bf16.msra.mxu0 %v13999_v26  ;;  %v877_v59 = vld [vmem:[#allocation2 + $0x1778] sm:$0xff] }
 0x432   :  { %7540 = vmatprep.subr.bf16.mxu0 %v13984_v40  ;;  %v1125_v17 = vld [vmem:[#allocation2 + $0x1f38] sm:$0xff]  ;;  %v14192_v36 = vcombine.high %v869_v50, %v877_v59  ;;  %v14191_v2 = vcombine.low %v869_v50, %v877_v59 }
 0x433   :  { %7580 = vmatpush1.bf16.msra.mxu1 %v14255_v46  ;;  %v1133_v4 = vld [vmem:[#allocation2 + $0x1f78] sm:$0xff] }
 0x434   :  { %7581 = vmatprep.subr.bf16.mxu1 %v14240_v21  ;;  %v14448_v39 = vcombine.high %v1125_v17, %v1133_v4  ;;  %v853_v38 = vld [vmem:[#allocation2 + $0x16b8] sm:$0xff]  ;;  %v14447_v26 = vcombine.low %v1125_v17, %v1133_v4 }
 0x435   :  { %7541 = vmatpush1.bf16.msra.mxu0 %v13983_v57  ;;  %v861_v5 = vld [vmem:[#allocation2 + $0x16f8] sm:$0xff] }
 0x436   :  { %7542 = vmatprep.subr.bf16.mxu0 %v13968_v63  ;;  %v1109_v53 = vld [vmem:[#allocation2 + $0x1eb8] sm:$0xff]  ;;  %v14176_v46 = vcombine.high %v853_v38, %v861_v5  ;;  %v14175_v3 = vcombine.low %v853_v38, %v861_v5 }
 0x437   :  { %7582 = vmatpush1.bf16.msra.mxu1 %v14239_v60  ;;  %v1117_v37 = vld [vmem:[#allocation2 + $0x1ef8] sm:$0xff] }
 0x438   :  { %7583 = vmatprep.subr.bf16.mxu1 %v14224_v10  ;;  %v14432_v40 = vcombine.high %v1109_v53, %v1117_v37  ;;  %v837_v21 = vld [vmem:[#allocation2 + $0x1638] sm:$0xff]  ;;  %v14431_v57 = vcombine.low %v1109_v53, %v1117_v37 }
 0x439   :  { %7543 = vmatpush1.bf16.msra.mxu0 %v13967_v35  ;;  %v845_v29 = vld [vmem:[#allocation2 + $0x1678] sm:$0xff] }
 0x43a   :  { %7544 = vmatprep.subr.bf16.mxu0 %v14208_v1  ;;  %v1093_v45 = vld [vmem:[#allocation2 + $0x1e38] sm:$0xff]  ;;  %v14160_v60 = vcombine.high %v837_v21, %v845_v29  ;;  %v14159_v9 = vcombine.low %v837_v21, %v845_v29 }
 0x43b   :  { %7584 = vmatpush1.bf16.msra.mxu1 %v14223_v15  ;;  %v1101_v6 = vld [vmem:[#allocation2 + $0x1e78] sm:$0xff] }
 0x43c   :  { %7585 = vmatprep.subr.bf16.mxu1 %v14464_v12  ;;  %v14416_v63 = vcombine.high %v1093_v45, %v1101_v6  ;;  %v821_v10 = vld [vmem:[#allocation2 + $0x15b8] sm:$0xff]  ;;  %v14415_v35 = vcombine.low %v1093_v45, %v1101_v6 }
 0x43d   :  { %7545 = vmatpush2.bf16.msra.mxu0 %v14207_v22  ;;  %v829_v61 = vld [vmem:[#allocation2 + $0x15f8] sm:$0xff] }
 0x43e   :  { %7546 = vmatprep.subr.bf16.mxu0 %v14192_v36  ;;  %v1077_v14 = vld [vmem:[#allocation2 + $0x1db8] sm:$0xff]  ;;  %v14144_v15 = vcombine.high %v821_v10, %v829_v61  ;;  %v14143_v4 = vcombine.low %v821_v10, %v829_v61 }
 0x43f   :  { %7586 = vmatpush2.bf16.msra.mxu1 %v14463_v41  ;;  %v1085_v0 = vld [vmem:[#allocation2 + $0x1df8] sm:$0xff] }
 0x440   :  { %7587 = vmatprep.subr.bf16.mxu1 %v14448_v39  ;;  %v14400_v1 = vcombine.high %v1077_v14, %v1085_v0  ;;  %v805_v12 = vld [vmem:[#allocation2 + $0x1538] sm:$0xff]  ;;  %v14399_v22 = vcombine.low %v1077_v14, %v1085_v0 }
 0x441   :  { %7547 = vmatpush2.bf16.msra.mxu0 %v14191_v2  ;;  %v813_v50 = vld [vmem:[#allocation2 + $0x1578] sm:$0xff] }
 0x442   :  { %7548 = vmatprep.subr.bf16.mxu0 %v14176_v46  ;;  %v1061_v59 = vld [vmem:[#allocation2 + $0x1d38] sm:$0xff]  ;;  %v14128_v41 = vcombine.high %v805_v12, %v813_v50  ;;  %v14127_v37 = vcombine.low %v805_v12, %v813_v50 }
 0x443   :  { %7588 = vmatpush2.bf16.msra.mxu1 %v14447_v26  ;;  %v1069_v17 = vld [vmem:[#allocation2 + $0x1d78] sm:$0xff] }
 0x444   :  { %7589 = vmatprep.subr.bf16.mxu1 %v14432_v40  ;;  %v14384_v36 = vcombine.high %v1061_v59, %v1069_v17  ;;  %v789_v39 = vld [vmem:[#allocation2 + $0x14b8] sm:$0xff]  ;;  %v14383_v2 = vcombine.low %v1061_v59, %v1069_v17 }
 0x445   :  { %7549 = vmatpush2.bf16.msra.mxu0 %v14175_v3  ;;  %v797_v38 = vld [vmem:[#allocation2 + $0x14f8] sm:$0xff] }
 0x446   :  { %7550 = vmatprep.subr.bf16.mxu0 %v14160_v60  ;;  %v1045_v5 = vld [vmem:[#allocation2 + $0x1cb8] sm:$0xff]  ;;  %v14112_v26 = vcombine.high %v789_v39, %v797_v38  ;;  %v14111_v6 = vcombine.low %v789_v39, %v797_v38 }
 0x447   :  { %7590 = vmatpush2.bf16.msra.mxu1 %v14431_v57  ;;  %v1053_v53 = vld [vmem:[#allocation2 + $0x1cf8] sm:$0xff] }
 0x448   :  { %7591 = vmatprep.subr.bf16.mxu1 %v14416_v63  ;;  %v14368_v46 = vcombine.high %v1045_v5, %v1053_v53  ;;  %v773_v40 = vld [vmem:[#allocation2 + $0x1438] sm:$0xff]  ;;  %v14367_v3 = vcombine.low %v1045_v5, %v1053_v53 }
 0x449   :  { %7551 = vmatpush2.bf16.msra.mxu0 %v14159_v9  ;;  %v781_v21 = vld [vmem:[#allocation2 + $0x1478] sm:$0xff] }
 0x44a   :  { %7552 = vmatprep.subr.bf16.mxu0 %v14144_v15  ;;  %v1029_v29 = vld [vmem:[#allocation2 + $0x1c38] sm:$0xff]  ;;  %v14096_v57 = vcombine.high %v773_v40, %v781_v21  ;;  %v14095_v63 = vcombine.low %v773_v40, %v781_v21 }
 0x44b   :  { %7592 = vmatpush2.bf16.msra.mxu1 %v14415_v35  ;;  %v1037_v45 = vld [vmem:[#allocation2 + $0x1c78] sm:$0xff] }
 0x44c   :  { %7593 = vmatprep.subr.bf16.mxu1 %v14400_v1  ;;  %v14352_v60 = vcombine.high %v1029_v29, %v1037_v45  ;;  %v14351_v10 = vcombine.low %v1029_v29, %v1037_v45 }
 0x44d   :  { %7553 = vmatpush2.bf16.msra.mxu0 %v14143_v4 }
 0x44e   :  { %7554 = vmatprep.subr.bf16.mxu0 %v14128_v41 }
 0x44f   :  { %7594 = vmatpush2.bf16.msra.mxu1 %v14399_v22 }
 0x450   :  { %7595 = vmatprep.subr.bf16.mxu1 %v14384_v36 }
 0x451   :  { %7555 = vmatpush2.bf16.msra.mxu0 %v14127_v37 }
 0x452   :  { %7556 = vmatprep.subr.bf16.mxu0 %v14112_v26 }
 0x453   :  { %7596 = vmatpush2.bf16.msra.mxu1 %v14383_v2 }
 0x454   :  { %7597 = vmatprep.subr.bf16.mxu1 %v14368_v46 }
 0x455   :  { %7557 = vmatpush2.bf16.msra.mxu0 %v14111_v6 }
 0x456   :  { %7558 = vmatprep.subr.bf16.mxu0 %v14096_v57 }
 0x457   :  { %7598 = vmatpush2.bf16.msra.mxu1 %v14367_v3 }
 0x458   :  { %7599 = vmatprep.subr.bf16.mxu1 %v14352_v60 }
 0x459   :  { %7559 = vmatpush2.bf16.msra.mxu0 %v14095_v63 }
 0x45b   :  { %7600 = vmatpush2.bf16.msra.mxu1 %v14351_v10 }
 0x45c   :  { %v7316_v61 = vpop.f32.mrf.mxu0  ;;  %7561 = vmatmul.mubr.bf16.vlgmr.msra.gmra.mxu0 %v16322_v44 }
 0x45e   :  { %v7357_v14 = vpop.f32.mrf.mxu1  ;;  %7602 = vmatmul.mubr.bf16.vlgmr.msra.gmra.mxu1 %v16326_v47  ;;  %v7318_v9 = vpop.f32.mrf.mxu0 }
 0x45f   :  { %v7358_v0 = vadd.f32 %v7357_v14, %v7316_v61 }
 0x460   :  { %v7359_v35 = vpop.f32.mrf.mxu1  ;;  %v7320_v1 = vpop.f32.mrf.mxu0 }
 0x461   :  { %v7360_v15 = vadd.f32 %v7359_v35, %v7318_v9 }
 0x462   :  { %v7361_v12 = vpop.f32.mrf.mxu1  ;;  %v7321_v50 = vpop.f32.mrf.mxu0 }
 0x464   :  { %v7362_v59 = vpop.f32.mrf.mxu1 }
 0x49c   :  { %v7398_v17 = vpop.f32.mrf.mxu0 }
 0x49d   :  { %v7399_v4 = vadd.f32 %v7398_v17, %v7358_v0 }
 0x49e   :  { %v7439_v22 = vpop.f32.mrf.mxu1  ;;  %v7400_v41 = vpop.f32.mrf.mxu0 }
 0x49f   :  { %v16496_v36 = vadd.f32 %v7439_v22, %v7399_v4  ;;  %v7401_v39 = vadd.f32 %v7400_v41, %v7360_v15 }
 0x4a0   :  { %v7441_v38 = vpop.f32.mrf.mxu1  ;;  %v7402_v44 = vpop.f32.mrf.mxu0 }
 0x4a1   :  { %v16498_v5 = vadd.f32 %v7441_v38, %v7401_v39 }
 0x4a2   :  { %v7443_v47 = vpop.f32.mrf.mxu1  ;;  %v7403_v53 = vpop.f32.mrf.mxu0 }
 0x4a4   :  { %v7444_v37 = vpop.f32.mrf.mxu1 }
 0x4dc   :  { %v7480_v2 = vpop.f32.mrf.mxu0 }
 0x4de   :  { %v7521_v26 = vpop.f32.mrf.mxu1  ;;  %v7482_v40 = vpop.f32.mrf.mxu0 }
 0x4df   :  { %v7522_v46 = vadd.f32 %v7521_v26, %v7480_v2 }
 0x4e0   :  { %v7523_v21 = vpop.f32.mrf.mxu1  ;;  %v7484_v29 = vpop.f32.mrf.mxu0 }
 0x4e1   :  { %v7524_v60 = vadd.f32 %v7523_v21, %v7482_v40 }
 0x4e2   :  { %v7525_v45 = vpop.f32.mrf.mxu1  ;;  %v7485_v6 = vpop.f32.mrf.mxu0 }
 0x4e4   :  { %v7526_v3 = vpop.f32.mrf.mxu1 }
 0x51c   :  { %v7562_v57 = vpop.f32.mrf.mxu0 }
 0x51d   :  { %v7563_v63 = vadd.f32 %v7562_v57, %v7522_v46 }
 0x51e   :  { %v7603_v10 = vpop.f32.mrf.mxu1  ;;  %v7564_v61 = vpop.f32.mrf.mxu0 }
 0x51f   :  { %v16500_v14 = vadd.f32 %v7603_v10, %v7563_v63  ;;  %v7565_v0 = vadd.f32 %v7564_v61, %v7524_v60 }
 0x520   :  { %v7605_v9 = vpop.f32.mrf.mxu1  ;;  %v7566_v35 = vpop.f32.mrf.mxu0 }
 0x521   :  { %v16502_v15 = vadd.f32 %v7605_v9, %v7565_v0 }
 0x522   :  { %v7607_v1 = vpop.f32.mrf.mxu1  ;;  %v7567_v12 = vpop.f32.mrf.mxu0 }
 0x524   :  { %v7608_v50 = vpop.f32.mrf.mxu1 }
 0x525   :  { %16182 = dma.done.wait [#allocation6 + $0x1], 32768 }
 0x526   :  { %16183 = vsyncadd [#allocation6 + $0x1], 4294934528  ;;  %v16507_v59 = vpack.c.bf16 %v7661_v42, %v7661_v42  ;;  %v16512_v17 = vpack.c.bf16 %v7663_v43, %v7663_v43  ;;  %v15246_v4 = vld [vmem:[#allocation3 + $0xe4] ss:$16 sps:$4 sm:$0xff]   ;;  %v15250_v41 = vld [vmem:[#allocation3 + $0xe0] ss:$16 sps:$4 sm:$0xff]   ;;  %v16529_v24 = vpack.c.bf16 %v7665_v16, %v7665_v16 }
 0x527   :  { %v15248_v22 = vld [vmem:[#allocation3 + $0x2e4] ss:$16 sps:$4 sm:$0xff]   ;;  %9237 = vmatprep.subr.bf16.mxu0 %v15246_v4  ;;  %v15251_v39 = vld [vmem:[#allocation3 + $0x2e0] ss:$16 sps:$4 sm:$0xff]   ;;  %v15444_v11 = vld [vmem:[#allocation3 + $0xc8] ss:$16 sps:$4 sm:$0xff]  }
 0x528   :  { %9269 = vmatprep.mubr.bf16.mxu0 %v16507_v59  ;;  %9310 = vmatprep.mubr.bf16.mxu1 %v16512_v17  ;;  %v15252_v38 = vld [vmem:[#allocation3 + $0xc4] ss:$16 sps:$4 sm:$0xff]   ;;  %v15256_v42 = vld [vmem:[#allocation3 + $0xc0] ss:$16 sps:$4 sm:$0xff]   ;;  %v15452_v13 = vld [vmem:[#allocation3 + $0xac] ss:$16 sps:$4 sm:$0xff]  }
 0x529   :  { %9278 = vmatprep.subr.bf16.mxu1 %v15248_v22  ;;  %9238 = vmatpush1.bf16.msra.mxu0 %v15250_v41  ;;  %v15254_v34 = vld [vmem:[#allocation3 + $0x2c4] ss:$16 sps:$4 sm:$0xff]   ;;  %v15257_v31 = vld [vmem:[#allocation3 + $0x2c0] ss:$16 sps:$4 sm:$0xff]  }
 0x52a   :  { %9279 = vmatpush1.bf16.msra.mxu1 %v15251_v39  ;;  %9239 = vmatprep.subr.bf16.mxu0 %v15252_v38  ;;  %v15258_v43 = vld [vmem:[#allocation3 + $0xa4] ss:$16 sps:$4 sm:$0xff]   ;;  %v15262_v47 = vld [vmem:[#allocation3 + $0xa0] ss:$16 sps:$4 sm:$0xff]  }
 0x52b   :  { %9280 = vmatprep.subr.bf16.mxu1 %v15254_v34  ;;  %v15260_v44 = vld [vmem:[#allocation3 + $0x2a4] ss:$16 sps:$4 sm:$0xff]   ;;  %v15263_v53 = vld [vmem:[#allocation3 + $0x2a0] ss:$16 sps:$4 sm:$0xff]  }
 0x52c   :  { %v15264_v37 = vld [vmem:[#allocation3 + $0x84] ss:$16 sps:$4 sm:$0xff]   ;;  %v15268_v26 = vld [vmem:[#allocation3 + $0x80] ss:$16 sps:$4 sm:$0xff]  }
 0x52d   :  { %9240 = vmatpush1.bf16.msra.mxu0 %v15256_v42  ;;  %v15266_v2 = vld [vmem:[#allocation3 + $0x284] ss:$16 sps:$4 sm:$0xff]   ;;  %v15269_v46 = vld [vmem:[#allocation3 + $0x280] ss:$16 sps:$4 sm:$0xff]  }
 0x52e   :  { %9281 = vmatpush1.bf16.msra.mxu1 %v15257_v31  ;;  %9241 = vmatprep.subr.bf16.mxu0 %v15258_v43  ;;  %v15270_v40 = vld [vmem:[#allocation3 + $0x64] ss:$16 sps:$4 sm:$0xff]   ;;  %v15274_v29 = vld [vmem:[#allocation3 + $0x60] ss:$16 sps:$4 sm:$0xff]  }
 0x52f   :  { %9282 = vmatprep.subr.bf16.mxu1 %v15260_v44  ;;  %v15272_v21 = vld [vmem:[#allocation3 + $0x264] ss:$16 sps:$4 sm:$0xff]   ;;  %v15275_v45 = vld [vmem:[#allocation3 + $0x260] ss:$16 sps:$4 sm:$0xff]  }
 0x530   :  { %v15276_v6 = vld [vmem:[#allocation3 + $0x44] ss:$16 sps:$4 sm:$0xff]   ;;  %v15280_v57 = vld [vmem:[#allocation3 + $0x40] ss:$16 sps:$4 sm:$0xff]  }
 0x531   :  { %9242 = vmatpush1.bf16.msra.mxu0 %v15262_v47  ;;  %v15278_v3 = vld [vmem:[#allocation3 + $0x244] ss:$16 sps:$4 sm:$0xff]   ;;  %v15281_v60 = vld [vmem:[#allocation3 + $0x240] ss:$16 sps:$4 sm:$0xff]  }
 0x532   :  { %9283 = vmatpush1.bf16.msra.mxu1 %v15263_v53  ;;  %9243 = vmatprep.subr.bf16.mxu0 %v15264_v37  ;;  %v15282_v63 = vld [vmem:[#allocation3 + $0x24] ss:$16 sps:$4 sm:$0xff]   ;;  %v15286_v61 = vld [vmem:[#allocation3 + $0x20] ss:$16 sps:$4 sm:$0xff]  }
 0x533   :  { %9284 = vmatprep.subr.bf16.mxu1 %v15266_v2  ;;  %v15284_v10 = vld [vmem:[#allocation3 + $0x224] ss:$16 sps:$4 sm:$0xff]   ;;  %v15287_v0 = vld [vmem:[#allocation3 + $0x220] ss:$16 sps:$4 sm:$0xff]  }
 0x534   :  { %v15288_v9 = vld [vmem:[#allocation3 + $0x4] ss:$16 sps:$4 sm:$0xff]   ;;  %v15292_v1 = vld [vmem:[#allocation3] ss:$16 sps:$4 sm:$0xff]  }
 0x535   :  { %9244 = vmatpush1.bf16.msra.mxu0 %v15268_v26  ;;  %v15290_v35 = vld [vmem:[#allocation3 + $0x204] ss:$16 sps:$4 sm:$0xff]   ;;  %v15293_v12 = vld [vmem:[#allocation3 + $0x200] ss:$16 sps:$4 sm:$0xff]  }
 0x536   :  { %9285 = vmatpush1.bf16.msra.mxu1 %v15269_v46  ;;  %9245 = vmatprep.subr.bf16.mxu0 %v15270_v40  ;;  %v15294_v50 = vld [vmem:[#allocation3 + $0x1e4] ss:$16 sps:$4 sm:$0xff]   ;;  %v15298_v22 = vld [vmem:[#allocation3 + $0x1e0] ss:$16 sps:$4 sm:$0xff]  }
 0x537   :  { %9286 = vmatprep.subr.bf16.mxu1 %v15272_v21  ;;  %v15296_v4 = vld [vmem:[#allocation3 + $0x3e4] ss:$16 sps:$4 sm:$0xff]   ;;  %v15299_v41 = vld [vmem:[#allocation3 + $0x3e0] ss:$16 sps:$4 sm:$0xff]  }
 0x538   :  { %v15300_v39 = vld [vmem:[#allocation3 + $0x1c4] ss:$16 sps:$4 sm:$0xff]   ;;  %v15304_v34 = vld [vmem:[#allocation3 + $0x1c0] ss:$16 sps:$4 sm:$0xff]  }
 0x539   :  { %9246 = vmatpush1.bf16.msra.mxu0 %v15274_v29  ;;  %v15302_v38 = vld [vmem:[#allocation3 + $0x3c4] ss:$16 sps:$4 sm:$0xff]   ;;  %v15305_v42 = vld [vmem:[#allocation3 + $0x3c0] ss:$16 sps:$4 sm:$0xff]  }
 0x53a   :  { %9287 = vmatpush1.bf16.msra.mxu1 %v15275_v45  ;;  %9247 = vmatprep.subr.bf16.mxu0 %v15276_v6  ;;  %v15306_v31 = vld [vmem:[#allocation3 + $0x1a4] ss:$16 sps:$4 sm:$0xff]   ;;  %v15310_v44 = vld [vmem:[#allocation3 + $0x1a0] ss:$16 sps:$4 sm:$0xff]  }
 0x53b   :  { %9288 = vmatprep.subr.bf16.mxu1 %v15278_v3  ;;  %v15308_v43 = vld [vmem:[#allocation3 + $0x3a4] ss:$16 sps:$4 sm:$0xff]   ;;  %v15311_v47 = vld [vmem:[#allocation3 + $0x3a0] ss:$16 sps:$4 sm:$0xff]  }
 0x53c   :  { %v15312_v53 = vld [vmem:[#allocation3 + $0x184] ss:$16 sps:$4 sm:$0xff]   ;;  %v15316_v2 = vld [vmem:[#allocation3 + $0x180] ss:$16 sps:$4 sm:$0xff]  }
 0x53d   :  { %9248 = vmatpush1.bf16.msra.mxu0 %v15280_v57  ;;  %v15314_v37 = vld [vmem:[#allocation3 + $0x384] ss:$16 sps:$4 sm:$0xff]   ;;  %v15317_v26 = vld [vmem:[#allocation3 + $0x380] ss:$16 sps:$4 sm:$0xff]  }
 0x53e   :  { %9289 = vmatpush1.bf16.msra.mxu1 %v15281_v60  ;;  %9249 = vmatprep.subr.bf16.mxu0 %v15282_v63  ;;  %v15318_v46 = vld [vmem:[#allocation3 + $0x164] ss:$16 sps:$4 sm:$0xff]   ;;  %v15322_v21 = vld [vmem:[#allocation3 + $0x160] ss:$16 sps:$4 sm:$0xff]  }
 0x53f   :  { %9290 = vmatprep.subr.bf16.mxu1 %v15284_v10  ;;  %v15320_v40 = vld [vmem:[#allocation3 + $0x364] ss:$16 sps:$4 sm:$0xff]   ;;  %v15323_v29 = vld [vmem:[#allocation3 + $0x360] ss:$16 sps:$4 sm:$0xff]  }
 0x540   :  { %v15324_v45 = vld [vmem:[#allocation3 + $0x144] ss:$16 sps:$4 sm:$0xff]   ;;  %v15328_v3 = vld [vmem:[#allocation3 + $0x140] ss:$16 sps:$4 sm:$0xff]  }
 0x541   :  { %9250 = vmatpush1.bf16.msra.mxu0 %v15286_v61  ;;  %v15326_v6 = vld [vmem:[#allocation3 + $0x344] ss:$16 sps:$4 sm:$0xff]   ;;  %v15329_v57 = vld [vmem:[#allocation3 + $0x340] ss:$16 sps:$4 sm:$0xff]  }
 0x542   :  { %9291 = vmatpush1.bf16.msra.mxu1 %v15287_v0  ;;  %9251 = vmatprep.subr.bf16.mxu0 %v15288_v9  ;;  %v15330_v60 = vld [vmem:[#allocation3 + $0x124] ss:$16 sps:$4 sm:$0xff]   ;;  %v15334_v10 = vld [vmem:[#allocation3 + $0x120] ss:$16 sps:$4 sm:$0xff]  }
 0x543   :  { %9292 = vmatprep.subr.bf16.mxu1 %v15290_v35  ;;  %v15332_v63 = vld [vmem:[#allocation3 + $0x324] ss:$16 sps:$4 sm:$0xff]   ;;  %v15335_v61 = vld [vmem:[#allocation3 + $0x320] ss:$16 sps:$4 sm:$0xff]  }
 0x544   :  { %v15336_v0 = vld [vmem:[#allocation3 + $0x104] ss:$16 sps:$4 sm:$0xff]   ;;  %v15340_v35 = vld [vmem:[#allocation3 + $0x100] ss:$16 sps:$4 sm:$0xff]  }
 0x545   :  { %9252 = vmatpush1.bf16.msra.mxu0 %v15292_v1  ;;  %v15338_v9 = vld [vmem:[#allocation3 + $0x304] ss:$16 sps:$4 sm:$0xff]   ;;  %v15341_v1 = vld [vmem:[#allocation3 + $0x300] ss:$16 sps:$4 sm:$0xff]  }
 0x546   :  { %9293 = vmatpush1.bf16.msra.mxu1 %v15293_v12  ;;  %9253 = vmatprep.subr.bf16.mxu0 %v15294_v50  ;;  %v15344_v12 = vld [vmem:[#allocation3 + $0x4e4] ss:$16 sps:$4 sm:$0xff]   ;;  %v15348_v23 = vld [vmem:[#allocation3 + $0x4c0] ss:$16 sps:$4 sm:$0xff]  }
 0x547   :  { %9294 = vmatprep.subr.bf16.mxu1 %v15296_v4  ;;  %v15347_v50 = vld [vmem:[#allocation3 + $0x6e4] ss:$16 sps:$4 sm:$0xff]   ;;  %v16519_v4 = vpack.c.bf16 %v7660_v32, %v7660_v32  ;;  %v16534_v32 = vpack.c.bf16 %v7667_v51, %v7667_v51  ;;  %v15354_v16 = vld [vmem:[#allocation3 + $0x4a0] ss:$16 sps:$4 sm:$0xff]  }
 0x548   :  { %v15359_v33 = vld [vmem:[#allocation3 + $0x6a4] ss:$16 sps:$4 sm:$0xff]   ;;  %v15357_v19 = vld [vmem:[#allocation3 + $0x6a0] ss:$16 sps:$4 sm:$0xff]  }
 0x549   :  { %9254 = vmatpush2.bf16.msra.mxu0 %v15298_v22  ;;  %v16524_v22 = vpack.c.bf16 %v7662_v30, %v7662_v30  ;;  %v15351_v30 = vld [vmem:[#allocation3 + $0x6c0] ss:$16 sps:$4 sm:$0xff]   ;;  %v15362_v51 = vld [vmem:[#allocation3 + $0x484] ss:$16 sps:$4 sm:$0xff]  }
 0x54a   :  { %9295 = vmatpush2.bf16.msra.mxu1 %v15299_v41  ;;  %9255 = vmatprep.subr.bf16.mxu0 %v15300_v39  ;;  %v15342_v41 = vld [vmem:[#allocation3 + $0x4e0] ss:$16 sps:$4 sm:$0xff]  }
 0x54b   :  { %9296 = vmatprep.subr.bf16.mxu1 %v15302_v38  ;;  %v15345_v39 = vld [vmem:[#allocation3 + $0x6e0] ss:$16 sps:$4 sm:$0xff]   ;;  %v15350_v38 = vld [vmem:[#allocation3 + $0x4c4] ss:$16 sps:$4 sm:$0xff]  }
 0x54d   :  { %9256 = vmatpush2.bf16.msra.mxu0 %v15304_v34  ;;  %v15353_v34 = vld [vmem:[#allocation3 + $0x6c4] ss:$16 sps:$4 sm:$0xff]  }
 0x54e   :  { %9297 = vmatpush2.bf16.msra.mxu1 %v15305_v42  ;;  %9257 = vmatprep.subr.bf16.mxu0 %v15306_v31  ;;  %v15356_v42 = vld [vmem:[#allocation3 + $0x4a4] ss:$16 sps:$4 sm:$0xff]  }
 0x54f   :  { %9298 = vmatprep.subr.bf16.mxu1 %v15308_v43  ;;  %v15365_v31 = vld [vmem:[#allocation3 + $0x684] ss:$16 sps:$4 sm:$0xff]   ;;  %v15360_v43 = vld [vmem:[#allocation3 + $0x480] ss:$16 sps:$4 sm:$0xff]  }
 0x551   :  { %9258 = vmatpush2.bf16.msra.mxu0 %v15310_v44  ;;  %v15363_v44 = vld [vmem:[#allocation3 + $0x680] ss:$16 sps:$4 sm:$0xff]  }
 0x552   :  { %9299 = vmatpush2.bf16.msra.mxu1 %v15311_v47  ;;  %9259 = vmatprep.subr.bf16.mxu0 %v15312_v53  ;;  %v15368_v47 = vld [vmem:[#allocation3 + $0x464] ss:$16 sps:$4 sm:$0xff]  }
 0x553   :  { %9300 = vmatprep.subr.bf16.mxu1 %v15314_v37  ;;  %v15371_v53 = vld [vmem:[#allocation3 + $0x664] ss:$16 sps:$4 sm:$0xff]   ;;  %v15366_v37 = vld [vmem:[#allocation3 + $0x460] ss:$16 sps:$4 sm:$0xff]  }
 0x555   :  { %9260 = vmatpush2.bf16.msra.mxu0 %v15316_v2  ;;  %v15369_v2 = vld [vmem:[#allocation3 + $0x660] ss:$16 sps:$4 sm:$0xff]  }
 0x556   :  { %9301 = vmatpush2.bf16.msra.mxu1 %v15317_v26  ;;  %9261 = vmatprep.subr.bf16.mxu0 %v15318_v46  ;;  %v15374_v26 = vld [vmem:[#allocation3 + $0x444] ss:$16 sps:$4 sm:$0xff]  }
 0x557   :  { %9302 = vmatprep.subr.bf16.mxu1 %v15320_v40  ;;  %v15377_v46 = vld [vmem:[#allocation3 + $0x644] ss:$16 sps:$4 sm:$0xff]   ;;  %v15372_v40 = vld [vmem:[#allocation3 + $0x440] ss:$16 sps:$4 sm:$0xff]  }
 0x559   :  { %9262 = vmatpush2.bf16.msra.mxu0 %v15322_v21  ;;  %v15375_v21 = vld [vmem:[#allocation3 + $0x640] ss:$16 sps:$4 sm:$0xff]  }
 0x55a   :  { %9303 = vmatpush2.bf16.msra.mxu1 %v15323_v29  ;;  %9263 = vmatprep.subr.bf16.mxu0 %v15324_v45  ;;  %v15380_v29 = vld [vmem:[#allocation3 + $0x424] ss:$16 sps:$4 sm:$0xff]  }
 0x55b   :  { %9304 = vmatprep.subr.bf16.mxu1 %v15326_v6  ;;  %v15383_v45 = vld [vmem:[#allocation3 + $0x624] ss:$16 sps:$4 sm:$0xff]   ;;  %v15378_v6 = vld [vmem:[#allocation3 + $0x420] ss:$16 sps:$4 sm:$0xff]  }
 0x55d   :  { %9264 = vmatpush2.bf16.msra.mxu0 %v15328_v3  ;;  %v15381_v3 = vld [vmem:[#allocation3 + $0x620] ss:$16 sps:$4 sm:$0xff]  }
 0x55e   :  { %9305 = vmatpush2.bf16.msra.mxu1 %v15329_v57  ;;  %9265 = vmatprep.subr.bf16.mxu0 %v15330_v60  ;;  %v15386_v57 = vld [vmem:[#allocation3 + $0x404] ss:$16 sps:$4 sm:$0xff]  }
 0x55f   :  { %9306 = vmatprep.subr.bf16.mxu1 %v15332_v63  ;;  %v15389_v60 = vld [vmem:[#allocation3 + $0x604] ss:$16 sps:$4 sm:$0xff]   ;;  %v15384_v63 = vld [vmem:[#allocation3 + $0x400] ss:$16 sps:$4 sm:$0xff]  }
 0x561   :  { %9266 = vmatpush2.bf16.msra.mxu0 %v15334_v10  ;;  %v15387_v10 = vld [vmem:[#allocation3 + $0x600] ss:$16 sps:$4 sm:$0xff]  }
 0x562   :  { %9307 = vmatpush2.bf16.msra.mxu1 %v15335_v61  ;;  %9267 = vmatprep.subr.bf16.mxu0 %v15336_v0  ;;  %v15392_v61 = vld [vmem:[#allocation3 + $0x5e4] ss:$16 sps:$4 sm:$0xff]  }
 0x563   :  { %9308 = vmatprep.subr.bf16.mxu1 %v15338_v9  ;;  %v15395_v0 = vld [vmem:[#allocation3 + $0x7e4] ss:$16 sps:$4 sm:$0xff]   ;;  %v15390_v9 = vld [vmem:[#allocation3 + $0x5e0] ss:$16 sps:$4 sm:$0xff]  }
 0x565   :  { %9268 = vmatpush2.bf16.msra.mxu0 %v15340_v35  ;;  %v15393_v35 = vld [vmem:[#allocation3 + $0x7e0] ss:$16 sps:$4 sm:$0xff]  }
 0x566   :  { %9309 = vmatpush2.bf16.msra.mxu1 %v15341_v1  ;;  %9319 = vmatprep.subr.bf16.mxu0 %v15344_v12  ;;  %v15398_v1 = vld [vmem:[#allocation3 + $0x5c4] ss:$16 sps:$4 sm:$0xff]  }
 0x567   :  { %9360 = vmatprep.subr.bf16.mxu1 %v15347_v50  ;;  %v15401_v12 = vld [vmem:[#allocation3 + $0x7c4] ss:$16 sps:$4 sm:$0xff]   ;;  %v15396_v50 = vld [vmem:[#allocation3 + $0x5c0] ss:$16 sps:$4 sm:$0xff]  }
 0x568   :  { %9270 = vmatmul.mubr.bf16.vlgmr.msra.gmra.mxu0 %v16519_v4 }
 0x569   :  { %9311 = vmatmul.mubr.bf16.vlgmr.msra.gmra.mxu1 %v16524_v22  ;;  %9320 = vmatpush1.bf16.msra.mxu0 %v15342_v41  ;;  %v15399_v41 = vld [vmem:[#allocation3 + $0x7c0] ss:$16 sps:$4 sm:$0xff]  }
 0x56a   :  { %9361 = vmatpush1.bf16.msra.mxu1 %v15345_v39  ;;  %9321 = vmatprep.subr.bf16.mxu0 %v15350_v38  ;;  %v15404_v39 = vld [vmem:[#allocation3 + $0x5a4] ss:$16 sps:$4 sm:$0xff]  }
 0x56b   :  { %9362 = vmatprep.subr.bf16.mxu1 %v15353_v34  ;;  %9351 = vmatprep.mubr.bf16.mxu0 %v16529_v24  ;;  %v15407_v38 = vld [vmem:[#allocation3 + $0x7a4] ss:$16 sps:$4 sm:$0xff]   ;;  %v15402_v34 = vld [vmem:[#allocation3 + $0x5a0] ss:$16 sps:$4 sm:$0xff]  }
 0x56c   :  { %9392 = vmatprep.mubr.bf16.mxu1 %v16534_v32 }
 0x56d   :  { %9322 = vmatpush1.bf16.msra.mxu0 %v15348_v23  ;;  %v15405_v23 = vld [vmem:[#allocation3 + $0x7a0] ss:$16 sps:$4 sm:$0xff]  }
 0x56e   :  { %9363 = vmatpush1.bf16.msra.mxu1 %v15351_v30  ;;  %9323 = vmatprep.subr.bf16.mxu0 %v15356_v42  ;;  %v15410_v30 = vld [vmem:[#allocation3 + $0x584] ss:$16 sps:$4 sm:$0xff]  }
 0x56f   :  { %9364 = vmatprep.subr.bf16.mxu1 %v15359_v33  ;;  %v15413_v42 = vld [vmem:[#allocation3 + $0x784] ss:$16 sps:$4 sm:$0xff]   ;;  %v15408_v33 = vld [vmem:[#allocation3 + $0x580] ss:$16 sps:$4 sm:$0xff]  }
 0x571   :  { %9324 = vmatpush1.bf16.msra.mxu0 %v15354_v16  ;;  %v15411_v16 = vld [vmem:[#allocation3 + $0x780] ss:$16 sps:$4 sm:$0xff]  }
 0x572   :  { %9365 = vmatpush1.bf16.msra.mxu1 %v15357_v19  ;;  %9325 = vmatprep.subr.bf16.mxu0 %v15362_v51  ;;  %v15416_v19 = vld [vmem:[#allocation3 + $0x564] ss:$16 sps:$4 sm:$0xff]  }
 0x573   :  { %9366 = vmatprep.subr.bf16.mxu1 %v15365_v31  ;;  %v15419_v51 = vld [vmem:[#allocation3 + $0x764] ss:$16 sps:$4 sm:$0xff]   ;;  %v15414_v31 = vld [vmem:[#allocation3 + $0x560] ss:$16 sps:$4 sm:$0xff]  }
 0x575   :  { %9326 = vmatpush1.bf16.msra.mxu0 %v15360_v43  ;;  %v15417_v43 = vld [vmem:[#allocation3 + $0x760] ss:$16 sps:$4 sm:$0xff]  }
 0x576   :  { %9367 = vmatpush1.bf16.msra.mxu1 %v15363_v44  ;;  %9327 = vmatprep.subr.bf16.mxu0 %v15368_v47  ;;  %v15422_v44 = vld [vmem:[#allocation3 + $0x544] ss:$16 sps:$4 sm:$0xff]  }
 0x577   :  { %9368 = vmatprep.subr.bf16.mxu1 %v15371_v53  ;;  %v15425_v47 = vld [vmem:[#allocation3 + $0x744] ss:$16 sps:$4 sm:$0xff]   ;;  %v15420_v53 = vld [vmem:[#allocation3 + $0x540] ss:$16 sps:$4 sm:$0xff]  }
 0x579   :  { %9328 = vmatpush1.bf16.msra.mxu0 %v15366_v37  ;;  %v15423_v37 = vld [vmem:[#allocation3 + $0x740] ss:$16 sps:$4 sm:$0xff]  }
 0x57a   :  { %9369 = vmatpush1.bf16.msra.mxu1 %v15369_v2  ;;  %9329 = vmatprep.subr.bf16.mxu0 %v15374_v26  ;;  %v15428_v2 = vld [vmem:[#allocation3 + $0x524] ss:$16 sps:$4 sm:$0xff]  }
 0x57b   :  { %9370 = vmatprep.subr.bf16.mxu1 %v15377_v46  ;;  %v15431_v26 = vld [vmem:[#allocation3 + $0x724] ss:$16 sps:$4 sm:$0xff]   ;;  %v15426_v46 = vld [vmem:[#allocation3 + $0x520] ss:$16 sps:$4 sm:$0xff]  }
 0x57d   :  { %9330 = vmatpush1.bf16.msra.mxu0 %v15372_v40  ;;  %v15429_v40 = vld [vmem:[#allocation3 + $0x720] ss:$16 sps:$4 sm:$0xff]  }
 0x57e   :  { %9371 = vmatpush1.bf16.msra.mxu1 %v15375_v21  ;;  %9331 = vmatprep.subr.bf16.mxu0 %v15380_v29  ;;  %v15434_v21 = vld [vmem:[#allocation3 + $0x504] ss:$16 sps:$4 sm:$0xff]  }
 0x57f   :  { %9372 = vmatprep.subr.bf16.mxu1 %v15383_v45  ;;  %v15437_v29 = vld [vmem:[#allocation3 + $0x704] ss:$16 sps:$4 sm:$0xff]   ;;  %v15432_v45 = vld [vmem:[#allocation3 + $0x500] ss:$16 sps:$4 sm:$0xff]  }
 0x581   :  { %9332 = vmatpush1.bf16.msra.mxu0 %v15378_v6  ;;  %v15435_v6 = vld [vmem:[#allocation3 + $0x700] ss:$16 sps:$4 sm:$0xff]  }
 0x582   :  { %9373 = vmatpush1.bf16.msra.mxu1 %v15381_v3  ;;  %9333 = vmatprep.subr.bf16.mxu0 %v15386_v57  ;;  %v15440_v3 = vld [vmem:[#allocation3 + $0xec] ss:$16 sps:$4 sm:$0xff]  }
 0x583   :  { %9374 = vmatprep.subr.bf16.mxu1 %v15389_v60  ;;  %v15443_v57 = vld [vmem:[#allocation3 + $0x2ec] ss:$16 sps:$4 sm:$0xff]   ;;  %v16543_v60 = vpack.c.bf16 %v7664_v8, %v7664_v8  ;;  %v15447_v8 = vld [vmem:[#allocation3 + $0x2c8] ss:$16 sps:$4 sm:$0xff]  }
 0x585   :  { %9334 = vmatpush1.bf16.msra.mxu0 %v15384_v63  ;;  %v16548_v63 = vpack.c.bf16 %v7666_v18, %v7666_v18  ;;  %v15455_v18 = vld [vmem:[#allocation3 + $0x2ac] ss:$16 sps:$4 sm:$0xff]  }
 0x586   :  { %9375 = vmatpush1.bf16.msra.mxu1 %v15387_v10  ;;  %9335 = vmatprep.subr.bf16.mxu0 %v15392_v61  ;;  %v15438_v10 = vld [vmem:[#allocation3 + $0xe8] ss:$16 sps:$4 sm:$0xff]  }
 0x587   :  { %9376 = vmatprep.subr.bf16.mxu1 %v15395_v0  ;;  %v15441_v61 = vld [vmem:[#allocation3 + $0x2e8] ss:$16 sps:$4 sm:$0xff]   ;;  %v15446_v0 = vld [vmem:[#allocation3 + $0xcc] ss:$16 sps:$4 sm:$0xff]  }
 0x589   :  { %9336 = vmatpush2.bf16.msra.mxu0 %v15390_v9  ;;  %v15449_v9 = vld [vmem:[#allocation3 + $0x2cc] ss:$16 sps:$4 sm:$0xff]  }
 0x58a   :  { %9377 = vmatpush2.bf16.msra.mxu1 %v15393_v35  ;;  %9337 = vmatprep.subr.bf16.mxu0 %v15398_v1  ;;  %v15450_v35 = vld [vmem:[#allocation3 + $0xa8] ss:$16 sps:$4 sm:$0xff]  }
 0x58b   :  { %9378 = vmatprep.subr.bf16.mxu1 %v15401_v12  ;;  %v15453_v1 = vld [vmem:[#allocation3 + $0x2a8] ss:$16 sps:$4 sm:$0xff]   ;;  %v15458_v12 = vld [vmem:[#allocation3 + $0x8c] ss:$16 sps:$4 sm:$0xff]  }
 0x58d   :  { %9338 = vmatpush2.bf16.msra.mxu0 %v15396_v50  ;;  %v15461_v50 = vld [vmem:[#allocation3 + $0x28c] ss:$16 sps:$4 sm:$0xff]  }
 0x58e   :  { %9379 = vmatpush2.bf16.msra.mxu1 %v15399_v41  ;;  %9339 = vmatprep.subr.bf16.mxu0 %v15404_v39  ;;  %v15456_v41 = vld [vmem:[#allocation3 + $0x88] ss:$16 sps:$4 sm:$0xff]  }
 0x58f   :  { %9380 = vmatprep.subr.bf16.mxu1 %v15407_v38  ;;  %v15459_v39 = vld [vmem:[#allocation3 + $0x288] ss:$16 sps:$4 sm:$0xff]   ;;  %v15464_v38 = vld [vmem:[#allocation3 + $0x6c] ss:$16 sps:$4 sm:$0xff]  }
 0x591   :  { %9340 = vmatpush2.bf16.msra.mxu0 %v15402_v34  ;;  %v15467_v34 = vld [vmem:[#allocation3 + $0x26c] ss:$16 sps:$4 sm:$0xff]  }
 0x592   :  { %9381 = vmatpush2.bf16.msra.mxu1 %v15405_v23  ;;  %9341 = vmatprep.subr.bf16.mxu0 %v15410_v30  ;;  %v15462_v23 = vld [vmem:[#allocation3 + $0x68] ss:$16 sps:$4 sm:$0xff]   ;;  %v15473_v30 = vld [vmem:[#allocation3 + $0x24c] ss:$16 sps:$4 sm:$0xff]  }
 0x593   :  { %9382 = vmatprep.subr.bf16.mxu1 %v15413_v42  ;;  %v15468_v42 = vld [vmem:[#allocation3 + $0x48] ss:$16 sps:$4 sm:$0xff]  }
 0x595   :  { %9342 = vmatpush2.bf16.msra.mxu0 %v15408_v33  ;;  %v15471_v33 = vld [vmem:[#allocation3 + $0x248] ss:$16 sps:$4 sm:$0xff]  }
 0x596   :  { %9383 = vmatpush2.bf16.msra.mxu1 %v15411_v16  ;;  %9343 = vmatprep.subr.bf16.mxu0 %v15416_v19  ;;  %v15476_v16 = vld [vmem:[#allocation3 + $0x2c] ss:$16 sps:$4 sm:$0xff]  }
 0x597   :  { %9384 = vmatprep.subr.bf16.mxu1 %v15419_v51  ;;  %v15479_v19 = vld [vmem:[#allocation3 + $0x22c] ss:$16 sps:$4 sm:$0xff]   ;;  %v15474_v51 = vld [vmem:[#allocation3 + $0x28] ss:$16 sps:$4 sm:$0xff]  }
 0x599   :  { %9344 = vmatpush2.bf16.msra.mxu0 %v15414_v31  ;;  %v15477_v31 = vld [vmem:[#allocation3 + $0x228] ss:$16 sps:$4 sm:$0xff]  }
 0x59a   :  { %9385 = vmatpush2.bf16.msra.mxu1 %v15417_v43  ;;  %9345 = vmatprep.subr.bf16.mxu0 %v15422_v44  ;;  %v15482_v43 = vld [vmem:[#allocation3 + $0xc] ss:$16 sps:$4 sm:$0xff]  }
 0x59b   :  { %9386 = vmatprep.subr.bf16.mxu1 %v15425_v47  ;;  %v15485_v44 = vld [vmem:[#allocation3 + $0x20c] ss:$16 sps:$4 sm:$0xff]   ;;  %v15480_v47 = vld [vmem:[#allocation3 + $0x8] ss:$16 sps:$4 sm:$0xff]  }
 0x59d   :  { %9346 = vmatpush2.bf16.msra.mxu0 %v15420_v53  ;;  %v15483_v53 = vld [vmem:[#allocation3 + $0x208] ss:$16 sps:$4 sm:$0xff]  }
 0x59e   :  { %9387 = vmatpush2.bf16.msra.mxu1 %v15423_v37  ;;  %9347 = vmatprep.subr.bf16.mxu0 %v15428_v2  ;;  %v15488_v37 = vld [vmem:[#allocation3 + $0x1ec] ss:$16 sps:$4 sm:$0xff]  }
 0x59f   :  { %9388 = vmatprep.subr.bf16.mxu1 %v15431_v26  ;;  %v15491_v2 = vld [vmem:[#allocation3 + $0x3ec] ss:$16 sps:$4 sm:$0xff]   ;;  %v15486_v26 = vld [vmem:[#allocation3 + $0x1e8] ss:$16 sps:$4 sm:$0xff]  }
 0x5a1   :  { %9348 = vmatpush2.bf16.msra.mxu0 %v15426_v46  ;;  %v15489_v46 = vld [vmem:[#allocation3 + $0x3e8] ss:$16 sps:$4 sm:$0xff]  }
 0x5a2   :  { %9389 = vmatpush2.bf16.msra.mxu1 %v15429_v40  ;;  %9349 = vmatprep.subr.bf16.mxu0 %v15434_v21  ;;  %v15494_v40 = vld [vmem:[#allocation3 + $0x1cc] ss:$16 sps:$4 sm:$0xff]  }
 0x5a3   :  { %9390 = vmatprep.subr.bf16.mxu1 %v15437_v29  ;;  %v15497_v21 = vld [vmem:[#allocation3 + $0x3cc] ss:$16 sps:$4 sm:$0xff]   ;;  %v15492_v29 = vld [vmem:[#allocation3 + $0x1c8] ss:$16 sps:$4 sm:$0xff]  }
 0x5a5   :  { %9350 = vmatpush2.bf16.msra.mxu0 %v15432_v45  ;;  %v15495_v45 = vld [vmem:[#allocation3 + $0x3c8] ss:$16 sps:$4 sm:$0xff]  }
 0x5a6   :  { %9391 = vmatpush2.bf16.msra.mxu1 %v15435_v6  ;;  %9401 = vmatprep.subr.bf16.mxu0 %v15440_v3  ;;  %v15500_v6 = vld [vmem:[#allocation3 + $0x1ac] ss:$16 sps:$4 sm:$0xff]  }
 0x5a7   :  { %9442 = vmatprep.subr.bf16.mxu1 %v15443_v57  ;;  %v15503_v3 = vld [vmem:[#allocation3 + $0x3ac] ss:$16 sps:$4 sm:$0xff]   ;;  %v15498_v57 = vld [vmem:[#allocation3 + $0x1a8] ss:$16 sps:$4 sm:$0xff]  }
 0x5a8   :  { %9352 = vmatmul.mubr.bf16.vlgmr.msra.gmra.mxu0 %v16543_v60 }
 0x5a9   :  { %9393 = vmatmul.mubr.bf16.vlgmr.msra.gmra.mxu1 %v16548_v63  ;;  %9402 = vmatpush1.bf16.msra.mxu0 %v15438_v10  ;;  %v15501_v10 = vld [vmem:[#allocation3 + $0x3a8] ss:$16 sps:$4 sm:$0xff]  }
 0x5aa   :  { %9443 = vmatpush1.bf16.msra.mxu1 %v15441_v61  ;;  %9403 = vmatprep.subr.bf16.mxu0 %v15446_v0  ;;  %v15506_v61 = vld [vmem:[#allocation3 + $0x18c] ss:$16 sps:$4 sm:$0xff]  }
 0x5ab   :  { %9444 = vmatprep.subr.bf16.mxu1 %v15449_v9  ;;  %9433 = vmatprep.mubr.bf16.mxu0 %v16507_v59  ;;  %v15465_v59 = vld [vmem:[#allocation3 + $0x268] ss:$16 sps:$4 sm:$0xff]   ;;  %v15509_v0 = vld [vmem:[#allocation3 + $0x38c] ss:$16 sps:$4 sm:$0xff]  }
 0x5ac   :  { %9474 = vmatprep.mubr.bf16.mxu1 %v16512_v17  ;;  %v15470_v17 = vld [vmem:[#allocation3 + $0x4c] ss:$16 sps:$4 sm:$0xff]   ;;  %v15504_v9 = vld [vmem:[#allocation3 + $0x188] ss:$16 sps:$4 sm:$0xff]  }
 0x5ad   :  { %9404 = vmatpush1.bf16.msra.mxu0 %v15444_v11  ;;  %v15507_v11 = vld [vmem:[#allocation3 + $0x388] ss:$16 sps:$4 sm:$0xff]  }
 0x5ae   :  { %9445 = vmatpush1.bf16.msra.mxu1 %v15447_v8  ;;  %9405 = vmatprep.subr.bf16.mxu0 %v15452_v13  ;;  %v15512_v8 = vld [vmem:[#allocation3 + $0x16c] ss:$16 sps:$4 sm:$0xff]  }
 0x5af   :  { %9446 = vmatprep.subr.bf16.mxu1 %v15455_v18  ;;  %v15515_v13 = vld [vmem:[#allocation3 + $0x36c] ss:$16 sps:$4 sm:$0xff]   ;;  %v15510_v18 = vld [vmem:[#allocation3 + $0x168] ss:$16 sps:$4 sm:$0xff]  }
 0x5b1   :  { %9406 = vmatpush1.bf16.msra.mxu0 %v15450_v35  ;;  %v15513_v35 = vld [vmem:[#allocation3 + $0x368] ss:$16 sps:$4 sm:$0xff]  }
 0x5b2   :  { %9447 = vmatpush1.bf16.msra.mxu1 %v15453_v1  ;;  %9407 = vmatprep.subr.bf16.mxu0 %v15458_v12  ;;  %v15518_v1 = vld [vmem:[#allocation3 + $0x14c] ss:$16 sps:$4 sm:$0xff]  }
 0x5b3   :  { %9448 = vmatprep.subr.bf16.mxu1 %v15461_v50  ;;  %v15521_v12 = vld [vmem:[#allocation3 + $0x34c] ss:$16 sps:$4 sm:$0xff]   ;;  %v15516_v50 = vld [vmem:[#allocation3 + $0x148] ss:$16 sps:$4 sm:$0xff]  }
 0x5b5   :  { %9408 = vmatpush1.bf16.msra.mxu0 %v15456_v41  ;;  %v15519_v41 = vld [vmem:[#allocation3 + $0x348] ss:$16 sps:$4 sm:$0xff]  }
 0x5b6   :  { %9449 = vmatpush1.bf16.msra.mxu1 %v15459_v39  ;;  %9409 = vmatprep.subr.bf16.mxu0 %v15464_v38  ;;  %v15524_v39 = vld [vmem:[#allocation3 + $0x12c] ss:$16 sps:$4 sm:$0xff]  }
 0x5b7   :  { %9450 = vmatprep.subr.bf16.mxu1 %v15467_v34  ;;  %v15527_v38 = vld [vmem:[#allocation3 + $0x32c] ss:$16 sps:$4 sm:$0xff]   ;;  %v15522_v34 = vld [vmem:[#allocation3 + $0x128] ss:$16 sps:$4 sm:$0xff]  }
 0x5b9   :  { %9410 = vmatpush1.bf16.msra.mxu0 %v15462_v23  ;;  %v15525_v23 = vld [vmem:[#allocation3 + $0x328] ss:$16 sps:$4 sm:$0xff]  }
 0x5ba   :  { %9451 = vmatpush1.bf16.msra.mxu1 %v15465_v59  ;;  %9411 = vmatprep.subr.bf16.mxu0 %v15470_v17  ;;  %v15530_v59 = vld [vmem:[#allocation3 + $0x10c] ss:$16 sps:$4 sm:$0xff]  }
 0x5bb   :  { %9452 = vmatprep.subr.bf16.mxu1 %v15473_v30  ;;  %v15533_v17 = vld [vmem:[#allocation3 + $0x30c] ss:$16 sps:$4 sm:$0xff]   ;;  %v15528_v30 = vld [vmem:[#allocation3 + $0x108] ss:$16 sps:$4 sm:$0xff]  }
 0x5bd   :  { %9412 = vmatpush1.bf16.msra.mxu0 %v15468_v42  ;;  %v15531_v42 = vld [vmem:[#allocation3 + $0x308] ss:$16 sps:$4 sm:$0xff]  }
 0x5be   :  { %9453 = vmatpush1.bf16.msra.mxu1 %v15471_v33  ;;  %9413 = vmatprep.subr.bf16.mxu0 %v15476_v16  ;;  %v15536_v33 = vld [vmem:[#allocation3 + $0x4ec] ss:$16 sps:$4 sm:$0xff]  }
 0x5bf   :  { %9454 = vmatprep.subr.bf16.mxu1 %v15479_v19  ;;  %v15539_v16 = vld [vmem:[#allocation3 + $0x6ec] ss:$16 sps:$4 sm:$0xff]   ;;  %v15534_v19 = vld [vmem:[#allocation3 + $0x4e8] ss:$16 sps:$4 sm:$0xff]  }
 0x5c1   :  { %9414 = vmatpush1.bf16.msra.mxu0 %v15474_v51  ;;  %v15537_v51 = vld [vmem:[#allocation3 + $0x6e8] ss:$16 sps:$4 sm:$0xff]  }
 0x5c2   :  { %9455 = vmatpush1.bf16.msra.mxu1 %v15477_v31  ;;  %9415 = vmatprep.subr.bf16.mxu0 %v15482_v43  ;;  %v15542_v31 = vld [vmem:[#allocation3 + $0x4cc] ss:$16 sps:$4 sm:$0xff]  }
 0x5c3   :  { %9456 = vmatprep.subr.bf16.mxu1 %v15485_v44  ;;  %v15545_v43 = vld [vmem:[#allocation3 + $0x6cc] ss:$16 sps:$4 sm:$0xff]   ;;  %v15540_v44 = vld [vmem:[#allocation3 + $0x4c8] ss:$16 sps:$4 sm:$0xff]  }
 0x5c5   :  { %9416 = vmatpush1.bf16.msra.mxu0 %v15480_v47  ;;  %v15543_v47 = vld [vmem:[#allocation3 + $0x6c8] ss:$16 sps:$4 sm:$0xff]  }
 0x5c6   :  { %9457 = vmatpush1.bf16.msra.mxu1 %v15483_v53  ;;  %9417 = vmatprep.subr.bf16.mxu0 %v15488_v37  ;;  %v15548_v53 = vld [vmem:[#allocation3 + $0x4ac] ss:$16 sps:$4 sm:$0xff]  }
 0x5c7   :  { %9458 = vmatprep.subr.bf16.mxu1 %v15491_v2  ;;  %v15551_v37 = vld [vmem:[#allocation3 + $0x6ac] ss:$16 sps:$4 sm:$0xff]   ;;  %v15546_v2 = vld [vmem:[#allocation3 + $0x4a8] ss:$16 sps:$4 sm:$0xff]  }
 0x5c9   :  { %9418 = vmatpush2.bf16.msra.mxu0 %v15486_v26  ;;  %v15549_v26 = vld [vmem:[#allocation3 + $0x6a8] ss:$16 sps:$4 sm:$0xff]  }
 0x5ca   :  { %9459 = vmatpush2.bf16.msra.mxu1 %v15489_v46  ;;  %9419 = vmatprep.subr.bf16.mxu0 %v15494_v40  ;;  %v15552_v46 = vld [vmem:[#allocation3 + $0x488] ss:$16 sps:$4 sm:$0xff]  }
 0x5cb   :  { %9460 = vmatprep.subr.bf16.mxu1 %v15497_v21  ;;  %v15555_v40 = vld [vmem:[#allocation3 + $0x688] ss:$16 sps:$4 sm:$0xff]   ;;  %v15560_v21 = vld [vmem:[#allocation3 + $0x46c] ss:$16 sps:$4 sm:$0xff]  }
 0x5cd   :  { %9420 = vmatpush2.bf16.msra.mxu0 %v15492_v29  ;;  %v15563_v29 = vld [vmem:[#allocation3 + $0x66c] ss:$16 sps:$4 sm:$0xff]  }
 0x5ce   :  { %9461 = vmatpush2.bf16.msra.mxu1 %v15495_v45  ;;  %9421 = vmatprep.subr.bf16.mxu0 %v15500_v6  ;;  %v15566_v45 = vld [vmem:[#allocation3 + $0x44c] ss:$16 sps:$4 sm:$0xff]  }
 0x5cf   :  { %9462 = vmatprep.subr.bf16.mxu1 %v15503_v3  ;;  %v15569_v6 = vld [vmem:[#allocation3 + $0x64c] ss:$16 sps:$4 sm:$0xff]   ;;  %v15564_v3 = vld [vmem:[#allocation3 + $0x448] ss:$16 sps:$4 sm:$0xff]  }
 0x5d1   :  { %9422 = vmatpush2.bf16.msra.mxu0 %v15498_v57  ;;  %v15567_v57 = vld [vmem:[#allocation3 + $0x648] ss:$16 sps:$4 sm:$0xff]  }
 0x5d2   :  { %9463 = vmatpush2.bf16.msra.mxu1 %v15501_v10  ;;  %9423 = vmatprep.subr.bf16.mxu0 %v15506_v61  ;;  %v15572_v10 = vld [vmem:[#allocation3 + $0x42c] ss:$16 sps:$4 sm:$0xff]  }
 0x5d3   :  { %9464 = vmatprep.subr.bf16.mxu1 %v15509_v0  ;;  %v15575_v61 = vld [vmem:[#allocation3 + $0x62c] ss:$16 sps:$4 sm:$0xff]   ;;  %v15570_v0 = vld [vmem:[#allocation3 + $0x428] ss:$16 sps:$4 sm:$0xff]  }
 0x5d5   :  { %9424 = vmatpush2.bf16.msra.mxu0 %v15504_v9  ;;  %v15573_v9 = vld [vmem:[#allocation3 + $0x628] ss:$16 sps:$4 sm:$0xff]  }
 0x5d6   :  { %9465 = vmatpush2.bf16.msra.mxu1 %v15507_v11  ;;  %9425 = vmatprep.subr.bf16.mxu0 %v15512_v8  ;;  %v15578_v11 = vld [vmem:[#allocation3 + $0x40c] ss:$16 sps:$4 sm:$0xff]  }
 0x5d7   :  { %9466 = vmatprep.subr.bf16.mxu1 %v15515_v13  ;;  %v15581_v8 = vld [vmem:[#allocation3 + $0x60c] ss:$16 sps:$4 sm:$0xff]   ;;  %v15576_v13 = vld [vmem:[#allocation3 + $0x408] ss:$16 sps:$4 sm:$0xff]  }
 0x5d9   :  { %9426 = vmatpush2.bf16.msra.mxu0 %v15510_v18  ;;  %v15579_v18 = vld [vmem:[#allocation3 + $0x608] ss:$16 sps:$4 sm:$0xff]  }
 0x5da   :  { %9467 = vmatpush2.bf16.msra.mxu1 %v15513_v35  ;;  %9427 = vmatprep.subr.bf16.mxu0 %v15518_v1  ;;  %v15584_v35 = vld [vmem:[#allocation3 + $0x5ec] ss:$16 sps:$4 sm:$0xff]  }
 0x5db   :  { %9468 = vmatprep.subr.bf16.mxu1 %v15521_v12  ;;  %v15587_v1 = vld [vmem:[#allocation3 + $0x7ec] ss:$16 sps:$4 sm:$0xff]   ;;  %v15582_v12 = vld [vmem:[#allocation3 + $0x5e8] ss:$16 sps:$4 sm:$0xff]  }
 0x5dd   :  { %9428 = vmatpush2.bf16.msra.mxu0 %v15516_v50  ;;  %v15585_v50 = vld [vmem:[#allocation3 + $0x7e8] ss:$16 sps:$4 sm:$0xff]  }
 0x5de   :  { %9469 = vmatpush2.bf16.msra.mxu1 %v15519_v41  ;;  %9429 = vmatprep.subr.bf16.mxu0 %v15524_v39  ;;  %v15590_v41 = vld [vmem:[#allocation3 + $0x5cc] ss:$16 sps:$4 sm:$0xff]  }
 0x5df   :  { %9470 = vmatprep.subr.bf16.mxu1 %v15527_v38  ;;  %v15593_v39 = vld [vmem:[#allocation3 + $0x7cc] ss:$16 sps:$4 sm:$0xff]   ;;  %v15588_v38 = vld [vmem:[#allocation3 + $0x5c8] ss:$16 sps:$4 sm:$0xff]  }
 0x5e1   :  { %9430 = vmatpush2.bf16.msra.mxu0 %v15522_v34  ;;  %v15591_v34 = vld [vmem:[#allocation3 + $0x7c8] ss:$16 sps:$4 sm:$0xff]  }
 0x5e2   :  { %9471 = vmatpush2.bf16.msra.mxu1 %v15525_v23  ;;  %9431 = vmatprep.subr.bf16.mxu0 %v15530_v59  ;;  %v15596_v23 = vld [vmem:[#allocation3 + $0x5ac] ss:$16 sps:$4 sm:$0xff]  }
 0x5e3   :  { %9472 = vmatprep.subr.bf16.mxu1 %v15533_v17  ;;  %v15599_v59 = vld [vmem:[#allocation3 + $0x7ac] ss:$16 sps:$4 sm:$0xff]   ;;  %v15594_v17 = vld [vmem:[#allocation3 + $0x5a8] ss:$16 sps:$4 sm:$0xff]  }
 0x5e5   :  { %9432 = vmatpush2.bf16.msra.mxu0 %v15528_v30  ;;  %v15597_v30 = vld [vmem:[#allocation3 + $0x7a8] ss:$16 sps:$4 sm:$0xff]  }
 0x5e6   :  { %9473 = vmatpush2.bf16.msra.mxu1 %v15531_v42  ;;  %9483 = vmatprep.subr.bf16.mxu0 %v15536_v33  ;;  %v15602_v42 = vld [vmem:[#allocation3 + $0x58c] ss:$16 sps:$4 sm:$0xff]  }
 0x5e7   :  { %9524 = vmatprep.subr.bf16.mxu1 %v15539_v16  ;;  %v15605_v33 = vld [vmem:[#allocation3 + $0x78c] ss:$16 sps:$4 sm:$0xff]   ;;  %v15600_v16 = vld [vmem:[#allocation3 + $0x588] ss:$16 sps:$4 sm:$0xff]  }
 0x5e8   :  { %9434 = vmatmul.mubr.bf16.vlgmr.msra.gmra.mxu0 %v16519_v4  ;;  %v15554_v4 = vld [vmem:[#allocation3 + $0x48c] ss:$16 sps:$4 sm:$0xff]  }
 0x5e9   :  { %9475 = vmatmul.mubr.bf16.vlgmr.msra.gmra.mxu1 %v16524_v22  ;;  %9484 = vmatpush1.bf16.msra.mxu0 %v15534_v19  ;;  %v15557_v22 = vld [vmem:[#allocation3 + $0x68c] ss:$16 sps:$4 sm:$0xff]   ;;  %v15603_v19 = vld [vmem:[#allocation3 + $0x788] ss:$16 sps:$4 sm:$0xff]  }
 0x5ea   :  { %9525 = vmatpush1.bf16.msra.mxu1 %v15537_v51  ;;  %9485 = vmatprep.subr.bf16.mxu0 %v15542_v31  ;;  %v15608_v51 = vld [vmem:[#allocation3 + $0x56c] ss:$16 sps:$4 sm:$0xff]  }
 0x5eb   :  { %9526 = vmatprep.subr.bf16.mxu1 %v15545_v43  ;;  %9515 = vmatprep.mubr.bf16.mxu0 %v16529_v24  ;;  %v15558_v24 = vld [vmem:[#allocation3 + $0x468] ss:$16 sps:$4 sm:$0xff]   ;;  %v15611_v31 = vld [vmem:[#allocation3 + $0x76c] ss:$16 sps:$4 sm:$0xff]  }
 0x5ec   :  { %9556 = vmatprep.mubr.bf16.mxu1 %v16534_v32  ;;  %v15561_v32 = vld [vmem:[#allocation3 + $0x668] ss:$16 sps:$4 sm:$0xff]  }
 0x5ed   :  { %9486 = vmatpush1.bf16.msra.mxu0 %v15540_v44  ;;  %v15606_v43 = vld [vmem:[#allocation3 + $0x568] ss:$16 sps:$4 sm:$0xff]  }
 0x5ee   :  { %9527 = vmatpush1.bf16.msra.mxu1 %v15543_v47  ;;  %9487 = vmatprep.subr.bf16.mxu0 %v15548_v53  ;;  %v15609_v44 = vld [vmem:[#allocation3 + $0x768] ss:$16 sps:$4 sm:$0xff]   ;;  %v15614_v47 = vld [vmem:[#allocation3 + $0x54c] ss:$16 sps:$4 sm:$0xff]  }
 0x5ef   :  { %9528 = vmatprep.subr.bf16.mxu1 %v15551_v37  ;;  %v15617_v53 = vld [vmem:[#allocation3 + $0x74c] ss:$16 sps:$4 sm:$0xff]   ;;  %v15612_v37 = vld [vmem:[#allocation3 + $0x548] ss:$16 sps:$4 sm:$0xff]  }
 0x5f1   :  { %9488 = vmatpush1.bf16.msra.mxu0 %v15546_v2  ;;  %v15615_v2 = vld [vmem:[#allocation3 + $0x748] ss:$16 sps:$4 sm:$0xff]  }
 0x5f2   :  { %9529 = vmatpush1.bf16.msra.mxu1 %v15549_v26  ;;  %9489 = vmatprep.subr.bf16.mxu0 %v15554_v4  ;;  %v15620_v26 = vld [vmem:[#allocation3 + $0x52c] ss:$16 sps:$4 sm:$0xff]  }
 0x5f3   :  { %9530 = vmatprep.subr.bf16.mxu1 %v15557_v22  ;;  %v15623_v4 = vld [vmem:[#allocation3 + $0x72c] ss:$16 sps:$4 sm:$0xff]   ;;  %v15618_v22 = vld [vmem:[#allocation3 + $0x528] ss:$16 sps:$4 sm:$0xff]  }
 0x5f5   :  { %9490 = vmatpush1.bf16.msra.mxu0 %v15552_v46  ;;  %v15621_v46 = vld [vmem:[#allocation3 + $0x728] ss:$16 sps:$4 sm:$0xff]  }
 0x5f6   :  { %9531 = vmatpush1.bf16.msra.mxu1 %v15555_v40  ;;  %9491 = vmatprep.subr.bf16.mxu0 %v15560_v21  ;;  %v15626_v40 = vld [vmem:[#allocation3 + $0x50c] ss:$16 sps:$4 sm:$0xff]  }
 0x5f7   :  { %9532 = vmatprep.subr.bf16.mxu1 %v15563_v29  ;;  %v15629_v21 = vld [vmem:[#allocation3 + $0x70c] ss:$16 sps:$4 sm:$0xff]   ;;  %v15624_v29 = vld [vmem:[#allocation3 + $0x508] ss:$16 sps:$4 sm:$0xff]  }
 0x5f9   :  { %9492 = vmatpush1.bf16.msra.mxu0 %v15558_v24  ;;  %v15627_v24 = vld [vmem:[#allocation3 + $0x708] ss:$16 sps:$4 sm:$0xff]  }
 0x5fa   :  { %9533 = vmatpush1.bf16.msra.mxu1 %v15561_v32  ;;  %9493 = vmatprep.subr.bf16.mxu0 %v15566_v45  ;;  %v7935_v32 = vld [vmem:[#allocation9] sm:$0xf] }
 0x5fb   :  { %9534 = vmatprep.subr.bf16.mxu1 %v15569_v6  ;;  %v7940_v45 = vrot.slane %v7935_v32, %v16347_v55  ;;  %v7944_v6 = vrot.slane %v7935_v32, %v16352_v58 }
 0x5fd   :  { %9494 = vmatpush1.bf16.msra.mxu0 %v15564_v3 }
 0x5fe   :  { %9535 = vmatpush1.bf16.msra.mxu1 %v15567_v57  ;;  %9495 = vmatprep.subr.bf16.mxu0 %v15572_v10 }
 0x5ff   :  { %9536 = vmatprep.subr.bf16.mxu1 %v15575_v61 }
 0x601   :  { %9496 = vmatpush1.bf16.msra.mxu0 %v15570_v0 }
 0x602   :  { %9537 = vmatpush1.bf16.msra.mxu1 %v15573_v9  ;;  %9497 = vmatprep.subr.bf16.mxu0 %v15578_v11 }
 0x603   :  { %9538 = vmatprep.subr.bf16.mxu1 %v15581_v8 }
 0x605   :  { %9498 = vmatpush1.bf16.msra.mxu0 %v15576_v13 }
 0x606   :  { %9539 = vmatpush1.bf16.msra.mxu1 %v15579_v18  ;;  %9499 = vmatprep.subr.bf16.mxu0 %v15584_v35 }
 0x607   :  { %9540 = vmatprep.subr.bf16.mxu1 %v15587_v1 }
 0x609   :  { %9500 = vmatpush2.bf16.msra.mxu0 %v15582_v12 }
 0x60a   :  { %9541 = vmatpush2.bf16.msra.mxu1 %v15585_v50  ;;  %9501 = vmatprep.subr.bf16.mxu0 %v15590_v41 }
 0x60b   :  { %9542 = vmatprep.subr.bf16.mxu1 %v15593_v39 }
 0x60d   :  { %9502 = vmatpush2.bf16.msra.mxu0 %v15588_v38 }
 0x60e   :  { %9543 = vmatpush2.bf16.msra.mxu1 %v15591_v34  ;;  %9503 = vmatprep.subr.bf16.mxu0 %v15596_v23 }
 0x60f   :  { %9544 = vmatprep.subr.bf16.mxu1 %v15599_v59 }
 0x611   :  { %9504 = vmatpush2.bf16.msra.mxu0 %v15594_v17 }
 0x612   :  { %9545 = vmatpush2.bf16.msra.mxu1 %v15597_v30  ;;  %9505 = vmatprep.subr.bf16.mxu0 %v15602_v42 }
 0x613   :  { %9546 = vmatprep.subr.bf16.mxu1 %v15605_v33 }
 0x615   :  { %9506 = vmatpush2.bf16.msra.mxu0 %v15600_v16 }
 0x616   :  { %9547 = vmatpush2.bf16.msra.mxu1 %v15603_v19  ;;  %9507 = vmatprep.subr.bf16.mxu0 %v15608_v51 }
 0x617   :  { %9548 = vmatprep.subr.bf16.mxu1 %v15611_v31 }
 0x619   :  { %9508 = vmatpush2.bf16.msra.mxu0 %v15606_v43 }
 0x61a   :  { %9549 = vmatpush2.bf16.msra.mxu1 %v15609_v44  ;;  %9509 = vmatprep.subr.bf16.mxu0 %v15614_v47 }
 0x61b   :  { %9550 = vmatprep.subr.bf16.mxu1 %v15617_v53 }
 0x61d   :  { %9510 = vmatpush2.bf16.msra.mxu0 %v15612_v37  ;;  %v7948_v37 = vrot.slane %v7935_v32, %v16379_v52 }
 0x61e   :  { %9551 = vmatpush2.bf16.msra.mxu1 %v15615_v2  ;;  %9511 = vmatprep.subr.bf16.mxu0 %v15620_v26  ;;  %v7952_v2 = vrot.slane %v7935_v32, %v16382_v54 }
 0x61f   :  { %9552 = vmatprep.subr.bf16.mxu1 %v15623_v4 }
 0x621   :  { %9512 = vmatpush2.bf16.msra.mxu0 %v15618_v22 }
 0x622   :  { %9553 = vmatpush2.bf16.msra.mxu1 %v15621_v46  ;;  %9513 = vmatprep.subr.bf16.mxu0 %v15626_v40 }
 0x623   :  { %9554 = vmatprep.subr.bf16.mxu1 %v15629_v21 }
 0x625   :  { %9514 = vmatpush2.bf16.msra.mxu0 %v15624_v29 }
 0x626   :  { %9555 = vmatpush2.bf16.msra.mxu1 %v15627_v24 }
 0x628   :  { %v9271_v3 = vpop.f32.mrf.mxu0  ;;  %9516 = vmatmul.mubr.bf16.vlgmr.msra.gmra.mxu0 %v16543_v60 }
 0x629   :  { %v9312_v57 = vpop.f32.mrf.mxu1  ;;  %9557 = vmatmul.mubr.bf16.vlgmr.msra.gmra.mxu1 %v16548_v63  ;;  %v9272_v10 = vadd.f32 %v9271_v3, %v7940_v45 }
 0x62a   :  { %v9273_v61 = vpop.f32.mrf.mxu0 }
 0x62b   :  { %v9314_v0 = vpop.f32.mrf.mxu1  ;;  %v9313_v9 = vadd.f32 %v9312_v57, %v9272_v10  ;;  %v9274_v11 = vadd.f32 %v9273_v61, %v7944_v6 }
 0x62c   :  { %v9275_v8 = vpop.f32.mrf.mxu0 }
 0x62d   :  { %v9316_v13 = vpop.f32.mrf.mxu1  ;;  %v9315_v18 = vadd.f32 %v9314_v0, %v9274_v11 }
 0x62e   :  { %v9276_v35 = vpop.f32.mrf.mxu0 }
 0x62f   :  { %v9317_v1 = vpop.f32.mrf.mxu1 }
 0x668   :  { %v9353_v12 = vpop.f32.mrf.mxu0 }
 0x669   :  { %v9394_v50 = vpop.f32.mrf.mxu1  ;;  %v9354_v41 = vadd.f32 %v9353_v12, %v9313_v9 }
 0x66a   :  { %v9355_v39 = vpop.f32.mrf.mxu0 }
 0x66b   :  { %v9396_v38 = vpop.f32.mrf.mxu1  ;;  %v16562_v34 = vadd.f32 %v9394_v50, %v9354_v41  ;;  %v9356_v60 = vadd.f32 %v9355_v39, %v9315_v18 }
 0x66c   :  { %v9357_v23 = vpop.f32.mrf.mxu0 }
 0x66d   :  { %v9398_v63 = vpop.f32.mrf.mxu1  ;;  %v9565_v59 = vmax.f32 %v16562_v34, 0.0  ;;  %v9397_v17 = vadd.f32 %v9396_v38, %v9356_v60 }
 0x66e   :  { %v9358_v30 = vpop.f32.mrf.mxu0 }
 0x66f   :  { %v9399_v42 = vpop.f32.mrf.mxu1  ;;  %v9566_v33 = vmax.f32 %v9397_v17, 0.0 }
 0x6a8   :  { %v9435_v16 = vpop.f32.mrf.mxu0 }
 0x6a9   :  { %v9476_v19 = vpop.f32.mrf.mxu1  ;;  %v9436_v26 = vadd.f32 %v9435_v16, %v7948_v37 }
 0x6aa   :  { %v9437_v51 = vpop.f32.mrf.mxu0 }
 0x6ab   :  { %v9478_v31 = vpop.f32.mrf.mxu1  ;;  %v9438_v4 = vadd.f32 %v9437_v51, %v7952_v2  ;;  %v9477_v22 = vadd.f32 %v9476_v19, %v9436_v26 }
 0x6ac   :  { %v9439_v43 = vpop.f32.mrf.mxu0 }
 0x6ad   :  { %v9480_v44 = vpop.f32.mrf.mxu1  ;;  %v9479_v21 = vadd.f32 %v9478_v31, %v9438_v4 }
 0x6ae   :  { %v9440_v47 = vpop.f32.mrf.mxu0 }
 0x6af   :  { %v9481_v53 = vpop.f32.mrf.mxu1 }
 0x6e8   :  { %v9517_v46 = vpop.f32.mrf.mxu0 }
 0x6e9   :  { %v9558_v40 = vpop.f32.mrf.mxu1  ;;  %v9518_v29 = vadd.f32 %v9517_v46, %v9477_v22 }
 0x6ea   :  { %v9519_v24 = vpop.f32.mrf.mxu0 }
 0x6eb   :  { %v9560_v45 = vpop.f32.mrf.mxu1  ;;  %v16567_v6 = vadd.f32 %v9558_v40, %v9518_v29  ;;  %v9520_v3 = vadd.f32 %v9519_v24, %v9479_v21 }
 0x6ec   :  { %v9521_v57 = vpop.f32.mrf.mxu0 }
 0x6ed   :  { %v9562_v10 = vpop.f32.mrf.mxu1  ;;  %v9567_v61 = vmax.f32 %v16567_v6, 0.0  ;;  %v9561_v0 = vadd.f32 %v9560_v45, %v9520_v3 }
 0x6ee   :  { %v9522_v9 = vpop.f32.mrf.mxu0 }
 0x6ef   :  { %v9563_v11 = vpop.f32.mrf.mxu1  ;;  %v9568_v32 = vmax.f32 %v9561_v0, 0.0 }
 0x6f0   :  { %16184 = dma.done.wait [#allocation6 + $0x2], 32768 }
 0x6f1   :  { %16185 = vsyncadd [#allocation6 + $0x2], 4294934528  ;;  %v16570_v8 = vpack.c.bf16 %v9566_v33, %v9566_v33  ;;  %v16572_v13 = vpack.c.bf16 %v9568_v32, %v9568_v32  ;;  %v9633_v18 = vld [vmem:[#allocation4 + $0x1c0] sm:$0xff]  ;;  %v9622_v34 = vld [vmem:[#allocation4 + $0x168] sm:$0xff] }
 0x6f2   :  { %v9637_v35 = vld [vmem:[#allocation4 + $0x1e0] sm:$0xff] }
 0x6f3   :  { %11145 = vmatprep.mubr.bf16.mxu0 %v16570_v8  ;;  %11186 = vmatprep.mubr.bf16.mxu1 %v16572_v13  ;;  %v9761_v1 = vld [vmem:[#allocation4 + $0x5c0] sm:$0xff]  ;;  %v14778_v12 = vcombine.high %v9633_v18, %v9637_v35  ;;  %v14777_v41 = vcombine.low %v9633_v18, %v9637_v35 }
 0x6f4   :  { %v9765_v50 = vld [vmem:[#allocation4 + $0x5e0] sm:$0xff] }
 0x6f5   :  { %v9625_v39 = vld [vmem:[#allocation4 + $0x180] sm:$0xff]  ;;  %v14906_v60 = vcombine.high %v9761_v1, %v9765_v50  ;;  %v14905_v23 = vcombine.low %v9761_v1, %v9765_v50  ;;  %11113 = vmatprep.subr.bf16.mxu0 %v14778_v12 }
 0x6f6   :  { %v9629_v38 = vld [vmem:[#allocation4 + $0x1a0] sm:$0xff]  ;;  %11114 = vmatpush1.bf16.msra.mxu0 %v14777_v41 }
 0x6f7   :  { %v14770_v63 = vcombine.high %v9625_v39, %v9629_v38  ;;  %v9753_v17 = vld [vmem:[#allocation4 + $0x580] sm:$0xff]  ;;  %11154 = vmatprep.subr.bf16.mxu1 %v14906_v60  ;;  %v14769_v31 = vcombine.low %v9625_v39, %v9629_v38 }
 0x6f8   :  { %v9757_v30 = vld [vmem:[#allocation4 + $0x5a0] sm:$0xff]  ;;  %11155 = vmatpush1.bf16.msra.mxu1 %v14905_v23 }
 0x6f9   :  { %v9617_v42 = vld [vmem:[#allocation4 + $0x140] sm:$0xff]  ;;  %v14898_v33 = vcombine.high %v9753_v17, %v9757_v30  ;;  %11115 = vmatprep.subr.bf16.mxu0 %v14770_v63  ;;  %v14897_v43 = vcombine.low %v9753_v17, %v9757_v30 }
 0x6fa   :  { %v9621_v16 = vld [vmem:[#allocation4 + $0x160] sm:$0xff]  ;;  %11116 = vmatpush1.bf16.msra.mxu0 %v14769_v31 }
 0x6fb   :  { %v9745_v19 = vld [vmem:[#allocation4 + $0x540] sm:$0xff]  ;;  %v14762_v44 = vcombine.high %v9617_v42, %v9621_v16  ;;  %11156 = vmatprep.subr.bf16.mxu1 %v14898_v33  ;;  %v14761_v4 = vcombine.low %v9617_v42, %v9621_v16 }
 0x6fc   :  { %v9749_v51 = vld [vmem:[#allocation4 + $0x560] sm:$0xff]  ;;  %11157 = vmatpush1.bf16.msra.mxu1 %v14897_v43 }
 0x6fd   :  { %v14890_v47 = vcombine.high %v9745_v19, %v9749_v51  ;;  %v9609_v53 = vld [vmem:[#allocation4 + $0x100] sm:$0xff]  ;;  %11117 = vmatprep.subr.bf16.mxu0 %v14762_v44  ;;  %v14889_v22 = vcombine.low %v9745_v19, %v9749_v51 }
 0x6fe   :  { %v9613_v37 = vld [vmem:[#allocation4 + $0x120] sm:$0xff]  ;;  %11118 = vmatpush1.bf16.msra.mxu0 %v14761_v4 }
 0x6ff   :  { %v9737_v2 = vld [vmem:[#allocation4 + $0x500] sm:$0xff]  ;;  %v14754_v46 = vcombine.high %v9609_v53, %v9613_v37  ;;  %11158 = vmatprep.subr.bf16.mxu1 %v14890_v47  ;;  %v14753_v3 = vcombine.low %v9609_v53, %v9613_v37 }
 0x700   :  { %v9741_v26 = vld [vmem:[#allocation4 + $0x520] sm:$0xff]  ;;  %11159 = vmatpush1.bf16.msra.mxu1 %v14889_v22 }
 0x701   :  { %v14882_v40 = vcombine.high %v9737_v2, %v9741_v26  ;;  %v9601_v21 = vld [vmem:[#allocation4 + $0xc0] sm:$0xff]  ;;  %11119 = vmatprep.subr.bf16.mxu0 %v14754_v46  ;;  %v14881_v57 = vcombine.low %v9737_v2, %v9741_v26 }
 0x702   :  { %v9605_v29 = vld [vmem:[#allocation4 + $0xe0] sm:$0xff]  ;;  %11120 = vmatpush1.bf16.msra.mxu0 %v14753_v3 }
 0x703   :  { %v9729_v24 = vld [vmem:[#allocation4 + $0x4c0] sm:$0xff]  ;;  %v14746_v10 = vcombine.high %v9601_v21, %v9605_v29  ;;  %11160 = vmatprep.subr.bf16.mxu1 %v14882_v40  ;;  %v14745_v35 = vcombine.low %v9601_v21, %v9605_v29 }
 0x704   :  { %v9733_v45 = vld [vmem:[#allocation4 + $0x4e0] sm:$0xff]  ;;  %11161 = vmatpush1.bf16.msra.mxu1 %v14881_v57 }
 0x705   :  { %v14874_v0 = vcombine.high %v9729_v24, %v9733_v45  ;;  %v9593_v9 = vld [vmem:[#allocation4 + $0x80] sm:$0xff]  ;;  %11121 = vmatprep.subr.bf16.mxu0 %v14746_v10  ;;  %v14873_v1 = vcombine.low %v9729_v24, %v9733_v45 }
 0x706   :  { %v9597_v11 = vld [vmem:[#allocation4 + $0xa0] sm:$0xff]  ;;  %11122 = vmatpush1.bf16.msra.mxu0 %v14745_v35 }
 0x707   :  { %v9721_v32 = vld [vmem:[#allocation4 + $0x480] sm:$0xff]  ;;  %v14738_v12 = vcombine.high %v9593_v9, %v9597_v11  ;;  %11162 = vmatprep.subr.bf16.mxu1 %v14874_v0  ;;  %v14737_v23 = vcombine.low %v9593_v9, %v9597_v11 }
 0x708   :  { %v9725_v18 = vld [vmem:[#allocation4 + $0x4a0] sm:$0xff]  ;;  %11163 = vmatpush1.bf16.msra.mxu1 %v14873_v1 }
 0x709   :  { %v14866_v50 = vcombine.high %v9721_v32, %v9725_v18  ;;  %v9585_v41 = vld [vmem:[#allocation4 + $0x40] sm:$0xff]  ;;  %11123 = vmatprep.subr.bf16.mxu0 %v14738_v12  ;;  %v14865_v63 = vcombine.low %v9721_v32, %v9725_v18 }
 0x70a   :  { %v9589_v39 = vld [vmem:[#allocation4 + $0x60] sm:$0xff]  ;;  %11124 = vmatpush1.bf16.msra.mxu0 %v14737_v23 }
 0x70b   :  { %v9713_v38 = vld [vmem:[#allocation4 + $0x440] sm:$0xff]  ;;  %v14730_v17 = vcombine.high %v9585_v41, %v9589_v39  ;;  %11164 = vmatprep.subr.bf16.mxu1 %v14866_v50  ;;  %v14729_v51 = vcombine.low %v9585_v41, %v9589_v39 }
 0x70c   :  { %v9717_v60 = vld [vmem:[#allocation4 + $0x460] sm:$0xff]  ;;  %11165 = vmatpush1.bf16.msra.mxu1 %v14865_v63 }
 0x70d   :  { %v14858_v30 = vcombine.high %v9713_v38, %v9717_v60  ;;  %v9577_v42 = vld [vmem:[#allocation4] sm:$0xff]  ;;  %11125 = vmatprep.subr.bf16.mxu0 %v14730_v17  ;;  %v14857_v31 = vcombine.low %v9713_v38, %v9717_v60 }
 0x70e   :  { %v9581_v33 = vld [vmem:[#allocation4 + $0x20] sm:$0xff]  ;;  %11126 = vmatpush1.bf16.msra.mxu0 %v14729_v51 }
 0x70f   :  { %v9705_v16 = vld [vmem:[#allocation4 + $0x400] sm:$0xff]  ;;  %v14722_v43 = vcombine.high %v9577_v42, %v9581_v33  ;;  %11166 = vmatprep.subr.bf16.mxu1 %v14858_v30  ;;  %v14721_v26 = vcombine.low %v9577_v42, %v9581_v33 }
 0x710   :  { %v9709_v19 = vld [vmem:[#allocation4 + $0x420] sm:$0xff]  ;;  %11167 = vmatpush1.bf16.msra.mxu1 %v14857_v31 }
 0x711   :  { %v14850_v44 = vcombine.high %v9705_v16, %v9709_v19  ;;  %v9697_v47 = vld [vmem:[#allocation4 + $0x3c0] sm:$0xff]  ;;  %11127 = vmatprep.subr.bf16.mxu0 %v14722_v43  ;;  %v14849_v4 = vcombine.low %v9705_v16, %v9709_v19 }
 0x712   :  { %v9701_v53 = vld [vmem:[#allocation4 + $0x3e0] sm:$0xff]  ;;  %11128 = vmatpush1.bf16.msra.mxu0 %v14721_v26 }
 0x713   :  { %v9825_v37 = vld [vmem:[#allocation4 + $0x7c0] sm:$0xff]  ;;  %v14842_v22 = vcombine.high %v9697_v47, %v9701_v53  ;;  %11168 = vmatprep.subr.bf16.mxu1 %v14850_v44  ;;  %v14841_v45 = vcombine.low %v9697_v47, %v9701_v53 }
 0x714   :  { %v9829_v2 = vld [vmem:[#allocation4 + $0x7e0] sm:$0xff]  ;;  %11169 = vmatpush1.bf16.msra.mxu1 %v14849_v4 }
 0x715   :  { %v14970_v46 = vcombine.high %v9825_v37, %v9829_v2  ;;  %v9689_v40 = vld [vmem:[#allocation4 + $0x380] sm:$0xff]  ;;  %11129 = vmatprep.subr.bf16.mxu0 %v14842_v22  ;;  %v14969_v3 = vcombine.low %v9825_v37, %v9829_v2 }
 0x716   :  { %v9693_v21 = vld [vmem:[#allocation4 + $0x3a0] sm:$0xff]  ;;  %11130 = vmatpush2.bf16.msra.mxu0 %v14841_v45 }
 0x717   :  { %v9817_v29 = vld [vmem:[#allocation4 + $0x780] sm:$0xff]  ;;  %v14834_v57 = vcombine.high %v9689_v40, %v9693_v21  ;;  %11170 = vmatprep.subr.bf16.mxu1 %v14970_v46  ;;  %v14833_v18 = vcombine.low %v9689_v40, %v9693_v21 }
 0x718   :  { %v9821_v24 = vld [vmem:[#allocation4 + $0x7a0] sm:$0xff]  ;;  %11171 = vmatpush2.bf16.msra.mxu1 %v14969_v3 }
 0x719   :  { %v14962_v10 = vcombine.high %v9817_v29, %v9821_v24  ;;  %v9681_v0 = vld [vmem:[#allocation4 + $0x340] sm:$0xff]  ;;  %11131 = vmatprep.subr.bf16.mxu0 %v14834_v57  ;;  %v14961_v35 = vcombine.low %v9817_v29, %v9821_v24 }
 0x71a   :  { %v9685_v9 = vld [vmem:[#allocation4 + $0x360] sm:$0xff]  ;;  %11132 = vmatpush2.bf16.msra.mxu0 %v14833_v18 }
 0x71b   :  { %v9809_v11 = vld [vmem:[#allocation4 + $0x740] sm:$0xff]  ;;  %v14826_v1 = vcombine.high %v9681_v0, %v9685_v9  ;;  %11172 = vmatprep.subr.bf16.mxu1 %v14962_v10  ;;  %v14825_v60 = vcombine.low %v9681_v0, %v9685_v9 }
 0x71c   :  { %v9813_v32 = vld [vmem:[#allocation4 + $0x760] sm:$0xff]  ;;  %11173 = vmatpush2.bf16.msra.mxu1 %v14961_v35 }
 0x71d   :  { %v14954_v12 = vcombine.high %v9809_v11, %v9813_v32  ;;  %v9673_v50 = vld [vmem:[#allocation4 + $0x300] sm:$0xff]  ;;  %11133 = vmatprep.subr.bf16.mxu0 %v14826_v1  ;;  %v14953_v23 = vcombine.low %v9809_v11, %v9813_v32 }
 0x71e   :  { %v9677_v41 = vld [vmem:[#allocation4 + $0x320] sm:$0xff]  ;;  %11134 = vmatpush2.bf16.msra.mxu0 %v14825_v60 }
 0x71f   :  { %v9801_v39 = vld [vmem:[#allocation4 + $0x700] sm:$0xff]  ;;  %v14818_v63 = vcombine.high %v9673_v50, %v9677_v41  ;;  %11174 = vmatprep.subr.bf16.mxu1 %v14954_v12  ;;  %v14817_v19 = vcombine.low %v9673_v50, %v9677_v41  ;;  %v9634_v12 = vld [vmem:[#allocation4 + $0x1c8] sm:$0xff] }
 0x720   :  { %v9805_v38 = vld [vmem:[#allocation4 + $0x720] sm:$0xff]  ;;  %11175 = vmatpush2.bf16.msra.mxu1 %v14953_v23  ;;  %v9638_v50 = vld [vmem:[#allocation4 + $0x1e8] sm:$0xff] }
 0x721   :  { %v14946_v17 = vcombine.high %v9801_v39, %v9805_v38  ;;  %v9665_v30 = vld [vmem:[#allocation4 + $0x2c0] sm:$0xff]  ;;  %11135 = vmatprep.subr.bf16.mxu0 %v14818_v63  ;;  %v14945_v51 = vcombine.low %v9801_v39, %v9805_v38  ;;  %v9762_v41 = vld [vmem:[#allocation4 + $0x5c8] sm:$0xff]  ;;  %v14780_v23 = vcombine.high %v9634_v12, %v9638_v50 }
 0x722   :  { %v9669_v42 = vld [vmem:[#allocation4 + $0x2e0] sm:$0xff]  ;;  %11136 = vmatpush2.bf16.msra.mxu0 %v14817_v19  ;;  %v9766_v39 = vld [vmem:[#allocation4 + $0x5e8] sm:$0xff]  ;;  %v16584_v19 = vpack.c.bf16 %v9567_v61, %v9567_v61 }
 0x723   :  { %v9793_v33 = vld [vmem:[#allocation4 + $0x6c0] sm:$0xff]  ;;  %v14810_v31 = vcombine.high %v9665_v30, %v9669_v42  ;;  %11176 = vmatprep.subr.bf16.mxu1 %v14946_v17  ;;  %v14809_v2 = vcombine.low %v9665_v30, %v9669_v42  ;;  %v14908_v63 = vcombine.high %v9762_v41, %v9766_v39  ;;  %v9626_v17 = vld [vmem:[#allocation4 + $0x188] sm:$0xff]  ;;  %v16579_v42 = vpack.c.bf16 %v9565_v59, %v9565_v59 }
 0x724   :  { %v9797_v16 = vld [vmem:[#allocation4 + $0x6e0] sm:$0xff]  ;;  %11177 = vmatpush2.bf16.msra.mxu1 %v14945_v51  ;;  %v9630_v30 = vld [vmem:[#allocation4 + $0x1a8] sm:$0xff]  ;;  %v14779_v51 = vcombine.low %v9634_v12, %v9638_v50 }
 0x725   :  { %v14938_v43 = vcombine.high %v9793_v33, %v9797_v16  ;;  %v9657_v44 = vld [vmem:[#allocation4 + $0x280] sm:$0xff]  ;;  %11137 = vmatprep.subr.bf16.mxu0 %v14810_v31  ;;  %v14937_v26 = vcombine.low %v9793_v33, %v9797_v16  ;;  %v9754_v33 = vld [vmem:[#allocation4 + $0x588] sm:$0xff]  ;;  %v14907_v31 = vcombine.low %v9762_v41, %v9766_v39  ;;  %v14771_v6 = vcombine.low %v9626_v17, %v9630_v30 }
 0x726   :  { %v9661_v47 = vld [vmem:[#allocation4 + $0x2a0] sm:$0xff]  ;;  %11138 = vmatpush2.bf16.msra.mxu0 %v14809_v2  ;;  %v9758_v16 = vld [vmem:[#allocation4 + $0x5a8] sm:$0xff] }
 0x727   :  { %v9785_v53 = vld [vmem:[#allocation4 + $0x680] sm:$0xff]  ;;  %v14802_v4 = vcombine.high %v9657_v44, %v9661_v47  ;;  %11178 = vmatprep.subr.bf16.mxu1 %v14938_v43  ;;  %v14801_v24 = vcombine.low %v9657_v44, %v9661_v47  ;;  %v14772_v43 = vcombine.high %v9626_v17, %v9630_v30  ;;  %v14900_v44 = vcombine.high %v9754_v33, %v9758_v16  ;;  %v9618_v47 = vld [vmem:[#allocation4 + $0x148] sm:$0xff] }
 0x728   :  { %v9789_v37 = vld [vmem:[#allocation4 + $0x6a0] sm:$0xff]  ;;  %11179 = vmatpush2.bf16.msra.mxu1 %v14937_v26  ;;  %v9746_v59 = vld [vmem:[#allocation4 + $0x548] sm:$0xff]  ;;  %v14899_v61 = vcombine.low %v9754_v33, %v9758_v16 }
 0x729   :  { %v14930_v22 = vcombine.high %v9785_v53, %v9789_v37  ;;  %v9649_v46 = vld [vmem:[#allocation4 + $0x240] sm:$0xff]  ;;  %11139 = vmatprep.subr.bf16.mxu0 %v14802_v4  ;;  %v14929_v45 = vcombine.low %v9785_v53, %v9789_v37  ;;  %v9750_v53 = vld [vmem:[#allocation4 + $0x568] sm:$0xff]  ;;  %v14764_v37 = vcombine.high %v9618_v47, %v9622_v34 }
 0x72a   :  { %v9653_v40 = vld [vmem:[#allocation4 + $0x260] sm:$0xff]  ;;  %11140 = vmatpush2.bf16.msra.mxu0 %v14801_v24  ;;  %v14892_v2 = vcombine.high %v9746_v59, %v9750_v53  ;;  %v9610_v26 = vld [vmem:[#allocation4 + $0x108] sm:$0xff] }
 0x72b   :  { %v9777_v21 = vld [vmem:[#allocation4 + $0x640] sm:$0xff]  ;;  %v14794_v3 = vcombine.high %v9649_v46, %v9653_v40  ;;  %11180 = vmatprep.subr.bf16.mxu1 %v14930_v22  ;;  %v14793_v32 = vcombine.low %v9649_v46, %v9653_v40  ;;  %v9614_v4 = vld [vmem:[#allocation4 + $0x128] sm:$0xff]  ;;  %v14763_v40 = vcombine.low %v9618_v47, %v9622_v34 }
 0x72c   :  { %v9781_v29 = vld [vmem:[#allocation4 + $0x660] sm:$0xff]  ;;  %11181 = vmatpush2.bf16.msra.mxu1 %v14929_v45  ;;  %v9738_v22 = vld [vmem:[#allocation4 + $0x508] sm:$0xff] }
 0x72d   :  { %v14922_v57 = vcombine.high %v9777_v21, %v9781_v29  ;;  %v9641_v10 = vld [vmem:[#allocation4 + $0x200] sm:$0xff]  ;;  %11141 = vmatprep.subr.bf16.mxu0 %v14794_v3  ;;  %v14921_v18 = vcombine.low %v9777_v21, %v9781_v29  ;;  %v9742_v46 = vld [vmem:[#allocation4 + $0x528] sm:$0xff]  ;;  %v14891_v21 = vcombine.low %v9746_v59, %v9750_v53  ;;  %v14756_v29 = vcombine.high %v9610_v26, %v9614_v4 }
 0x72e   :  { %v9645_v0 = vld [vmem:[#allocation4 + $0x220] sm:$0xff]  ;;  %11142 = vmatpush2.bf16.msra.mxu0 %v14793_v32  ;;  %v14884_v24 = vcombine.high %v9738_v22, %v9742_v46  ;;  %v9602_v45 = vld [vmem:[#allocation4 + $0xc8] sm:$0xff] }
 0x72f   :  { %v9769_v9 = vld [vmem:[#allocation4 + $0x600] sm:$0xff]  ;;  %v14786_v35 = vcombine.high %v9641_v10, %v9645_v0  ;;  %11182 = vmatprep.subr.bf16.mxu1 %v14922_v57  ;;  %v14785_v38 = vcombine.low %v9641_v10, %v9645_v0  ;;  %v9606_v3 = vld [vmem:[#allocation4 + $0xe8] sm:$0xff]  ;;  %v14755_v0 = vcombine.low %v9610_v26, %v9614_v4 }
 0x730   :  { %v9773_v11 = vld [vmem:[#allocation4 + $0x620] sm:$0xff]  ;;  %11183 = vmatpush2.bf16.msra.mxu1 %v14921_v18  ;;  %v9730_v57 = vld [vmem:[#allocation4 + $0x4c8] sm:$0xff]  ;;  %v14747_v50 = vcombine.low %v9602_v45, %v9606_v3 }
 0x731   :  { %v14914_v1 = vcombine.high %v9769_v9, %v9773_v11  ;;  %11143 = vmatprep.subr.bf16.mxu0 %v14786_v35  ;;  %v14913_v60 = vcombine.low %v9769_v9, %v9773_v11  ;;  %v9734_v10 = vld [vmem:[#allocation4 + $0x4e8] sm:$0xff]  ;;  %v14883_v9 = vcombine.low %v9738_v22, %v9742_v46  ;;  %v14748_v11 = vcombine.high %v9602_v45, %v9606_v3 }
 0x732   :  { %11144 = vmatpush2.bf16.msra.mxu0 %v14785_v38  ;;  %v14876_v32 = vcombine.high %v9730_v57, %v9734_v10  ;;  %v9594_v18 = vld [vmem:[#allocation4 + $0x88] sm:$0xff]  ;;  %v14875_v41 = vcombine.low %v9730_v57, %v9734_v10 }
 0x733   :  { %11184 = vmatprep.subr.bf16.mxu1 %v14914_v1  ;;  %11195 = vmatprep.subr.bf16.mxu0 %v14780_v23  ;;  %v9598_v35 = vld [vmem:[#allocation4 + $0xa8] sm:$0xff] }
 0x734   :  { %11185 = vmatpush2.bf16.msra.mxu1 %v14913_v60  ;;  %v9722_v1 = vld [vmem:[#allocation4 + $0x488] sm:$0xff]  ;;  %v14740_v39 = vcombine.high %v9594_v18, %v9598_v35  ;;  %v14739_v30 = vcombine.low %v9594_v18, %v9598_v35 }
 0x735   :  { %11236 = vmatprep.subr.bf16.mxu1 %v14908_v63  ;;  %11146 = vmatmul.mubr.bf16.vlgmr.msra.gmra.mxu0 %v16579_v42  ;;  %v9726_v12 = vld [vmem:[#allocation4 + $0x4a8] sm:$0xff] }
 0x736   :  { %11196 = vmatpush1.bf16.msra.mxu0 %v14779_v51  ;;  %11227 = vmatprep.mubr.bf16.mxu0 %v16570_v8  ;;  %v14868_v38 = vcombine.high %v9722_v1, %v9726_v12  ;;  %v9586_v60 = vld [vmem:[#allocation4 + $0x48] sm:$0xff]  ;;  %v14867_v33 = vcombine.low %v9722_v1, %v9726_v12 }
 0x737   :  { %11187 = vmatmul.mubr.bf16.vlgmr.msra.gmra.mxu1 %v16584_v19  ;;  %11197 = vmatprep.subr.bf16.mxu0 %v14772_v43  ;;  %v9590_v23 = vld [vmem:[#allocation4 + $0x68] sm:$0xff] }
 0x738   :  { %11237 = vmatpush1.bf16.msra.mxu1 %v14907_v31  ;;  %11268 = vmatprep.mubr.bf16.mxu1 %v16572_v13  ;;  %v9714_v63 = vld [vmem:[#allocation4 + $0x448] sm:$0xff]  ;;  %v14732_v16 = vcombine.high %v9586_v60, %v9590_v23  ;;  %v14731_v34 = vcombine.low %v9586_v60, %v9590_v23 }
 0x739   :  { %11238 = vmatprep.subr.bf16.mxu1 %v14900_v44  ;;  %v9718_v17 = vld [vmem:[#allocation4 + $0x468] sm:$0xff] }
 0x73a   :  { %11198 = vmatpush1.bf16.msra.mxu0 %v14771_v6  ;;  %v14860_v51 = vcombine.high %v9714_v63, %v9718_v17  ;;  %v9578_v31 = vld [vmem:[#allocation4 + $0x8] sm:$0xff]  ;;  %v14859_v59 = vcombine.low %v9714_v63, %v9718_v17 }
 0x73b   :  { %11199 = vmatprep.subr.bf16.mxu0 %v14764_v37  ;;  %v9582_v43 = vld [vmem:[#allocation4 + $0x28] sm:$0xff] }
 0x73c   :  { %11239 = vmatpush1.bf16.msra.mxu1 %v14899_v61  ;;  %v9706_v44 = vld [vmem:[#allocation4 + $0x408] sm:$0xff]  ;;  %v14724_v53 = vcombine.high %v9578_v31, %v9582_v43  ;;  %v14723_v4 = vcombine.low %v9578_v31, %v9582_v43 }
 0x73d   :  { %11240 = vmatprep.subr.bf16.mxu1 %v14892_v2  ;;  %v9710_v47 = vld [vmem:[#allocation4 + $0x428] sm:$0xff] }
 0x73e   :  { %11200 = vmatpush1.bf16.msra.mxu0 %v14763_v40  ;;  %v14852_v6 = vcombine.high %v9706_v44, %v9710_v47  ;;  %v9698_v61 = vld [vmem:[#allocation4 + $0x3c8] sm:$0xff]  ;;  %v14851_v22 = vcombine.low %v9706_v44, %v9710_v47 }
 0x73f   :  { %11201 = vmatprep.subr.bf16.mxu0 %v14756_v29  ;;  %v9702_v37 = vld [vmem:[#allocation4 + $0x3e8] sm:$0xff] }
 0x740   :  { %11241 = vmatpush1.bf16.msra.mxu1 %v14891_v21  ;;  %v9826_v2 = vld [vmem:[#allocation4 + $0x7c8] sm:$0xff]  ;;  %v14844_v46 = vcombine.high %v9698_v61, %v9702_v37  ;;  %v14843_v3 = vcombine.low %v9698_v61, %v9702_v37 }
 0x741   :  { %11242 = vmatprep.subr.bf16.mxu1 %v14884_v24  ;;  %v9830_v26 = vld [vmem:[#allocation4 + $0x7e8] sm:$0xff] }
 0x742   :  { %11202 = vmatpush1.bf16.msra.mxu0 %v14755_v0  ;;  %v14972_v40 = vcombine.high %v9826_v2, %v9830_v26  ;;  %v9690_v21 = vld [vmem:[#allocation4 + $0x388] sm:$0xff]  ;;  %v14971_v57 = vcombine.low %v9826_v2, %v9830_v26 }
 0x743   :  { %11203 = vmatprep.subr.bf16.mxu0 %v14748_v11  ;;  %v9694_v29 = vld [vmem:[#allocation4 + $0x3a8] sm:$0xff] }
 0x744   :  { %11243 = vmatpush1.bf16.msra.mxu1 %v14883_v9  ;;  %v9818_v24 = vld [vmem:[#allocation4 + $0x788] sm:$0xff]  ;;  %v14836_v10 = vcombine.high %v9690_v21, %v9694_v29  ;;  %v14835_v35 = vcombine.low %v9690_v21, %v9694_v29 }
 0x745   :  { %11244 = vmatprep.subr.bf16.mxu1 %v14876_v32  ;;  %v9822_v45 = vld [vmem:[#allocation4 + $0x7a8] sm:$0xff] }
 0x746   :  { %11204 = vmatpush1.bf16.msra.mxu0 %v14747_v50  ;;  %v14964_v0 = vcombine.high %v9818_v24, %v9822_v45  ;;  %v9682_v9 = vld [vmem:[#allocation4 + $0x348] sm:$0xff]  ;;  %v14963_v1 = vcombine.low %v9818_v24, %v9822_v45 }
 0x747   :  { %11205 = vmatprep.subr.bf16.mxu0 %v14740_v39  ;;  %v9686_v11 = vld [vmem:[#allocation4 + $0x368] sm:$0xff] }
 0x748   :  { %11245 = vmatpush1.bf16.msra.mxu1 %v14875_v41  ;;  %v9810_v32 = vld [vmem:[#allocation4 + $0x748] sm:$0xff]  ;;  %v14828_v12 = vcombine.high %v9682_v9, %v9686_v11  ;;  %v14827_v23 = vcombine.low %v9682_v9, %v9686_v11 }
 0x749   :  { %11246 = vmatprep.subr.bf16.mxu1 %v14868_v38  ;;  %v9814_v18 = vld [vmem:[#allocation4 + $0x768] sm:$0xff] }
 0x74a   :  { %11206 = vmatpush1.bf16.msra.mxu0 %v14739_v30  ;;  %v14956_v50 = vcombine.high %v9810_v32, %v9814_v18  ;;  %v9674_v41 = vld [vmem:[#allocation4 + $0x308] sm:$0xff]  ;;  %v14955_v63 = vcombine.low %v9810_v32, %v9814_v18 }
 0x74b   :  { %11207 = vmatprep.subr.bf16.mxu0 %v14732_v16  ;;  %v9678_v39 = vld [vmem:[#allocation4 + $0x328] sm:$0xff] }
 0x74c   :  { %11247 = vmatpush1.bf16.msra.mxu1 %v14867_v33  ;;  %v9802_v38 = vld [vmem:[#allocation4 + $0x708] sm:$0xff]  ;;  %v14820_v17 = vcombine.high %v9674_v41, %v9678_v39  ;;  %v14819_v43 = vcombine.low %v9674_v41, %v9678_v39  ;;  %v9767_v41 = vld [vmem:[#allocation4 + $0x5f0] sm:$0xff] }
 0x74d   :  { %11248 = vmatprep.subr.bf16.mxu1 %v14860_v51  ;;  %v9806_v60 = vld [vmem:[#allocation4 + $0x728] sm:$0xff] }
 0x74e   :  { %11208 = vmatpush1.bf16.msra.mxu0 %v14731_v34  ;;  %v14948_v30 = vcombine.high %v9802_v38, %v9806_v60  ;;  %v9666_v33 = vld [vmem:[#allocation4 + $0x2c8] sm:$0xff]  ;;  %v14947_v44 = vcombine.low %v9802_v38, %v9806_v60 }
 0x74f   :  { %11209 = vmatprep.subr.bf16.mxu0 %v14724_v53  ;;  %v9670_v16 = vld [vmem:[#allocation4 + $0x2e8] sm:$0xff] }
 0x750   :  { %11249 = vmatpush1.bf16.msra.mxu1 %v14859_v59  ;;  %v9794_v51 = vld [vmem:[#allocation4 + $0x6c8] sm:$0xff]  ;;  %v14812_v47 = vcombine.high %v9666_v33, %v9670_v16  ;;  %v14811_v37 = vcombine.low %v9666_v33, %v9670_v16  ;;  %v9759_v33 = vld [vmem:[#allocation4 + $0x5b0] sm:$0xff] }
 0x751   :  { %11250 = vmatprep.subr.bf16.mxu1 %v14852_v6  ;;  %v9798_v31 = vld [vmem:[#allocation4 + $0x6e8] sm:$0xff] }
 0x752   :  { %11210 = vmatpush1.bf16.msra.mxu0 %v14723_v4  ;;  %v14940_v34 = vcombine.high %v9794_v51, %v9798_v31  ;;  %v9658_v59 = vld [vmem:[#allocation4 + $0x288] sm:$0xff]  ;;  %v14939_v2 = vcombine.low %v9794_v51, %v9798_v31 }
 0x753   :  { %11211 = vmatprep.subr.bf16.mxu0 %v14844_v46  ;;  %v9662_v53 = vld [vmem:[#allocation4 + $0x2a8] sm:$0xff] }
 0x754   :  { %11251 = vmatpush1.bf16.msra.mxu1 %v14851_v22  ;;  %v9786_v6 = vld [vmem:[#allocation4 + $0x688] sm:$0xff]  ;;  %v14804_v26 = vcombine.high %v9658_v59, %v9662_v53  ;;  %v14803_v29 = vcombine.low %v9658_v59, %v9662_v53  ;;  %v9751_v59 = vld [vmem:[#allocation4 + $0x570] sm:$0xff] }
 0x755   :  { %11252 = vmatprep.subr.bf16.mxu1 %v14972_v40  ;;  %v9790_v61 = vld [vmem:[#allocation4 + $0x6a8] sm:$0xff] }
 0x756   :  { %11212 = vmatpush2.bf16.msra.mxu0 %v14843_v3  ;;  %v14932_v4 = vcombine.high %v9786_v6, %v9790_v61  ;;  %v9650_v22 = vld [vmem:[#allocation4 + $0x248] sm:$0xff]  ;;  %v14931_v24 = vcombine.low %v9786_v6, %v9790_v61 }
 0x757   :  { %11213 = vmatprep.subr.bf16.mxu0 %v14836_v10  ;;  %v9654_v46 = vld [vmem:[#allocation4 + $0x268] sm:$0xff] }
 0x758   :  { %11253 = vmatpush2.bf16.msra.mxu1 %v14971_v57  ;;  %v9778_v40 = vld [vmem:[#allocation4 + $0x648] sm:$0xff]  ;;  %v14796_v45 = vcombine.high %v9650_v22, %v9654_v46  ;;  %v14795_v11 = vcombine.low %v9650_v22, %v9654_v46  ;;  %v9743_v22 = vld [vmem:[#allocation4 + $0x530] sm:$0xff] }
 0x759   :  { %11254 = vmatprep.subr.bf16.mxu1 %v14964_v0  ;;  %v9782_v21 = vld [vmem:[#allocation4 + $0x668] sm:$0xff] }
 0x75a   :  { %11214 = vmatpush2.bf16.msra.mxu0 %v14835_v35  ;;  %v14924_v3 = vcombine.high %v9778_v40, %v9782_v21  ;;  %v9642_v57 = vld [vmem:[#allocation4 + $0x208] sm:$0xff]  ;;  %v14923_v32 = vcombine.low %v9778_v40, %v9782_v21 }
 0x75b   :  { %11215 = vmatprep.subr.bf16.mxu0 %v14828_v12  ;;  %v9646_v10 = vld [vmem:[#allocation4 + $0x228] sm:$0xff]  ;;  %v9639_v12 = vld [vmem:[#allocation4 + $0x1f0] sm:$0xff] }
 0x75c   :  { %11255 = vmatpush2.bf16.msra.mxu1 %v14963_v1  ;;  %v9770_v0 = vld [vmem:[#allocation4 + $0x608] sm:$0xff]  ;;  %v14788_v18 = vcombine.high %v9642_v57, %v9646_v10  ;;  %v9635_v1 = vld [vmem:[#allocation4 + $0x1d0] sm:$0xff]  ;;  %v14787_v39 = vcombine.low %v9642_v57, %v9646_v10 }
 0x75d   :  { %11256 = vmatprep.subr.bf16.mxu1 %v14956_v50  ;;  %v9774_v9 = vld [vmem:[#allocation4 + $0x628] sm:$0xff]  ;;  %v9763_v50 = vld [vmem:[#allocation4 + $0x5d0] sm:$0xff]  ;;  %v14782_v60 = vcombine.high %v9635_v1, %v9639_v12  ;;  %v14781_v16 = vcombine.low %v9635_v1, %v9639_v12 }
 0x75e   :  { %11216 = vmatpush2.bf16.msra.mxu0 %v14827_v23  ;;  %v14916_v35 = vcombine.high %v9770_v0, %v9774_v9  ;;  %v14915_v38 = vcombine.low %v9770_v0, %v9774_v9  ;;  %v14910_v23 = vcombine.high %v9763_v50, %v9767_v41  ;;  %v14909_v51 = vcombine.low %v9763_v50, %v9767_v41  ;;  %v9735_v57 = vld [vmem:[#allocation4 + $0x4f0] sm:$0xff] }
 0x75f   :  { %11217 = vmatprep.subr.bf16.mxu0 %v14820_v17  ;;  %v9631_v17 = vld [vmem:[#allocation4 + $0x1b0] sm:$0xff] }
 0x760   :  { %11257 = vmatpush2.bf16.msra.mxu1 %v14955_v63  ;;  %v9627_v63 = vld [vmem:[#allocation4 + $0x190] sm:$0xff] }
 0x761   :  { %11258 = vmatprep.subr.bf16.mxu1 %v14948_v30  ;;  %v9755_v30 = vld [vmem:[#allocation4 + $0x590] sm:$0xff]  ;;  %v14774_v31 = vcombine.high %v9627_v63, %v9631_v17  ;;  %v14773_v53 = vcombine.low %v9627_v63, %v9631_v17 }
 0x762   :  { %11218 = vmatpush2.bf16.msra.mxu0 %v14819_v43  ;;  %v14902_v43 = vcombine.high %v9755_v30, %v9759_v33  ;;  %v14901_v6 = vcombine.low %v9755_v30, %v9759_v33  ;;  %v9727_v1 = vld [vmem:[#allocation4 + $0x4b0] sm:$0xff] }
 0x763   :  { %11219 = vmatprep.subr.bf16.mxu0 %v14812_v47  ;;  %v9623_v47 = vld [vmem:[#allocation4 + $0x170] sm:$0xff] }
 0x764   :  { %11259 = vmatpush2.bf16.msra.mxu1 %v14947_v44  ;;  %v9619_v44 = vld [vmem:[#allocation4 + $0x150] sm:$0xff] }
 0x765   :  { %11260 = vmatprep.subr.bf16.mxu1 %v14940_v34  ;;  %v9747_v34 = vld [vmem:[#allocation4 + $0x550] sm:$0xff]  ;;  %v14766_v61 = vcombine.high %v9619_v44, %v9623_v47  ;;  %v14765_v46 = vcombine.low %v9619_v44, %v9623_v47 }
 0x766   :  { %11220 = vmatpush2.bf16.msra.mxu0 %v14811_v37  ;;  %v14894_v37 = vcombine.high %v9747_v34, %v9751_v59  ;;  %v14893_v40 = vcombine.low %v9747_v34, %v9751_v59  ;;  %v9719_v63 = vld [vmem:[#allocation4 + $0x470] sm:$0xff] }
 0x767   :  { %11221 = vmatprep.subr.bf16.mxu0 %v14804_v26  ;;  %v9615_v26 = vld [vmem:[#allocation4 + $0x130] sm:$0xff] }
 0x768   :  { %11261 = vmatpush2.bf16.msra.mxu1 %v14939_v2  ;;  %v9611_v2 = vld [vmem:[#allocation4 + $0x110] sm:$0xff] }
 0x769   :  { %11262 = vmatprep.subr.bf16.mxu1 %v14932_v4  ;;  %v9739_v4 = vld [vmem:[#allocation4 + $0x510] sm:$0xff]  ;;  %v14758_v21 = vcombine.high %v9611_v2, %v9615_v26  ;;  %v14757_v10 = vcombine.low %v9611_v2, %v9615_v26 }
 0x76a   :  { %11222 = vmatpush2.bf16.msra.mxu0 %v14803_v29  ;;  %v14886_v29 = vcombine.high %v9739_v4, %v9743_v22  ;;  %v14885_v0 = vcombine.low %v9739_v4, %v9743_v22  ;;  %v9711_v44 = vld [vmem:[#allocation4 + $0x430] sm:$0xff] }
 0x76b   :  { %11223 = vmatprep.subr.bf16.mxu0 %v14796_v45  ;;  %v9607_v45 = vld [vmem:[#allocation4 + $0xf0] sm:$0xff] }
 0x76c   :  { %11263 = vmatpush2.bf16.msra.mxu1 %v14931_v24  ;;  %v9603_v24 = vld [vmem:[#allocation4 + $0xd0] sm:$0xff] }
 0x76d   :  { %11264 = vmatprep.subr.bf16.mxu1 %v14924_v3  ;;  %v9731_v3 = vld [vmem:[#allocation4 + $0x4d0] sm:$0xff]  ;;  %v14750_v9 = vcombine.high %v9603_v24, %v9607_v45  ;;  %v14749_v12 = vcombine.low %v9603_v24, %v9607_v45 }
 0x76e   :  { %11224 = vmatpush2.bf16.msra.mxu0 %v14795_v11  ;;  %v14878_v11 = vcombine.high %v9731_v3, %v9735_v57  ;;  %v14877_v50 = vcombine.low %v9731_v3, %v9735_v57  ;;  %v9831_v2 = vld [vmem:[#allocation4 + $0x7f0] sm:$0xff] }
 0x76f   :  { %11225 = vmatprep.subr.bf16.mxu0 %v14788_v18  ;;  %v9599_v18 = vld [vmem:[#allocation4 + $0xb0] sm:$0xff] }
 0x770   :  { %11265 = vmatpush2.bf16.msra.mxu1 %v14923_v32  ;;  %v9595_v32 = vld [vmem:[#allocation4 + $0x90] sm:$0xff] }
 0x771   :  { %11266 = vmatprep.subr.bf16.mxu1 %v14916_v35  ;;  %v9723_v35 = vld [vmem:[#allocation4 + $0x490] sm:$0xff]  ;;  %v14742_v41 = vcombine.high %v9595_v32, %v9599_v18  ;;  %v14741_v17 = vcombine.low %v9595_v32, %v9599_v18 }
 0x772   :  { %11226 = vmatpush2.bf16.msra.mxu0 %v14787_v39  ;;  %v14870_v39 = vcombine.high %v9723_v35, %v9727_v1  ;;  %v14869_v30 = vcombine.low %v9723_v35, %v9727_v1  ;;  %v9823_v24 = vld [vmem:[#allocation4 + $0x7b0] sm:$0xff] }
 0x773   :  { %11277 = vmatprep.subr.bf16.mxu0 %v14782_v60  ;;  %v9591_v60 = vld [vmem:[#allocation4 + $0x70] sm:$0xff] }
 0x774   :  { %11267 = vmatpush2.bf16.msra.mxu1 %v14915_v38  ;;  %v9587_v38 = vld [vmem:[#allocation4 + $0x50] sm:$0xff] }
 0x775   :  { %11318 = vmatprep.subr.bf16.mxu1 %v14910_v23  ;;  %11228 = vmatmul.mubr.bf16.vlgmr.msra.gmra.mxu0 %v16579_v42  ;;  %v9715_v23 = vld [vmem:[#allocation4 + $0x450] sm:$0xff]  ;;  %v14734_v33 = vcombine.high %v9587_v38, %v9591_v60  ;;  %v14733_v47 = vcombine.low %v9587_v38, %v9591_v60 }
 0x776   :  { %11278 = vmatpush1.bf16.msra.mxu0 %v14781_v16  ;;  %11309 = vmatprep.mubr.bf16.mxu0 %v16570_v8  ;;  %v14862_v16 = vcombine.high %v9715_v23, %v9719_v63  ;;  %v14861_v34 = vcombine.low %v9715_v23, %v9719_v63  ;;  %v9815_v32 = vld [vmem:[#allocation4 + $0x770] sm:$0xff] }
 0x777   :  { %11269 = vmatmul.mubr.bf16.vlgmr.msra.gmra.mxu1 %v16584_v19  ;;  %11279 = vmatprep.subr.bf16.mxu0 %v14774_v31  ;;  %v9583_v31 = vld [vmem:[#allocation4 + $0x30] sm:$0xff] }
 0x778   :  { %11319 = vmatpush1.bf16.msra.mxu1 %v14909_v51  ;;  %11350 = vmatprep.mubr.bf16.mxu1 %v16572_v13  ;;  %v9579_v51 = vld [vmem:[#allocation4 + $0x10] sm:$0xff] }
 0x779   :  { %11320 = vmatprep.subr.bf16.mxu1 %v14902_v43  ;;  %v9707_v43 = vld [vmem:[#allocation4 + $0x410] sm:$0xff]  ;;  %v14726_v59 = vcombine.high %v9579_v51, %v9583_v31  ;;  %v14725_v26 = vcombine.low %v9579_v51, %v9583_v31 }
 0x77a   :  { %11280 = vmatpush1.bf16.msra.mxu0 %v14773_v53  ;;  %v14854_v53 = vcombine.high %v9707_v43, %v9711_v44  ;;  %v14853_v4 = vcombine.low %v9707_v43, %v9711_v44  ;;  %v9807_v38 = vld [vmem:[#allocation4 + $0x730] sm:$0xff] }
 0x77b   :  { %11281 = vmatprep.subr.bf16.mxu0 %v14766_v61  ;;  %v9703_v61 = vld [vmem:[#allocation4 + $0x3f0] sm:$0xff] }
 0x77c   :  { %11321 = vmatpush1.bf16.msra.mxu1 %v14901_v6  ;;  %v9699_v6 = vld [vmem:[#allocation4 + $0x3d0] sm:$0xff] }
 0x77d   :  { %11322 = vmatprep.subr.bf16.mxu1 %v14894_v37  ;;  %v9827_v37 = vld [vmem:[#allocation4 + $0x7d0] sm:$0xff]  ;;  %v14846_v22 = vcombine.high %v9699_v6, %v9703_v61  ;;  %v14845_v45 = vcombine.low %v9699_v6, %v9703_v61 }
 0x77e   :  { %11282 = vmatpush1.bf16.msra.mxu0 %v14765_v46  ;;  %v14974_v46 = vcombine.high %v9827_v37, %v9831_v2  ;;  %v14973_v3 = vcombine.low %v9827_v37, %v9831_v2  ;;  %v9799_v51 = vld [vmem:[#allocation4 + $0x6f0] sm:$0xff] }
 0x77f   :  { %11283 = vmatprep.subr.bf16.mxu0 %v14758_v21  ;;  %v9695_v21 = vld [vmem:[#allocation4 + $0x3b0] sm:$0xff] }
 0x780   :  { %11323 = vmatpush1.bf16.msra.mxu1 %v14893_v40  ;;  %v9691_v40 = vld [vmem:[#allocation4 + $0x390] sm:$0xff] }
 0x781   :  { %11324 = vmatprep.subr.bf16.mxu1 %v14886_v29  ;;  %v9819_v29 = vld [vmem:[#allocation4 + $0x790] sm:$0xff]  ;;  %v14838_v57 = vcombine.high %v9691_v40, %v9695_v21  ;;  %v14837_v18 = vcombine.low %v9691_v40, %v9695_v21 }
 0x782   :  { %11284 = vmatpush1.bf16.msra.mxu0 %v14757_v10  ;;  %v14966_v10 = vcombine.high %v9819_v29, %v9823_v24  ;;  %v14965_v35 = vcombine.low %v9819_v29, %v9823_v24  ;;  %v9791_v6 = vld [vmem:[#allocation4 + $0x6b0] sm:$0xff] }
 0x783   :  { %11285 = vmatprep.subr.bf16.mxu0 %v14750_v9  ;;  %v9687_v9 = vld [vmem:[#allocation4 + $0x370] sm:$0xff] }
 0x784   :  { %11325 = vmatpush1.bf16.msra.mxu1 %v14885_v0  ;;  %v9683_v0 = vld [vmem:[#allocation4 + $0x350] sm:$0xff] }
 0x785   :  { %11326 = vmatprep.subr.bf16.mxu1 %v14878_v11  ;;  %v9811_v11 = vld [vmem:[#allocation4 + $0x750] sm:$0xff]  ;;  %v14830_v1 = vcombine.high %v9683_v0, %v9687_v9  ;;  %v14829_v60 = vcombine.low %v9683_v0, %v9687_v9 }
 0x786   :  { %11286 = vmatpush1.bf16.msra.mxu0 %v14749_v12  ;;  %v14958_v12 = vcombine.high %v9811_v11, %v9815_v32  ;;  %v14957_v23 = vcombine.low %v9811_v11, %v9815_v32  ;;  %v9783_v40 = vld [vmem:[#allocation4 + $0x670] sm:$0xff] }
 0x787   :  { %11287 = vmatprep.subr.bf16.mxu0 %v14742_v41  ;;  %v9679_v41 = vld [vmem:[#allocation4 + $0x330] sm:$0xff] }
 0x788   :  { %11327 = vmatpush1.bf16.msra.mxu1 %v14877_v50  ;;  %v9675_v50 = vld [vmem:[#allocation4 + $0x310] sm:$0xff] }
 0x789   :  { %11328 = vmatprep.subr.bf16.mxu1 %v14870_v39  ;;  %v9803_v39 = vld [vmem:[#allocation4 + $0x710] sm:$0xff]  ;;  %v14822_v63 = vcombine.high %v9675_v50, %v9679_v41  ;;  %v14821_v31 = vcombine.low %v9675_v50, %v9679_v41  ;;  %v9768_v50 = vld [vmem:[#allocation4 + $0x5f8] sm:$0xff] }
 0x78a   :  { %11288 = vmatpush1.bf16.msra.mxu0 %v14741_v17  ;;  %v14950_v17 = vcombine.high %v9803_v39, %v9807_v38  ;;  %v14949_v43 = vcombine.low %v9803_v39, %v9807_v38  ;;  %v9775_v0 = vld [vmem:[#allocation4 + $0x630] sm:$0xff] }
 0x78b   :  { %11289 = vmatprep.subr.bf16.mxu0 %v14734_v33  ;;  %v9671_v33 = vld [vmem:[#allocation4 + $0x2f0] sm:$0xff] }
 0x78c   :  { %11329 = vmatpush1.bf16.msra.mxu1 %v14869_v30  ;;  %v9667_v30 = vld [vmem:[#allocation4 + $0x2d0] sm:$0xff] }
 0x78d   :  { %11330 = vmatprep.subr.bf16.mxu1 %v14862_v16  ;;  %v9795_v16 = vld [vmem:[#allocation4 + $0x6d0] sm:$0xff]  ;;  %v14814_v44 = vcombine.high %v9667_v30, %v9671_v33  ;;  %v14813_v61 = vcombine.low %v9667_v30, %v9671_v33  ;;  %v9760_v30 = vld [vmem:[#allocation4 + $0x5b8] sm:$0xff] }
 0x78e   :  { %11290 = vmatpush1.bf16.msra.mxu0 %v14733_v47  ;;  %v14942_v47 = vcombine.high %v9795_v16, %v9799_v51  ;;  %v14941_v37 = vcombine.low %v9795_v16, %v9799_v51 }
 0x78f   :  { %11291 = vmatprep.subr.bf16.mxu0 %v14726_v59  ;;  %v9663_v59 = vld [vmem:[#allocation4 + $0x2b0] sm:$0xff] }
 0x790   :  { %11331 = vmatpush1.bf16.msra.mxu1 %v14861_v34  ;;  %v9659_v34 = vld [vmem:[#allocation4 + $0x290] sm:$0xff] }
 0x791   :  { %11332 = vmatprep.subr.bf16.mxu1 %v14854_v53  ;;  %v9787_v53 = vld [vmem:[#allocation4 + $0x690] sm:$0xff]  ;;  %v14806_v2 = vcombine.high %v9659_v34, %v9663_v59  ;;  %v14805_v21 = vcombine.low %v9659_v34, %v9663_v59  ;;  %v9752_v34 = vld [vmem:[#allocation4 + $0x578] sm:$0xff] }
 0x792   :  { %11292 = vmatpush1.bf16.msra.mxu0 %v14725_v26  ;;  %v14934_v26 = vcombine.high %v9787_v53, %v9791_v6  ;;  %v14933_v29 = vcombine.low %v9787_v53, %v9791_v6 }
 0x793   :  { %11293 = vmatprep.subr.bf16.mxu0 %v14846_v22  ;;  %v9655_v22 = vld [vmem:[#allocation4 + $0x270] sm:$0xff] }
 0x794   :  { %11333 = vmatpush1.bf16.msra.mxu1 %v14853_v4  ;;  %v9651_v4 = vld [vmem:[#allocation4 + $0x250] sm:$0xff] }
 0x795   :  { %11334 = vmatprep.subr.bf16.mxu1 %v14974_v46  ;;  %v9779_v46 = vld [vmem:[#allocation4 + $0x650] sm:$0xff]  ;;  %v14798_v24 = vcombine.high %v9651_v4, %v9655_v22  ;;  %v14797_v9 = vcombine.low %v9651_v4, %v9655_v22  ;;  %v9744_v4 = vld [vmem:[#allocation4 + $0x538] sm:$0xff] }
 0x796   :  { %11294 = vmatpush2.bf16.msra.mxu0 %v14845_v45  ;;  %v14926_v45 = vcombine.high %v9779_v46, %v9783_v40  ;;  %v14925_v11 = vcombine.low %v9779_v46, %v9783_v40 }
 0x797   :  { %11295 = vmatprep.subr.bf16.mxu0 %v14838_v57  ;;  %v9647_v57 = vld [vmem:[#allocation4 + $0x230] sm:$0xff] }
 0x798   :  { %11335 = vmatpush2.bf16.msra.mxu1 %v14973_v3  ;;  %v9643_v3 = vld [vmem:[#allocation4 + $0x210] sm:$0xff] }
 0x799   :  { %11336 = vmatprep.subr.bf16.mxu1 %v14966_v10  ;;  %v9771_v10 = vld [vmem:[#allocation4 + $0x610] sm:$0xff]  ;;  %v14790_v32 = vcombine.high %v9643_v3, %v9647_v57  ;;  %v14789_v41 = vcombine.low %v9643_v3, %v9647_v57  ;;  %v9736_v3 = vld [vmem:[#allocation4 + $0x4f8] sm:$0xff] }
 0x79a   :  { %11296 = vmatpush2.bf16.msra.mxu0 %v14837_v18  ;;  %v14918_v18 = vcombine.high %v9771_v10, %v9775_v0  ;;  %v14917_v39 = vcombine.low %v9771_v10, %v9775_v0  ;;  %v9596_v0 = vld [vmem:[#allocation4 + $0x98] sm:$0xff] }
 0x79b   :  { %11297 = vmatprep.subr.bf16.mxu0 %v14830_v1  ;;  %v9640_v1 = vld [vmem:[#allocation4 + $0x1f8] sm:$0xff] }
 0x79c   :  { %11337 = vmatpush2.bf16.msra.mxu1 %v14965_v35  ;;  %v9636_v35 = vld [vmem:[#allocation4 + $0x1d8] sm:$0xff] }
 0x79d   :  { %11338 = vmatprep.subr.bf16.mxu1 %v14958_v12  ;;  %v9764_v12 = vld [vmem:[#allocation4 + $0x5d8] sm:$0xff]  ;;  %v14784_v38 = vcombine.high %v9636_v35, %v9640_v1  ;;  %v14783_v33 = vcombine.low %v9636_v35, %v9640_v1 }
 0x79e   :  { %11298 = vmatpush2.bf16.msra.mxu0 %v14829_v60  ;;  %v14912_v60 = vcombine.high %v9764_v12, %v9768_v50  ;;  %v14911_v16 = vcombine.low %v9764_v12, %v9768_v50  ;;  %v9588_v50 = vld [vmem:[#allocation4 + $0x58] sm:$0xff] }
 0x79f   :  { %11299 = vmatprep.subr.bf16.mxu0 %v14822_v63  ;;  %v9632_v63 = vld [vmem:[#allocation4 + $0x1b8] sm:$0xff] }
 0x7a0   :  { %11339 = vmatpush2.bf16.msra.mxu1 %v14957_v23  ;;  %v9628_v23 = vld [vmem:[#allocation4 + $0x198] sm:$0xff] }
 0x7a1   :  { %11340 = vmatprep.subr.bf16.mxu1 %v14950_v17  ;;  %v9756_v17 = vld [vmem:[#allocation4 + $0x598] sm:$0xff]  ;;  %v14776_v51 = vcombine.high %v9628_v23, %v9632_v63  ;;  %v14775_v59 = vcombine.low %v9628_v23, %v9632_v63 }
 0x7a2   :  { %11300 = vmatpush2.bf16.msra.mxu0 %v14821_v31  ;;  %v14904_v31 = vcombine.high %v9756_v17, %v9760_v30  ;;  %v14903_v53 = vcombine.low %v9756_v17, %v9760_v30  ;;  %v9580_v30 = vld [vmem:[#allocation4 + $0x18] sm:$0xff] }
 0x7a3   :  { %11301 = vmatprep.subr.bf16.mxu0 %v14814_v44  ;;  %v9624_v44 = vld [vmem:[#allocation4 + $0x178] sm:$0xff] }
 0x7a4   :  { %11341 = vmatpush2.bf16.msra.mxu1 %v14949_v43  ;;  %v9620_v43 = vld [vmem:[#allocation4 + $0x158] sm:$0xff] }
 0x7a5   :  { %11342 = vmatprep.subr.bf16.mxu1 %v14942_v47  ;;  %v9748_v47 = vld [vmem:[#allocation4 + $0x558] sm:$0xff]  ;;  %v14768_v6 = vcombine.high %v9620_v43, %v9624_v44  ;;  %v14767_v22 = vcombine.low %v9620_v43, %v9624_v44 }
 0x7a6   :  { %11302 = vmatpush2.bf16.msra.mxu0 %v14813_v61  ;;  %v14896_v61 = vcombine.high %v9748_v47, %v9752_v34  ;;  %v14895_v46 = vcombine.low %v9748_v47, %v9752_v34  ;;  %v9700_v34 = vld [vmem:[#allocation4 + $0x3d8] sm:$0xff] }
 0x7a7   :  { %11303 = vmatprep.subr.bf16.mxu0 %v14806_v2  ;;  %v9616_v2 = vld [vmem:[#allocation4 + $0x138] sm:$0xff] }
 0x7a8   :  { %11343 = vmatpush2.bf16.msra.mxu1 %v14941_v37  ;;  %v9612_v37 = vld [vmem:[#allocation4 + $0x118] sm:$0xff] }
 0x7a9   :  { %11344 = vmatprep.subr.bf16.mxu1 %v14934_v26  ;;  %v9740_v26 = vld [vmem:[#allocation4 + $0x518] sm:$0xff]  ;;  %v14760_v40 = vcombine.high %v9612_v37, %v9616_v2  ;;  %v14759_v57 = vcombine.low %v9612_v37, %v9616_v2 }
 0x7aa   :  { %11304 = vmatpush2.bf16.msra.mxu0 %v14805_v21  ;;  %v14888_v21 = vcombine.high %v9740_v26, %v9744_v4 }
 0x7ab   :  { %11305 = vmatprep.subr.bf16.mxu0 %v14798_v24  ;;  %v9608_v24 = vld [vmem:[#allocation4 + $0xf8] sm:$0xff] }
 0x7ac   :  { %11345 = vmatpush2.bf16.msra.mxu1 %v14933_v29  ;;  %v9604_v29 = vld [vmem:[#allocation4 + $0xd8] sm:$0xff] }
 0x7ad   :  { %11346 = vmatprep.subr.bf16.mxu1 %v14926_v45  ;;  %v9732_v45 = vld [vmem:[#allocation4 + $0x4d8] sm:$0xff]  ;;  %v14752_v10 = vcombine.high %v9604_v29, %v9608_v24 }
 0x7ae   :  { %11306 = vmatpush2.bf16.msra.mxu0 %v14797_v9  ;;  %v9600_v9 = vld [vmem:[#allocation4 + $0xb8] sm:$0xff]  ;;  %v14879_v35 = vcombine.low %v9732_v45, %v9736_v3 }
 0x7af   :  { %11307 = vmatprep.subr.bf16.mxu0 %v14790_v32  ;;  %v9728_v32 = vld [vmem:[#allocation4 + $0x4b8] sm:$0xff]  ;;  %v14744_v1 = vcombine.high %v9596_v0, %v9600_v9 }
 0x7b0   :  { %11347 = vmatpush2.bf16.msra.mxu1 %v14925_v11  ;;  %v9724_v11 = vld [vmem:[#allocation4 + $0x498] sm:$0xff] }
 0x7b1   :  { %11348 = vmatprep.subr.bf16.mxu1 %v14918_v18  ;;  %v14751_v18 = vcombine.low %v9604_v29, %v9608_v24  ;;  %v14872_v12 = vcombine.high %v9724_v11, %v9728_v32  ;;  %v14871_v23 = vcombine.low %v9724_v11, %v9728_v32  ;;  %v9676_v32 = vld [vmem:[#allocation4 + $0x318] sm:$0xff] }
 0x7b2   :  { %11308 = vmatpush2.bf16.msra.mxu0 %v14789_v41  ;;  %v9592_v41 = vld [vmem:[#allocation4 + $0x78] sm:$0xff] }
 0x7b3   :  { %11359 = vmatprep.subr.bf16.mxu0 %v14784_v38  ;;  %v9720_v38 = vld [vmem:[#allocation4 + $0x478] sm:$0xff]  ;;  %v14736_v63 = vcombine.high %v9588_v50, %v9592_v41 }
 0x7b4   :  { %11349 = vmatpush2.bf16.msra.mxu1 %v14917_v39  ;;  %v9716_v39 = vld [vmem:[#allocation4 + $0x458] sm:$0xff] }
 0x7b5   :  { %11400 = vmatprep.subr.bf16.mxu1 %v14912_v60  ;;  %11310 = vmatmul.mubr.bf16.vlgmr.msra.gmra.mxu0 %v16579_v42  ;;  %v14743_v60 = vcombine.low %v9596_v0, %v9600_v9  ;;  %v14864_v17 = vcombine.high %v9716_v39, %v9720_v38  ;;  %v14863_v43 = vcombine.low %v9716_v39, %v9720_v38  ;;  %v9668_v38 = vld [vmem:[#allocation4 + $0x2d8] sm:$0xff] }
 0x7b6   :  { %11360 = vmatpush1.bf16.msra.mxu0 %v14783_v33  ;;  %11391 = vmatprep.mubr.bf16.mxu0 %v16570_v8  ;;  %v14887_v8 = vcombine.low %v9740_v26, %v9744_v4  ;;  %v9584_v33 = vld [vmem:[#allocation4 + $0x38] sm:$0xff] }
 0x7b7   :  { %11351 = vmatmul.mubr.bf16.vlgmr.msra.gmra.mxu1 %v16584_v19  ;;  %11361 = vmatprep.subr.bf16.mxu0 %v14776_v51  ;;  %v9712_v51 = vld [vmem:[#allocation4 + $0x438] sm:$0xff]  ;;  %v14728_v44 = vcombine.high %v9580_v30, %v9584_v33 }
 0x7b8   :  { %11401 = vmatpush1.bf16.msra.mxu1 %v14911_v16  ;;  %11432 = vmatprep.mubr.bf16.mxu1 %v16572_v13  ;;  %v14880_v13 = vcombine.high %v9732_v45, %v9736_v3  ;;  %v9708_v16 = vld [vmem:[#allocation4 + $0x418] sm:$0xff] }
 0x7b9   :  { %11402 = vmatprep.subr.bf16.mxu1 %v14904_v31  ;;  %v14735_v31 = vcombine.low %v9588_v50, %v9592_v41  ;;  %v14856_v47 = vcombine.high %v9708_v16, %v9712_v51  ;;  %v14855_v37 = vcombine.low %v9708_v16, %v9712_v51  ;;  %v9692_v4 = vld [vmem:[#allocation4 + $0x398] sm:$0xff] }
 0x7ba   :  { %11362 = vmatpush1.bf16.msra.mxu0 %v14775_v59  ;;  %v9704_v59 = vld [vmem:[#allocation4 + $0x3f8] sm:$0xff] }
 0x7bb   :  { %11363 = vmatprep.subr.bf16.mxu0 %v14768_v6  ;;  %v9832_v6 = vld [vmem:[#allocation4 + $0x7f8] sm:$0xff]  ;;  %v14848_v2 = vcombine.high %v9700_v34, %v9704_v59 }
 0x7bc   :  { %11403 = vmatpush1.bf16.msra.mxu1 %v14903_v53  ;;  %v9828_v53 = vld [vmem:[#allocation4 + $0x7d8] sm:$0xff] }
 0x7bd   :  { %11404 = vmatprep.subr.bf16.mxu1 %v14896_v61  ;;  %v14727_v61 = vcombine.low %v9580_v30, %v9584_v33  ;;  %v14976_v26 = vcombine.high %v9828_v53, %v9832_v6  ;;  %v14975_v29 = vcombine.low %v9828_v53, %v9832_v6  ;;  %v9684_v3 = vld [vmem:[#allocation4 + $0x358] sm:$0xff] }
 0x7be   :  { %11364 = vmatpush1.bf16.msra.mxu0 %v14767_v22  ;;  %v9696_v22 = vld [vmem:[#allocation4 + $0x3b8] sm:$0xff] }
 0x7bf   :  { %11365 = vmatprep.subr.bf16.mxu0 %v14760_v40  ;;  %v9824_v40 = vld [vmem:[#allocation4 + $0x7b8] sm:$0xff]  ;;  %v14840_v24 = vcombine.high %v9692_v4, %v9696_v22 }
 0x7c0   :  { %11405 = vmatpush1.bf16.msra.mxu1 %v14895_v46  ;;  %v9820_v46 = vld [vmem:[#allocation4 + $0x798] sm:$0xff] }
 0x7c1   :  { %11406 = vmatprep.subr.bf16.mxu1 %v14888_v21  ;;  %v14847_v21 = vcombine.low %v9700_v34, %v9704_v59  ;;  %v14968_v45 = vcombine.high %v9820_v46, %v9824_v40  ;;  %v14967_v0 = vcombine.low %v9820_v46, %v9824_v40  ;;  %v9660_v51 = vld [vmem:[#allocation4 + $0x298] sm:$0xff] }
 0x7c2   :  { %11366 = vmatpush1.bf16.msra.mxu0 %v14759_v57  ;;  %v9688_v57 = vld [vmem:[#allocation4 + $0x378] sm:$0xff] }
 0x7c3   :  { %11367 = vmatprep.subr.bf16.mxu0 %v14752_v10  ;;  %v9816_v10 = vld [vmem:[#allocation4 + $0x778] sm:$0xff]  ;;  %v14832_v9 = vcombine.high %v9684_v3, %v9688_v57 }
 0x7c4   :  { %11407 = vmatpush1.bf16.msra.mxu1 %v14887_v8  ;;  %v9812_v8 = vld [vmem:[#allocation4 + $0x758] sm:$0xff] }
 0x7c5   :  { %11408 = vmatprep.subr.bf16.mxu1 %v14880_v13  ;;  %v14839_v13 = vcombine.low %v9692_v4, %v9696_v22  ;;  %v14960_v11 = vcombine.high %v9812_v8, %v9816_v10  ;;  %v14959_v50 = vcombine.low %v9812_v8, %v9816_v10  ;;  %v9652_v6 = vld [vmem:[#allocation4 + $0x258] sm:$0xff] }
 0x7c6   :  { %11368 = vmatpush1.bf16.msra.mxu0 %v14751_v18  ;;  %v9680_v18 = vld [vmem:[#allocation4 + $0x338] sm:$0xff] }
 0x7c7   :  { %11369 = vmatprep.subr.bf16.mxu0 %v14744_v1  ;;  %v9808_v1 = vld [vmem:[#allocation4 + $0x738] sm:$0xff]  ;;  %v14824_v41 = vcombine.high %v9676_v32, %v9680_v18 }
 0x7c8   :  { %11409 = vmatpush1.bf16.msra.mxu1 %v14879_v35  ;;  %v9804_v35 = vld [vmem:[#allocation4 + $0x718] sm:$0xff] }
 0x7c9   :  { %11410 = vmatprep.subr.bf16.mxu1 %v14872_v12  ;;  %v14831_v12 = vcombine.low %v9684_v3, %v9688_v57  ;;  %v14952_v39 = vcombine.high %v9804_v35, %v9808_v1  ;;  %v14951_v30 = vcombine.low %v9804_v35, %v9808_v1  ;;  %v9644_v40 = vld [vmem:[#allocation4 + $0x218] sm:$0xff] }
 0x7ca   :  { %11370 = vmatpush1.bf16.msra.mxu0 %v14743_v60  ;;  %v9672_v60 = vld [vmem:[#allocation4 + $0x2f8] sm:$0xff] }
 0x7cb   :  { %11371 = vmatprep.subr.bf16.mxu0 %v14736_v63  ;;  %v9800_v63 = vld [vmem:[#allocation4 + $0x6f8] sm:$0xff]  ;;  %v14816_v33 = vcombine.high %v9668_v38, %v9672_v60 }
 0x7cc   :  { %11411 = vmatpush1.bf16.msra.mxu1 %v14871_v23  ;;  %v9796_v23 = vld [vmem:[#allocation4 + $0x6d8] sm:$0xff] }
 0x7cd   :  { %11412 = vmatprep.subr.bf16.mxu1 %v14864_v17  ;;  %v14823_v17 = vcombine.low %v9676_v32, %v9680_v18  ;;  %v14944_v16 = vcombine.high %v9796_v23, %v9800_v63  ;;  %v14943_v34 = vcombine.low %v9796_v23, %v9800_v63 }
 0x7ce   :  { %11372 = vmatpush1.bf16.msra.mxu0 %v14735_v31  ;;  %v9664_v31 = vld [vmem:[#allocation4 + $0x2b8] sm:$0xff] }
 0x7cf   :  { %11373 = vmatprep.subr.bf16.mxu0 %v14728_v44  ;;  %v9792_v44 = vld [vmem:[#allocation4 + $0x6b8] sm:$0xff]  ;;  %v14808_v59 = vcombine.high %v9660_v51, %v9664_v31 }
 0x7d0   :  { %11413 = vmatpush1.bf16.msra.mxu1 %v14863_v43  ;;  %v9788_v43 = vld [vmem:[#allocation4 + $0x698] sm:$0xff] }
 0x7d1   :  { %11414 = vmatprep.subr.bf16.mxu1 %v14856_v47  ;;  %v14815_v47 = vcombine.low %v9668_v38, %v9672_v60  ;;  %v14936_v53 = vcombine.high %v9788_v43, %v9792_v44  ;;  %v14935_v4 = vcombine.low %v9788_v43, %v9792_v44 }
 0x7d2   :  { %11374 = vmatpush1.bf16.msra.mxu0 %v14727_v61  ;;  %v9656_v61 = vld [vmem:[#allocation4 + $0x278] sm:$0xff] }
 0x7d3   :  { %11375 = vmatprep.subr.bf16.mxu0 %v14848_v2  ;;  %v9784_v2 = vld [vmem:[#allocation4 + $0x678] sm:$0xff]  ;;  %v14800_v22 = vcombine.high %v9652_v6, %v9656_v61 }
 0x7d4   :  { %11415 = vmatpush1.bf16.msra.mxu1 %v14855_v37  ;;  %v9780_v37 = vld [vmem:[#allocation4 + $0x658] sm:$0xff] }
 0x7d5   :  { %11416 = vmatprep.subr.bf16.mxu1 %v14976_v26  ;;  %v14807_v26 = vcombine.low %v9660_v51, %v9664_v31  ;;  %v14928_v46 = vcombine.high %v9780_v37, %v9784_v2  ;;  %v14927_v3 = vcombine.low %v9780_v37, %v9784_v2 }
 0x7d6   :  { %11376 = vmatpush2.bf16.msra.mxu0 %v14847_v21  ;;  %v9648_v21 = vld [vmem:[#allocation4 + $0x238] sm:$0xff] }
 0x7d7   :  { %11377 = vmatprep.subr.bf16.mxu0 %v14840_v24  ;;  %v9776_v24 = vld [vmem:[#allocation4 + $0x638] sm:$0xff]  ;;  %v14792_v57 = vcombine.high %v9644_v40, %v9648_v21  ;;  %v14791_v10 = vcombine.low %v9644_v40, %v9648_v21 }
 0x7d8   :  { %11417 = vmatpush2.bf16.msra.mxu1 %v14975_v29  ;;  %v9772_v29 = vld [vmem:[#allocation4 + $0x618] sm:$0xff] }
 0x7d9   :  { %11418 = vmatprep.subr.bf16.mxu1 %v14968_v45  ;;  %v14799_v45 = vcombine.low %v9652_v6, %v9656_v61  ;;  %v14920_v8 = vcombine.high %v9772_v29, %v9776_v24 }
 0x7da   :  { %11378 = vmatpush2.bf16.msra.mxu0 %v14839_v13  ;;  %v14919_v13 = vcombine.low %v9772_v29, %v9776_v24 }
 0x7db   :  { %11379 = vmatprep.subr.bf16.mxu0 %v14832_v9 }
 0x7dc   :  { %11419 = vmatpush2.bf16.msra.mxu1 %v14967_v0  ;;  %v16598_v0 = vld [vmem:[#allocation11] sm:$0xff] }
 0x7dd   :  { %11420 = vmatprep.subr.bf16.mxu1 %v14960_v11  ;;  %v11446_v18 = vrot.slane %v16598_v0, %v16347_v55 }
 0x7de   :  { %11380 = vmatpush2.bf16.msra.mxu0 %v14831_v12 }
 0x7df   :  { %11381 = vmatprep.subr.bf16.mxu0 %v14824_v41  ;;  %v11450_v41 = vrot.slane %v16598_v0, %v16352_v58 }
 0x7e0   :  { %11421 = vmatpush2.bf16.msra.mxu1 %v14959_v50 }
 0x7e1   :  { %11422 = vmatprep.subr.bf16.mxu1 %v14952_v39 }
 0x7e2   :  { %11382 = vmatpush2.bf16.msra.mxu0 %v14823_v17 }
 0x7e3   :  { %11383 = vmatprep.subr.bf16.mxu0 %v14816_v33 }
 0x7e4   :  { %11423 = vmatpush2.bf16.msra.mxu1 %v14951_v30 }
 0x7e5   :  { %11424 = vmatprep.subr.bf16.mxu1 %v14944_v16 }
 0x7e6   :  { %11384 = vmatpush2.bf16.msra.mxu0 %v14815_v47  ;;  %v11458_v47 = vrot.slane %v16598_v0, %v16382_v54 }
 0x7e7   :  { %11385 = vmatprep.subr.bf16.mxu0 %v14808_v59 }
 0x7e8   :  { %11425 = vmatpush2.bf16.msra.mxu1 %v14943_v34 }
 0x7e9   :  { %11426 = vmatprep.subr.bf16.mxu1 %v14936_v53 }
 0x7ea   :  { %11386 = vmatpush2.bf16.msra.mxu0 %v14807_v26 }
 0x7eb   :  { %11387 = vmatprep.subr.bf16.mxu0 %v14800_v22 }
 0x7ec   :  { %11427 = vmatpush2.bf16.msra.mxu1 %v14935_v4 }
 0x7ed   :  { %11428 = vmatprep.subr.bf16.mxu1 %v14928_v46 }
 0x7ee   :  { %11388 = vmatpush2.bf16.msra.mxu0 %v14799_v45  ;;  %v11466_v45 = vrot.slane %v16598_v0, %v7634_v28  ;;  %v11470_v28 = vrot.slane %v16598_v0, %v7638_v20 }
 0x7ef   :  { %11389 = vmatprep.subr.bf16.mxu0 %v14792_v57 }
 0x7f0   :  { %11429 = vmatpush2.bf16.msra.mxu1 %v14927_v3 }
 0x7f1   :  { %11430 = vmatprep.subr.bf16.mxu1 %v14920_v8 }
 0x7f2   :  { %11390 = vmatpush2.bf16.msra.mxu0 %v14791_v10 }
 0x7f4   :  { %11431 = vmatpush2.bf16.msra.mxu1 %v14919_v13 }
 0x7f5   :  { %v11147_v9 = vpop.f32.mrf.mxu0  ;;  %11392 = vmatmul.mubr.bf16.vlgmr.msra.gmra.mxu0 %v16579_v42 }
 0x7f6   :  { %v11148_v11 = vadd.f32 %v11147_v9, %v16469_v7 }
 0x7f7   :  { %v11188_v32 = vpop.f32.mrf.mxu1  ;;  %11433 = vmatmul.mubr.bf16.vlgmr.msra.gmra.mxu1 %v16584_v19  ;;  %v11149_v35 = vpop.f32.mrf.mxu0 }
 0x7f8   :  { %v11189_v1 = vadd.f32 %v11188_v32, %v11148_v11  ;;  %v11150_v12 = vadd.f32 %v11149_v35, %v16474_v56  ;;  %v11454_v56 = vrot.slane %v16598_v0, %v16379_v52 }
 0x7f9   :  { %v11190_v50 = vpop.f32.mrf.mxu1  ;;  %v11151_v39 = vpop.f32.mrf.mxu0 }
 0x7fa   :  { %v16608_v38 = vadd.f32 %v11446_v18, %v11189_v1  ;;  %v11191_v42 = vadd.f32 %v11190_v50, %v11150_v12 }
 0x7fb   :  { %v11192_v60 = vpop.f32.mrf.mxu1  ;;  %v11152_v7 = vpop.f32.mrf.mxu0 }
 0x7fc   :  { %v11491_v23 = vmax.f32 %v16608_v38, 0.0  ;;  %v11484_v63 = vadd.f32 %v11450_v41, %v11191_v42  ;;  %v11474_v41 = vrot.slane %v16598_v0, %v7642_v27 }
 0x7fd   :  { %v11193_v17 = vpop.f32.mrf.mxu1 }
 0x7fe   :  { %v11492_v30 = vmax.f32 %v11484_v63, 0.0 }
 0x835   :  { %v11229_v19 = vpop.f32.mrf.mxu0 }
 0x836   :  { %v11230_v33 = vadd.f32 %v11229_v19, %v16487_v49 }
 0x837   :  { %v11270_v16 = vpop.f32.mrf.mxu1  ;;  %v11231_v51 = vpop.f32.mrf.mxu0 }
 0x838   :  { %v11271_v31 = vadd.f32 %v11270_v16, %v11230_v33  ;;  %v11232_v43 = vadd.f32 %v11231_v51, %v16492_v62  ;;  %v11462_v62 = vrot.slane %v16598_v0, %v7630_v25 }
 0x839   :  { %v11272_v44 = vpop.f32.mrf.mxu1  ;;  %v11233_v34 = vpop.f32.mrf.mxu0 }
 0x83a   :  { %v16617_v59 = vadd.f32 %v11454_v56, %v11271_v31  ;;  %v11273_v53 = vadd.f32 %v11272_v44, %v11232_v43 }
 0x83b   :  { %v11274_v6 = vpop.f32.mrf.mxu1  ;;  %v11234_v61 = vpop.f32.mrf.mxu0 }
 0x83c   :  { %v11493_v49 = vmax.f32 %v16617_v59, 0.0  ;;  %v11486_v37 = vadd.f32 %v11458_v47, %v11273_v53 }
 0x83d   :  { %v11275_v2 = vpop.f32.mrf.mxu1 }
 0x83e   :  { %v11494_v26 = vmax.f32 %v11486_v37, 0.0 }
 0x875   :  { %v11311_v4 = vpop.f32.mrf.mxu0 }
 0x876   :  { %v11312_v22 = vadd.f32 %v11311_v4, %v16496_v36 }
 0x877   :  { %v11352_v46 = vpop.f32.mrf.mxu1  ;;  %v11313_v40 = vpop.f32.mrf.mxu0 }
 0x878   :  { %v11353_v21 = vadd.f32 %v11352_v46, %v11312_v22  ;;  %v11314_v29 = vadd.f32 %v11313_v40, %v16498_v5 }
 0x879   :  { %v11354_v24 = vpop.f32.mrf.mxu1  ;;  %v11315_v3 = vpop.f32.mrf.mxu0 }
 0x87a   :  { %v16628_v57 = vadd.f32 %v11462_v62, %v11353_v21  ;;  %v11355_v8 = vadd.f32 %v11354_v24, %v11314_v29 }
 0x87b   :  { %v11356_v10 = vpop.f32.mrf.mxu1  ;;  %v11316_v36 = vpop.f32.mrf.mxu0 }
 0x87c   :  { %v11495_v13 = vmax.f32 %v16628_v57, 0.0  ;;  %v16631_v9 = vadd.f32 %v11466_v45, %v11355_v8 }
 0x87d   :  { %v11357_v25 = vpop.f32.mrf.mxu1 }
 0x87e   :  { %v11496_v11 = vmax.f32 %v16631_v9, 0.0 }
 0x8b5   :  { %v11393_v32 = vpop.f32.mrf.mxu0 }
 0x8b6   :  { %v11394_v5 = vadd.f32 %v11393_v32, %v16500_v14 }
 0x8b7   :  { %v11434_v18 = vpop.f32.mrf.mxu1  ;;  %v11395_v35 = vpop.f32.mrf.mxu0 }
 0x8b8   :  { %v11435_v1 = vadd.f32 %v11434_v18, %v11394_v5  ;;  %v11396_v12 = vadd.f32 %v11395_v35, %v16502_v15 }
 0x8b9   :  { %v11436_v50 = vpop.f32.mrf.mxu1  ;;  %v11397_v39 = vpop.f32.mrf.mxu0 }
 0x8ba   :  { %v16642_v42 = vadd.f32 %v11470_v28, %v11435_v1  ;;  %v11437_v60 = vadd.f32 %v11436_v50, %v11396_v12 }
 0x8bb   :  { %v11438_v7 = vpop.f32.mrf.mxu1  ;;  %v11398_v14 = vpop.f32.mrf.mxu0 }
 0x8bc   :  { %v11497_v63 = vmax.f32 %v16642_v42, 0.0  ;;  %v16645_v17 = vadd.f32 %v11474_v41, %v11437_v60 }
 0x8bd   :  { %v11439_v20 = vpop.f32.mrf.mxu1 }
 0x8be   :  { %v11498_v19 = vmax.f32 %v16645_v17, 0.0 }
 0x8bf   :  { %16186 = dma.done.wait [#allocation6 + $0x3], 32768 }
 0x8c0   :  { %16187 = vsyncadd [#allocation6 + $0x3], 4294934528  ;;  %v16648_v15 = vpack.c.bf16 %v11492_v30, %v11492_v30  ;;  %v16650_v48 = vpack.c.bf16 %v11494_v26, %v11494_v26  ;;  %v15630_v27 = vld [vmem:[#allocation5 + $0xe4] ss:$16 sps:$4 sm:$0xff]   ;;  %v15634_v33 = vld [vmem:[#allocation5 + $0xe0] ss:$16 sps:$4 sm:$0xff]   ;;  %v16667_v38 = vpack.c.bf16 %v11496_v11, %v11496_v11 }
 0x8c1   :  { %v15632_v0 = vld [vmem:[#allocation5 + $0x2e4] ss:$16 sps:$4 sm:$0xff]   ;;  %13067 = vmatprep.subr.bf16.mxu0 %v15630_v27  ;;  %v15635_v16 = vld [vmem:[#allocation5 + $0x2e0] ss:$16 sps:$4 sm:$0xff]   ;;  %v15828_v57 = vld [vmem:[#allocation5 + $0xc8] ss:$16 sps:$4 sm:$0xff]  }
 0x8c2   :  { %13099 = vmatprep.mubr.bf16.mxu0 %v16648_v15  ;;  %13140 = vmatprep.mubr.bf16.mxu1 %v16650_v48  ;;  %v15636_v56 = vld [vmem:[#allocation5 + $0xc4] ss:$16 sps:$4 sm:$0xff]   ;;  %v15640_v31 = vld [vmem:[#allocation5 + $0xc0] ss:$16 sps:$4 sm:$0xff]   ;;  %v15836_v42 = vld [vmem:[#allocation5 + $0xac] ss:$16 sps:$4 sm:$0xff]  }
 0x8c3   :  { %13108 = vmatprep.subr.bf16.mxu1 %v15632_v0  ;;  %13068 = vmatpush1.bf16.msra.mxu0 %v15634_v33  ;;  %v15638_v51 = vld [vmem:[#allocation5 + $0x2c4] ss:$16 sps:$4 sm:$0xff]   ;;  %v15641_v30 = vld [vmem:[#allocation5 + $0x2c0] ss:$16 sps:$4 sm:$0xff]  }
 0x8c4   :  { %13109 = vmatpush1.bf16.msra.mxu1 %v15635_v16  ;;  %13069 = vmatprep.subr.bf16.mxu0 %v15636_v56  ;;  %v15642_v43 = vld [vmem:[#allocation5 + $0xa4] ss:$16 sps:$4 sm:$0xff]   ;;  %v15646_v47 = vld [vmem:[#allocation5 + $0xa0] ss:$16 sps:$4 sm:$0xff]  }
 0x8c5   :  { %13110 = vmatprep.subr.bf16.mxu1 %v15638_v51  ;;  %v15644_v44 = vld [vmem:[#allocation5 + $0x2a4] ss:$16 sps:$4 sm:$0xff]   ;;  %v15647_v34 = vld [vmem:[#allocation5 + $0x2a0] ss:$16 sps:$4 sm:$0xff]  }
 0x8c6   :  { %v15648_v53 = vld [vmem:[#allocation5 + $0x84] ss:$16 sps:$4 sm:$0xff]   ;;  %v15652_v61 = vld [vmem:[#allocation5 + $0x80] ss:$16 sps:$4 sm:$0xff]  }
 0x8c7   :  { %13070 = vmatpush1.bf16.msra.mxu0 %v15640_v31  ;;  %v15650_v6 = vld [vmem:[#allocation5 + $0x284] ss:$16 sps:$4 sm:$0xff]   ;;  %v15653_v37 = vld [vmem:[#allocation5 + $0x280] ss:$16 sps:$4 sm:$0xff]  }
 0x8c8   :  { %13111 = vmatpush1.bf16.msra.mxu1 %v15641_v30  ;;  %13071 = vmatprep.subr.bf16.mxu0 %v15642_v43  ;;  %v15654_v2 = vld [vmem:[#allocation5 + $0x64] ss:$16 sps:$4 sm:$0xff]   ;;  %v15658_v4 = vld [vmem:[#allocation5 + $0x60] ss:$16 sps:$4 sm:$0xff]  }
 0x8c9   :  { %13112 = vmatprep.subr.bf16.mxu1 %v15644_v44  ;;  %v15656_v26 = vld [vmem:[#allocation5 + $0x264] ss:$16 sps:$4 sm:$0xff]   ;;  %v15659_v22 = vld [vmem:[#allocation5 + $0x260] ss:$16 sps:$4 sm:$0xff]  }
 0x8ca   :  { %v15660_v46 = vld [vmem:[#allocation5 + $0x44] ss:$16 sps:$4 sm:$0xff]   ;;  %v15664_v40 = vld [vmem:[#allocation5 + $0x40] ss:$16 sps:$4 sm:$0xff]  }
 0x8cb   :  { %13072 = vmatpush1.bf16.msra.mxu0 %v15646_v47  ;;  %v15662_v62 = vld [vmem:[#allocation5 + $0x244] ss:$16 sps:$4 sm:$0xff]   ;;  %v15665_v21 = vld [vmem:[#allocation5 + $0x240] ss:$16 sps:$4 sm:$0xff]  }
 0x8cc   :  { %13113 = vmatpush1.bf16.msra.mxu1 %v15647_v34  ;;  %13073 = vmatprep.subr.bf16.mxu0 %v15648_v53  ;;  %v15666_v29 = vld [vmem:[#allocation5 + $0x24] ss:$16 sps:$4 sm:$0xff]   ;;  %v15670_v45 = vld [vmem:[#allocation5 + $0x20] ss:$16 sps:$4 sm:$0xff]  }
 0x8cd   :  { %13114 = vmatprep.subr.bf16.mxu1 %v15650_v6  ;;  %v15668_v24 = vld [vmem:[#allocation5 + $0x224] ss:$16 sps:$4 sm:$0xff]   ;;  %v15671_v3 = vld [vmem:[#allocation5 + $0x220] ss:$16 sps:$4 sm:$0xff]  }
 0x8ce   :  { %v15672_v8 = vld [vmem:[#allocation5 + $0x4] ss:$16 sps:$4 sm:$0xff]   ;;  %v15676_v36 = vld [vmem:[#allocation5] ss:$16 sps:$4 sm:$0xff]  }
 0x8cf   :  { %13074 = vmatpush1.bf16.msra.mxu0 %v15652_v61  ;;  %v15674_v10 = vld [vmem:[#allocation5 + $0x204] ss:$16 sps:$4 sm:$0xff]   ;;  %v15677_v25 = vld [vmem:[#allocation5 + $0x200] ss:$16 sps:$4 sm:$0xff]  }
 0x8d0   :  { %13115 = vmatpush1.bf16.msra.mxu1 %v15653_v37  ;;  %13075 = vmatprep.subr.bf16.mxu0 %v15654_v2  ;;  %v15678_v32 = vld [vmem:[#allocation5 + $0x1e4] ss:$16 sps:$4 sm:$0xff]   ;;  %v15682_v18 = vld [vmem:[#allocation5 + $0x1e0] ss:$16 sps:$4 sm:$0xff]  }
 0x8d1   :  { %13116 = vmatprep.subr.bf16.mxu1 %v15656_v26  ;;  %v15680_v5 = vld [vmem:[#allocation5 + $0x3e4] ss:$16 sps:$4 sm:$0xff]   ;;  %v15683_v28 = vld [vmem:[#allocation5 + $0x3e0] ss:$16 sps:$4 sm:$0xff]  }
 0x8d2   :  { %v15684_v35 = vld [vmem:[#allocation5 + $0x1c4] ss:$16 sps:$4 sm:$0xff]   ;;  %v15688_v12 = vld [vmem:[#allocation5 + $0x1c0] ss:$16 sps:$4 sm:$0xff]  }
 0x8d3   :  { %13076 = vmatpush1.bf16.msra.mxu0 %v15658_v4  ;;  %v15686_v1 = vld [vmem:[#allocation5 + $0x3c4] ss:$16 sps:$4 sm:$0xff]   ;;  %v15689_v50 = vld [vmem:[#allocation5 + $0x3c0] ss:$16 sps:$4 sm:$0xff]  }
 0x8d4   :  { %13117 = vmatpush1.bf16.msra.mxu1 %v15659_v22  ;;  %13077 = vmatprep.subr.bf16.mxu0 %v15660_v46  ;;  %v15690_v41 = vld [vmem:[#allocation5 + $0x1a4] ss:$16 sps:$4 sm:$0xff]   ;;  %v15694_v60 = vld [vmem:[#allocation5 + $0x1a0] ss:$16 sps:$4 sm:$0xff]   ;;  %v16657_v46 = vpack.c.bf16 %v11491_v23, %v11491_v23  ;;  %v16672_v23 = vpack.c.bf16 %v11498_v19, %v11498_v19 }
 0x8d5   :  { %13118 = vmatprep.subr.bf16.mxu1 %v15662_v62  ;;  %v15692_v39 = vld [vmem:[#allocation5 + $0x3a4] ss:$16 sps:$4 sm:$0xff]   ;;  %v15695_v7 = vld [vmem:[#allocation5 + $0x3a0] ss:$16 sps:$4 sm:$0xff]   ;;  %v16662_v62 = vpack.c.bf16 %v11493_v49, %v11493_v49 }
 0x8d6   :  { %v15696_v14 = vld [vmem:[#allocation5 + $0x184] ss:$16 sps:$4 sm:$0xff]   ;;  %v15700_v27 = vld [vmem:[#allocation5 + $0x180] ss:$16 sps:$4 sm:$0xff]  }
 0x8d7   :  { %13078 = vmatpush1.bf16.msra.mxu0 %v15664_v40  ;;  %v15698_v20 = vld [vmem:[#allocation5 + $0x384] ss:$16 sps:$4 sm:$0xff]   ;;  %v15701_v0 = vld [vmem:[#allocation5 + $0x380] ss:$16 sps:$4 sm:$0xff]  }
 0x8d8   :  { %13119 = vmatpush1.bf16.msra.mxu1 %v15665_v21  ;;  %13079 = vmatprep.subr.bf16.mxu0 %v15666_v29  ;;  %v15702_v33 = vld [vmem:[#allocation5 + $0x164] ss:$16 sps:$4 sm:$0xff]   ;;  %v15706_v56 = vld [vmem:[#allocation5 + $0x160] ss:$16 sps:$4 sm:$0xff]  }
 0x8d9   :  { %13120 = vmatprep.subr.bf16.mxu1 %v15668_v24  ;;  %v15704_v16 = vld [vmem:[#allocation5 + $0x364] ss:$16 sps:$4 sm:$0xff]   ;;  %v15707_v51 = vld [vmem:[#allocation5 + $0x360] ss:$16 sps:$4 sm:$0xff]  }
 0x8da   :  { %v15708_v31 = vld [vmem:[#allocation5 + $0x144] ss:$16 sps:$4 sm:$0xff]   ;;  %v15712_v43 = vld [vmem:[#allocation5 + $0x140] ss:$16 sps:$4 sm:$0xff]  }
 0x8db   :  { %13080 = vmatpush1.bf16.msra.mxu0 %v15670_v45  ;;  %v15710_v30 = vld [vmem:[#allocation5 + $0x344] ss:$16 sps:$4 sm:$0xff]   ;;  %v15713_v44 = vld [vmem:[#allocation5 + $0x340] ss:$16 sps:$4 sm:$0xff]  }
 0x8dc   :  { %13121 = vmatpush1.bf16.msra.mxu1 %v15671_v3  ;;  %13081 = vmatprep.subr.bf16.mxu0 %v15672_v8  ;;  %v15714_v47 = vld [vmem:[#allocation5 + $0x124] ss:$16 sps:$4 sm:$0xff]   ;;  %v15718_v53 = vld [vmem:[#allocation5 + $0x120] ss:$16 sps:$4 sm:$0xff]  }
 0x8dd   :  { %13122 = vmatprep.subr.bf16.mxu1 %v15674_v10  ;;  %v15716_v34 = vld [vmem:[#allocation5 + $0x324] ss:$16 sps:$4 sm:$0xff]   ;;  %v15719_v6 = vld [vmem:[#allocation5 + $0x320] ss:$16 sps:$4 sm:$0xff]  }
 0x8de   :  { %v15720_v61 = vld [vmem:[#allocation5 + $0x104] ss:$16 sps:$4 sm:$0xff]   ;;  %v15724_v2 = vld [vmem:[#allocation5 + $0x100] ss:$16 sps:$4 sm:$0xff]  }
 0x8df   :  { %13082 = vmatpush1.bf16.msra.mxu0 %v15676_v36  ;;  %v15722_v37 = vld [vmem:[#allocation5 + $0x304] ss:$16 sps:$4 sm:$0xff]   ;;  %v15725_v26 = vld [vmem:[#allocation5 + $0x300] ss:$16 sps:$4 sm:$0xff]  }
 0x8e0   :  { %13123 = vmatpush1.bf16.msra.mxu1 %v15677_v25  ;;  %13083 = vmatprep.subr.bf16.mxu0 %v15678_v32  ;;  %v15728_v4 = vld [vmem:[#allocation5 + $0x4e4] ss:$16 sps:$4 sm:$0xff]   ;;  %v15726_v40 = vld [vmem:[#allocation5 + $0x4e0] ss:$16 sps:$4 sm:$0xff]  }
 0x8e1   :  { %13124 = vmatprep.subr.bf16.mxu1 %v15680_v5  ;;  %v15731_v22 = vld [vmem:[#allocation5 + $0x6e4] ss:$16 sps:$4 sm:$0xff]   ;;  %v15729_v21 = vld [vmem:[#allocation5 + $0x6e0] ss:$16 sps:$4 sm:$0xff]  }
 0x8e2   :  { %v15734_v29 = vld [vmem:[#allocation5 + $0x4c4] ss:$16 sps:$4 sm:$0xff]   ;;  %v15732_v59 = vld [vmem:[#allocation5 + $0x4c0] ss:$16 sps:$4 sm:$0xff]  }
 0x8e3   :  { %13084 = vmatpush2.bf16.msra.mxu0 %v15682_v18  ;;  %v15737_v24 = vld [vmem:[#allocation5 + $0x6c4] ss:$16 sps:$4 sm:$0xff]   ;;  %v15735_v49 = vld [vmem:[#allocation5 + $0x6c0] ss:$16 sps:$4 sm:$0xff]  }
 0x8e4   :  { %13125 = vmatpush2.bf16.msra.mxu1 %v15683_v28  ;;  %13085 = vmatprep.subr.bf16.mxu0 %v15684_v35  ;;  %v15740_v45 = vld [vmem:[#allocation5 + $0x4a4] ss:$16 sps:$4 sm:$0xff]   ;;  %v15738_v11 = vld [vmem:[#allocation5 + $0x4a0] ss:$16 sps:$4 sm:$0xff]  }
 0x8e5   :  { %13126 = vmatprep.subr.bf16.mxu1 %v15686_v1  ;;  %v15743_v9 = vld [vmem:[#allocation5 + $0x6a4] ss:$16 sps:$4 sm:$0xff]   ;;  %v15741_v17 = vld [vmem:[#allocation5 + $0x6a0] ss:$16 sps:$4 sm:$0xff]  }
 0x8e6   :  { %v15746_v19 = vld [vmem:[#allocation5 + $0x484] ss:$16 sps:$4 sm:$0xff]   ;;  %v15744_v8 = vld [vmem:[#allocation5 + $0x480] ss:$16 sps:$4 sm:$0xff]  }
 0x8e7   :  { %13086 = vmatpush2.bf16.msra.mxu0 %v15688_v12  ;;  %v15749_v3 = vld [vmem:[#allocation5 + $0x684] ss:$16 sps:$4 sm:$0xff]   ;;  %v15747_v10 = vld [vmem:[#allocation5 + $0x680] ss:$16 sps:$4 sm:$0xff]  }
 0x8e8   :  { %13127 = vmatpush2.bf16.msra.mxu1 %v15689_v50  ;;  %13087 = vmatprep.subr.bf16.mxu0 %v15690_v41  ;;  %v15752_v36 = vld [vmem:[#allocation5 + $0x464] ss:$16 sps:$4 sm:$0xff]   ;;  %v15750_v32 = vld [vmem:[#allocation5 + $0x460] ss:$16 sps:$4 sm:$0xff]  }
 0x8e9   :  { %13128 = vmatprep.subr.bf16.mxu1 %v15692_v39  ;;  %v15755_v25 = vld [vmem:[#allocation5 + $0x664] ss:$16 sps:$4 sm:$0xff]   ;;  %v15753_v5 = vld [vmem:[#allocation5 + $0x660] ss:$16 sps:$4 sm:$0xff]  }
 0x8ea   :  { %v15758_v18 = vld [vmem:[#allocation5 + $0x444] ss:$16 sps:$4 sm:$0xff]   ;;  %v15756_v35 = vld [vmem:[#allocation5 + $0x440] ss:$16 sps:$4 sm:$0xff]  }
 0x8eb   :  { %13088 = vmatpush2.bf16.msra.mxu0 %v15694_v60  ;;  %v15761_v28 = vld [vmem:[#allocation5 + $0x644] ss:$16 sps:$4 sm:$0xff]   ;;  %v15759_v1 = vld [vmem:[#allocation5 + $0x640] ss:$16 sps:$4 sm:$0xff]  }
 0x8ec   :  { %13129 = vmatpush2.bf16.msra.mxu1 %v15695_v7  ;;  %13089 = vmatprep.subr.bf16.mxu0 %v15696_v14  ;;  %v15764_v12 = vld [vmem:[#allocation5 + $0x424] ss:$16 sps:$4 sm:$0xff]   ;;  %v15762_v41 = vld [vmem:[#allocation5 + $0x420] ss:$16 sps:$4 sm:$0xff]  }
 0x8ed   :  { %13130 = vmatprep.subr.bf16.mxu1 %v15698_v20  ;;  %v15767_v50 = vld [vmem:[#allocation5 + $0x624] ss:$16 sps:$4 sm:$0xff]   ;;  %v15765_v39 = vld [vmem:[#allocation5 + $0x620] ss:$16 sps:$4 sm:$0xff]  }
 0x8ee   :  { %v15770_v60 = vld [vmem:[#allocation5 + $0x404] ss:$16 sps:$4 sm:$0xff]   ;;  %v15768_v14 = vld [vmem:[#allocation5 + $0x400] ss:$16 sps:$4 sm:$0xff]  }
 0x8ef   :  { %13090 = vmatpush2.bf16.msra.mxu0 %v15700_v27  ;;  %v15773_v7 = vld [vmem:[#allocation5 + $0x604] ss:$16 sps:$4 sm:$0xff]   ;;  %v15771_v20 = vld [vmem:[#allocation5 + $0x600] ss:$16 sps:$4 sm:$0xff]  }
 0x8f0   :  { %13131 = vmatpush2.bf16.msra.mxu1 %v15701_v0  ;;  %13091 = vmatprep.subr.bf16.mxu0 %v15702_v33  ;;  %v15776_v27 = vld [vmem:[#allocation5 + $0x5e4] ss:$16 sps:$4 sm:$0xff]   ;;  %v15774_v33 = vld [vmem:[#allocation5 + $0x5e0] ss:$16 sps:$4 sm:$0xff]  }
 0x8f1   :  { %13132 = vmatprep.subr.bf16.mxu1 %v15704_v16  ;;  %v15779_v0 = vld [vmem:[#allocation5 + $0x7e4] ss:$16 sps:$4 sm:$0xff]   ;;  %v15777_v16 = vld [vmem:[#allocation5 + $0x7e0] ss:$16 sps:$4 sm:$0xff]  }
 0x8f3   :  { %13092 = vmatpush2.bf16.msra.mxu0 %v15706_v56  ;;  %v15782_v56 = vld [vmem:[#allocation5 + $0x5c4] ss:$16 sps:$4 sm:$0xff]  }
 0x8f4   :  { %13133 = vmatpush2.bf16.msra.mxu1 %v15707_v51  ;;  %13093 = vmatprep.subr.bf16.mxu0 %v15708_v31  ;;  %v15785_v51 = vld [vmem:[#allocation5 + $0x7c4] ss:$16 sps:$4 sm:$0xff]   ;;  %v15780_v31 = vld [vmem:[#allocation5 + $0x5c0] ss:$16 sps:$4 sm:$0xff]  }
 0x8f5   :  { %13134 = vmatprep.subr.bf16.mxu1 %v15710_v30  ;;  %v15783_v30 = vld [vmem:[#allocation5 + $0x7c0] ss:$16 sps:$4 sm:$0xff]  }
 0x8f7   :  { %13094 = vmatpush2.bf16.msra.mxu0 %v15712_v43  ;;  %v15788_v43 = vld [vmem:[#allocation5 + $0x5a4] ss:$16 sps:$4 sm:$0xff]  }
 0x8f8   :  { %13135 = vmatpush2.bf16.msra.mxu1 %v15713_v44  ;;  %13095 = vmatprep.subr.bf16.mxu0 %v15714_v47  ;;  %v15791_v44 = vld [vmem:[#allocation5 + $0x7a4] ss:$16 sps:$4 sm:$0xff]   ;;  %v15786_v47 = vld [vmem:[#allocation5 + $0x5a0] ss:$16 sps:$4 sm:$0xff]  }
 0x8f9   :  { %13136 = vmatprep.subr.bf16.mxu1 %v15716_v34  ;;  %v15789_v34 = vld [vmem:[#allocation5 + $0x7a0] ss:$16 sps:$4 sm:$0xff]  }
 0x8fb   :  { %13096 = vmatpush2.bf16.msra.mxu0 %v15718_v53  ;;  %v15794_v53 = vld [vmem:[#allocation5 + $0x584] ss:$16 sps:$4 sm:$0xff]  }
 0x8fc   :  { %13137 = vmatpush2.bf16.msra.mxu1 %v15719_v6  ;;  %13097 = vmatprep.subr.bf16.mxu0 %v15720_v61  ;;  %v15797_v6 = vld [vmem:[#allocation5 + $0x784] ss:$16 sps:$4 sm:$0xff]   ;;  %v15792_v61 = vld [vmem:[#allocation5 + $0x580] ss:$16 sps:$4 sm:$0xff]  }
 0x8fd   :  { %13138 = vmatprep.subr.bf16.mxu1 %v15722_v37  ;;  %v15795_v37 = vld [vmem:[#allocation5 + $0x780] ss:$16 sps:$4 sm:$0xff]  }
 0x8ff   :  { %13098 = vmatpush2.bf16.msra.mxu0 %v15724_v2  ;;  %v15800_v2 = vld [vmem:[#allocation5 + $0x564] ss:$16 sps:$4 sm:$0xff]  }
 0x900   :  { %13139 = vmatpush2.bf16.msra.mxu1 %v15725_v26  ;;  %13149 = vmatprep.subr.bf16.mxu0 %v15728_v4  ;;  %v15803_v26 = vld [vmem:[#allocation5 + $0x764] ss:$16 sps:$4 sm:$0xff]   ;;  %v15798_v4 = vld [vmem:[#allocation5 + $0x560] ss:$16 sps:$4 sm:$0xff]  }
 0x901   :  { %13190 = vmatprep.subr.bf16.mxu1 %v15731_v22  ;;  %v15801_v22 = vld [vmem:[#allocation5 + $0x760] ss:$16 sps:$4 sm:$0xff]  }
 0x902   :  { %13100 = vmatmul.mubr.bf16.vlgmr.msra.gmra.mxu0 %v16657_v46 }
 0x903   :  { %13141 = vmatmul.mubr.bf16.vlgmr.msra.gmra.mxu1 %v16662_v62  ;;  %13150 = vmatpush1.bf16.msra.mxu0 %v15726_v40  ;;  %v15806_v40 = vld [vmem:[#allocation5 + $0x544] ss:$16 sps:$4 sm:$0xff]  }
 0x904   :  { %13191 = vmatpush1.bf16.msra.mxu1 %v15729_v21  ;;  %13151 = vmatprep.subr.bf16.mxu0 %v15734_v29  ;;  %v15809_v21 = vld [vmem:[#allocation5 + $0x744] ss:$16 sps:$4 sm:$0xff]   ;;  %v15804_v29 = vld [vmem:[#allocation5 + $0x540] ss:$16 sps:$4 sm:$0xff]  }
 0x905   :  { %13192 = vmatprep.subr.bf16.mxu1 %v15737_v24  ;;  %13181 = vmatprep.mubr.bf16.mxu0 %v16667_v38  ;;  %v15807_v24 = vld [vmem:[#allocation5 + $0x740] ss:$16 sps:$4 sm:$0xff]  }
 0x906   :  { %13222 = vmatprep.mubr.bf16.mxu1 %v16672_v23 }
 0x907   :  { %13152 = vmatpush1.bf16.msra.mxu0 %v15732_v59  ;;  %v15812_v59 = vld [vmem:[#allocation5 + $0x524] ss:$16 sps:$4 sm:$0xff]  }
 0x908   :  { %13193 = vmatpush1.bf16.msra.mxu1 %v15735_v49  ;;  %13153 = vmatprep.subr.bf16.mxu0 %v15740_v45  ;;  %v15815_v49 = vld [vmem:[#allocation5 + $0x724] ss:$16 sps:$4 sm:$0xff]   ;;  %v15810_v45 = vld [vmem:[#allocation5 + $0x520] ss:$16 sps:$4 sm:$0xff]  }
 0x909   :  { %13194 = vmatprep.subr.bf16.mxu1 %v15743_v9  ;;  %v15813_v9 = vld [vmem:[#allocation5 + $0x720] ss:$16 sps:$4 sm:$0xff]  }
 0x90b   :  { %13154 = vmatpush1.bf16.msra.mxu0 %v15738_v11  ;;  %v15818_v11 = vld [vmem:[#allocation5 + $0x504] ss:$16 sps:$4 sm:$0xff]  }
 0x90c   :  { %13195 = vmatpush1.bf16.msra.mxu1 %v15741_v17  ;;  %13155 = vmatprep.subr.bf16.mxu0 %v15746_v19  ;;  %v15821_v17 = vld [vmem:[#allocation5 + $0x704] ss:$16 sps:$4 sm:$0xff]   ;;  %v15816_v19 = vld [vmem:[#allocation5 + $0x500] ss:$16 sps:$4 sm:$0xff]  }
 0x90d   :  { %13196 = vmatprep.subr.bf16.mxu1 %v15749_v3  ;;  %v15819_v3 = vld [vmem:[#allocation5 + $0x700] ss:$16 sps:$4 sm:$0xff]  }
 0x90f   :  { %13156 = vmatpush1.bf16.msra.mxu0 %v15744_v8  ;;  %v15824_v8 = vld [vmem:[#allocation5 + $0xec] ss:$16 sps:$4 sm:$0xff]  }
 0x910   :  { %13197 = vmatpush1.bf16.msra.mxu1 %v15747_v10  ;;  %13157 = vmatprep.subr.bf16.mxu0 %v15752_v36  ;;  %v15827_v10 = vld [vmem:[#allocation5 + $0x2ec] ss:$16 sps:$4 sm:$0xff]   ;;  %v16681_v36 = vpack.c.bf16 %v11495_v13, %v11495_v13  ;;  %v15831_v13 = vld [vmem:[#allocation5 + $0x2c8] ss:$16 sps:$4 sm:$0xff]  }
 0x911   :  { %13198 = vmatprep.subr.bf16.mxu1 %v15755_v25  ;;  %v16686_v25 = vpack.c.bf16 %v11497_v63, %v11497_v63  ;;  %v15839_v63 = vld [vmem:[#allocation5 + $0x2ac] ss:$16 sps:$4 sm:$0xff]  }
 0x913   :  { %13158 = vmatpush1.bf16.msra.mxu0 %v15750_v32  ;;  %v15822_v32 = vld [vmem:[#allocation5 + $0xe8] ss:$16 sps:$4 sm:$0xff]  }
 0x914   :  { %13199 = vmatpush1.bf16.msra.mxu1 %v15753_v5  ;;  %13159 = vmatprep.subr.bf16.mxu0 %v15758_v18  ;;  %v15825_v5 = vld [vmem:[#allocation5 + $0x2e8] ss:$16 sps:$4 sm:$0xff]   ;;  %v15830_v18 = vld [vmem:[#allocation5 + $0xcc] ss:$16 sps:$4 sm:$0xff]  }
 0x915   :  { %13200 = vmatprep.subr.bf16.mxu1 %v15761_v28  ;;  %v15833_v28 = vld [vmem:[#allocation5 + $0x2cc] ss:$16 sps:$4 sm:$0xff]  }
 0x917   :  { %13160 = vmatpush1.bf16.msra.mxu0 %v15756_v35  ;;  %v15834_v35 = vld [vmem:[#allocation5 + $0xa8] ss:$16 sps:$4 sm:$0xff]  }
 0x918   :  { %13201 = vmatpush1.bf16.msra.mxu1 %v15759_v1  ;;  %13161 = vmatprep.subr.bf16.mxu0 %v15764_v12  ;;  %v15837_v1 = vld [vmem:[#allocation5 + $0x2a8] ss:$16 sps:$4 sm:$0xff]   ;;  %v15842_v12 = vld [vmem:[#allocation5 + $0x8c] ss:$16 sps:$4 sm:$0xff]  }
 0x919   :  { %13202 = vmatprep.subr.bf16.mxu1 %v15767_v50  ;;  %v15845_v50 = vld [vmem:[#allocation5 + $0x28c] ss:$16 sps:$4 sm:$0xff]  }
 0x91b   :  { %13162 = vmatpush1.bf16.msra.mxu0 %v15762_v41  ;;  %v15840_v41 = vld [vmem:[#allocation5 + $0x88] ss:$16 sps:$4 sm:$0xff]  }
 0x91c   :  { %13203 = vmatpush1.bf16.msra.mxu1 %v15765_v39  ;;  %13163 = vmatprep.subr.bf16.mxu0 %v15770_v60  ;;  %v15843_v39 = vld [vmem:[#allocation5 + $0x288] ss:$16 sps:$4 sm:$0xff]   ;;  %v15848_v60 = vld [vmem:[#allocation5 + $0x6c] ss:$16 sps:$4 sm:$0xff]  }
 0x91d   :  { %13204 = vmatprep.subr.bf16.mxu1 %v15773_v7  ;;  %v15851_v7 = vld [vmem:[#allocation5 + $0x26c] ss:$16 sps:$4 sm:$0xff]  }
 0x91f   :  { %13164 = vmatpush1.bf16.msra.mxu0 %v15768_v14  ;;  %v15846_v14 = vld [vmem:[#allocation5 + $0x68] ss:$16 sps:$4 sm:$0xff]  }
 0x920   :  { %13205 = vmatpush1.bf16.msra.mxu1 %v15771_v20  ;;  %13165 = vmatprep.subr.bf16.mxu0 %v15776_v27  ;;  %v15857_v20 = vld [vmem:[#allocation5 + $0x24c] ss:$16 sps:$4 sm:$0xff]   ;;  %v15852_v27 = vld [vmem:[#allocation5 + $0x48] ss:$16 sps:$4 sm:$0xff]  }
 0x921   :  { %13206 = vmatprep.subr.bf16.mxu1 %v15779_v0  ;;  %v15855_v0 = vld [vmem:[#allocation5 + $0x248] ss:$16 sps:$4 sm:$0xff]  }
 0x923   :  { %13166 = vmatpush2.bf16.msra.mxu0 %v15774_v33  ;;  %v15860_v33 = vld [vmem:[#allocation5 + $0x2c] ss:$16 sps:$4 sm:$0xff]  }
 0x924   :  { %13207 = vmatpush2.bf16.msra.mxu1 %v15777_v16  ;;  %13167 = vmatprep.subr.bf16.mxu0 %v15782_v56  ;;  %v15863_v16 = vld [vmem:[#allocation5 + $0x22c] ss:$16 sps:$4 sm:$0xff]   ;;  %v15858_v56 = vld [vmem:[#allocation5 + $0x28] ss:$16 sps:$4 sm:$0xff]  }
 0x925   :  { %13208 = vmatprep.subr.bf16.mxu1 %v15785_v51  ;;  %v15861_v51 = vld [vmem:[#allocation5 + $0x228] ss:$16 sps:$4 sm:$0xff]  }
 0x927   :  { %13168 = vmatpush2.bf16.msra.mxu0 %v15780_v31  ;;  %v15866_v31 = vld [vmem:[#allocation5 + $0xc] ss:$16 sps:$4 sm:$0xff]  }
 0x928   :  { %13209 = vmatpush2.bf16.msra.mxu1 %v15783_v30  ;;  %13169 = vmatprep.subr.bf16.mxu0 %v15788_v43  ;;  %v15869_v30 = vld [vmem:[#allocation5 + $0x20c] ss:$16 sps:$4 sm:$0xff]   ;;  %v15864_v43 = vld [vmem:[#allocation5 + $0x8] ss:$16 sps:$4 sm:$0xff]  }
 0x929   :  { %13210 = vmatprep.subr.bf16.mxu1 %v15791_v44  ;;  %v15867_v44 = vld [vmem:[#allocation5 + $0x208] ss:$16 sps:$4 sm:$0xff]  }
 0x92b   :  { %13170 = vmatpush2.bf16.msra.mxu0 %v15786_v47  ;;  %v15872_v47 = vld [vmem:[#allocation5 + $0x1ec] ss:$16 sps:$4 sm:$0xff]  }
 0x92c   :  { %13211 = vmatpush2.bf16.msra.mxu1 %v15789_v34  ;;  %13171 = vmatprep.subr.bf16.mxu0 %v15794_v53  ;;  %v15875_v34 = vld [vmem:[#allocation5 + $0x3ec] ss:$16 sps:$4 sm:$0xff]   ;;  %v15870_v53 = vld [vmem:[#allocation5 + $0x1e8] ss:$16 sps:$4 sm:$0xff]  }
 0x92d   :  { %13212 = vmatprep.subr.bf16.mxu1 %v15797_v6  ;;  %v15873_v6 = vld [vmem:[#allocation5 + $0x3e8] ss:$16 sps:$4 sm:$0xff]  }
 0x92f   :  { %13172 = vmatpush2.bf16.msra.mxu0 %v15792_v61  ;;  %v15878_v61 = vld [vmem:[#allocation5 + $0x1cc] ss:$16 sps:$4 sm:$0xff]  }
 0x930   :  { %13213 = vmatpush2.bf16.msra.mxu1 %v15795_v37  ;;  %13173 = vmatprep.subr.bf16.mxu0 %v15800_v2  ;;  %v15881_v37 = vld [vmem:[#allocation5 + $0x3cc] ss:$16 sps:$4 sm:$0xff]   ;;  %v15876_v2 = vld [vmem:[#allocation5 + $0x1c8] ss:$16 sps:$4 sm:$0xff]  }
 0x931   :  { %13214 = vmatprep.subr.bf16.mxu1 %v15803_v26  ;;  %v15879_v26 = vld [vmem:[#allocation5 + $0x3c8] ss:$16 sps:$4 sm:$0xff]  }
 0x933   :  { %13174 = vmatpush2.bf16.msra.mxu0 %v15798_v4  ;;  %v15884_v4 = vld [vmem:[#allocation5 + $0x1ac] ss:$16 sps:$4 sm:$0xff]  }
 0x934   :  { %13215 = vmatpush2.bf16.msra.mxu1 %v15801_v22  ;;  %13175 = vmatprep.subr.bf16.mxu0 %v15806_v40  ;;  %v15887_v22 = vld [vmem:[#allocation5 + $0x3ac] ss:$16 sps:$4 sm:$0xff]   ;;  %v15882_v40 = vld [vmem:[#allocation5 + $0x1a8] ss:$16 sps:$4 sm:$0xff]  }
 0x935   :  { %13216 = vmatprep.subr.bf16.mxu1 %v15809_v21  ;;  %v15885_v21 = vld [vmem:[#allocation5 + $0x3a8] ss:$16 sps:$4 sm:$0xff]  }
 0x937   :  { %13176 = vmatpush2.bf16.msra.mxu0 %v15804_v29  ;;  %v15890_v29 = vld [vmem:[#allocation5 + $0x18c] ss:$16 sps:$4 sm:$0xff]  }
 0x938   :  { %13217 = vmatpush2.bf16.msra.mxu1 %v15807_v24  ;;  %13177 = vmatprep.subr.bf16.mxu0 %v15812_v59  ;;  %v15893_v24 = vld [vmem:[#allocation5 + $0x38c] ss:$16 sps:$4 sm:$0xff]   ;;  %v15888_v59 = vld [vmem:[#allocation5 + $0x188] ss:$16 sps:$4 sm:$0xff]  }
 0x939   :  { %13218 = vmatprep.subr.bf16.mxu1 %v15815_v49  ;;  %v15891_v49 = vld [vmem:[#allocation5 + $0x388] ss:$16 sps:$4 sm:$0xff]  }
 0x93b   :  { %13178 = vmatpush2.bf16.msra.mxu0 %v15810_v45  ;;  %v15896_v45 = vld [vmem:[#allocation5 + $0x16c] ss:$16 sps:$4 sm:$0xff]  }
 0x93c   :  { %13219 = vmatpush2.bf16.msra.mxu1 %v15813_v9  ;;  %13179 = vmatprep.subr.bf16.mxu0 %v15818_v11  ;;  %v15899_v9 = vld [vmem:[#allocation5 + $0x36c] ss:$16 sps:$4 sm:$0xff]   ;;  %v15894_v11 = vld [vmem:[#allocation5 + $0x168] ss:$16 sps:$4 sm:$0xff]  }
 0x93d   :  { %13220 = vmatprep.subr.bf16.mxu1 %v15821_v17  ;;  %v15897_v17 = vld [vmem:[#allocation5 + $0x368] ss:$16 sps:$4 sm:$0xff]  }
 0x93f   :  { %13180 = vmatpush2.bf16.msra.mxu0 %v15816_v19  ;;  %v15902_v19 = vld [vmem:[#allocation5 + $0x14c] ss:$16 sps:$4 sm:$0xff]  }
 0x940   :  { %13221 = vmatpush2.bf16.msra.mxu1 %v15819_v3  ;;  %13231 = vmatprep.subr.bf16.mxu0 %v15824_v8  ;;  %v15905_v3 = vld [vmem:[#allocation5 + $0x34c] ss:$16 sps:$4 sm:$0xff]   ;;  %v15900_v8 = vld [vmem:[#allocation5 + $0x148] ss:$16 sps:$4 sm:$0xff]  }
 0x941   :  { %13272 = vmatprep.subr.bf16.mxu1 %v15827_v10  ;;  %v15903_v10 = vld [vmem:[#allocation5 + $0x348] ss:$16 sps:$4 sm:$0xff]  }
 0x942   :  { %13182 = vmatmul.mubr.bf16.vlgmr.msra.gmra.mxu0 %v16681_v36 }
 0x943   :  { %13223 = vmatmul.mubr.bf16.vlgmr.msra.gmra.mxu1 %v16686_v25  ;;  %13232 = vmatpush1.bf16.msra.mxu0 %v15822_v32  ;;  %v15908_v32 = vld [vmem:[#allocation5 + $0x12c] ss:$16 sps:$4 sm:$0xff]  }
 0x944   :  { %13273 = vmatpush1.bf16.msra.mxu1 %v15825_v5  ;;  %13233 = vmatprep.subr.bf16.mxu0 %v15830_v18  ;;  %v15911_v5 = vld [vmem:[#allocation5 + $0x32c] ss:$16 sps:$4 sm:$0xff]   ;;  %v15906_v18 = vld [vmem:[#allocation5 + $0x128] ss:$16 sps:$4 sm:$0xff]  }
 0x945   :  { %13274 = vmatprep.subr.bf16.mxu1 %v15833_v28  ;;  %13263 = vmatprep.mubr.bf16.mxu0 %v16648_v15  ;;  %v15849_v15 = vld [vmem:[#allocation5 + $0x268] ss:$16 sps:$4 sm:$0xff]  }
 0x946   :  { %13304 = vmatprep.mubr.bf16.mxu1 %v16650_v48  ;;  %v15854_v48 = vld [vmem:[#allocation5 + $0x4c] ss:$16 sps:$4 sm:$0xff]   ;;  %v15909_v28 = vld [vmem:[#allocation5 + $0x328] ss:$16 sps:$4 sm:$0xff]  }
 0x947   :  { %13234 = vmatpush1.bf16.msra.mxu0 %v15828_v57  ;;  %v15914_v57 = vld [vmem:[#allocation5 + $0x10c] ss:$16 sps:$4 sm:$0xff]  }
 0x948   :  { %13275 = vmatpush1.bf16.msra.mxu1 %v15831_v13  ;;  %13235 = vmatprep.subr.bf16.mxu0 %v15836_v42  ;;  %v15917_v13 = vld [vmem:[#allocation5 + $0x30c] ss:$16 sps:$4 sm:$0xff]   ;;  %v15912_v42 = vld [vmem:[#allocation5 + $0x108] ss:$16 sps:$4 sm:$0xff]  }
 0x949   :  { %13276 = vmatprep.subr.bf16.mxu1 %v15839_v63  ;;  %v15915_v63 = vld [vmem:[#allocation5 + $0x308] ss:$16 sps:$4 sm:$0xff]  }
 0x94b   :  { %13236 = vmatpush1.bf16.msra.mxu0 %v15834_v35  ;;  %v15920_v35 = vld [vmem:[#allocation5 + $0x4ec] ss:$16 sps:$4 sm:$0xff]  }
 0x94c   :  { %13277 = vmatpush1.bf16.msra.mxu1 %v15837_v1  ;;  %13237 = vmatprep.subr.bf16.mxu0 %v15842_v12  ;;  %v15923_v1 = vld [vmem:[#allocation5 + $0x6ec] ss:$16 sps:$4 sm:$0xff]   ;;  %v15918_v12 = vld [vmem:[#allocation5 + $0x4e8] ss:$16 sps:$4 sm:$0xff]  }
 0x94d   :  { %13278 = vmatprep.subr.bf16.mxu1 %v15845_v50  ;;  %v15921_v50 = vld [vmem:[#allocation5 + $0x6e8] ss:$16 sps:$4 sm:$0xff]  }
 0x94f   :  { %13238 = vmatpush1.bf16.msra.mxu0 %v15840_v41  ;;  %v15926_v41 = vld [vmem:[#allocation5 + $0x4cc] ss:$16 sps:$4 sm:$0xff]  }
 0x950   :  { %13279 = vmatpush1.bf16.msra.mxu1 %v15843_v39  ;;  %13239 = vmatprep.subr.bf16.mxu0 %v15848_v60  ;;  %v15929_v39 = vld [vmem:[#allocation5 + $0x6cc] ss:$16 sps:$4 sm:$0xff]   ;;  %v15924_v60 = vld [vmem:[#allocation5 + $0x4c8] ss:$16 sps:$4 sm:$0xff]  }
 0x951   :  { %13280 = vmatprep.subr.bf16.mxu1 %v15851_v7  ;;  %v15927_v7 = vld [vmem:[#allocation5 + $0x6c8] ss:$16 sps:$4 sm:$0xff]  }
 0x953   :  { %13240 = vmatpush1.bf16.msra.mxu0 %v15846_v14  ;;  %v15932_v14 = vld [vmem:[#allocation5 + $0x4ac] ss:$16 sps:$4 sm:$0xff]  }
 0x954   :  { %13281 = vmatpush1.bf16.msra.mxu1 %v15849_v15  ;;  %13241 = vmatprep.subr.bf16.mxu0 %v15854_v48  ;;  %v15935_v15 = vld [vmem:[#allocation5 + $0x6ac] ss:$16 sps:$4 sm:$0xff]   ;;  %v15930_v48 = vld [vmem:[#allocation5 + $0x4a8] ss:$16 sps:$4 sm:$0xff]  }
 0x955   :  { %13282 = vmatprep.subr.bf16.mxu1 %v15857_v20  ;;  %v15933_v20 = vld [vmem:[#allocation5 + $0x6a8] ss:$16 sps:$4 sm:$0xff]  }
 0x957   :  { %13242 = vmatpush1.bf16.msra.mxu0 %v15852_v27  ;;  %v15936_v27 = vld [vmem:[#allocation5 + $0x488] ss:$16 sps:$4 sm:$0xff]  }
 0x958   :  { %13283 = vmatpush1.bf16.msra.mxu1 %v15855_v0  ;;  %13243 = vmatprep.subr.bf16.mxu0 %v15860_v33  ;;  %v15939_v0 = vld [vmem:[#allocation5 + $0x688] ss:$16 sps:$4 sm:$0xff]   ;;  %v15944_v33 = vld [vmem:[#allocation5 + $0x46c] ss:$16 sps:$4 sm:$0xff]  }
 0x959   :  { %13284 = vmatprep.subr.bf16.mxu1 %v15863_v16  ;;  %v15947_v16 = vld [vmem:[#allocation5 + $0x66c] ss:$16 sps:$4 sm:$0xff]  }
 0x95b   :  { %13244 = vmatpush1.bf16.msra.mxu0 %v15858_v56  ;;  %v15950_v56 = vld [vmem:[#allocation5 + $0x44c] ss:$16 sps:$4 sm:$0xff]  }
 0x95c   :  { %13285 = vmatpush1.bf16.msra.mxu1 %v15861_v51  ;;  %13245 = vmatprep.subr.bf16.mxu0 %v15866_v31  ;;  %v15953_v51 = vld [vmem:[#allocation5 + $0x64c] ss:$16 sps:$4 sm:$0xff]   ;;  %v15948_v31 = vld [vmem:[#allocation5 + $0x448] ss:$16 sps:$4 sm:$0xff]  }
 0x95d   :  { %13286 = vmatprep.subr.bf16.mxu1 %v15869_v30  ;;  %v15951_v30 = vld [vmem:[#allocation5 + $0x648] ss:$16 sps:$4 sm:$0xff]  }
 0x95f   :  { %13246 = vmatpush1.bf16.msra.mxu0 %v15864_v43  ;;  %v15956_v43 = vld [vmem:[#allocation5 + $0x42c] ss:$16 sps:$4 sm:$0xff]  }
 0x960   :  { %13287 = vmatpush1.bf16.msra.mxu1 %v15867_v44  ;;  %13247 = vmatprep.subr.bf16.mxu0 %v15872_v47  ;;  %v15959_v44 = vld [vmem:[#allocation5 + $0x62c] ss:$16 sps:$4 sm:$0xff]   ;;  %v15954_v47 = vld [vmem:[#allocation5 + $0x428] ss:$16 sps:$4 sm:$0xff]  }
 0x961   :  { %13288 = vmatprep.subr.bf16.mxu1 %v15875_v34  ;;  %v15957_v34 = vld [vmem:[#allocation5 + $0x628] ss:$16 sps:$4 sm:$0xff]  }
 0x963   :  { %13248 = vmatpush2.bf16.msra.mxu0 %v15870_v53  ;;  %v15962_v53 = vld [vmem:[#allocation5 + $0x40c] ss:$16 sps:$4 sm:$0xff]  }
 0x964   :  { %13289 = vmatpush2.bf16.msra.mxu1 %v15873_v6  ;;  %13249 = vmatprep.subr.bf16.mxu0 %v15878_v61  ;;  %v15965_v6 = vld [vmem:[#allocation5 + $0x60c] ss:$16 sps:$4 sm:$0xff]   ;;  %v15960_v61 = vld [vmem:[#allocation5 + $0x408] ss:$16 sps:$4 sm:$0xff]  }
 0x965   :  { %13290 = vmatprep.subr.bf16.mxu1 %v15881_v37  ;;  %v15963_v37 = vld [vmem:[#allocation5 + $0x608] ss:$16 sps:$4 sm:$0xff]  }
 0x967   :  { %13250 = vmatpush2.bf16.msra.mxu0 %v15876_v2  ;;  %v15968_v2 = vld [vmem:[#allocation5 + $0x5ec] ss:$16 sps:$4 sm:$0xff]  }
 0x968   :  { %13291 = vmatpush2.bf16.msra.mxu1 %v15879_v26  ;;  %13251 = vmatprep.subr.bf16.mxu0 %v15884_v4  ;;  %v15971_v26 = vld [vmem:[#allocation5 + $0x7ec] ss:$16 sps:$4 sm:$0xff]   ;;  %v15966_v4 = vld [vmem:[#allocation5 + $0x5e8] ss:$16 sps:$4 sm:$0xff]  }
 0x969   :  { %13292 = vmatprep.subr.bf16.mxu1 %v15887_v22  ;;  %v15969_v22 = vld [vmem:[#allocation5 + $0x7e8] ss:$16 sps:$4 sm:$0xff]  }
 0x96b   :  { %13252 = vmatpush2.bf16.msra.mxu0 %v15882_v40  ;;  %v15974_v40 = vld [vmem:[#allocation5 + $0x5cc] ss:$16 sps:$4 sm:$0xff]  }
 0x96c   :  { %13293 = vmatpush2.bf16.msra.mxu1 %v15885_v21  ;;  %13253 = vmatprep.subr.bf16.mxu0 %v15890_v29  ;;  %v15977_v21 = vld [vmem:[#allocation5 + $0x7cc] ss:$16 sps:$4 sm:$0xff]   ;;  %v15972_v29 = vld [vmem:[#allocation5 + $0x5c8] ss:$16 sps:$4 sm:$0xff]  }
 0x96d   :  { %13294 = vmatprep.subr.bf16.mxu1 %v15893_v24  ;;  %v15975_v24 = vld [vmem:[#allocation5 + $0x7c8] ss:$16 sps:$4 sm:$0xff]  }
 0x96f   :  { %13254 = vmatpush2.bf16.msra.mxu0 %v15888_v59  ;;  %v15980_v59 = vld [vmem:[#allocation5 + $0x5ac] ss:$16 sps:$4 sm:$0xff]  }
 0x970   :  { %13295 = vmatpush2.bf16.msra.mxu1 %v15891_v49  ;;  %13255 = vmatprep.subr.bf16.mxu0 %v15896_v45  ;;  %v15983_v49 = vld [vmem:[#allocation5 + $0x7ac] ss:$16 sps:$4 sm:$0xff]   ;;  %v15978_v45 = vld [vmem:[#allocation5 + $0x5a8] ss:$16 sps:$4 sm:$0xff]  }
 0x971   :  { %13296 = vmatprep.subr.bf16.mxu1 %v15899_v9  ;;  %v15981_v9 = vld [vmem:[#allocation5 + $0x7a8] ss:$16 sps:$4 sm:$0xff]  }
 0x973   :  { %13256 = vmatpush2.bf16.msra.mxu0 %v15894_v11  ;;  %v15986_v11 = vld [vmem:[#allocation5 + $0x58c] ss:$16 sps:$4 sm:$0xff]  }
 0x974   :  { %13297 = vmatpush2.bf16.msra.mxu1 %v15897_v17  ;;  %13257 = vmatprep.subr.bf16.mxu0 %v15902_v19  ;;  %v15989_v17 = vld [vmem:[#allocation5 + $0x78c] ss:$16 sps:$4 sm:$0xff]   ;;  %v15984_v19 = vld [vmem:[#allocation5 + $0x588] ss:$16 sps:$4 sm:$0xff]  }
 0x975   :  { %13298 = vmatprep.subr.bf16.mxu1 %v15905_v3  ;;  %v15987_v3 = vld [vmem:[#allocation5 + $0x788] ss:$16 sps:$4 sm:$0xff]  }
 0x977   :  { %13258 = vmatpush2.bf16.msra.mxu0 %v15900_v8  ;;  %v15992_v8 = vld [vmem:[#allocation5 + $0x56c] ss:$16 sps:$4 sm:$0xff]  }
 0x978   :  { %13299 = vmatpush2.bf16.msra.mxu1 %v15903_v10  ;;  %13259 = vmatprep.subr.bf16.mxu0 %v15908_v32  ;;  %v15995_v10 = vld [vmem:[#allocation5 + $0x76c] ss:$16 sps:$4 sm:$0xff]   ;;  %v15990_v32 = vld [vmem:[#allocation5 + $0x568] ss:$16 sps:$4 sm:$0xff]  }
 0x979   :  { %13300 = vmatprep.subr.bf16.mxu1 %v15911_v5  ;;  %v15993_v5 = vld [vmem:[#allocation5 + $0x768] ss:$16 sps:$4 sm:$0xff]  }
 0x97b   :  { %13260 = vmatpush2.bf16.msra.mxu0 %v15906_v18  ;;  %v15998_v18 = vld [vmem:[#allocation5 + $0x54c] ss:$16 sps:$4 sm:$0xff]  }
 0x97c   :  { %13301 = vmatpush2.bf16.msra.mxu1 %v15909_v28  ;;  %13261 = vmatprep.subr.bf16.mxu0 %v15914_v57  ;;  %v16001_v28 = vld [vmem:[#allocation5 + $0x74c] ss:$16 sps:$4 sm:$0xff]   ;;  %v15996_v57 = vld [vmem:[#allocation5 + $0x548] ss:$16 sps:$4 sm:$0xff]  }
 0x97d   :  { %13302 = vmatprep.subr.bf16.mxu1 %v15917_v13  ;;  %v15999_v13 = vld [vmem:[#allocation5 + $0x748] ss:$16 sps:$4 sm:$0xff]  }
 0x97f   :  { %13262 = vmatpush2.bf16.msra.mxu0 %v15912_v42  ;;  %v16004_v42 = vld [vmem:[#allocation5 + $0x52c] ss:$16 sps:$4 sm:$0xff]  }
 0x980   :  { %13303 = vmatpush2.bf16.msra.mxu1 %v15915_v63  ;;  %13313 = vmatprep.subr.bf16.mxu0 %v15920_v35  ;;  %v16007_v63 = vld [vmem:[#allocation5 + $0x72c] ss:$16 sps:$4 sm:$0xff]   ;;  %v16002_v35 = vld [vmem:[#allocation5 + $0x528] ss:$16 sps:$4 sm:$0xff]  }
 0x981   :  { %13354 = vmatprep.subr.bf16.mxu1 %v15923_v1  ;;  %v16005_v1 = vld [vmem:[#allocation5 + $0x728] ss:$16 sps:$4 sm:$0xff]  }
 0x982   :  { %13264 = vmatmul.mubr.bf16.vlgmr.msra.gmra.mxu0 %v16657_v46  ;;  %v15938_v46 = vld [vmem:[#allocation5 + $0x48c] ss:$16 sps:$4 sm:$0xff]  }
 0x983   :  { %13305 = vmatmul.mubr.bf16.vlgmr.msra.gmra.mxu1 %v16662_v62  ;;  %13314 = vmatpush1.bf16.msra.mxu0 %v15918_v12  ;;  %v15941_v62 = vld [vmem:[#allocation5 + $0x68c] ss:$16 sps:$4 sm:$0xff]  }
 0x984   :  { %13355 = vmatpush1.bf16.msra.mxu1 %v15921_v50  ;;  %13315 = vmatprep.subr.bf16.mxu0 %v15926_v41  ;;  %v16010_v12 = vld [vmem:[#allocation5 + $0x50c] ss:$16 sps:$4 sm:$0xff]   ;;  %v16008_v41 = vld [vmem:[#allocation5 + $0x508] ss:$16 sps:$4 sm:$0xff]  }
 0x985   :  { %13356 = vmatprep.subr.bf16.mxu1 %v15929_v39  ;;  %13345 = vmatprep.mubr.bf16.mxu0 %v16667_v38  ;;  %v15942_v38 = vld [vmem:[#allocation5 + $0x468] ss:$16 sps:$4 sm:$0xff]   ;;  %v16013_v50 = vld [vmem:[#allocation5 + $0x70c] ss:$16 sps:$4 sm:$0xff]  }
 0x986   :  { %13386 = vmatprep.mubr.bf16.mxu1 %v16672_v23  ;;  %v15945_v23 = vld [vmem:[#allocation5 + $0x668] ss:$16 sps:$4 sm:$0xff]  }
 0x987   :  { %13316 = vmatpush1.bf16.msra.mxu0 %v15924_v60  ;;  %v16011_v39 = vld [vmem:[#allocation5 + $0x708] ss:$16 sps:$4 sm:$0xff]  }
 0x988   :  { %13357 = vmatpush1.bf16.msra.mxu1 %v15927_v7  ;;  %13317 = vmatprep.subr.bf16.mxu0 %v15932_v14 }
 0x989   :  { %13358 = vmatprep.subr.bf16.mxu1 %v15935_v15 }
 0x98b   :  { %13318 = vmatpush1.bf16.msra.mxu0 %v15930_v48 }
 0x98c   :  { %13359 = vmatpush1.bf16.msra.mxu1 %v15933_v20  ;;  %13319 = vmatprep.subr.bf16.mxu0 %v15938_v46 }
 0x98d   :  { %13360 = vmatprep.subr.bf16.mxu1 %v15941_v62 }
 0x98f   :  { %13320 = vmatpush1.bf16.msra.mxu0 %v15936_v27  ;;  %v11765_v27 = vld [vmem:[#allocation12] sm:$0xf] }
 0x990   :  { %13361 = vmatpush1.bf16.msra.mxu1 %v15939_v0  ;;  %13321 = vmatprep.subr.bf16.mxu0 %v15944_v33  ;;  %v11770_v0 = vrot.slane %v11765_v27, %v16347_v55  ;;  %v11774_v33 = vrot.slane %v11765_v27, %v16352_v58 }
 0x991   :  { %13362 = vmatprep.subr.bf16.mxu1 %v15947_v16 }
 0x993   :  { %13322 = vmatpush1.bf16.msra.mxu0 %v15942_v38 }
 0x994   :  { %13363 = vmatpush1.bf16.msra.mxu1 %v15945_v23  ;;  %13323 = vmatprep.subr.bf16.mxu0 %v15950_v56 }
 0x995   :  { %13364 = vmatprep.subr.bf16.mxu1 %v15953_v51 }
 0x997   :  { %13324 = vmatpush1.bf16.msra.mxu0 %v15948_v31 }
 0x998   :  { %13365 = vmatpush1.bf16.msra.mxu1 %v15951_v30  ;;  %13325 = vmatprep.subr.bf16.mxu0 %v15956_v43 }
 0x999   :  { %13366 = vmatprep.subr.bf16.mxu1 %v15959_v44 }
 0x99b   :  { %13326 = vmatpush1.bf16.msra.mxu0 %v15954_v47 }
 0x99c   :  { %13367 = vmatpush1.bf16.msra.mxu1 %v15957_v34  ;;  %13327 = vmatprep.subr.bf16.mxu0 %v15962_v53 }
 0x99d   :  { %13368 = vmatprep.subr.bf16.mxu1 %v15965_v6 }
 0x99f   :  { %13328 = vmatpush1.bf16.msra.mxu0 %v15960_v61 }
 0x9a0   :  { %13369 = vmatpush1.bf16.msra.mxu1 %v15963_v37  ;;  %13329 = vmatprep.subr.bf16.mxu0 %v15968_v2 }
 0x9a1   :  { %13370 = vmatprep.subr.bf16.mxu1 %v15971_v26 }
 0x9a3   :  { %13330 = vmatpush2.bf16.msra.mxu0 %v15966_v4 }
 0x9a4   :  { %13371 = vmatpush2.bf16.msra.mxu1 %v15969_v22  ;;  %13331 = vmatprep.subr.bf16.mxu0 %v15974_v40 }
 0x9a5   :  { %13372 = vmatprep.subr.bf16.mxu1 %v15977_v21  ;;  %v11778_v21 = vrot.slane %v11765_v27, %v16379_v52 }
 0x9a7   :  { %13332 = vmatpush2.bf16.msra.mxu0 %v15972_v29  ;;  %v11782_v29 = vrot.slane %v11765_v27, %v16382_v54 }
 0x9a8   :  { %13373 = vmatpush2.bf16.msra.mxu1 %v15975_v24  ;;  %13333 = vmatprep.subr.bf16.mxu0 %v15980_v59 }
 0x9a9   :  { %13374 = vmatprep.subr.bf16.mxu1 %v15983_v49 }
 0x9ab   :  { %13334 = vmatpush2.bf16.msra.mxu0 %v15978_v45 }
 0x9ac   :  { %13375 = vmatpush2.bf16.msra.mxu1 %v15981_v9  ;;  %13335 = vmatprep.subr.bf16.mxu0 %v15986_v11 }
 0x9ad   :  { %13376 = vmatprep.subr.bf16.mxu1 %v15989_v17 }
 0x9af   :  { %13336 = vmatpush2.bf16.msra.mxu0 %v15984_v19 }
 0x9b0   :  { %13377 = vmatpush2.bf16.msra.mxu1 %v15987_v3  ;;  %13337 = vmatprep.subr.bf16.mxu0 %v15992_v8 }
 0x9b1   :  { %13378 = vmatprep.subr.bf16.mxu1 %v15995_v10 }
 0x9b3   :  { %13338 = vmatpush2.bf16.msra.mxu0 %v15990_v32 }
 0x9b4   :  { %13379 = vmatpush2.bf16.msra.mxu1 %v15993_v5  ;;  %13339 = vmatprep.subr.bf16.mxu0 %v15998_v18 }
 0x9b5   :  { %13380 = vmatprep.subr.bf16.mxu1 %v16001_v28 }
 0x9b7   :  { %13340 = vmatpush2.bf16.msra.mxu0 %v15996_v57 }
 0x9b8   :  { %13381 = vmatpush2.bf16.msra.mxu1 %v15999_v13  ;;  %13341 = vmatprep.subr.bf16.mxu0 %v16004_v42 }
 0x9b9   :  { %13382 = vmatprep.subr.bf16.mxu1 %v16007_v63 }
 0x9bb   :  { %13342 = vmatpush2.bf16.msra.mxu0 %v16002_v35 }
 0x9bc   :  { %13383 = vmatpush2.bf16.msra.mxu1 %v16005_v1  ;;  %13343 = vmatprep.subr.bf16.mxu0 %v16010_v12 }
 0x9bd   :  { %13384 = vmatprep.subr.bf16.mxu1 %v16013_v50 }
 0x9bf   :  { %13344 = vmatpush2.bf16.msra.mxu0 %v16008_v41 }
 0x9c0   :  { %13385 = vmatpush2.bf16.msra.mxu1 %v16011_v39 }
 0x9c2   :  { %v13101_v60 = vpop.f32.mrf.mxu0  ;;  %13346 = vmatmul.mubr.bf16.vlgmr.msra.gmra.mxu0 %v16681_v36 }
 0x9c3   :  { %v13142_v7 = vpop.f32.mrf.mxu1  ;;  %13387 = vmatmul.mubr.bf16.vlgmr.msra.gmra.mxu1 %v16686_v25  ;;  %v13102_v16 = vadd.f32 %v13101_v60, %v11770_v0 }
 0x9c4   :  { %v13103_v14 = vpop.f32.mrf.mxu0 }
 0x9c5   :  { %v13144_v15 = vpop.f32.mrf.mxu1  ;;  %v13104_v38 = vadd.f32 %v13103_v14, %v11774_v33  ;;  %v13143_v23 = vadd.f32 %v13142_v7, %v13102_v16 }
 0x9c6   :  { %v13105_v48 = vpop.f32.mrf.mxu0 }
 0x9c7   :  { %v13146_v20 = vpop.f32.mrf.mxu1  ;;  %v13145_v31 = vadd.f32 %v13144_v15, %v13104_v38 }
 0x9c8   :  { %v13106_v46 = vpop.f32.mrf.mxu0 }
 0x9c9   :  { %v13147_v62 = vpop.f32.mrf.mxu1 }
 0xa02   :  { %v13183_v56 = vpop.f32.mrf.mxu0 }
 0xa03   :  { %v13224_v51 = vpop.f32.mrf.mxu1  ;;  %v13184_v36 = vadd.f32 %v13183_v56, %v13143_v23 }
 0xa04   :  { %v13185_v30 = vpop.f32.mrf.mxu0 }
 0xa05   :  { %v13226_v25 = vpop.f32.mrf.mxu1  ;;  %v13225_v43 = vadd.f32 %v13224_v51, %v13184_v36  ;;  %v13186_v44 = vadd.f32 %v13185_v30, %v13145_v31 }
 0xa06   :  { %v13187_v47 = vpop.f32.mrf.mxu0 }
 0xa07   :  { %v13228_v34 = vpop.f32.mrf.mxu1  ;;  %13395 = vst [vmem:[%s16723_s9] sm:$0xff] %v13225_v43  ;;  %v13227_v55 = vadd.f32 %v13226_v25, %v13186_v44 }
 0xa08   :  { %v13188_v53 = vpop.f32.mrf.mxu0 }
 0xa09   :  { %v13229_v58 = vpop.f32.mrf.mxu1  ;;  %13396 = vst [vmem:[%s16723_s9 + $0x8] sm:$0xff] %v13227_v55 }
 0xa42   :  { %v13265_v6 = vpop.f32.mrf.mxu0 }
 0xa43   :  { %v13306_v61 = vpop.f32.mrf.mxu1  ;;  %v13266_v24 = vadd.f32 %v13265_v6, %v11778_v21 }
 0xa44   :  { %v13267_v37 = vpop.f32.mrf.mxu0 }
 0xa45   :  { %v13308_v2 = vpop.f32.mrf.mxu1  ;;  %v13268_v59 = vadd.f32 %v13267_v37, %v11782_v29  ;;  %v13307_v49 = vadd.f32 %v13306_v61, %v13266_v24 }
 0xa46   :  { %v13269_v26 = vpop.f32.mrf.mxu0 }
 0xa47   :  { %v13310_v4 = vpop.f32.mrf.mxu1  ;;  %v13309_v11 = vadd.f32 %v13308_v2, %v13268_v59 }
 0xa48   :  { %v13270_v22 = vpop.f32.mrf.mxu0 }
 0xa49   :  { %v13311_v40 = vpop.f32.mrf.mxu1 }
 0xa82   :  { %v13347_v45 = vpop.f32.mrf.mxu0 }
 0xa83   :  { %v13388_v9 = vpop.f32.mrf.mxu1  ;;  %v13348_v17 = vadd.f32 %v13347_v45, %v13307_v49 }
 0xa84   :  { %v13349_v19 = vpop.f32.mrf.mxu0 }
 0xa85   :  { %v13390_v3 = vpop.f32.mrf.mxu1  ;;  %v13389_v8 = vadd.f32 %v13388_v9, %v13348_v17  ;;  %v13350_v10 = vadd.f32 %v13349_v19, %v13309_v11 }
 0xa86   :  { %v13351_v32 = vpop.f32.mrf.mxu0 }
 0xa87   :  { %v13392_v5 = vpop.f32.mrf.mxu1  ;;  %13397 = vst [vmem:[%s16723_s9 + $0x10] sm:$0xff] %v13389_v8  ;;  %v13391_v52 = vadd.f32 %v13390_v3, %v13350_v10 }
 0xa88   :  { %v13352_v18 = vpop.f32.mrf.mxu0 }
 0xa89   :  { %v13393_v54 = vpop.f32.mrf.mxu1  ;;  %13398 = vst [vmem:[%s16723_s9 + $0x18] sm:$0xff] %v13391_v52 }
 0xa8a   :  { %13403 = vsyncpa [#allocation8], 1 }
 0xa8b   :  { %13404 = vsyncpa [#allocation10], 1 }
 0xa8c   :  { %13405 = vsyncpa [#allocation13], 1 }
 0xa8d   :  { %13406 = vsyncmov [#allocation6] }
 0xa90   :  { %s13407_s10 = vpop.sfrf %13406 }
 0xa91   :  { %p15233_p12 = scmp.ne.s32.totalorder %s13407_s10, 0 }
 0xa93   :  { %13411 = shalt.err (%p15233_p12)  }
 0xa94   :  { %13413 = vsyncmov [#allocation6 + $0x1] }
 0xa97   :  { %s13414_s11 = vpop.sfrf %13413 }
 0xa98   :  { %p15234_p13 = scmp.ne.s32.totalorder %s13414_s11, 0 }
 0xa9a   :  { %13418 = shalt.err (%p15234_p13)  }
 0xa9b   :  { %13420 = vsyncmov [#allocation6 + $0x2] }
 0xa9e   :  { %s13421_s12 = vpop.sfrf %13420 }
 0xa9f   :  { %p15235_p0 = scmp.ne.s32.totalorder %s13421_s12, 0 }
 0xaa1   :  { %13425 = shalt.err (%p15235_p0)  }
 0xaa2   :  { %13427 = vsyncmov [#allocation6 + $0x3] }
 0xaa5   :  { %s13428_s13 = vpop.sfrf %13427 }
 0xaa6   :  { %p15236_p1 = scmp.ne.s32.totalorder %s13428_s13, 0 }
 0xaa8   :  { %13432 = shalt.err (%p15236_p1)  }

</bundles_post_ra>
